<compile_context>
chip_gen: v7x
topology: tpu7x:2x2x1
jax: 0.10.0
libtpu: 0.0.40
codegen_flags: <defaults>
</compile_context>

<pallas_src>
import functools

import jax
import jax.numpy as jnp
from jax import lax
from jax.experimental import pallas as pl
from jax.experimental.pallas import tpu as pltpu

ALPHA = 0.5
LAYERS = 3
LANE = 128                     # feature-dim padding target (lane-dense stores)
ROW_TILE = 128                 # parallel row tile (keeps >=2 blocks for 2-TC chips)
NEG_INF = -1e30
VMEM_SOFT_CAP = 32 << 20       # scoped-VMEM request cap for tiled kernels
FUSED_DWR_VMEM_CAP = 40 << 20  # A-resident DWR budget (headroom under v7x 64 MiB)


def _round_up(n, m):
    return ((n + m - 1) // m) * m


def _pad2(x, rows, cols):
    r, c = x.shape
    return jnp.pad(x, ((0, rows - r), (0, cols - c)))


def _vmem_limit(nbytes, cap=VMEM_SOFT_CAP):
    return int(min(max(2 * nbytes, 8 << 20), cap))


def _pick_tk(np_):
    # largest MXU-friendly reduction tile that divides the padded node count
    for t in (256, 128):
        if np_ % t == 0:
            return t
    return np_


# ----------------------------------------------------------------------------
# Pallas kernels
# ----------------------------------------------------------------------------
def _gcn_kernel(a_ref, x_ref, w_ref, b_ref, *refs,
                activation, with_softmax, valid_cols, single_k):
    """GCN layer  Y = act( (A_hat @ X) @ W + b )  [+ fused row softmax].

    Inner loop only accumulates A_hat @ X (f32); the @W / bias / activation /
    softmax epilogue runs once per row tile (k == last, or unconditionally in
    the single-k fast path).
    """

    def epilogue(ax, o_ref, s_ref):
        y = jnp.dot(ax.astype(jnp.bfloat16), w_ref[...],
                    preferred_element_type=jnp.float32) + b_ref[...]
        tm_, fp = y.shape
        lane = lax.broadcasted_iota(jnp.int32, (tm_, fp), 1)
        valid = lane < valid_cols
        if activation == "relu":
            y = jnp.maximum(y, 0.0)
        elif activation == "sigmoid":
            # sigmoid(0) = 0.5 on padded feature lanes would leak into the
            # downstream cosine-similarity reductions -> zero them.
            y = jnp.where(valid, jax.nn.sigmoid(y), 0.0)
        elif activation == "tanh":
            y = jnp.tanh(y)
        o_ref[...] = y.astype(o_ref.dtype)
        if with_softmax:
            logits = jnp.where(valid, y, NEG_INF)     # exclude padded lanes
            m = jnp.max(logits, axis=1, keepdims=True)
            e = jnp.exp(logits - m)
            denom = jnp.sum(e, axis=1, keepdims=True)
            s_ref[...] = (e * pl.reciprocal(denom, approx=True)).astype(s_ref.dtype)

    if single_k:
        if with_softmax:
            o_ref, s_ref = refs
        else:
            (o_ref,) = refs
            s_ref = None
        ax = jnp.dot(a_ref[...], x_ref[...], preferred_element_type=jnp.float32)
        epilogue(ax, o_ref, s_ref)
        return

    if with_softmax:
        o_ref, s_ref, acc_ref = refs
    else:
        o_ref, acc_ref = refs
        s_ref = None

    k = pl.program_id(1)

    @pl.when(k == 0)
    def _():
        acc_ref[...] = jnp.zeros_like(acc_ref)

    acc_ref[...] += jnp.dot(a_ref[...], x_ref[...],
                            preferred_element_type=jnp.float32)

    @pl.when(k == pl.num_programs(1) - 1)
    def _():
        epilogue(acc_ref[...], o_ref, s_ref)


def _dwr_fused_kernel(a_ref, x_ref, o_ref, *, layers):
    """All 3 DWR propagation steps with A_lap and x resident in VMEM:
         x_out = A_lap @ x ; w = cos(x_out, x) ; x = relu(alpha*w*x_out + x)
       accumulated mean over the stacked steps written in the epilogue.
    """
    eps2 = jnp.float32(1e-16)   # (1e-8)^2: clamp each norm at eps, like torch
    a = a_ref[...]
    x = x_ref[...]
    acc = jnp.zeros_like(x)
    for _ in range(layers):
        x_out = jnp.dot(a, x.astype(jnp.bfloat16),
                        preferred_element_type=jnp.float32)
        dot = jnp.sum(x_out * x, axis=1, keepdims=True)
        s1 = jnp.sum(x_out * x_out, axis=1, keepdims=True)
        s2 = jnp.sum(x * x, axis=1, keepdims=True)
        w = dot * lax.rsqrt(jnp.maximum(s1, eps2)) * lax.rsqrt(jnp.maximum(s2, eps2))
        x = jnp.maximum(ALPHA * (w * x_out) + x, 0.0)
        acc = acc + x
    o_ref[...] = acc * jnp.float32(1.0 / layers)


def _dwr_step_kernel(a_ref, xk_ref, xi_ref, o_ref, acc_ref):
    """Fallback: one DWR step for a row block (A_lap streamed from HBM)."""
    k = pl.program_id(1)

    @pl.when(k == 0)
    def _():
        acc_ref[...] = jnp.zeros_like(acc_ref)

    acc_ref[...] += jnp.dot(a_ref[...], xk_ref[...],
                            preferred_element_type=jnp.float32)

    @pl.when(k == pl.num_programs(1) - 1)
    def _():
        x_out = acc_ref[...]
        x_in = xi_ref[...]
        eps2 = jnp.float32(1e-16)
        dot = jnp.sum(x_out * x_in, axis=1, keepdims=True)
        s1 = jnp.sum(x_out * x_out, axis=1, keepdims=True)
        s2 = jnp.sum(x_in * x_in, axis=1, keepdims=True)
        w = dot * lax.rsqrt(jnp.maximum(s1, eps2)) * lax.rsqrt(jnp.maximum(s2, eps2))
        o_ref[...] = jnp.maximum(ALPHA * (w * x_out) + x_in, 0.0).astype(o_ref.dtype)


# ----------------------------------------------------------------------------
# Kernel wrappers
# ----------------------------------------------------------------------------
def gcn_layer(a_pad_bf16, x_pad_bf16, w_pad_bf16, b_pad_f32, *,
              activation="none", with_softmax=False, valid_cols,
              out_dtype=jnp.float32, tm=None, tk=None):
    np_ = a_pad_bf16.shape[0]
    fin_p = x_pad_bf16.shape[1]
    fout_p = w_pad_bf16.shape[1]

    tm = tm or min(ROW_TILE, np_)
    tk = tk or _pick_tk(np_)
    nk = np_ // tk
    single_k = nk == 1

    out_shape = [jax.ShapeDtypeStruct((np_, fout_p), out_dtype)]
    if with_softmax:
        out_shape.append(jax.ShapeDtypeStruct((np_, fout_p), jnp.float32))

    if single_k:
        grid = (np_ // tm,)
        in_specs = [
            pl.BlockSpec((tm, tk), lambda i: (i, 0)),           # A_hat row tile
            pl.BlockSpec((tk, fin_p), lambda i: (0, 0)),        # X (full k)
            pl.BlockSpec((fin_p, fout_p), lambda i: (0, 0)),    # W (full)
            pl.BlockSpec((1, fout_p), lambda i: (0, 0)),        # bias
        ]
        out_specs = [pl.BlockSpec((tm, fout_p), lambda i: (i, 0))
                     for _ in out_shape]
        scratch = []
        semantics = ("parallel",)
    else:
        grid = (np_ // tm, nk)
        in_specs = [
            pl.BlockSpec((tm, tk), lambda i, k: (i, k)),        # A_hat tile
            pl.BlockSpec((tk, fin_p), lambda i, k: (k, 0)),     # X k-block
            pl.BlockSpec((fin_p, fout_p), lambda i, k: (0, 0)),  # W (full)
            pl.BlockSpec((1, fout_p), lambda i, k: (0, 0)),     # bias
        ]
        out_specs = [pl.BlockSpec((tm, fout_p), lambda i, k: (i, 0))
                     for _ in out_shape]
        scratch = [pltpu.VMEM((tm, fin_p), jnp.float32)]
        semantics = ("parallel", "arbitrary")

    flops = 2 * np_ * np_ * fin_p + 2 * np_ * fin_p * fout_p
    transc = np_ * fout_p if (activation in ("sigmoid", "tanh") or with_softmax) else 0
    bytes_acc = (np_ * np_ * 2 + (np_ // tm) * np_ * fin_p * 2
                 + fin_p * fout_p * 2 + len(out_shape) * np_ * fout_p * 4)
    vmem = _vmem_limit(
        2 * (tm * tk + tk * fin_p + fin_p * fout_p + fout_p) * 2
        + 2 * len(out_shape) * tm * fout_p * 4
        + tm * fin_p * 4)

    out = pl.pallas_call(
        functools.partial(_gcn_kernel, activation=activation,
                          with_softmax=with_softmax, valid_cols=valid_cols,
                          single_k=single_k),
        grid_spec=pltpu.PrefetchScalarGridSpec(
            num_scalar_prefetch=0, grid=grid,
            in_specs=in_specs, out_specs=out_specs, scratch_shapes=scratch),
        out_shape=out_shape,
        compiler_params=pltpu.CompilerParams(
            dimension_semantics=semantics, vmem_limit_bytes=vmem),
        cost_estimate=pl.CostEstimate(flops=int(flops),
                                      transcendentals=int(transc),
                                      bytes_accessed=int(bytes_acc)),
    )(a_pad_bf16, x_pad_bf16, w_pad_bf16, b_pad_f32)

    if with_softmax:
        return out[0], out[1]
    return out[0]


def _dwr_fused(a_lap_pad_bf16, x_in_pad):
    np_, fp = x_in_pad.shape
    resident = 2 * np_ * np_ * 2 + 6 * np_ * fp * 4
    vmem = int(min(max(resident + (8 << 20), 8 << 20), 48 << 20))
    return pl.pallas_call(
        functools.partial(_dwr_fused_kernel, layers=LAYERS),
        grid_spec=pltpu.PrefetchScalarGridSpec(
            num_scalar_prefetch=0, grid=(1,),
            in_specs=[pl.BlockSpec((np_, np_), lambda i: (0, 0)),
                      pl.BlockSpec((np_, fp), lambda i: (0, 0))],
            out_specs=pl.BlockSpec((np_, fp), lambda i: (0, 0))),
        out_shape=jax.ShapeDtypeStruct((np_, fp), jnp.float32),
        compiler_params=pltpu.CompilerParams(
            dimension_semantics=("arbitrary",), vmem_limit_bytes=vmem),
        cost_estimate=pl.CostEstimate(
            flops=int(LAYERS * (2 * np_ * np_ * fp + 10 * np_ * fp)),
            transcendentals=int(LAYERS * 2 * np_),
            bytes_accessed=int(np_ * np_ * 2 + 2 * np_ * fp * 4)),
    )(a_lap_pad_bf16, x_in_pad)


def _dwr_step(a_pad_bf16, x_pad, *, tm=None, tk=None):
    np_, fp = x_pad.shape
    tm = tm or min(ROW_TILE, np_)
    tk = tk or _pick_tk(np_)
    grid = (np_ // tm, np_ // tk)
    xk_bf = x_pad.astype(jnp.bfloat16)   # bf16 contraction operand (half the DMA)
    vmem = _vmem_limit(2 * (tm * tk * 2 + tk * fp * 2 + tm * fp * 4)
                       + 2 * tm * fp * 4 + tm * fp * 4)
    return pl.pallas_call(
        _dwr_step_kernel,
        grid_spec=pltpu.PrefetchScalarGridSpec(
            num_scalar_prefetch=0, grid=grid,
            in_specs=[
                pl.BlockSpec((tm, tk), lambda i, k: (i, k)),   # A_lap tile
                pl.BlockSpec((tk, fp), lambda i, k: (k, 0)),   # x, contraction block
                pl.BlockSpec((tm, fp), lambda i, k: (i, 0)),   # x, residual block
            ],
            out_specs=pl.BlockSpec((tm, fp), lambda i, k: (i, 0)),
            scratch_shapes=[pltpu.VMEM((tm, fp), jnp.float32)]),
        out_shape=jax.ShapeDtypeStruct((np_, fp), jnp.float32),
        compiler_params=pltpu.CompilerParams(
            dimension_semantics=("parallel", "arbitrary"), vmem_limit_bytes=vmem),
        cost_estimate=pl.CostEstimate(
            flops=int(2 * np_ * np_ * fp + 10 * np_ * fp),
            transcendentals=int(2 * np_),
            bytes_accessed=int(np_ * np_ * 2 + np_ * fp * 2 + 2 * np_ * fp * 4)),
    )(a_pad_bf16, xk_bf, x_pad)


def dwr_propagate(a_lap_pad_bf16, x_in_pad):
    np_, fp = x_in_pad.shape
    fused_bytes = 2 * (np_ * np_ * 2) + 6 * np_ * fp * 4
    if fused_bytes <= FUSED_DWR_VMEM_CAP:
        # A_lap + x resident in VMEM for all 3 steps; mean fused into epilogue.
        return _dwr_fused(a_lap_pad_bf16, x_in_pad)
    # TODO(synk): fallback for large graphs streams A_lap from HBM once per
    # step (each step needs the fully updated x across ALL rows, so steps
    # cannot be fused without full-x residency).
    acc = jnp.zeros_like(x_in_pad)
    x = x_in_pad
    for _ in range(LAYERS):
        x = _dwr_step(a_lap_pad_bf16, x)
        acc = acc + x
    return acc / jnp.float32(LAYERS)


# ----------------------------------------------------------------------------
# Glue: graph normalization + deterministic parameter init / preparation
# ----------------------------------------------------------------------------
def build_norm_adj(edge_index, edge_weight, n):
    # PyG GCNConv propagation: out_i = sum_j norm_ij * x_j, self loops (w=1),
    # symmetric D^{-1/2} (A + I) D^{-1/2} normalization.
    src, dst = edge_index[0], edge_index[1]
    a = jnp.zeros((n, n), jnp.float32).at[dst, src].add(edge_weight)
    a = a + jnp.eye(n, dtype=jnp.float32)
    deg = jnp.sum(a, axis=1)
    dinv = jnp.where(deg > 0, 1.0 / jnp.sqrt(deg), 0.0)
    return dinv[:, None] * a * dinv[None, :]


def glorot(key, fan_in, fan_out):
    limit = jnp.sqrt(6.0 / (fan_in + fan_out))
    return jax.random.uniform(key, (fan_in, fan_out), jnp.float32, -limit, limit)


def init_params(key, n_feat, n_hid, n_class):
    shapes = {
        "enc_1": (n_feat, n_hid), "enc_2": (n_hid, n_hid), "enc_3": (n_hid, n_hid),
        "z_en_layer": (n_hid, n_class),
        "dec_1": (n_class, n_hid), "dec_2": (n_hid, n_hid), "dec_3": (n_hid, n_hid),
        "x_de_layer": (n_hid, n_feat),
        "conv1": (n_feat, n_hid), "conv2": (n_hid, n_class),
    }
    params = {}
    keys = jax.random.split(key, len(shapes))
    for k_, (name, (fi, fo)) in zip(keys, shapes.items()):
        params[name] = {"w": glorot(k_, fi, fo), "b": jnp.zeros((fo,), jnp.float32)}
    return params


def prepare_params(params):
    """Pad + cast weights/biases once (outside jit / per-layer wrappers)."""
    prepared = {}
    for name, p in params.items():
        w, b = p["w"], p["b"]
        fin_p = _round_up(w.shape[0], LANE)
        fout_p = _round_up(w.shape[1], LANE)
        prepared[name] = {
            "w": _pad2(w, fin_p, fout_p).astype(jnp.bfloat16),
            "b": _pad2(b.reshape(1, -1), 1, fout_p).astype(jnp.float32),
        }
    return prepared


# ----------------------------------------------------------------------------
# Model forward (mirrors DWR_GCN.forward); intermediates stay bf16/lane-dense
# ----------------------------------------------------------------------------
def ae_forward(params, a_hat_pad, x_bf, *, n_feat, n_hid, n_class):
    h1 = gcn_layer(a_hat_pad, x_bf, params["enc_1"]["w"], params["enc_1"]["b"],
                   activation="relu", valid_cols=n_hid, out_dtype=jnp.bfloat16)
    h2 = gcn_layer(a_hat_pad, h1, params["enc_2"]["w"], params["enc_2"]["b"],
                   activation="relu", valid_cols=n_hid, out_dtype=jnp.bfloat16)
    h3 = gcn_layer(a_hat_pad, h2, params["enc_3"]["w"], params["enc_3"]["b"],
                   activation="relu", valid_cols=n_hid, out_dtype=jnp.bfloat16)
    # z_en + fused q = softmax(z_en, dim=1)
    z_en, q = gcn_layer(a_hat_pad, h3, params["z_en_layer"]["w"],
                        params["z_en_layer"]["b"], activation="none",
                        with_softmax=True, valid_cols=n_class,
                        out_dtype=jnp.float32)
    z_bf = z_en.astype(jnp.bfloat16)
    d1 = gcn_layer(a_hat_pad, z_bf, params["dec_1"]["w"], params["dec_1"]["b"],
                   activation="relu", valid_cols=n_hid, out_dtype=jnp.bfloat16)
    d2 = gcn_layer(a_hat_pad, d1, params["dec_2"]["w"], params["dec_2"]["b"],
                   activation="relu", valid_cols=n_hid, out_dtype=jnp.bfloat16)
    d3 = gcn_layer(a_hat_pad, d2, params["dec_3"]["w"], params["dec_3"]["b"],
                   activation="relu", valid_cols=n_hid, out_dtype=jnp.bfloat16)
    x_de = gcn_layer(a_hat_pad, d3, params["x_de_layer"]["w"],
                     params["x_de_layer"]["b"], activation="none",
                     valid_cols=n_feat, out_dtype=jnp.float32)
    return x_de, z_en, q


def dwr_gcn_forward(params, x_pad, a_hat_ae_pad, a_hat_w_pad, a_lap_pad,
                    *, n_feat, n_hid, n_class):
    x_bf = x_pad.astype(jnp.bfloat16)

    # AE branch (edge_index only -> unweighted normalized adjacency)
    x_de, z_en, q = ae_forward(params, a_hat_ae_pad, x_bf,
                               n_feat=n_feat, n_hid=n_hid, n_class=n_class)

    # conv1 with edge_weight, sigmoid (f32 output feeds the cosine loop)
    x_in = gcn_layer(a_hat_w_pad, x_bf, params["conv1"]["w"], params["conv1"]["b"],
                     activation="sigmoid", valid_cols=n_hid, out_dtype=jnp.float32)

    # 3-layer cosine-reweighted propagation + mean over stacked layers
    x_all = dwr_propagate(a_lap_pad, x_in)

    # conv2 with edge_weight, tanh + fused o = softmax(x_out, dim=1)
    x_out, o = gcn_layer(a_hat_w_pad, x_all.astype(jnp.bfloat16),
                         params["conv2"]["w"], params["conv2"]["b"],
                         activation="tanh", with_softmax=True,
                         valid_cols=n_class, out_dtype=jnp.float32)
    return x_out, x_de, z_en, q, o


# ----------------------------------------------------------------------------
if __name__ == "__main__":
    N, N_FEAT, N_HID, N_CLASS = 200, 48, 64, 10

    key = jax.random.PRNGKey(0)
    k_x, k_e, k_w, k_p = jax.random.split(key, 4)

    # node features
    x = jax.random.normal(k_x, (N, N_FEAT), jnp.float32)

    # deterministic synthetic graph: ring edges + a few random ones
    ring_src = jnp.arange(N, dtype=jnp.int32)
    ring_dst = (ring_src + 1) % N
    rand_src = jax.random.randint(k_e, (N,), 0, N, dtype=jnp.int32)
    rand_dst = jax.random.randint(jax.random.fold_in(k_e, 1), (N,), 0, N, dtype=jnp.int32)
    edge_index = jnp.stack(
        [jnp.concatenate([ring_src, rand_src]), jnp.concatenate([ring_dst, rand_dst])]
    )
    n_edges = edge_index.shape[1]
    edge_weight = jax.random.uniform(k_w, (n_edges,), jnp.float32, 0.5, 1.5)

    a_hat_ae = build_norm_adj(edge_index, jnp.ones((n_edges,), jnp.float32), N)
    a_hat_w = build_norm_adj(edge_index, edge_weight, N)
    # TODO(synk): the original script's global A_laplacians is external data;
    # synthesized here as the weighted normalized adjacency.
    a_lap = a_hat_w

    # pad to tile/lane-aligned shapes; A matrices go to bf16 once (MXU inputs)
    Np = _round_up(N, ROW_TILE)
    Fp = _round_up(N_FEAT, LANE)
    a_ae_pad = _pad2(a_hat_ae, Np, Np).astype(jnp.bfloat16)
    a_w_pad = _pad2(a_hat_w, Np, Np).astype(jnp.bfloat16)
    a_lap_pad = _pad2(a_lap, Np, Np).astype(jnp.bfloat16)
    x_pad = _pad2(x, Np, Fp)

    params = prepare_params(init_params(k_p, N_FEAT, N_HID, N_CLASS))

    fwd = jax.jit(functools.partial(dwr_gcn_forward,
                                    n_feat=N_FEAT, n_hid=N_HID, n_class=N_CLASS))
    x_out_p, x_de_p, z_en_p, q_p, o_p = fwd(params, x_pad, a_ae_pad, a_w_pad, a_lap_pad)
    jax.block_until_ready((x_out_p, x_de_p, z_en_p, q_p, o_p))

    # slice padded outputs back to real shapes
    x_out = x_out_p[:N, :N_CLASS]
    x_de = x_de_p[:N, :N_FEAT]
    z_en = z_en_p[:N, :N_CLASS]
    q = q_p[:N, :N_CLASS]
    o = o_p[:N, :N_CLASS]

    assert x_out.shape == (N, N_CLASS)
    assert x_de.shape == (N, N_FEAT)
    assert z_en.shape == (N, N_CLASS)
    assert q.shape == (N, N_CLASS)
    assert o.shape == (N, N_CLASS)
    # fused softmaxes normalize over the real classes only
    assert bool(jnp.allclose(jnp.sum(o, axis=1), 1.0, atol=1e-2))
    assert bool(jnp.allclose(jnp.sum(q, axis=1), 1.0, atol=1e-2))
    assert bool(jnp.all(jnp.isfinite(x_out))) and bool(jnp.all(jnp.isfinite(x_de)))
    print("KERNEL_OK")
</pallas_src>

<mosaic_0001>
module attributes {stable_mosaic.version = 11 : i64} {
  func.func @_dwr_fused_kernel(%arg0: i32, %arg1: memref<256x256xbf16, #tpu.memory_space<vmem>>, %arg2: memref<256x128xf32, #tpu.memory_space<vmem>>, %arg3: memref<256x128xf32, #tpu.memory_space<vmem>>) attributes {dimension_semantics = [#tpu.dimension_semantics<arbitrary>], iteration_bounds = array<i64: 1>, scalar_prefetch = 0 : i64, scratch_operands = 0 : i64, tpu.core_type = #tpu.core_type<tc>, window_params = [{pipeline_mode = #tpu.pipeline_mode<synchronous>, transform_indices = @transform_0, window_bounds = array<i64: 256, 256>}, {pipeline_mode = #tpu.pipeline_mode<synchronous>, transform_indices = @transform_1, window_bounds = array<i64: 256, 128>}, {pipeline_mode = #tpu.pipeline_mode<synchronous>, transform_indices = @transform_2, window_bounds = array<i64: 256, 128>}]} {
    %c0 = arith.constant 0 : index
    %c0_0 = arith.constant 0 : index
    %0 = vector.load %arg1[%c0, %c0_0] : memref<256x256xbf16, #tpu.memory_space<vmem>>, vector<256x256xbf16>
    %c0_1 = arith.constant 0 : index
    %c0_2 = arith.constant 0 : index
    %1 = vector.load %arg2[%c0_1, %c0_2] : memref<256x128xf32, #tpu.memory_space<vmem>>, vector<256x128xf32>
    %cst = arith.constant 0.000000e+00 : f32
    %2 = vector.broadcast %cst : f32 to vector<256x128xf32>
    %3 = arith.truncf %1 : vector<256x128xf32> to vector<256x128xbf16>
    %cst_3 = arith.constant dense<0.000000e+00> : vector<256x128xf32>
    %4 = tpu.matmul %0, %3, %cst_3 {dimension_numbers = #tpu.dot_dimension_numbers<[1], [0], [0], [1], [0, 0, 1, 1], [], []>} : vector<256x256xbf16>, vector<256x128xbf16>, vector<256x128xf32> -> vector<256x128xf32>
    %5 = arith.mulf %4, %1 : vector<256x128xf32>
    %cst_4 = arith.constant dense<0.000000e+00> : vector<256xf32>
    %6 = vector.multi_reduction <add>, %5, %cst_4 [1] : vector<256x128xf32> to vector<256xf32>
    %7 = vector.shape_cast %6 : vector<256xf32> to vector<256x1xf32>
    %8 = arith.mulf %4, %4 : vector<256x128xf32>
    %cst_5 = arith.constant dense<0.000000e+00> : vector<256xf32>
    %9 = vector.multi_reduction <add>, %8, %cst_5 [1] : vector<256x128xf32> to vector<256xf32>
    %10 = vector.shape_cast %9 : vector<256xf32> to vector<256x1xf32>
    %11 = arith.mulf %1, %1 : vector<256x128xf32>
    %cst_6 = arith.constant dense<0.000000e+00> : vector<256xf32>
    %12 = vector.multi_reduction <add>, %11, %cst_6 [1] : vector<256x128xf32> to vector<256xf32>
    %13 = vector.shape_cast %12 : vector<256xf32> to vector<256x1xf32>
    %cst_7 = arith.constant 1.000000e-16 : f32
    %14 = vector.broadcast %cst_7 : f32 to vector<256x1xf32>
    %15 = arith.maximumf %10, %14 : vector<256x1xf32>
    %16 = math.rsqrt %15 : vector<256x1xf32>
    %17 = arith.mulf %7, %16 : vector<256x1xf32>
    %cst_8 = arith.constant 1.000000e-16 : f32
    %18 = vector.broadcast %cst_8 : f32 to vector<256x1xf32>
    %19 = arith.maximumf %13, %18 : vector<256x1xf32>
    %20 = math.rsqrt %19 : vector<256x1xf32>
    %21 = arith.mulf %17, %20 : vector<256x1xf32>
    %22 = vector.broadcast %21 : vector<256x1xf32> to vector<256x128xf32>
    %23 = arith.mulf %22, %4 : vector<256x128xf32>
    %cst_9 = arith.constant 5.000000e-01 : f32
    %24 = vector.broadcast %cst_9 : f32 to vector<256x128xf32>
    %25 = arith.mulf %24, %23 : vector<256x128xf32>
    %26 = arith.addf %25, %1 : vector<256x128xf32>
    %cst_10 = arith.constant 0.000000e+00 : f32
    %27 = vector.broadcast %cst_10 : f32 to vector<256x128xf32>
    %28 = arith.maximumf %26, %27 : vector<256x128xf32>
    %29 = arith.addf %2, %28 : vector<256x128xf32>
    %30 = arith.truncf %28 : vector<256x128xf32> to vector<256x128xbf16>
    %cst_11 = arith.constant dense<0.000000e+00> : vector<256x128xf32>
    %31 = tpu.matmul %0, %30, %cst_11 {dimension_numbers = #tpu.dot_dimension_numbers<[1], [0], [0], [1], [0, 0, 1, 1], [], []>} : vector<256x256xbf16>, vector<256x128xbf16>, vector<256x128xf32> -> vector<256x128xf32>
    %32 = arith.mulf %31, %28 : vector<256x128xf32>
    %cst_12 = arith.constant dense<0.000000e+00> : vector<256xf32>
    %33 = vector.multi_reduction <add>, %32, %cst_12 [1] : vector<256x128xf32> to vector<256xf32>
    %34 = vector.shape_cast %33 : vector<256xf32> to vector<256x1xf32>
    %35 = arith.mulf %31, %31 : vector<256x128xf32>
    %cst_13 = arith.constant dense<0.000000e+00> : vector<256xf32>
    %36 = vector.multi_reduction <add>, %35, %cst_13 [1] : vector<256x128xf32> to vector<256xf32>
    %37 = vector.shape_cast %36 : vector<256xf32> to vector<256x1xf32>
    %38 = arith.mulf %28, %28 : vector<256x128xf32>
    %cst_14 = arith.constant dense<0.000000e+00> : vector<256xf32>
    %39 = vector.multi_reduction <add>, %38, %cst_14 [1] : vector<256x128xf32> to vector<256xf32>
    %40 = vector.shape_cast %39 : vector<256xf32> to vector<256x1xf32>
    %cst_15 = arith.constant 1.000000e-16 : f32
    %41 = vector.broadcast %cst_15 : f32 to vector<256x1xf32>
    %42 = arith.maximumf %37, %41 : vector<256x1xf32>
    %43 = math.rsqrt %42 : vector<256x1xf32>
    %44 = arith.mulf %34, %43 : vector<256x1xf32>
    %cst_16 = arith.constant 1.000000e-16 : f32
    %45 = vector.broadcast %cst_16 : f32 to vector<256x1xf32>
    %46 = arith.maximumf %40, %45 : vector<256x1xf32>
    %47 = math.rsqrt %46 : vector<256x1xf32>
    %48 = arith.mulf %44, %47 : vector<256x1xf32>
    %49 = vector.broadcast %48 : vector<256x1xf32> to vector<256x128xf32>
    %50 = arith.mulf %49, %31 : vector<256x128xf32>
    %cst_17 = arith.constant 5.000000e-01 : f32
    %51 = vector.broadcast %cst_17 : f32 to vector<256x128xf32>
    %52 = arith.mulf %51, %50 : vector<256x128xf32>
    %53 = arith.addf %52, %28 : vector<256x128xf32>
    %cst_18 = arith.constant 0.000000e+00 : f32
    %54 = vector.broadcast %cst_18 : f32 to vector<256x128xf32>
    %55 = arith.maximumf %53, %54 : vector<256x128xf32>
    %56 = arith.addf %29, %55 : vector<256x128xf32>
    %57 = arith.truncf %55 : vector<256x128xf32> to vector<256x128xbf16>
    %cst_19 = arith.constant dense<0.000000e+00> : vector<256x128xf32>
    %58 = tpu.matmul %0, %57, %cst_19 {dimension_numbers = #tpu.dot_dimension_numbers<[1], [0], [0], [1], [0, 0, 1, 1], [], []>} : vector<256x256xbf16>, vector<256x128xbf16>, vector<256x128xf32> -> vector<256x128xf32>
    %59 = arith.mulf %58, %55 : vector<256x128xf32>
    %cst_20 = arith.constant dense<0.000000e+00> : vector<256xf32>
    %60 = vector.multi_reduction <add>, %59, %cst_20 [1] : vector<256x128xf32> to vector<256xf32>
    %61 = vector.shape_cast %60 : vector<256xf32> to vector<256x1xf32>
    %62 = arith.mulf %58, %58 : vector<256x128xf32>
    %cst_21 = arith.constant dense<0.000000e+00> : vector<256xf32>
    %63 = vector.multi_reduction <add>, %62, %cst_21 [1] : vector<256x128xf32> to vector<256xf32>
    %64 = vector.shape_cast %63 : vector<256xf32> to vector<256x1xf32>
    %65 = arith.mulf %55, %55 : vector<256x128xf32>
    %cst_22 = arith.constant dense<0.000000e+00> : vector<256xf32>
    %66 = vector.multi_reduction <add>, %65, %cst_22 [1] : vector<256x128xf32> to vector<256xf32>
    %67 = vector.shape_cast %66 : vector<256xf32> to vector<256x1xf32>
    %cst_23 = arith.constant 1.000000e-16 : f32
    %68 = vector.broadcast %cst_23 : f32 to vector<256x1xf32>
    %69 = arith.maximumf %64, %68 : vector<256x1xf32>
    %70 = math.rsqrt %69 : vector<256x1xf32>
    %71 = arith.mulf %61, %70 : vector<256x1xf32>
    %cst_24 = arith.constant 1.000000e-16 : f32
    %72 = vector.broadcast %cst_24 : f32 to vector<256x1xf32>
    %73 = arith.maximumf %67, %72 : vector<256x1xf32>
    %74 = math.rsqrt %73 : vector<256x1xf32>
    %75 = arith.mulf %71, %74 : vector<256x1xf32>
    %76 = vector.broadcast %75 : vector<256x1xf32> to vector<256x128xf32>
    %77 = arith.mulf %76, %58 : vector<256x128xf32>
    %cst_25 = arith.constant 5.000000e-01 : f32
    %78 = vector.broadcast %cst_25 : f32 to vector<256x128xf32>
    %79 = arith.mulf %78, %77 : vector<256x128xf32>
    %80 = arith.addf %79, %55 : vector<256x128xf32>
    %cst_26 = arith.constant 0.000000e+00 : f32
    %81 = vector.broadcast %cst_26 : f32 to vector<256x128xf32>
    %82 = arith.maximumf %80, %81 : vector<256x128xf32>
    %83 = arith.addf %56, %82 : vector<256x128xf32>
    %cst_27 = arith.constant 0.333333343 : f32
    %84 = vector.broadcast %cst_27 : f32 to vector<256x128xf32>
    %85 = arith.mulf %83, %84 : vector<256x128xf32>
    %c0_28 = arith.constant 0 : index
    %c0_29 = arith.constant 0 : index
    %86 = vector.load %arg3[%c0_28, %c0_29] : memref<256x128xf32, #tpu.memory_space<vmem>>, vector<256x128xf32>
    tpu.vector_store %arg3[%c0_28, %c0_29], %85 {strides = array<i32>} : memref<256x128xf32, #tpu.memory_space<vmem>>, vector<256x128xf32>,
    return
  }
  func.func @transform_0(%arg0: i32) -> (i32, i32) {
    %c0_i32 = arith.constant 0 : i32
    %c0_i32_0 = arith.constant 0 : i32
    %c0_i32_1 = arith.constant 0 : i32
    return %c0_i32, %c0_i32_0 : i32, i32
  }
  func.func @transform_1(%arg0: i32) -> (i32, i32) {
    %c0_i32 = arith.constant 0 : i32
    %c0_i32_0 = arith.constant 0 : i32
    %c0_i32_1 = arith.constant 0 : i32
    return %c0_i32, %c0_i32_0 : i32, i32
  }
  func.func @transform_2(%arg0: i32) -> (i32, i32) {
    %c0_i32 = arith.constant 0 : i32
    %c0_i32_0 = arith.constant 0 : i32
    %c0_i32_1 = arith.constant 0 : i32
    return %c0_i32, %c0_i32_0 : i32, i32
  }
}

module attributes {stable_mosaic.version = 11 : i64} {
  func.func @_gcn_kernel(%arg0: i32, %arg1: memref<128x256xbf16, #tpu.memory_space<vmem>>, %arg2: memref<256x128xbf16, #tpu.memory_space<vmem>>, %arg3: memref<128x128xbf16, #tpu.memory_space<vmem>>, %arg4: memref<1x128xf32, #tpu.memory_space<vmem>>, %arg5: memref<128x128xbf16, #tpu.memory_space<vmem>>) attributes {dimension_semantics = [#tpu.dimension_semantics<parallel>], iteration_bounds = array<i64: 2>, scalar_prefetch = 0 : i64, scratch_operands = 0 : i64, tpu.core_type = #tpu.core_type<tc>, window_params = [{transform_indices = @transform_0, window_bounds = array<i64: 128, 256>}, {pipeline_mode = #tpu.pipeline_mode<synchronous>, transform_indices = @transform_1, window_bounds = array<i64: 256, 128>}, {pipeline_mode = #tpu.pipeline_mode<synchronous>, transform_indices = @transform_2, window_bounds = array<i64: 128, 128>}, {pipeline_mode = #tpu.pipeline_mode<synchronous>, transform_indices = @transform_3, window_bounds = array<i64: 1, 128>}, {transform_indices = @transform_4, window_bounds = array<i64: 128, 128>}]} {
    %c0 = arith.constant 0 : index
    %c0_0 = arith.constant 0 : index
    %0 = vector.load %arg1[%c0, %c0_0] : memref<128x256xbf16, #tpu.memory_space<vmem>>, vector<128x256xbf16>
    %c0_1 = arith.constant 0 : index
    %c0_2 = arith.constant 0 : index
    %1 = vector.load %arg2[%c0_1, %c0_2] : memref<256x128xbf16, #tpu.memory_space<vmem>>, vector<256x128xbf16>
    %cst = arith.constant dense<0.000000e+00> : vector<128x128xf32>
    %2 = tpu.matmul %0, %1, %cst {dimension_numbers = #tpu.dot_dimension_numbers<[1], [0], [0], [1], [0, 0, 1, 1], [], []>} : vector<128x256xbf16>, vector<256x128xbf16>, vector<128x128xf32> -> vector<128x128xf32>
    %3 = arith.truncf %2 : vector<128x128xf32> to vector<128x128xbf16>
    %c0_3 = arith.constant 0 : index
    %c0_4 = arith.constant 0 : index
    %4 = vector.load %arg3[%c0_3, %c0_4] : memref<128x128xbf16, #tpu.memory_space<vmem>>, vector<128x128xbf16>
    %cst_5 = arith.constant dense<0.000000e+00> : vector<128x128xf32>
    %5 = tpu.matmul %3, %4, %cst_5 {dimension_numbers = #tpu.dot_dimension_numbers<[1], [0], [0], [1], [0, 0, 1, 1], [], []>} : vector<128x128xbf16>, vector<128x128xbf16>, vector<128x128xf32> -> vector<128x128xf32>
    %c0_6 = arith.constant 0 : index
    %c0_7 = arith.constant 0 : index
    %6 = vector.load %arg4[%c0_6, %c0_7] : memref<1x128xf32, #tpu.memory_space<vmem>>, vector<1x128xf32>
    %7 = vector.broadcast %6 : vector<1x128xf32> to vector<128x128xf32>
    %8 = arith.addf %5, %7 : vector<128x128xf32>
    %cst_8 = arith.constant 0.000000e+00 : f32
    %9 = vector.broadcast %cst_8 : f32 to vector<128x128xf32>
    %10 = arith.maximumf %8, %9 : vector<128x128xf32>
    %11 = arith.truncf %10 : vector<128x128xf32> to vector<128x128xbf16>
    %c0_9 = arith.constant 0 : index
    %c0_10 = arith.constant 0 : index
    %12 = vector.load %arg5[%c0_9, %c0_10] : memref<128x128xbf16, #tpu.memory_space<vmem>>, vector<128x128xbf16>
    tpu.vector_store %arg5[%c0_9, %c0_10], %11 {strides = array<i32>} : memref<128x128xbf16, #tpu.memory_space<vmem>>, vector<128x128xbf16>,
    return
  }
  func.func @transform_0(%arg0: i32) -> (i32, i32) {
    %c0_i32 = arith.constant 0 : i32
    %c0_i32_0 = arith.constant 0 : i32
    return %arg0, %c0_i32 : i32, i32
  }
  func.func @transform_1(%arg0: i32) -> (i32, i32) {
    %c0_i32 = arith.constant 0 : i32
    %c0_i32_0 = arith.constant 0 : i32
    %c0_i32_1 = arith.constant 0 : i32
    return %c0_i32, %c0_i32_0 : i32, i32
  }
  func.func @transform_2(%arg0: i32) -> (i32, i32) {
    %c0_i32 = arith.constant 0 : i32
    %c0_i32_0 = arith.constant 0 : i32
    %c0_i32_1 = arith.constant 0 : i32
    return %c0_i32, %c0_i32_0 : i32, i32
  }
  func.func @transform_3(%arg0: i32) -> (i32, i32) {
    %c0_i32 = arith.constant 0 : i32
    %c0_i32_0 = arith.constant 0 : i32
    %c0_i32_1 = arith.constant 0 : i32
    return %c0_i32, %c0_i32_0 : i32, i32
  }
  func.func @transform_4(%arg0: i32) -> (i32, i32) {
    %c0_i32 = arith.constant 0 : i32
    %c0_i32_0 = arith.constant 0 : i32
    return %arg0, %c0_i32 : i32, i32
  }
}

module attributes {stable_mosaic.version = 11 : i64} {
  func.func @_gcn_kernel(%arg0: i32, %arg1: memref<128x256xbf16, #tpu.memory_space<vmem>>, %arg2: memref<256x128xbf16, #tpu.memory_space<vmem>>, %arg3: memref<128x128xbf16, #tpu.memory_space<vmem>>, %arg4: memref<1x128xf32, #tpu.memory_space<vmem>>, %arg5: memref<128x128xf32, #tpu.memory_space<vmem>>) attributes {dimension_semantics = [#tpu.dimension_semantics<parallel>], iteration_bounds = array<i64: 2>, scalar_prefetch = 0 : i64, scratch_operands = 0 : i64, tpu.core_type = #tpu.core_type<tc>, window_params = [{transform_indices = @transform_0, window_bounds = array<i64: 128, 256>}, {pipeline_mode = #tpu.pipeline_mode<synchronous>, transform_indices = @transform_1, window_bounds = array<i64: 256, 128>}, {pipeline_mode = #tpu.pipeline_mode<synchronous>, transform_indices = @transform_2, window_bounds = array<i64: 128, 128>}, {pipeline_mode = #tpu.pipeline_mode<synchronous>, transform_indices = @transform_3, window_bounds = array<i64: 1, 128>}, {transform_indices = @transform_4, window_bounds = array<i64: 128, 128>}]} {
    %c0 = arith.constant 0 : index
    %c0_0 = arith.constant 0 : index
    %0 = vector.load %arg1[%c0, %c0_0] : memref<128x256xbf16, #tpu.memory_space<vmem>>, vector<128x256xbf16>
    %c0_1 = arith.constant 0 : index
    %c0_2 = arith.constant 0 : index
    %1 = vector.load %arg2[%c0_1, %c0_2] : memref<256x128xbf16, #tpu.memory_space<vmem>>, vector<256x128xbf16>
    %cst = arith.constant dense<0.000000e+00> : vector<128x128xf32>
    %2 = tpu.matmul %0, %1, %cst {dimension_numbers = #tpu.dot_dimension_numbers<[1], [0], [0], [1], [0, 0, 1, 1], [], []>} : vector<128x256xbf16>, vector<256x128xbf16>, vector<128x128xf32> -> vector<128x128xf32>
    %3 = arith.truncf %2 : vector<128x128xf32> to vector<128x128xbf16>
    %c0_3 = arith.constant 0 : index
    %c0_4 = arith.constant 0 : index
    %4 = vector.load %arg3[%c0_3, %c0_4] : memref<128x128xbf16, #tpu.memory_space<vmem>>, vector<128x128xbf16>
    %cst_5 = arith.constant dense<0.000000e+00> : vector<128x128xf32>
    %5 = tpu.matmul %3, %4, %cst_5 {dimension_numbers = #tpu.dot_dimension_numbers<[1], [0], [0], [1], [0, 0, 1, 1], [], []>} : vector<128x128xbf16>, vector<128x128xbf16>, vector<128x128xf32> -> vector<128x128xf32>
    %c0_6 = arith.constant 0 : index
    %c0_7 = arith.constant 0 : index
    %6 = vector.load %arg4[%c0_6, %c0_7] : memref<1x128xf32, #tpu.memory_space<vmem>>, vector<1x128xf32>
    %7 = vector.broadcast %6 : vector<1x128xf32> to vector<128x128xf32>
    %8 = arith.addf %5, %7 : vector<128x128xf32>
    %9 = tpu.iota {dimensions = array<i32: 1>} : vector<128x128xi32>
    %c64_i32 = arith.constant 64 : i32
    %10 = vector.broadcast %c64_i32 : i32 to vector<128x128xi32>
    %11 = arith.cmpi slt, %9, %10 : vector<128x128xi32>
    %12 = arith.negf %8 : vector<128x128xf32>
    %13 = math.exp %12 : vector<128x128xf32>
    %cst_8 = arith.constant 1.000000e+00 : f32
    %14 = vector.broadcast %cst_8 : f32 to vector<128x128xf32>
    %15 = arith.addf %14, %13 : vector<128x128xf32>
    %16 = arith.divf %14, %15 : vector<128x128xf32>
    %cst_9 = arith.constant 0.000000e+00 : f32
    %17 = vector.broadcast %cst_9 : f32 to vector<128x128xf32>
    %18 = arith.select %11, %16, %17 : vector<128x128xi1>, vector<128x128xf32>
    %c0_10 = arith.constant 0 : index
    %c0_11 = arith.constant 0 : index
    %19 = vector.load %arg5[%c0_10, %c0_11] : memref<128x128xf32, #tpu.memory_space<vmem>>, vector<128x128xf32>
    tpu.vector_store %arg5[%c0_10, %c0_11], %18 {strides = array<i32>} : memref<128x128xf32, #tpu.memory_space<vmem>>, vector<128x128xf32>,
    return
  }
  func.func @transform_0(%arg0: i32) -> (i32, i32) {
    %c0_i32 = arith.constant 0 : i32
    %c0_i32_0 = arith.constant 0 : i32
    return %arg0, %c0_i32 : i32, i32
  }
  func.func @transform_1(%arg0: i32) -> (i32, i32) {
    %c0_i32 = arith.constant 0 : i32
    %c0_i32_0 = arith.constant 0 : i32
    %c0_i32_1 = arith.constant 0 : i32
    return %c0_i32, %c0_i32_0 : i32, i32
  }
  func.func @transform_2(%arg0: i32) -> (i32, i32) {
    %c0_i32 = arith.constant 0 : i32
    %c0_i32_0 = arith.constant 0 : i32
    %c0_i32_1 = arith.constant 0 : i32
    return %c0_i32, %c0_i32_0 : i32, i32
  }
  func.func @transform_3(%arg0: i32) -> (i32, i32) {
    %c0_i32 = arith.constant 0 : i32
    %c0_i32_0 = arith.constant 0 : i32
    %c0_i32_1 = arith.constant 0 : i32
    return %c0_i32, %c0_i32_0 : i32, i32
  }
  func.func @transform_4(%arg0: i32) -> (i32, i32) {
    %c0_i32 = arith.constant 0 : i32
    %c0_i32_0 = arith.constant 0 : i32
    return %arg0, %c0_i32 : i32, i32
  }
}

module attributes {stable_mosaic.version = 11 : i64} {
  func.func @_gcn_kernel(%arg0: i32, %arg1: memref<128x256xbf16, #tpu.memory_space<vmem>>, %arg2: memref<256x128xbf16, #tpu.memory_space<vmem>>, %arg3: memref<128x128xbf16, #tpu.memory_space<vmem>>, %arg4: memref<1x128xf32, #tpu.memory_space<vmem>>, %arg5: memref<128x128xf32, #tpu.memory_space<vmem>>, %arg6: memref<128x128xf32, #tpu.memory_space<vmem>>) attributes {dimension_semantics = [#tpu.dimension_semantics<parallel>], iteration_bounds = array<i64: 2>, scalar_prefetch = 0 : i64, scratch_operands = 0 : i64, tpu.core_type = #tpu.core_type<tc>, window_params = [{transform_indices = @transform_0, window_bounds = array<i64: 128, 256>}, {pipeline_mode = #tpu.pipeline_mode<synchronous>, transform_indices = @transform_1, window_bounds = array<i64: 256, 128>}, {pipeline_mode = #tpu.pipeline_mode<synchronous>, transform_indices = @transform_2, window_bounds = array<i64: 128, 128>}, {pipeline_mode = #tpu.pipeline_mode<synchronous>, transform_indices = @transform_3, window_bounds = array<i64: 1, 128>}, {transform_indices = @transform_4, window_bounds = array<i64: 128, 128>}, {transform_indices = @transform_5, window_bounds = array<i64: 128, 128>}]} {
    %c0 = arith.constant 0 : index
    %c0_0 = arith.constant 0 : index
    %0 = vector.load %arg1[%c0, %c0_0] : memref<128x256xbf16, #tpu.memory_space<vmem>>, vector<128x256xbf16>
    %c0_1 = arith.constant 0 : index
    %c0_2 = arith.constant 0 : index
    %1 = vector.load %arg2[%c0_1, %c0_2] : memref<256x128xbf16, #tpu.memory_space<vmem>>, vector<256x128xbf16>
    %cst = arith.constant dense<0.000000e+00> : vector<128x128xf32>
    %2 = tpu.matmul %0, %1, %cst {dimension_numbers = #tpu.dot_dimension_numbers<[1], [0], [0], [1], [0, 0, 1, 1], [], []>} : vector<128x256xbf16>, vector<256x128xbf16>, vector<128x128xf32> -> vector<128x128xf32>
    %3 = arith.truncf %2 : vector<128x128xf32> to vector<128x128xbf16>
    %c0_3 = arith.constant 0 : index
    %c0_4 = arith.constant 0 : index
    %4 = vector.load %arg3[%c0_3, %c0_4] : memref<128x128xbf16, #tpu.memory_space<vmem>>, vector<128x128xbf16>
    %cst_5 = arith.constant dense<0.000000e+00> : vector<128x128xf32>
    %5 = tpu.matmul %3, %4, %cst_5 {dimension_numbers = #tpu.dot_dimension_numbers<[1], [0], [0], [1], [0, 0, 1, 1], [], []>} : vector<128x128xbf16>, vector<128x128xbf16>, vector<128x128xf32> -> vector<128x128xf32>
    %c0_6 = arith.constant 0 : index
    %c0_7 = arith.constant 0 : index
    %6 = vector.load %arg4[%c0_6, %c0_7] : memref<1x128xf32, #tpu.memory_space<vmem>>, vector<1x128xf32>
    %7 = vector.broadcast %6 : vector<1x128xf32> to vector<128x128xf32>
    %8 = arith.addf %5, %7 : vector<128x128xf32>
    %9 = tpu.iota {dimensions = array<i32: 1>} : vector<128x128xi32>
    %c10_i32 = arith.constant 10 : i32
    %10 = vector.broadcast %c10_i32 : i32 to vector<128x128xi32>
    %11 = arith.cmpi slt, %9, %10 : vector<128x128xi32>
    %12 = math.tanh %8 : vector<128x128xf32>
    %c0_8 = arith.constant 0 : index
    %c0_9 = arith.constant 0 : index
    %13 = vector.load %arg5[%c0_8, %c0_9] : memref<128x128xf32, #tpu.memory_space<vmem>>, vector<128x128xf32>
    tpu.vector_store %arg5[%c0_8, %c0_9], %12 {strides = array<i32>} : memref<128x128xf32, #tpu.memory_space<vmem>>, vector<128x128xf32>,
    %cst_10 = arith.constant -1.000000e+30 : f32
    %14 = vector.broadcast %cst_10 : f32 to vector<128x128xf32>
    %15 = arith.select %11, %12, %14 : vector<128x128xi1>, vector<128x128xf32>
    %cst_11 = arith.constant dense<0xFF800000> : vector<128xf32>
    %16 = vector.multi_reduction <maximumf>, %15, %cst_11 [1] : vector<128x128xf32> to vector<128xf32>
    %17 = vector.shape_cast %16 : vector<128xf32> to vector<128x1xf32>
    %18 = vector.broadcast %17 : vector<128x1xf32> to vector<128x128xf32>
    %19 = arith.subf %15, %18 : vector<128x128xf32>
    %20 = math.exp %19 : vector<128x128xf32>
    %cst_12 = arith.constant dense<0.000000e+00> : vector<128xf32>
    %21 = vector.multi_reduction <add>, %20, %cst_12 [1] : vector<128x128xf32> to vector<128xf32>
    %22 = vector.shape_cast %21 : vector<128xf32> to vector<128x1xf32>
    %23 = tpu.reciprocal %22 {approx = true} : vector<128x1xf32> -> vector<128x1xf32>
    %24 = vector.broadcast %23 : vector<128x1xf32> to vector<128x128xf32>
    %25 = arith.mulf %20, %24 : vector<128x128xf32>
    %c0_13 = arith.constant 0 : index
    %c0_14 = arith.constant 0 : index
    %26 = vector.load %arg6[%c0_13, %c0_14] : memref<128x128xf32, #tpu.memory_space<vmem>>, vector<128x128xf32>
    tpu.vector_store %arg6[%c0_13, %c0_14], %25 {strides = array<i32>} : memref<128x128xf32, #tpu.memory_space<vmem>>, vector<128x128xf32>,
    return
  }
  func.func @transform_0(%arg0: i32) -> (i32, i32) {
    %c0_i32 = arith.constant 0 : i32
    %c0_i32_0 = arith.constant 0 : i32
    return %arg0, %c0_i32 : i32, i32
  }
  func.func @transform_1(%arg0: i32) -> (i32, i32) {
    %c0_i32 = arith.constant 0 : i32
    %c0_i32_0 = arith.constant 0 : i32
    %c0_i32_1 = arith.constant 0 : i32
    return %c0_i32, %c0_i32_0 : i32, i32
  }
  func.func @transform_2(%arg0: i32) -> (i32, i32) {
    %c0_i32 = arith.constant 0 : i32
    %c0_i32_0 = arith.constant 0 : i32
    %c0_i32_1 = arith.constant 0 : i32
    return %c0_i32, %c0_i32_0 : i32, i32
  }
  func.func @transform_3(%arg0: i32) -> (i32, i32) {
    %c0_i32 = arith.constant 0 : i32
    %c0_i32_0 = arith.constant 0 : i32
    %c0_i32_1 = arith.constant 0 : i32
    return %c0_i32, %c0_i32_0 : i32, i32
  }
  func.func @transform_4(%arg0: i32) -> (i32, i32) {
    %c0_i32 = arith.constant 0 : i32
    %c0_i32_0 = arith.constant 0 : i32
    return %arg0, %c0_i32 : i32, i32
  }
  func.func @transform_5(%arg0: i32) -> (i32, i32) {
    %c0_i32 = arith.constant 0 : i32
    %c0_i32_0 = arith.constant 0 : i32
    return %arg0, %c0_i32 : i32, i32
  }
}

module attributes {stable_mosaic.version = 11 : i64} {
  func.func @_gcn_kernel(%arg0: i32, %arg1: memref<128x256xbf16, #tpu.memory_space<vmem>>, %arg2: memref<256x128xbf16, #tpu.memory_space<vmem>>, %arg3: memref<128x128xbf16, #tpu.memory_space<vmem>>, %arg4: memref<1x128xf32, #tpu.memory_space<vmem>>, %arg5: memref<128x128xf32, #tpu.memory_space<vmem>>, %arg6: memref<128x128xf32, #tpu.memory_space<vmem>>) attributes {dimension_semantics = [#tpu.dimension_semantics<parallel>], iteration_bounds = array<i64: 2>, scalar_prefetch = 0 : i64, scratch_operands = 0 : i64, tpu.core_type = #tpu.core_type<tc>, window_params = [{transform_indices = @transform_0, window_bounds = array<i64: 128, 256>}, {pipeline_mode = #tpu.pipeline_mode<synchronous>, transform_indices = @transform_1, window_bounds = array<i64: 256, 128>}, {pipeline_mode = #tpu.pipeline_mode<synchronous>, transform_indices = @transform_2, window_bounds = array<i64: 128, 128>}, {pipeline_mode = #tpu.pipeline_mode<synchronous>, transform_indices = @transform_3, window_bounds = array<i64: 1, 128>}, {transform_indices = @transform_4, window_bounds = array<i64: 128, 128>}, {transform_indices = @transform_5, window_bounds = array<i64: 128, 128>}]} {
    %c0 = arith.constant 0 : index
    %c0_0 = arith.constant 0 : index
    %0 = vector.load %arg1[%c0, %c0_0] : memref<128x256xbf16, #tpu.memory_space<vmem>>, vector<128x256xbf16>
    %c0_1 = arith.constant 0 : index
    %c0_2 = arith.constant 0 : index
    %1 = vector.load %arg2[%c0_1, %c0_2] : memref<256x128xbf16, #tpu.memory_space<vmem>>, vector<256x128xbf16>
    %cst = arith.constant dense<0.000000e+00> : vector<128x128xf32>
    %2 = tpu.matmul %0, %1, %cst {dimension_numbers = #tpu.dot_dimension_numbers<[1], [0], [0], [1], [0, 0, 1, 1], [], []>} : vector<128x256xbf16>, vector<256x128xbf16>, vector<128x128xf32> -> vector<128x128xf32>
    %3 = arith.truncf %2 : vector<128x128xf32> to vector<128x128xbf16>
    %c0_3 = arith.constant 0 : index
    %c0_4 = arith.constant 0 : index
    %4 = vector.load %arg3[%c0_3, %c0_4] : memref<128x128xbf16, #tpu.memory_space<vmem>>, vector<128x128xbf16>
    %cst_5 = arith.constant dense<0.000000e+00> : vector<128x128xf32>
    %5 = tpu.matmul %3, %4, %cst_5 {dimension_numbers = #tpu.dot_dimension_numbers<[1], [0], [0], [1], [0, 0, 1, 1], [], []>} : vector<128x128xbf16>, vector<128x128xbf16>, vector<128x128xf32> -> vector<128x128xf32>
    %c0_6 = arith.constant 0 : index
    %c0_7 = arith.constant 0 : index
    %6 = vector.load %arg4[%c0_6, %c0_7] : memref<1x128xf32, #tpu.memory_space<vmem>>, vector<1x128xf32>
    %7 = vector.broadcast %6 : vector<1x128xf32> to vector<128x128xf32>
    %8 = arith.addf %5, %7 : vector<128x128xf32>
    %9 = tpu.iota {dimensions = array<i32: 1>} : vector<128x128xi32>
    %c10_i32 = arith.constant 10 : i32
    %10 = vector.broadcast %c10_i32 : i32 to vector<128x128xi32>
    %11 = arith.cmpi slt, %9, %10 : vector<128x128xi32>
    %c0_8 = arith.constant 0 : index
    %c0_9 = arith.constant 0 : index
    %12 = vector.load %arg5[%c0_8, %c0_9] : memref<128x128xf32, #tpu.memory_space<vmem>>, vector<128x128xf32>
    tpu.vector_store %arg5[%c0_8, %c0_9], %8 {strides = array<i32>} : memref<128x128xf32, #tpu.memory_space<vmem>>, vector<128x128xf32>,
    %cst_10 = arith.constant -1.000000e+30 : f32
    %13 = vector.broadcast %cst_10 : f32 to vector<128x128xf32>
    %14 = arith.select %11, %8, %13 : vector<128x128xi1>, vector<128x128xf32>
    %cst_11 = arith.constant dense<0xFF800000> : vector<128xf32>
    %15 = vector.multi_reduction <maximumf>, %14, %cst_11 [1] : vector<128x128xf32> to vector<128xf32>
    %16 = vector.shape_cast %15 : vector<128xf32> to vector<128x1xf32>
    %17 = vector.broadcast %16 : vector<128x1xf32> to vector<128x128xf32>
    %18 = arith.subf %14, %17 : vector<128x128xf32>
    %19 = math.exp %18 : vector<128x128xf32>
    %cst_12 = arith.constant dense<0.000000e+00> : vector<128xf32>
    %20 = vector.multi_reduction <add>, %19, %cst_12 [1] : vector<128x128xf32> to vector<128xf32>
    %21 = vector.shape_cast %20 : vector<128xf32> to vector<128x1xf32>
    %22 = tpu.reciprocal %21 {approx = true} : vector<128x1xf32> -> vector<128x1xf32>
    %23 = vector.broadcast %22 : vector<128x1xf32> to vector<128x128xf32>
    %24 = arith.mulf %19, %23 : vector<128x128xf32>
    %c0_13 = arith.constant 0 : index
    %c0_14 = arith.constant 0 : index
    %25 = vector.load %arg6[%c0_13, %c0_14] : memref<128x128xf32, #tpu.memory_space<vmem>>, vector<128x128xf32>
    tpu.vector_store %arg6[%c0_13, %c0_14], %24 {strides = array<i32>} : memref<128x128xf32, #tpu.memory_space<vmem>>, vector<128x128xf32>,
    return
  }
  func.func @transform_0(%arg0: i32) -> (i32, i32) {
    %c0_i32 = arith.constant 0 : i32
    %c0_i32_0 = arith.constant 0 : i32
    return %arg0, %c0_i32 : i32, i32
  }
  func.func @transform_1(%arg0: i32) -> (i32, i32) {
    %c0_i32 = arith.constant 0 : i32
    %c0_i32_0 = arith.constant 0 : i32
    %c0_i32_1 = arith.constant 0 : i32
    return %c0_i32, %c0_i32_0 : i32, i32
  }
  func.func @transform_2(%arg0: i32) -> (i32, i32) {
    %c0_i32 = arith.constant 0 : i32
    %c0_i32_0 = arith.constant 0 : i32
    %c0_i32_1 = arith.constant 0 : i32
    return %c0_i32, %c0_i32_0 : i32, i32
  }
  func.func @transform_3(%arg0: i32) -> (i32, i32) {
    %c0_i32 = arith.constant 0 : i32
    %c0_i32_0 = arith.constant 0 : i32
    %c0_i32_1 = arith.constant 0 : i32
    return %c0_i32, %c0_i32_0 : i32, i32
  }
  func.func @transform_4(%arg0: i32) -> (i32, i32) {
    %c0_i32 = arith.constant 0 : i32
    %c0_i32_0 = arith.constant 0 : i32
    return %arg0, %c0_i32 : i32, i32
  }
  func.func @transform_5(%arg0: i32) -> (i32, i32) {
    %c0_i32 = arith.constant 0 : i32
    %c0_i32_0 = arith.constant 0 : i32
    return %arg0, %c0_i32 : i32, i32
  }
}

module attributes {stable_mosaic.version = 11 : i64} {
  func.func @_gcn_kernel(%arg0: i32, %arg1: memref<128x256xbf16, #tpu.memory_space<vmem>>, %arg2: memref<256x128xbf16, #tpu.memory_space<vmem>>, %arg3: memref<128x128xbf16, #tpu.memory_space<vmem>>, %arg4: memref<1x128xf32, #tpu.memory_space<vmem>>, %arg5: memref<128x128xf32, #tpu.memory_space<vmem>>) attributes {dimension_semantics = [#tpu.dimension_semantics<parallel>], iteration_bounds = array<i64: 2>, scalar_prefetch = 0 : i64, scratch_operands = 0 : i64, tpu.core_type = #tpu.core_type<tc>, window_params = [{transform_indices = @transform_0, window_bounds = array<i64: 128, 256>}, {pipeline_mode = #tpu.pipeline_mode<synchronous>, transform_indices = @transform_1, window_bounds = array<i64: 256, 128>}, {pipeline_mode = #tpu.pipeline_mode<synchronous>, transform_indices = @transform_2, window_bounds = array<i64: 128, 128>}, {pipeline_mode = #tpu.pipeline_mode<synchronous>, transform_indices = @transform_3, window_bounds = array<i64: 1, 128>}, {transform_indices = @transform_4, window_bounds = array<i64: 128, 128>}]} {
    %c0 = arith.constant 0 : index
    %c0_0 = arith.constant 0 : index
    %0 = vector.load %arg1[%c0, %c0_0] : memref<128x256xbf16, #tpu.memory_space<vmem>>, vector<128x256xbf16>
    %c0_1 = arith.constant 0 : index
    %c0_2 = arith.constant 0 : index
    %1 = vector.load %arg2[%c0_1, %c0_2] : memref<256x128xbf16, #tpu.memory_space<vmem>>, vector<256x128xbf16>
    %cst = arith.constant dense<0.000000e+00> : vector<128x128xf32>
    %2 = tpu.matmul %0, %1, %cst {dimension_numbers = #tpu.dot_dimension_numbers<[1], [0], [0], [1], [0, 0, 1, 1], [], []>} : vector<128x256xbf16>, vector<256x128xbf16>, vector<128x128xf32> -> vector<128x128xf32>
    %3 = arith.truncf %2 : vector<128x128xf32> to vector<128x128xbf16>
    %c0_3 = arith.constant 0 : index
    %c0_4 = arith.constant 0 : index
    %4 = vector.load %arg3[%c0_3, %c0_4] : memref<128x128xbf16, #tpu.memory_space<vmem>>, vector<128x128xbf16>
    %cst_5 = arith.constant dense<0.000000e+00> : vector<128x128xf32>
    %5 = tpu.matmul %3, %4, %cst_5 {dimension_numbers = #tpu.dot_dimension_numbers<[1], [0], [0], [1], [0, 0, 1, 1], [], []>} : vector<128x128xbf16>, vector<128x128xbf16>, vector<128x128xf32> -> vector<128x128xf32>
    %c0_6 = arith.constant 0 : index
    %c0_7 = arith.constant 0 : index
    %6 = vector.load %arg4[%c0_6, %c0_7] : memref<1x128xf32, #tpu.memory_space<vmem>>, vector<1x128xf32>
    %7 = vector.broadcast %6 : vector<1x128xf32> to vector<128x128xf32>
    %8 = arith.addf %5, %7 : vector<128x128xf32>
    %c0_8 = arith.constant 0 : index
    %c0_9 = arith.constant 0 : index
    %9 = vector.load %arg5[%c0_8, %c0_9] : memref<128x128xf32, #tpu.memory_space<vmem>>, vector<128x128xf32>
    tpu.vector_store %arg5[%c0_8, %c0_9], %8 {strides = array<i32>} : memref<128x128xf32, #tpu.memory_space<vmem>>, vector<128x128xf32>,
    return
  }
  func.func @transform_0(%arg0: i32) -> (i32, i32) {
    %c0_i32 = arith.constant 0 : i32
    %c0_i32_0 = arith.constant 0 : i32
    return %arg0, %c0_i32 : i32, i32
  }
  func.func @transform_1(%arg0: i32) -> (i32, i32) {
    %c0_i32 = arith.constant 0 : i32
    %c0_i32_0 = arith.constant 0 : i32
    %c0_i32_1 = arith.constant 0 : i32
    return %c0_i32, %c0_i32_0 : i32, i32
  }
  func.func @transform_2(%arg0: i32) -> (i32, i32) {
    %c0_i32 = arith.constant 0 : i32
    %c0_i32_0 = arith.constant 0 : i32
    %c0_i32_1 = arith.constant 0 : i32
    return %c0_i32, %c0_i32_0 : i32, i32
  }
  func.func @transform_3(%arg0: i32) -> (i32, i32) {
    %c0_i32 = arith.constant 0 : i32
    %c0_i32_0 = arith.constant 0 : i32
    %c0_i32_1 = arith.constant 0 : i32
    return %c0_i32, %c0_i32_0 : i32, i32
  }
  func.func @transform_4(%arg0: i32) -> (i32, i32) {
    %c0_i32 = arith.constant 0 : i32
    %c0_i32_0 = arith.constant 0 : i32
    return %arg0, %c0_i32 : i32, i32
  }
}

</mosaic_0001>

<bundles_post_ra>
// kernel: dwr_gcn_forward.19
= control target key start
LH: loop header
LB: loop body
LE: loop exit
PB: predicated region body
PF: predicated region fallthrough
CT: control target
= control target key end

     0   :  { %s1224_s15 = smov 0   ;;  %s1412_s0 = inlined_call_operand.vmem [shape: bf16[256,256], index: 0, kind: input, shape index: {}]   ;;  %s1413_s1 = inlined_call_operand.vmem [shape: bf16[256,128], index: 1, kind: input, shape index: {}]   ;;  %s1414_s2 = inlined_call_operand.vmem [shape: bf16[128,128], index: 2, kind: input, shape index: {}]   ;;  %s1415_s3 = inlined_call_operand.vmem [shape: f32[1,128], index: 3, kind: input, shape index: {}]   ;;  %s1416_s4 = inlined_call_operand.vmem [shape: f32[256,128], index: 4, kind: output, shape index: {}]  }
   0x1 LB: > { %s889_s16 = sadd.s32 4294967295, %s1197_s15   ;;  %p893_p0 = scmp.ge.s32.totalorder %s1197_s15, 1  ;;  %s1197_s15 = sphi %s1224_s15, %s14_s15  }
   0x2   : > { %p164_p1 = scmp.lt.s32.totalorder %s1197_s15, 3 }
   0x4   : > { %p165_p2 = pnand %p893_p0, %p164_p1 }
   0x5   : > { %v1079_v0 = vld [vmem:[%s1413_s1 + $0x40] sm:$0xff] (!%p165_p2)   ;;  %s894_s19 = sshll.u32 (!%p165_p2), %s889_s16, 4  ;;  %v1081_v2 = vld [vmem:[%s1413_s1 + $0x48] sm:$0xff] (!%p165_p2)   ;;  %v1083_v4 = vld [vmem:[%s1413_s1 + $0x50] sm:$0xff] (!%p165_p2)  }
   0x6   : > { %168 = sbr.rel (%p165_p2) target bundleno = 561 (0x231), region = 36  ;;  %v1080_v1 = vld [vmem:[%s1413_s1] sm:$0xff] (!%p165_p2)   ;;  %959 = vmatprep.subr.bf16.mxu0 (!%p165_p2), %v1079_v0  ;;  %v1082_v3 = vld [vmem:[%s1413_s1 + $0x8] sm:$0xff] (!%p165_p2)   ;;  %p192_p3 = scmp.lt.s32.totalorder (!%p165_p2), %s894_s19, 31  ;;  %v1084_v5 = vld [vmem:[%s1413_s1 + $0x10] sm:$0xff] (!%p165_p2)  }
   0x7   : > { %960 = vmatpush3.bf16.msra.mxu0 (!%p165_p2), %v1080_v1  ;;  %v1085_v6 = vld [vmem:[%s1413_s1 + $0x58] sm:$0xff] (!%p165_p2)   ;;  %v1087_v8 = vld [vmem:[%s1413_s1 + $0x60] sm:$0xff] (!%p165_p2)   ;;  %v1089_v10 = vld [vmem:[%s1413_s1 + $0x68] sm:$0xff] (!%p165_p2)  }
   0x8   : > { %961 = vmatprep.subr.bf16.mxu0 (!%p165_p2), %v1081_v2  ;;  %v1086_v7 = vld [vmem:[%s1413_s1 + $0x18] sm:$0xff] (!%p165_p2)   ;;  %v1088_v9 = vld [vmem:[%s1413_s1 + $0x20] sm:$0xff] (!%p165_p2)   ;;  %v1090_v12 = vld [vmem:[%s1413_s1 + $0x28] sm:$0xff] (!%p165_p2)  }
   0x9   : > { %v1091_v13 = vld [vmem:[%s1413_s1 + $0x70] sm:$0xff] (!%p165_p2)   ;;  %v1093_v15 = vld [vmem:[%s1413_s1 + $0x78] sm:$0xff] (!%p165_p2)   ;;  %v1119_v17 = vld [vmem:[%s1414_s2] sm:$0xff] (!%p165_p2)  }
   0xa   : > { %v1092_v14 = vld [vmem:[%s1413_s1 + $0x30] sm:$0xff] (!%p165_p2)   ;;  %v1094_v16 = vld [vmem:[%s1413_s1 + $0x38] sm:$0xff] (!%p165_p2)   ;;  %v1120_v19 = vld [vmem:[%s1414_s2 + $0x8] sm:$0xff] (!%p165_p2)   ;;  %1039 = vmatprep.subr.bf16.mxu1 (!%p165_p2), %v1119_v17 }
   0xb   : > { %962 = vmatpush3.bf16.msra.mxu0 (!%p165_p2), %v1082_v3  ;;  %1040 = vmatpush3.bf16.msra.mxu1 (!%p165_p2), %v1119_v17  ;;  %v1121_v21 = vld [vmem:[%s1414_s2 + $0x10] sm:$0xff] (!%p165_p2)   ;;  %v1122_v22 = vld [vmem:[%s1414_s2 + $0x18] sm:$0xff] (!%p165_p2)   ;;  %v1123_v36 = vld [vmem:[%s1414_s2 + $0x20] sm:$0xff] (!%p165_p2)  }
   0xc   : > { %963 = vmatprep.subr.bf16.mxu0 (!%p165_p2), %v1083_v4  ;;  %1041 = vmatprep.subr.bf16.mxu1 (!%p165_p2), %v1120_v19  ;;  %v1124_v37 = vld [vmem:[%s1414_s2 + $0x28] sm:$0xff] (!%p165_p2)   ;;  %v1125_v38 = vld [vmem:[%s1414_s2 + $0x30] sm:$0xff] (!%p165_p2)   ;;  %v1126_v39 = vld [vmem:[%s1414_s2 + $0x38] sm:$0xff] (!%p165_p2)  }
   0xd   : > { %s1418_s19 = smov (!%p192_p3, %s894_s19), 31 }
   0xe   : > { %s958_s8 = sshll.u32 %s1418_s19, 3 }
   0xf   : > { %964 = vmatpush3.bf16.msra.mxu0 %v1084_v5  ;;  %s1267_s13 = scalar_lea.vmem %s1412_s0, %s958_s8  ;;  %1042 = vmatpush3.bf16.msra.mxu1 %v1120_v19  ;;  %s1351_s27 = scalar_lea.vmem %s1416_s4, %s958_s8 }
  0x10   : > { %965 = vmatprep.subr.bf16.mxu0 %v1085_v6  ;;  %v1097_v11 = vld [vmem:[%s1267_s13 + $0x4] ss:$8 sps:$4 sm:$0xff]   ;;  %v1095_v18 = vld [vmem:[%s1267_s13] ss:$8 sps:$4 sm:$0xff]   ;;  %v1098_v20 = vld [vmem:[%s1267_s13 + $0x14] ss:$8 sps:$4 sm:$0xff]   ;;  %1043 = vmatprep.subr.bf16.mxu1 %v1121_v21 }
  0x11   : > { %461 = vmatprep.mubr.bf16.mxu0 %v1097_v11  ;;  %v1100_v23 = vld [vmem:[%s1267_s13 + $0x10] ss:$8 sps:$4 sm:$0xff]   ;;  %v1101_v24 = vld [vmem:[%s1267_s13 + $0x24] ss:$8 sps:$4 sm:$0xff]   ;;  %v1103_v25 = vld [vmem:[%s1267_s13 + $0x20] ss:$8 sps:$4 sm:$0xff]  }
  0x12   : > { %v1104_v26 = vld [vmem:[%s1267_s13 + $0x34] ss:$8 sps:$4 sm:$0xff]   ;;  %v1106_v27 = vld [vmem:[%s1267_s13 + $0x30] ss:$8 sps:$4 sm:$0xff]   ;;  %v1107_v28 = vld [vmem:[%s1267_s13 + $0x44] ss:$8 sps:$4 sm:$0xff]  }
  0x13   : > { %966 = vmatpush3.bf16.msra.mxu0 %v1086_v7  ;;  %1044 = vmatpush3.bf16.msra.mxu1 %v1121_v21  ;;  %v1109_v29 = vld [vmem:[%s1267_s13 + $0x40] ss:$8 sps:$4 sm:$0xff]   ;;  %v1110_v30 = vld [vmem:[%s1267_s13 + $0x54] ss:$8 sps:$4 sm:$0xff]   ;;  %v1112_v31 = vld [vmem:[%s1267_s13 + $0x50] ss:$8 sps:$4 sm:$0xff]  }
  0x14   : > { %967 = vmatprep.subr.bf16.mxu0 %v1087_v8  ;;  %1045 = vmatprep.subr.bf16.mxu1 %v1122_v22  ;;  %v1113_v32 = vld [vmem:[%s1267_s13 + $0x64] ss:$8 sps:$4 sm:$0xff]   ;;  %v1115_v33 = vld [vmem:[%s1267_s13 + $0x60] ss:$8 sps:$4 sm:$0xff]   ;;  %v1116_v34 = vld [vmem:[%s1267_s13 + $0x74] ss:$8 sps:$4 sm:$0xff]  }
  0x15   : > { %v1118_v35 = vld [vmem:[%s1267_s13 + $0x70] ss:$8 sps:$4 sm:$0xff]  }
  0x17   : > { %968 = vmatpush3.bf16.msra.mxu0 %v1088_v9  ;;  %1046 = vmatpush3.bf16.msra.mxu1 %v1122_v22 }
  0x18   : > { %969 = vmatprep.subr.bf16.mxu0 %v1089_v10  ;;  %1047 = vmatprep.subr.bf16.mxu1 %v1123_v36 }
  0x1b   : > { %970 = vmatpush3.bf16.msra.mxu0 %v1090_v12  ;;  %1048 = vmatpush3.bf16.msra.mxu1 %v1123_v36 }
  0x1c   : > { %971 = vmatprep.subr.bf16.mxu0 %v1091_v13  ;;  %1049 = vmatprep.subr.bf16.mxu1 %v1124_v37 }
  0x1f   : > { %972 = vmatpush3.bf16.msra.mxu0 %v1092_v14  ;;  %1050 = vmatpush3.bf16.msra.mxu1 %v1124_v37 }
  0x20   : > { %973 = vmatprep.subr.bf16.mxu0 %v1093_v15  ;;  %1051 = vmatprep.subr.bf16.mxu1 %v1125_v38 }
  0x23   : > { %974 = vmatpush3.bf16.msra.mxu0 %v1094_v16  ;;  %1052 = vmatpush3.bf16.msra.mxu1 %v1125_v38 }
  0x24   : > { %1053 = vmatprep.subr.bf16.mxu1 %v1126_v39 }
  0x26   : > { %462 = vmatmul.mubr.bf16.vlgmr.msra.gmra.mrb[0].mxu0 %v1095_v18 }
  0x27   : > { %469 = vmatprep.mubr.bf16.mxu0 %v1098_v20  ;;  %1054 = vmatpush3.bf16.msra.mxu1 %v1126_v39 }
  0x2e   : > { %470 = vmatmul.mubr.bf16.gmra.mrb[4].mxu0 %v1100_v23 }
  0x2f   : > { %477 = vmatprep.mubr.bf16.mxu0 %v1101_v24 }
  0x36   : > { %478 = vmatmul.mubr.bf16.gmra.mrb[8].mxu0 %v1103_v25 }
  0x37   : > { %485 = vmatprep.mubr.bf16.mxu0 %v1104_v26 }
  0x3e   : > { %486 = vmatmul.mubr.bf16.gmra.mrb[12].mxu0 %v1106_v27 }
  0x3f   : > { %493 = vmatprep.mubr.bf16.mxu0 %v1107_v28 }
  0x46   : > { %494 = vmatmul.mubr.bf16.gmra.mrb[16].mxu0 %v1109_v29 }
  0x47   : > { %501 = vmatprep.mubr.bf16.mxu0 %v1110_v30 }
  0x4e   : > { %502 = vmatmul.mubr.bf16.gmra.mrb[20].mxu0 %v1112_v31 }
  0x4f   : > { %509 = vmatprep.mubr.bf16.mxu0 %v1113_v32  ;;  %v1333_v32 = vld [vmem:[%s1415_s3] ss:$0 sm:$0xff] }
  0x56   : > { %510 = vmatmul.mubr.bf16.gmra.mrb[24].mxu0 %v1115_v33 }
  0x57   : > { %517 = vmatprep.mubr.bf16.mxu0 %v1116_v34 }
  0x5e   : > { %518 = vmatmul.mubr.bf16.gmra.mrb[28].mxu0 %v1118_v35 }
  0xf9   : > { %v975_v40 = vpop.f32.mrb[0].mxu0 }
  0xfa   : > { %v976_v41 = vpop.f32.mrb[1].mxu0 }
  0xfb   : > { %v977_v42 = vadd.f32 %v976_v41, %v975_v40  ;;  %v978_v43 = vpop.f32.mrb[2].mxu0 }
  0xfc   : > { %v979_v44 = vpop.f32.mrb[3].mxu0 }
  0xfd   : > { %v980_v45 = vadd.f32 %v979_v44, %v978_v43 }
  0xff   : > { %v526_v46 = vpack.c.bf16 %v980_v45, %v977_v42 }
 0x101   : > { %v981_v47 = vpop.f32.mrb[4].mxu0  ;;  %1055 = vmatprep.mubr.bf16.mxu1 %v526_v46 }
 0x102   : > { %v982_v48 = vpop.f32.mrb[5].mxu0 }
 0x103   : > { %v983_v49 = vadd.f32 %v982_v48, %v981_v47  ;;  %v984_v50 = vpop.f32.mrb[6].mxu0 }
 0x104   : > { %v985_v51 = vpop.f32.mrb[7].mxu0 }
 0x105   : > { %v986_v52 = vadd.f32 %v985_v51, %v984_v50 }
 0x107   : > { %v527_v53 = vpack.c.bf16 %v986_v52, %v983_v49 }
 0x109   : > { %v987_v54 = vpop.f32.mrb[8].mxu0  ;;  %1056 = vmatmul.mubr.bf16.vlgmr.msra.gmra.mrb[0].mxu1 %v527_v53 }
 0x10a   : > { %v988_v55 = vpop.f32.mrb[9].mxu0 }
 0x10b   : > { %v989_v56 = vadd.f32 %v988_v55, %v987_v54  ;;  %v990_v57 = vpop.f32.mrb[10].mxu0  ;;  %v702_v54 = vlaneseq }
 0x10c   : > { %v991_v58 = vpop.f32.mrb[11].mxu0 }
 0x10d   : > { %v992_v59 = vadd.f32 %v991_v58, %v990_v57 }
 0x10f   : > { %v528_v60 = vpack.c.bf16 %v992_v59, %v989_v56 }
 0x111   : > { %v993_v61 = vpop.f32.mrb[12].mxu0  ;;  %1059 = vmatprep.mubr.bf16.mxu1 %v528_v60 }
 0x112   : > { %v994_v62 = vpop.f32.mrb[13].mxu0 }
 0x113   : > { %v995_v63 = vadd.f32 %v994_v62, %v993_v61  ;;  %v996_v0 = vpop.f32.mrb[14].mxu0 }
 0x114   : > { %v997_v1 = vpop.f32.mrb[15].mxu0 }
 0x115   : > { %v998_v2 = vadd.f32 %v997_v1, %v996_v0  ;;  %v1343_v1 = vand.u32 127, %v702_v54 }
 0x117   : > { %v529_v3 = vpack.c.bf16 %v998_v2, %v995_v63  ;;  %vm704_vm0 = vcmp.lt.s32.totalorder %v1343_v1, 64 }
 0x119   : > { %v999_v4 = vpop.f32.mrb[16].mxu0  ;;  %1060 = vmatmul.mubr.bf16.gmra.mrb[4].mxu1 %v529_v3 }
 0x11a   : > { %v1000_v5 = vpop.f32.mrb[17].mxu0 }
 0x11b   : > { %v1001_v6 = vadd.f32 %v1000_v5, %v999_v4  ;;  %v1002_v7 = vpop.f32.mrb[18].mxu0 }
 0x11c   : > { %v1003_v8 = vpop.f32.mrb[19].mxu0 }
 0x11d   : > { %v1004_v9 = vadd.f32 %v1003_v8, %v1002_v7 }
 0x11f   : > { %v530_v10 = vpack.c.bf16 %v1004_v9, %v1001_v6 }
 0x121   : > { %v1005_v11 = vpop.f32.mrb[20].mxu0  ;;  %1063 = vmatprep.mubr.bf16.mxu1 %v530_v10 }
 0x122   : > { %v1006_v12 = vpop.f32.mrb[21].mxu0 }
 0x123   : > { %v1007_v13 = vadd.f32 %v1006_v12, %v1005_v11  ;;  %v1008_v14 = vpop.f32.mrb[22].mxu0 }
 0x124   : > { %v1009_v15 = vpop.f32.mrb[23].mxu0 }
 0x125   : > { %v1010_v16 = vadd.f32 %v1009_v15, %v1008_v14 }
 0x127   : > { %v531_v17 = vpack.c.bf16 %v1010_v16, %v1007_v13 }
 0x129   : > { %v1011_v18 = vpop.f32.mrb[24].mxu0  ;;  %1064 = vmatmul.mubr.bf16.gmra.mrb[8].mxu1 %v531_v17 }
 0x12a   : > { %v1012_v19 = vpop.f32.mrb[25].mxu0 }
 0x12b   : > { %v1013_v20 = vadd.f32 %v1012_v19, %v1011_v18  ;;  %v1014_v21 = vpop.f32.mrb[26].mxu0 }
 0x12c   : > { %v1015_v22 = vpop.f32.mrb[27].mxu0 }
 0x12d   : > { %v1016_v23 = vadd.f32 %v1015_v22, %v1014_v21 }
 0x12f   : > { %v532_v24 = vpack.c.bf16 %v1016_v23, %v1013_v20 }
 0x131   : > { %v1017_v25 = vpop.f32.mrb[28].mxu0  ;;  %1067 = vmatprep.mubr.bf16.mxu1 %v532_v24 }
 0x132   : > { %v1018_v26 = vpop.f32.mrb[29].mxu0 }
 0x133   : > { %v1019_v27 = vadd.f32 %v1018_v26, %v1017_v25  ;;  %v1020_v28 = vpop.f32.mrb[30].mxu0 }
 0x134   : > { %v1021_v29 = vpop.f32.mrb[31].mxu0 }
 0x135   : > { %v1022_v30 = vadd.f32 %v1021_v29, %v1020_v28 }
 0x137   : > { %v533_v31 = vpack.c.bf16 %v1022_v30, %v1019_v27 }
 0x139   : > { %1068 = vmatmul.mubr.bf16.gmra.mrb[12].mxu1 %v533_v31 }
 0x1dc   : > { %v1057_v33 = vpop.f32.mrb[0].mxu1 }
 0x1dd   : > { %v648_v34 = vadd.f32 %v1057_v33, %v1333_v32  ;;  %v639_v35 = vpop.f32.mrb[1].mxu1 }
 0x1de   : > { %v640_v36 = vadd.f32 %v1333_v32, %v639_v35  ;;  %v1058_v37 = vpop.f32.mrb[2].mxu1 }
 0x1df   : > { %v942_v38 = vmul.f32 -1.442695, %v648_v34  ;;  %v651_v39 = vadd.f32 %v1058_v37, %v1333_v32  ;;  %v642_v40 = vpop.f32.mrb[3].mxu1 }
 0x1e0   : > { %v940_v41 = vmul.f32 -1.442695, %v640_v36  ;;  %v643_v42 = vadd.f32 %v1333_v32, %v642_v40 }
 0x1e1   : > { %1127 = vpow2.f32 %v942_v38  ;;  %v943_v43 = vmul.f32 -1.442695, %v651_v39 }
 0x1e2   : > { %1129 = vpow2.f32 %v940_v41  ;;  %v941_v44 = vmul.f32 -1.442695, %v643_v42 }
 0x1e3   : > { %1131 = vpow2.f32 %v943_v43 }
 0x1e4   : > { %1133 = vpow2.f32 %v941_v44 }
 0x1eb   : > { %v1128_v45 = vpop.eup %1127 }
 0x1ec   : > { %v1130_v46 = vpop.eup %1129  ;;  %v755_v47 = vadd.f32 1.0, %v1128_v45  ;;  %v1061_v48 = vpop.f32.mrb[4].mxu1 }
 0x1ed   : > { %v1132_v49 = vpop.eup %1131  ;;  %v753_v50 = vadd.f32 1.0, %v1130_v46  ;;  %v664_v51 = vadd.f32 %v1061_v48, %v1333_v32  ;;  %v655_v52 = vpop.f32.mrb[5].mxu1 }
 0x1ee   : > { %v1134_v53 = vpop.eup %1133  ;;  %1135 = vrcp.f32 %v755_v47  ;;  %v756_v55 = vadd.f32 1.0, %v1132_v49  ;;  %v656_v56 = vadd.f32 %v1333_v32, %v655_v52  ;;  %v1062_v57 = vpop.f32.mrb[6].mxu1 }
 0x1ef   : > { %1137 = vrcp.f32 %v753_v50  ;;  %v754_v58 = vadd.f32 1.0, %v1134_v53  ;;  %v946_v59 = vmul.f32 -1.442695, %v664_v51  ;;  %v667_v60 = vadd.f32 %v1062_v57, %v1333_v32  ;;  %v658_v61 = vpop.f32.mrb[7].mxu1 }
 0x1f0   : > { %1139 = vrcp.f32 %v756_v55  ;;  %v944_v62 = vmul.f32 -1.442695, %v656_v56  ;;  %v659_v63 = vadd.f32 %v1333_v32, %v658_v61 }
 0x1f1   : > { %1141 = vrcp.f32 %v754_v58  ;;  %v947_v0 = vmul.f32 -1.442695, %v667_v60 }
 0x1f2   : > { %1143 = vpow2.f32 %v946_v59  ;;  %v945_v2 = vmul.f32 -1.442695, %v659_v63 }
 0x1f3   : > { %1145 = vpow2.f32 %v944_v62 }
 0x1f4   : > { %1147 = vpow2.f32 %v947_v0 }
 0x1f5   : > { %1149 = vpow2.f32 %v945_v2 }
 0x1f8   : > { %v1136_v3 = vpop.eup %1135 }
 0x1f9   : > { %v1138_v4 = vpop.eup %1137  ;;  %v803_v5 = vsel %vm704_vm0, %v1136_v3, 0.0 }
 0x1fa   : > { %v1140_v6 = vpop.eup %1139  ;;  %819 = vst [vmem:[%s1351_s27 + $0x10] sm:$0xff] %v803_v5  ;;  %v801_v7 = vsel %vm704_vm0, %v1138_v4, 0.0 }
 0x1fb   : > { %v1142_v8 = vpop.eup %1141  ;;  %817 = vst [vmem:[%s1351_s27] sm:$0xff] %v801_v7  ;;  %v804_v9 = vsel %vm704_vm0, %v1140_v6, 0.0 }
 0x1fc   : > { %v1144_v10 = vpop.eup %1143  ;;  %820 = vst [vmem:[%s1351_s27 + $0x18] sm:$0xff] %v804_v9  ;;  %v802_v11 = vsel %vm704_vm0, %v1142_v8, 0.0  ;;  %v1065_v12 = vpop.f32.mrb[8].mxu1 }
 0x1fd   : > { %v1146_v13 = vpop.eup %1145  ;;  %818 = vst [vmem:[%s1351_s27 + $0x8] sm:$0xff] %v802_v11  ;;  %v759_v14 = vadd.f32 1.0, %v1144_v10  ;;  %v680_v15 = vadd.f32 %v1065_v12, %v1333_v32  ;;  %v671_v16 = vpop.f32.mrb[9].mxu1 }
 0x1fe   : > { %v1148_v17 = vpop.eup %1147  ;;  %v757_v18 = vadd.f32 1.0, %v1146_v13  ;;  %v672_v19 = vadd.f32 %v1333_v32, %v671_v16  ;;  %v1066_v20 = vpop.f32.mrb[10].mxu1 }
 0x1ff   : > { %v1150_v21 = vpop.eup %1149  ;;  %1151 = vrcp.f32 %v759_v14  ;;  %v760_v22 = vadd.f32 1.0, %v1148_v17  ;;  %v950_v23 = vmul.f32 -1.442695, %v680_v15  ;;  %v683_v24 = vadd.f32 %v1066_v20, %v1333_v32  ;;  %v674_v25 = vpop.f32.mrb[11].mxu1 }
 0x200   : > { %1153 = vrcp.f32 %v757_v18  ;;  %v758_v26 = vadd.f32 1.0, %v1150_v21  ;;  %v948_v27 = vmul.f32 -1.442695, %v672_v19  ;;  %v675_v28 = vadd.f32 %v1333_v32, %v674_v25 }
 0x201   : > { %1155 = vrcp.f32 %v760_v22  ;;  %v951_v29 = vmul.f32 -1.442695, %v683_v24 }
 0x202   : > { %1157 = vrcp.f32 %v758_v26  ;;  %v949_v30 = vmul.f32 -1.442695, %v675_v28 }
 0x203   : > { %1159 = vpow2.f32 %v950_v23 }
 0x204   : > { %1161 = vpow2.f32 %v948_v27 }
 0x205   : > { %1163 = vpow2.f32 %v951_v29 }
 0x206   : > { %1165 = vpow2.f32 %v949_v30 }
 0x209   : > { %v1152_v31 = vpop.eup %1151 }
 0x20a   : > { %v1154_v33 = vpop.eup %1153  ;;  %v807_v34 = vsel %vm704_vm0, %v1152_v31, 0.0 }
 0x20b   : > { %v1156_v35 = vpop.eup %1155  ;;  %823 = vst [vmem:[%s1351_s27 + $0x30] sm:$0xff] %v807_v34  ;;  %v805_v36 = vsel %vm704_vm0, %v1154_v33, 0.0 }
 0x20c   : > { %v1158_v37 = vpop.eup %1157  ;;  %821 = vst [vmem:[%s1351_s27 + $0x20] sm:$0xff] %v805_v36  ;;  %v808_v38 = vsel %vm704_vm0, %v1156_v35, 0.0  ;;  %v1069_v39 = vpop.f32.mrb[12].mxu1 }
 0x20d   : > { %v1160_v40 = vpop.eup %1159  ;;  %824 = vst [vmem:[%s1351_s27 + $0x38] sm:$0xff] %v808_v38  ;;  %v806_v41 = vsel %vm704_vm0, %v1158_v37, 0.0  ;;  %v696_v42 = vadd.f32 %v1069_v39, %v1333_v32  ;;  %v687_v43 = vpop.f32.mrb[13].mxu1 }
 0x20e   : > { %v1162_v44 = vpop.eup %1161  ;;  %822 = vst [vmem:[%s1351_s27 + $0x28] sm:$0xff] %v806_v41  ;;  %v763_v45 = vadd.f32 1.0, %v1160_v40  ;;  %v688_v46 = vadd.f32 %v1333_v32, %v687_v43  ;;  %v1070_v47 = vpop.f32.mrb[14].mxu1 }
 0x20f   : > { %v1164_v48 = vpop.eup %1163  ;;  %v761_v49 = vadd.f32 1.0, %v1162_v44  ;;  %v699_v50 = vadd.f32 %v1070_v47, %v1333_v32  ;;  %v690_v51 = vpop.f32.mrb[15].mxu1  ;;  %v954_v54 = vmul.f32 -1.442695, %v696_v42 }
 0x210   : > { %v1166_v52 = vpop.eup %1165  ;;  %1167 = vrcp.f32 %v763_v45  ;;  %v764_v53 = vadd.f32 1.0, %v1164_v48  ;;  %v691_v55 = vadd.f32 %v1333_v32, %v690_v51  ;;  %v952_v57 = vmul.f32 -1.442695, %v688_v46 }
 0x211   : > { %1169 = vrcp.f32 %v761_v49  ;;  %v762_v56 = vadd.f32 1.0, %v1166_v52  ;;  %v955_v58 = vmul.f32 -1.442695, %v699_v50 }
 0x212   : > { %1171 = vrcp.f32 %v764_v53  ;;  %v953_v59 = vmul.f32 -1.442695, %v691_v55 }
 0x213   : > { %1173 = vrcp.f32 %v762_v56 }
 0x214   : > { %1175 = vpow2.f32 %v954_v54 }
 0x215   : > { %1177 = vpow2.f32 %v952_v57 }
 0x216   : > { %1179 = vpow2.f32 %v955_v58 }
 0x217   : > { %1181 = vpow2.f32 %v953_v59 }
 0x21a   : > { %v1168_v60 = vpop.eup %1167 }
 0x21b   : > { %v1170_v61 = vpop.eup %1169  ;;  %v811_v32 = vsel %vm704_vm0, %v1168_v60, 0.0 }
 0x21c   : > { %v1172_v62 = vpop.eup %1171  ;;  %827 = vst [vmem:[%s1351_s27 + $0x50] sm:$0xff] %v811_v32  ;;  %v809_v63 = vsel %vm704_vm0, %v1170_v61, 0.0 }
 0x21d   : > { %v1174_v0 = vpop.eup %1173  ;;  %825 = vst [vmem:[%s1351_s27 + $0x40] sm:$0xff] %v809_v63  ;;  %v812_v2 = vsel %vm704_vm0, %v1172_v62, 0.0 }
 0x21e   : > { %v1176_v3 = vpop.eup %1175  ;;  %828 = vst [vmem:[%s1351_s27 + $0x58] sm:$0xff] %v812_v2  ;;  %v810_v4 = vsel %vm704_vm0, %v1174_v0, 0.0 }
 0x21f   : > { %v1178_v5 = vpop.eup %1177  ;;  %826 = vst [vmem:[%s1351_s27 + $0x48] sm:$0xff] %v810_v4  ;;  %v767_v6 = vadd.f32 1.0, %v1176_v3 }
 0x220   : > { %v1180_v7 = vpop.eup %1179  ;;  %v765_v8 = vadd.f32 1.0, %v1178_v5 }
 0x221   : > { %v1182_v9 = vpop.eup %1181  ;;  %1183 = vrcp.f32 %v767_v6  ;;  %v768_v10 = vadd.f32 1.0, %v1180_v7 }
 0x222   : > { %1185 = vrcp.f32 %v765_v8  ;;  %v766_v11 = vadd.f32 1.0, %v1182_v9 }
 0x223   : > { %1187 = vrcp.f32 %v768_v10 }
 0x224   : > { %1189 = vrcp.f32 %v766_v11 }
 0x22b   : > { %v1184_v12 = vpop.eup %1183 }
 0x22c   : > { %v1186_v13 = vpop.eup %1185  ;;  %v815_v14 = vsel %vm704_vm0, %v1184_v12, 0.0 }
 0x22d   : > { %v1188_v15 = vpop.eup %1187  ;;  %831 = vst [vmem:[%s1351_s27 + $0x70] sm:$0xff] %v815_v14  ;;  %v813_v16 = vsel %vm704_vm0, %v1186_v13, 0.0 }
 0x22e   : > { %v1190_v17 = vpop.eup %1189  ;;  %829 = vst [vmem:[%s1351_s27 + $0x60] sm:$0xff] %v813_v16  ;;  %v816_v18 = vsel %vm704_vm0, %v1188_v15, 0.0 }
 0x22f   : > { %832 = vst [vmem:[%s1351_s27 + $0x78] sm:$0xff] %v816_v18  ;;  %v814_v19 = vsel %vm704_vm0, %v1190_v17, 0.0 }
 0x230   : > { %830 = vst [vmem:[%s1351_s27 + $0x68] sm:$0xff] %v814_v19 }
 0x231 PF: > { %s14_s15 = sadd.s32 1, %s1197_s15  }
 0x232   : > { %p11_p4 = scmp.ge.s32.totalorder %s14_s15, 4  }
 0x234   :  { %13 = sbr.rel (!%p11_p4) target bundleno = 1 (0x1), region = 66 }

// kernel: dwr_gcn_forward.11
= control target key start
LH: loop header
LB: loop body
LE: loop exit
PB: predicated region body
PF: predicated region fallthrough
CT: control target
= control target key end

     0   :  { %s1188_s15 = smov 0   ;;  %s1312_s0 = inlined_call_operand.vmem [shape: bf16[256,256], index: 0, kind: input, shape index: {}]   ;;  %s1313_s1 = inlined_call_operand.vmem [shape: bf16[256,128], index: 1, kind: input, shape index: {}]   ;;  %s1314_s2 = inlined_call_operand.vmem [shape: bf16[128,128], index: 2, kind: input, shape index: {}]   ;;  %s1315_s3 = inlined_call_operand.vmem [shape: f32[1,128], index: 3, kind: input, shape index: {}]   ;;  %s1316_s4 = inlined_call_operand.vmem [shape: bf16[256,128], index: 4, kind: output, shape index: {}]  }
   0x1 LB: > { %s854_s16 = sadd.s32 4294967295, %s1161_s15   ;;  %p858_p0 = scmp.ge.s32.totalorder %s1161_s15, 1  ;;  %s1161_s15 = sphi %s1188_s15, %s14_s15  }
   0x2   : > { %p164_p1 = scmp.lt.s32.totalorder %s1161_s15, 3 }
   0x4   : > { %p165_p2 = pnand %p858_p0, %p164_p1 }
   0x5   : > { %v1107_v0 = vld [vmem:[%s1313_s1 + $0x40] sm:$0xff] (!%p165_p2)   ;;  %s859_s19 = sshll.u32 (!%p165_p2), %s854_s16, 4  ;;  %v1109_v2 = vld [vmem:[%s1313_s1 + $0x48] sm:$0xff] (!%p165_p2)   ;;  %v1111_v4 = vld [vmem:[%s1313_s1 + $0x50] sm:$0xff] (!%p165_p2)  }
   0x6   : > { %168 = sbr.rel (%p165_p2) target bundleno = 535 (0x217), region = 36  ;;  %v1108_v1 = vld [vmem:[%s1313_s1] sm:$0xff] (!%p165_p2)   ;;  %987 = vmatprep.subr.bf16.mxu0 (!%p165_p2), %v1107_v0  ;;  %v1110_v3 = vld [vmem:[%s1313_s1 + $0x8] sm:$0xff] (!%p165_p2)   ;;  %p192_p3 = scmp.lt.s32.totalorder (!%p165_p2), %s859_s19, 31  ;;  %v1112_v5 = vld [vmem:[%s1313_s1 + $0x10] sm:$0xff] (!%p165_p2)  }
   0x7   : > { %988 = vmatpush3.bf16.msra.mxu0 (!%p165_p2), %v1108_v1  ;;  %v1113_v6 = vld [vmem:[%s1313_s1 + $0x58] sm:$0xff] (!%p165_p2)   ;;  %v1115_v8 = vld [vmem:[%s1313_s1 + $0x60] sm:$0xff] (!%p165_p2)   ;;  %v1117_v10 = vld [vmem:[%s1313_s1 + $0x68] sm:$0xff] (!%p165_p2)  }
   0x8   : > { %989 = vmatprep.subr.bf16.mxu0 (!%p165_p2), %v1109_v2  ;;  %v1114_v7 = vld [vmem:[%s1313_s1 + $0x18] sm:$0xff] (!%p165_p2)   ;;  %v1116_v9 = vld [vmem:[%s1313_s1 + $0x20] sm:$0xff] (!%p165_p2)   ;;  %v1118_v12 = vld [vmem:[%s1313_s1 + $0x28] sm:$0xff] (!%p165_p2)  }
   0x9   : > { %v1119_v13 = vld [vmem:[%s1313_s1 + $0x70] sm:$0xff] (!%p165_p2)   ;;  %v1121_v15 = vld [vmem:[%s1313_s1 + $0x78] sm:$0xff] (!%p165_p2)   ;;  %v1147_v17 = vld [vmem:[%s1314_s2] sm:$0xff] (!%p165_p2)  }
   0xa   : > { %v1120_v14 = vld [vmem:[%s1313_s1 + $0x30] sm:$0xff] (!%p165_p2)   ;;  %v1122_v16 = vld [vmem:[%s1313_s1 + $0x38] sm:$0xff] (!%p165_p2)   ;;  %v1148_v19 = vld [vmem:[%s1314_s2 + $0x8] sm:$0xff] (!%p165_p2)   ;;  %1067 = vmatprep.subr.bf16.mxu1 (!%p165_p2), %v1147_v17 }
   0xb   : > { %990 = vmatpush3.bf16.msra.mxu0 (!%p165_p2), %v1110_v3  ;;  %1068 = vmatpush3.bf16.msra.mxu1 (!%p165_p2), %v1147_v17  ;;  %v1149_v21 = vld [vmem:[%s1314_s2 + $0x10] sm:$0xff] (!%p165_p2)   ;;  %v1150_v22 = vld [vmem:[%s1314_s2 + $0x18] sm:$0xff] (!%p165_p2)   ;;  %v1151_v36 = vld [vmem:[%s1314_s2 + $0x20] sm:$0xff] (!%p165_p2)  }
   0xc   : > { %991 = vmatprep.subr.bf16.mxu0 (!%p165_p2), %v1111_v4  ;;  %1069 = vmatprep.subr.bf16.mxu1 (!%p165_p2), %v1148_v19  ;;  %v1152_v37 = vld [vmem:[%s1314_s2 + $0x28] sm:$0xff] (!%p165_p2)   ;;  %v1153_v38 = vld [vmem:[%s1314_s2 + $0x30] sm:$0xff] (!%p165_p2)   ;;  %v1154_v39 = vld [vmem:[%s1314_s2 + $0x38] sm:$0xff] (!%p165_p2)  }
   0xd   : > { %s1318_s19 = smov (!%p192_p3, %s859_s19), 31 }
   0xe   : > { %s923_s8 = sshll.u32 %s1318_s19, 3  ;;  %s863_s24 = sshll.u32 %s1318_s19, 2 }
   0xf   : > { %992 = vmatpush3.bf16.msra.mxu0 %v1112_v5  ;;  %s1229_s13 = scalar_lea.vmem %s1312_s0, %s923_s8  ;;  %1070 = vmatpush3.bf16.msra.mxu1 %v1148_v19  ;;  %s1299_s27 = scalar_lea.vmem %s1316_s4, %s863_s24 }
  0x10   : > { %993 = vmatprep.subr.bf16.mxu0 %v1113_v6  ;;  %v1125_v11 = vld [vmem:[%s1229_s13 + $0x4] ss:$8 sps:$4 sm:$0xff]   ;;  %v1123_v18 = vld [vmem:[%s1229_s13] ss:$8 sps:$4 sm:$0xff]   ;;  %v1126_v20 = vld [vmem:[%s1229_s13 + $0x14] ss:$8 sps:$4 sm:$0xff]   ;;  %1071 = vmatprep.subr.bf16.mxu1 %v1149_v21 }
  0x11   : > { %461 = vmatprep.mubr.bf16.mxu0 %v1125_v11  ;;  %v1128_v23 = vld [vmem:[%s1229_s13 + $0x10] ss:$8 sps:$4 sm:$0xff]   ;;  %v1129_v24 = vld [vmem:[%s1229_s13 + $0x24] ss:$8 sps:$4 sm:$0xff]   ;;  %v1131_v25 = vld [vmem:[%s1229_s13 + $0x20] ss:$8 sps:$4 sm:$0xff]  }
  0x12   : > { %v1132_v26 = vld [vmem:[%s1229_s13 + $0x34] ss:$8 sps:$4 sm:$0xff]   ;;  %v1134_v27 = vld [vmem:[%s1229_s13 + $0x30] ss:$8 sps:$4 sm:$0xff]   ;;  %v1135_v28 = vld [vmem:[%s1229_s13 + $0x44] ss:$8 sps:$4 sm:$0xff]  }
  0x13   : > { %994 = vmatpush3.bf16.msra.mxu0 %v1114_v7  ;;  %1072 = vmatpush3.bf16.msra.mxu1 %v1149_v21  ;;  %v1137_v29 = vld [vmem:[%s1229_s13 + $0x40] ss:$8 sps:$4 sm:$0xff]   ;;  %v1138_v30 = vld [vmem:[%s1229_s13 + $0x54] ss:$8 sps:$4 sm:$0xff]   ;;  %v1140_v31 = vld [vmem:[%s1229_s13 + $0x50] ss:$8 sps:$4 sm:$0xff]  }
  0x14   : > { %995 = vmatprep.subr.bf16.mxu0 %v1115_v8  ;;  %1073 = vmatprep.subr.bf16.mxu1 %v1150_v22  ;;  %v1141_v32 = vld [vmem:[%s1229_s13 + $0x64] ss:$8 sps:$4 sm:$0xff]   ;;  %v1143_v33 = vld [vmem:[%s1229_s13 + $0x60] ss:$8 sps:$4 sm:$0xff]   ;;  %v1144_v34 = vld [vmem:[%s1229_s13 + $0x74] ss:$8 sps:$4 sm:$0xff]  }
  0x15   : > { %v1146_v35 = vld [vmem:[%s1229_s13 + $0x70] ss:$8 sps:$4 sm:$0xff]  }
  0x17   : > { %996 = vmatpush3.bf16.msra.mxu0 %v1116_v9  ;;  %1074 = vmatpush3.bf16.msra.mxu1 %v1150_v22 }
  0x18   : > { %997 = vmatprep.subr.bf16.mxu0 %v1117_v10  ;;  %1075 = vmatprep.subr.bf16.mxu1 %v1151_v36 }
  0x1b   : > { %998 = vmatpush3.bf16.msra.mxu0 %v1118_v12  ;;  %1076 = vmatpush3.bf16.msra.mxu1 %v1151_v36 }
  0x1c   : > { %999 = vmatprep.subr.bf16.mxu0 %v1119_v13  ;;  %1077 = vmatprep.subr.bf16.mxu1 %v1152_v37 }
  0x1f   : > { %1000 = vmatpush3.bf16.msra.mxu0 %v1120_v14  ;;  %1078 = vmatpush3.bf16.msra.mxu1 %v1152_v37 }
  0x20   : > { %1001 = vmatprep.subr.bf16.mxu0 %v1121_v15  ;;  %1079 = vmatprep.subr.bf16.mxu1 %v1153_v38 }
  0x23   : > { %1002 = vmatpush3.bf16.msra.mxu0 %v1122_v16  ;;  %1080 = vmatpush3.bf16.msra.mxu1 %v1153_v38 }
  0x24   : > { %1081 = vmatprep.subr.bf16.mxu1 %v1154_v39 }
  0x26   : > { %462 = vmatmul.mubr.bf16.vlgmr.msra.gmra.mrb[0].mxu0 %v1123_v18 }
  0x27   : > { %469 = vmatprep.mubr.bf16.mxu0 %v1126_v20  ;;  %1082 = vmatpush3.bf16.msra.mxu1 %v1154_v39 }
  0x2e   : > { %470 = vmatmul.mubr.bf16.gmra.mrb[4].mxu0 %v1128_v23 }
  0x2f   : > { %477 = vmatprep.mubr.bf16.mxu0 %v1129_v24 }
  0x36   : > { %478 = vmatmul.mubr.bf16.gmra.mrb[8].mxu0 %v1131_v25 }
  0x37   : > { %485 = vmatprep.mubr.bf16.mxu0 %v1132_v26 }
  0x3e   : > { %486 = vmatmul.mubr.bf16.gmra.mrb[12].mxu0 %v1134_v27 }
  0x3f   : > { %493 = vmatprep.mubr.bf16.mxu0 %v1135_v28 }
  0x46   : > { %494 = vmatmul.mubr.bf16.gmra.mrb[16].mxu0 %v1137_v29 }
  0x47   : > { %501 = vmatprep.mubr.bf16.mxu0 %v1138_v30 }
  0x4e   : > { %502 = vmatmul.mubr.bf16.gmra.mrb[20].mxu0 %v1140_v31 }
  0x4f   : > { %509 = vmatprep.mubr.bf16.mxu0 %v1141_v32  ;;  %v896_v32 = vld [vmem:[%s1315_s3] ss:$0 sm:$0xff] }
  0x56   : > { %510 = vmatmul.mubr.bf16.gmra.mrb[24].mxu0 %v1143_v33 }
  0x57   : > { %517 = vmatprep.mubr.bf16.mxu0 %v1144_v34 }
  0x5e   : > { %518 = vmatmul.mubr.bf16.gmra.mrb[28].mxu0 %v1146_v35 }
  0xf9   : > { %v1003_v40 = vpop.f32.mrb[0].mxu0 }
  0xfa   : > { %v1004_v41 = vpop.f32.mrb[1].mxu0 }
  0xfb   : > { %v1005_v42 = vadd.f32 %v1004_v41, %v1003_v40  ;;  %v1006_v43 = vpop.f32.mrb[2].mxu0 }
  0xfc   : > { %v1007_v44 = vpop.f32.mrb[3].mxu0 }
  0xfd   : > { %v1008_v45 = vadd.f32 %v1007_v44, %v1006_v43 }
  0xff   : > { %v526_v46 = vpack.c.bf16 %v1008_v45, %v1005_v42 }
 0x101   : > { %v1009_v47 = vpop.f32.mrb[4].mxu0  ;;  %1083 = vmatprep.mubr.bf16.mxu1 %v526_v46 }
 0x102   : > { %v1010_v48 = vpop.f32.mrb[5].mxu0 }
 0x103   : > { %v1011_v49 = vadd.f32 %v1010_v48, %v1009_v47  ;;  %v1012_v50 = vpop.f32.mrb[6].mxu0 }
 0x104   : > { %v1013_v51 = vpop.f32.mrb[7].mxu0 }
 0x105   : > { %v1014_v52 = vadd.f32 %v1013_v51, %v1012_v50 }
 0x107   : > { %v527_v53 = vpack.c.bf16 %v1014_v52, %v1011_v49 }
 0x109   : > { %v1015_v54 = vpop.f32.mrb[8].mxu0  ;;  %1084 = vmatmul.mubr.bf16.vlgmr.msra.gmra.mrb[0].mxu1 %v527_v53 }
 0x10a   : > { %v1016_v55 = vpop.f32.mrb[9].mxu0 }
 0x10b   : > { %v1017_v56 = vadd.f32 %v1016_v55, %v1015_v54  ;;  %v1018_v57 = vpop.f32.mrb[10].mxu0 }
 0x10c   : > { %v1019_v58 = vpop.f32.mrb[11].mxu0 }
 0x10d   : > { %v1020_v59 = vadd.f32 %v1019_v58, %v1018_v57 }
 0x10f   : > { %v528_v60 = vpack.c.bf16 %v1020_v59, %v1017_v56 }
 0x111   : > { %v1021_v61 = vpop.f32.mrb[12].mxu0  ;;  %1087 = vmatprep.mubr.bf16.mxu1 %v528_v60 }
 0x112   : > { %v1022_v62 = vpop.f32.mrb[13].mxu0 }
 0x113   : > { %v1023_v63 = vadd.f32 %v1022_v62, %v1021_v61  ;;  %v1024_v0 = vpop.f32.mrb[14].mxu0 }
 0x114   : > { %v1025_v1 = vpop.f32.mrb[15].mxu0 }
 0x115   : > { %v1026_v2 = vadd.f32 %v1025_v1, %v1024_v0 }
 0x117   : > { %v529_v3 = vpack.c.bf16 %v1026_v2, %v1023_v63 }
 0x119   : > { %v1027_v4 = vpop.f32.mrb[16].mxu0  ;;  %1088 = vmatmul.mubr.bf16.gmra.mrb[4].mxu1 %v529_v3 }
 0x11a   : > { %v1028_v5 = vpop.f32.mrb[17].mxu0 }
 0x11b   : > { %v1029_v6 = vadd.f32 %v1028_v5, %v1027_v4  ;;  %v1030_v7 = vpop.f32.mrb[18].mxu0 }
 0x11c   : > { %v1031_v8 = vpop.f32.mrb[19].mxu0 }
 0x11d   : > { %v1032_v9 = vadd.f32 %v1031_v8, %v1030_v7 }
 0x11f   : > { %v530_v10 = vpack.c.bf16 %v1032_v9, %v1029_v6 }
 0x121   : > { %v1033_v11 = vpop.f32.mrb[20].mxu0  ;;  %1091 = vmatprep.mubr.bf16.mxu1 %v530_v10 }
 0x122   : > { %v1034_v12 = vpop.f32.mrb[21].mxu0 }
 0x123   : > { %v1035_v13 = vadd.f32 %v1034_v12, %v1033_v11  ;;  %v1036_v14 = vpop.f32.mrb[22].mxu0 }
 0x124   : > { %v1037_v15 = vpop.f32.mrb[23].mxu0 }
 0x125   : > { %v1038_v16 = vadd.f32 %v1037_v15, %v1036_v14 }
 0x127   : > { %v531_v17 = vpack.c.bf16 %v1038_v16, %v1035_v13 }
 0x129   : > { %v1039_v18 = vpop.f32.mrb[24].mxu0  ;;  %1092 = vmatmul.mubr.bf16.gmra.mrb[8].mxu1 %v531_v17 }
 0x12a   : > { %v1040_v19 = vpop.f32.mrb[25].mxu0 }
 0x12b   : > { %v1041_v20 = vadd.f32 %v1040_v19, %v1039_v18  ;;  %v1042_v21 = vpop.f32.mrb[26].mxu0 }
 0x12c   : > { %v1043_v22 = vpop.f32.mrb[27].mxu0 }
 0x12d   : > { %v1044_v23 = vadd.f32 %v1043_v22, %v1042_v21 }
 0x12f   : > { %v532_v24 = vpack.c.bf16 %v1044_v23, %v1041_v20 }
 0x131   : > { %v1045_v25 = vpop.f32.mrb[28].mxu0  ;;  %1095 = vmatprep.mubr.bf16.mxu1 %v532_v24 }
 0x132   : > { %v1046_v26 = vpop.f32.mrb[29].mxu0 }
 0x133   : > { %v1047_v27 = vadd.f32 %v1046_v26, %v1045_v25  ;;  %v1048_v28 = vpop.f32.mrb[30].mxu0 }
 0x134   : > { %v1049_v29 = vpop.f32.mrb[31].mxu0 }
 0x135   : > { %v1050_v30 = vadd.f32 %v1049_v29, %v1048_v28 }
 0x137   : > { %v533_v31 = vpack.c.bf16 %v1050_v30, %v1047_v27 }
 0x139   : > { %1096 = vmatmul.mubr.bf16.gmra.mrb[12].mxu1 %v533_v31 }
 0x1dc   : > { %v1085_v33 = vpop.f32.mrb[0].mxu1 }
 0x1dd   : > { %v648_v34 = vadd.f32 %v1085_v33, %v896_v32  ;;  %v639_v35 = vpop.f32.mrb[1].mxu1 }
 0x1de   : > { %v640_v36 = vadd.f32 %v896_v32, %v639_v35  ;;  %v1086_v37 = vpop.f32.mrb[2].mxu1 }
 0x1df   : > { %v651_v38 = vadd.f32 %v1086_v37, %v896_v32  ;;  %v642_v39 = vpop.f32.mrb[3].mxu1  ;;  %v704_v41 = vmax.f32 %v648_v34, 0.0 }
 0x1e0   : > { %v643_v40 = vadd.f32 %v896_v32, %v642_v39  ;;  %v702_v43 = vmax.f32 %v640_v36, 0.0 }
 0x1e1   : > { %v705_v42 = vmax.f32 %v651_v38, 0.0 }
 0x1e2   : > { %v703_v44 = vmax.f32 %v643_v40, 0.0 }
 0x1e3   : > { %v948_v45 = vpack.c.bf16 %v705_v42, %v704_v41 }
 0x1e4   : > { %v943_v46 = vpack.c.bf16 %v703_v44, %v702_v43 }
 0x1e5   : > { %980 = vst [vmem:[%s1299_s27 + $0x8] sm:$0xff] %v948_v45  }
 0x1e6   : > { %944 = vst [vmem:[%s1299_s27] sm:$0xff] %v943_v46  }
 0x1ec   : > { %v1089_v47 = vpop.f32.mrb[4].mxu1 }
 0x1ed   : > { %v664_v48 = vadd.f32 %v1089_v47, %v896_v32  ;;  %v655_v49 = vpop.f32.mrb[5].mxu1 }
 0x1ee   : > { %v656_v50 = vadd.f32 %v896_v32, %v655_v49  ;;  %v1090_v51 = vpop.f32.mrb[6].mxu1 }
 0x1ef   : > { %v667_v52 = vadd.f32 %v1090_v51, %v896_v32  ;;  %v658_v53 = vpop.f32.mrb[7].mxu1  ;;  %v708_v55 = vmax.f32 %v664_v48, 0.0 }
 0x1f0   : > { %v659_v54 = vadd.f32 %v896_v32, %v658_v53  ;;  %v706_v57 = vmax.f32 %v656_v50, 0.0 }
 0x1f1   : > { %v709_v56 = vmax.f32 %v667_v52, 0.0 }
 0x1f2   : > { %v707_v58 = vmax.f32 %v659_v54, 0.0 }
 0x1f3   : > { %v958_v59 = vpack.c.bf16 %v709_v56, %v708_v55 }
 0x1f4   : > { %v953_v60 = vpack.c.bf16 %v707_v58, %v706_v57 }
 0x1f5   : > { %982 = vst [vmem:[%s1299_s27 + $0x18] sm:$0xff] %v958_v59  }
 0x1f6   : > { %981 = vst [vmem:[%s1299_s27 + $0x10] sm:$0xff] %v953_v60  }
 0x1fc   : > { %v1093_v61 = vpop.f32.mrb[8].mxu1 }
 0x1fd   : > { %v680_v62 = vadd.f32 %v1093_v61, %v896_v32  ;;  %v671_v63 = vpop.f32.mrb[9].mxu1 }
 0x1fe   : > { %v672_v0 = vadd.f32 %v896_v32, %v671_v63  ;;  %v1094_v1 = vpop.f32.mrb[10].mxu1 }
 0x1ff   : > { %v683_v2 = vadd.f32 %v1094_v1, %v896_v32  ;;  %v674_v3 = vpop.f32.mrb[11].mxu1  ;;  %v712_v5 = vmax.f32 %v680_v62, 0.0 }
 0x200   : > { %v675_v4 = vadd.f32 %v896_v32, %v674_v3  ;;  %v710_v7 = vmax.f32 %v672_v0, 0.0 }
 0x201   : > { %v713_v6 = vmax.f32 %v683_v2, 0.0 }
 0x202   : > { %v711_v8 = vmax.f32 %v675_v4, 0.0 }
 0x203   : > { %v968_v9 = vpack.c.bf16 %v713_v6, %v712_v5 }
 0x204   : > { %v963_v10 = vpack.c.bf16 %v711_v8, %v710_v7 }
 0x205   : > { %984 = vst [vmem:[%s1299_s27 + $0x28] sm:$0xff] %v968_v9  }
 0x206   : > { %983 = vst [vmem:[%s1299_s27 + $0x20] sm:$0xff] %v963_v10  }
 0x20c   : > { %v1097_v11 = vpop.f32.mrb[12].mxu1 }
 0x20d   : > { %v696_v12 = vadd.f32 %v1097_v11, %v896_v32  ;;  %v687_v13 = vpop.f32.mrb[13].mxu1 }
 0x20e   : > { %v688_v14 = vadd.f32 %v896_v32, %v687_v13  ;;  %v1098_v15 = vpop.f32.mrb[14].mxu1 }
 0x20f   : > { %v699_v16 = vadd.f32 %v1098_v15, %v896_v32  ;;  %v690_v17 = vpop.f32.mrb[15].mxu1  ;;  %v716_v19 = vmax.f32 %v696_v12, 0.0 }
 0x210   : > { %v691_v18 = vadd.f32 %v896_v32, %v690_v17  ;;  %v714_v21 = vmax.f32 %v688_v14, 0.0 }
 0x211   : > { %v717_v20 = vmax.f32 %v699_v16, 0.0 }
 0x212   : > { %v715_v22 = vmax.f32 %v691_v18, 0.0 }
 0x213   : > { %v978_v23 = vpack.c.bf16 %v717_v20, %v716_v19 }
 0x214   : > { %v973_v24 = vpack.c.bf16 %v715_v22, %v714_v21 }
 0x215   : > { %986 = vst [vmem:[%s1299_s27 + $0x38] sm:$0xff] %v978_v23  }
 0x216   : > { %985 = vst [vmem:[%s1299_s27 + $0x30] sm:$0xff] %v973_v24  }
 0x217 PF: > { %s14_s15 = sadd.s32 1, %s1161_s15  }
 0x218   : > { %p11_p4 = scmp.ge.s32.totalorder %s14_s15, 4  }
 0x21a   :  { %13 = sbr.rel (!%p11_p4) target bundleno = 1 (0x1), region = 66 }

// kernel: dwr_gcn_forward.20
= control target key start
LH: loop header
LB: loop body
LE: loop exit
PB: predicated region body
PF: predicated region fallthrough
CT: control target
= control target key end

     0   :  { %s5913_s1 = inlined_call_operand.vmem [shape: f32[256,128], index: 1, kind: input, shape index: {}]   ;;  %s5914_s0 = inlined_call_operand.vmem [shape: bf16[256,256], index: 0, kind: input, shape index: {}]   ;;  %s5915_s2 = inlined_call_operand.vmem [shape: f32[256,128], index: 2, kind: output, shape index: {}]  }
   0x1   :  { %v3683_v0 = vld [vmem:[%s5913_s1 + $0x80] sm:$0xff]  ;;  %v3688_v1 = vld [vmem:[%s5913_s1 + $0x88] sm:$0xff]  ;;  %v3705_v5 = vld [vmem:[%s5913_s1 + $0x90] sm:$0xff] }
   0x2   :  { %v3693_v2 = vld [vmem:[%s5913_s1] sm:$0xff]  ;;  %v84_v3 = vpack.c.bf16 %v3688_v1, %v3683_v0  ;;  %v3700_v4 = vld [vmem:[%s5913_s1 + $0x8] sm:$0xff]  ;;  %v3710_v6 = vld [vmem:[%s5913_s1 + $0x98] sm:$0xff]  ;;  %v622_v12 = vmul.f32 %v3688_v1, %v3688_v1  ;;  %v621_v13 = vmul.f32 %v3683_v0, %v3683_v0  ;;  %v623_v31 = vmul.f32 %v3705_v5, %v3705_v5 }
   0x3   :  { %v76_v7 = vpack.c.bf16 %v3700_v4, %v3693_v2  ;;  %v85_v8 = vpack.c.bf16 %v3710_v6, %v3705_v5  ;;  %v3719_v9 = vld [vmem:[%s5913_s1 + $0x10] sm:$0xff]  ;;  %v3724_v10 = vld [vmem:[%s5913_s1 + $0x18] sm:$0xff]  ;;  %v3729_v11 = vld [vmem:[%s5913_s1 + $0xa0] sm:$0xff]  ;;  %v606_v21 = vmul.f32 %v3700_v4, %v3700_v4  ;;  %v605_v22 = vmul.f32 %v3693_v2, %v3693_v2 }
   0x4   :  { %2787 = vmatprep.subr.bf16.mxu0 %v84_v3  ;;  %3123 = vmatprep.subr.bf16.mxu1 %v84_v3  ;;  %v3738_v14 = vld [vmem:[%s5913_s1 + $0xa8] sm:$0xff]  ;;  %v77_v15 = vpack.c.bf16 %v3724_v10, %v3719_v9  ;;  %v3747_v17 = vld [vmem:[%s5913_s1 + $0x20] sm:$0xff]  ;;  %v3757_v19 = vld [vmem:[%s5913_s1 + $0xb0] sm:$0xff]  ;;  %v624_v30 = vmul.f32 %v3710_v6, %v3710_v6  ;;  %v608_v39 = vmul.f32 %v3724_v10, %v3724_v10 }
   0x5   :  { %2788 = vmatpush3.bf16.msra.mxu0 %v76_v7  ;;  %3131 = vmatpush3.bf16.msra.mxu1 %v76_v7  ;;  %v86_v16 = vpack.c.bf16 %v3738_v14, %v3729_v11  ;;  %v3752_v18 = vld [vmem:[%s5913_s1 + $0x28] sm:$0xff]  ;;  %v3762_v20 = vld [vmem:[%s5913_s1 + $0xb8] sm:$0xff]  ;;  %v3775_v25 = vld [vmem:[%s5913_s1 + $0x30] sm:$0xff]  ;;  %v607_v40 = vmul.f32 %v3719_v9, %v3719_v9  ;;  %v626_v47 = vmul.f32 %v3738_v14, %v3738_v14 }
   0x6   :  { %2789 = vmatprep.subr.bf16.mxu0 %v85_v8  ;;  %3124 = vmatprep.subr.bf16.mxu1 %v85_v8  ;;  %v78_v23 = vpack.c.bf16 %v3752_v18, %v3747_v17  ;;  %v87_v24 = vpack.c.bf16 %v3762_v20, %v3757_v19  ;;  %v3780_v26 = vld [vmem:[%s5913_s1 + $0x38] sm:$0xff]  ;;  %v3785_v27 = vld [vmem:[%s5913_s1 + $0xc0] sm:$0xff]  ;;  %v3790_v28 = vld [vmem:[%s5913_s1 + $0xc8] sm:$0xff]  ;;  %v625_v48 = vmul.f32 %v3729_v11, %v3729_v11 }
   0x7   :  { %671 = vadd.xlane.f32.xlu1 %v622_v12  ;;  %669 = vadd.xlane.f32.xlu0 %v621_v13  ;;  %v3795_v29 = vld [vmem:[%s5914_s0 + $0x4] ss:$8 sps:$4 sm:$0xff]   ;;  %v79_v32 = vpack.c.bf16 %v3780_v26, %v3775_v25  ;;  %v88_v35 = vpack.c.bf16 %v3790_v28, %v3785_v27  ;;  %v3821_v37 = vld [vmem:[%s5913_s1 + $0xd0] sm:$0xff]  ;;  %v3826_v38 = vld [vmem:[%s5913_s1 + $0xd8] sm:$0xff]  ;;  %v610_v55 = vmul.f32 %v3752_v18, %v3752_v18 }
   0x8   :  { %v3806_v33 = vld [vmem:[%s5913_s1 + $0x40] sm:$0xff]  ;;  %v3816_v36 = vld [vmem:[%s5913_s1 + $0x48] sm:$0xff]  ;;  %284 = vmatprep.mubr.bf16.mxu0 %v3795_v29  ;;  %v3838_v42 = vld [vmem:[%s5913_s1 + $0x50] sm:$0xff]  ;;  %v89_v43 = vpack.c.bf16 %v3826_v38, %v3821_v37  ;;  %v609_v56 = vmul.f32 %v3747_v17, %v3747_v17  ;;  %v628_v61 = vmul.f32 %v3762_v20, %v3762_v20  ;;  %v627_v62 = vmul.f32 %v3757_v19, %v3757_v19 }
   0x9   :  { %2790 = vmatpush3.bf16.msra.mxu0 %v77_v15  ;;  %3132 = vmatpush3.bf16.msra.mxu1 %v77_v15  ;;  %v3141_v34 = vld [vmem:[%s5914_s0 + $0x84] ss:$8 sps:$4 sm:$0xff]   ;;  %v80_v41 = vpack.c.bf16 %v3816_v36, %v3806_v33  ;;  %v3845_v44 = vld [vmem:[%s5913_s1 + $0x58] sm:$0xff]  ;;  %v3878_v53 = vld [vmem:[%s5913_s1 + $0xf0] sm:$0xff]  ;;  %v612_v13 = vmul.f32 %v3780_v26, %v3780_v26  ;;  %v611_v15 = vmul.f32 %v3775_v25, %v3775_v25 }
   0xa   :  { %2791 = vmatprep.subr.bf16.mxu0 %v86_v16  ;;  %3125 = vmatprep.subr.bf16.mxu1 %v86_v16  ;;  %v3850_v45 = vld [vmem:[%s5913_s1 + $0xe0] sm:$0xff]  ;;  %v3855_v46 = vld [vmem:[%s5913_s1 + $0xe8] sm:$0xff]  ;;  %v81_v49 = vpack.c.bf16 %v3845_v44, %v3838_v42  ;;  %v3883_v54 = vld [vmem:[%s5913_s1 + $0xf8] sm:$0xff]  ;;  %v630_v16 = vmul.f32 %v3790_v28, %v3790_v28 }
   0xb   :  { %639 = vadd.xlane.f32.xlu1 %v606_v21  ;;  %637 = vadd.xlane.f32.xlu0 %v605_v22  ;;  %v3866_v50 = vld [vmem:[%s5913_s1 + $0x60] sm:$0xff]  ;;  %v90_v51 = vpack.c.bf16 %v3855_v46, %v3850_v45  ;;  %v3873_v52 = vld [vmem:[%s5913_s1 + $0x68] sm:$0xff]  ;;  %v3894_v58 = vld [vmem:[%s5913_s1 + $0x70] sm:$0xff]  ;;  %v91_v59 = vpack.c.bf16 %v3883_v54, %v3878_v53  ;;  %v629_v21 = vmul.f32 %v3785_v27, %v3785_v27 }
   0xc   :  { %348 = vmatprep.mubr.bf16.mxu1 %v3141_v34  ;;  %v82_v57 = vpack.c.bf16 %v3873_v52, %v3866_v50  ;;  %v3901_v60 = vld [vmem:[%s5913_s1 + $0x78] sm:$0xff]  ;;  %v3143_v3 = vld [vmem:[%s5914_s0] ss:$8 sps:$4 sm:$0xff]   ;;  %v632_v34 = vmul.f32 %v3826_v38, %v3826_v38 }
   0xd   :  { %2792 = vmatpush3.bf16.msra.mxu0 %v78_v23  ;;  %3133 = vmatpush3.bf16.msra.mxu1 %v78_v23  ;;  %v83_v63 = vpack.c.bf16 %v3901_v60, %v3894_v58  ;;  %v3144_v7 = vld [vmem:[%s5914_s0 + $0x80] ss:$8 sps:$4 sm:$0xff]   ;;  %v3145_v8 = vld [vmem:[%s5914_s0 + $0x94] ss:$8 sps:$4 sm:$0xff]   ;;  %v3147_v22 = vld [vmem:[%s5914_s0 + $0x90] ss:$8 sps:$4 sm:$0xff]  }
   0xe   :  { %2793 = vmatprep.subr.bf16.mxu0 %v87_v24  ;;  %3126 = vmatprep.subr.bf16.mxu1 %v87_v24  ;;  %v3148_v12 = vld [vmem:[%s5914_s0 + $0x14] ss:$8 sps:$4 sm:$0xff]   ;;  %v3150_v23 = vld [vmem:[%s5914_s0 + $0x10] ss:$8 sps:$4 sm:$0xff]   ;;  %v3151_v24 = vld [vmem:[%s5914_s0 + $0xa4] ss:$8 sps:$4 sm:$0xff]  }
   0xf   :  { %675 = vadd.xlane.f32.xlu1 %v624_v30  ;;  %673 = vadd.xlane.f32.xlu0 %v623_v31  ;;  %v3154_v30 = vld [vmem:[%s5914_s0 + $0x24] ss:$8 sps:$4 sm:$0xff]   ;;  %v614_v31 = vmul.f32 %v3816_v36, %v3816_v36 }
  0x11   :  { %2794 = vmatpush3.bf16.msra.mxu0 %v79_v32  ;;  %3134 = vmatpush3.bf16.msra.mxu1 %v79_v32  ;;  %v613_v32 = vmul.f32 %v3806_v33, %v3806_v33 }
  0x12   :  { %2795 = vmatprep.subr.bf16.mxu0 %v88_v35  ;;  %3127 = vmatprep.subr.bf16.mxu1 %v88_v35  ;;  %v631_v35 = vmul.f32 %v3821_v37, %v3821_v37 }
  0x13   :  { %643 = vadd.xlane.f32.xlu1 %v608_v39  ;;  %641 = vadd.xlane.f32.xlu0 %v607_v40  ;;  %v3153_v39 = vld [vmem:[%s5914_s0 + $0xa0] ss:$8 sps:$4 sm:$0xff]  }
  0x14   :  { %v3156_v40 = vld [vmem:[%s5914_s0 + $0x20] ss:$8 sps:$4 sm:$0xff]  }
  0x15   :  { %2796 = vmatpush3.bf16.msra.mxu0 %v80_v41  ;;  %3135 = vmatpush3.bf16.msra.mxu1 %v80_v41  ;;  %v3157_v41 = vld [vmem:[%s5914_s0 + $0xb4] ss:$8 sps:$4 sm:$0xff]  }
  0x16   :  { %2797 = vmatprep.subr.bf16.mxu0 %v89_v43  ;;  %3128 = vmatprep.subr.bf16.mxu1 %v89_v43  ;;  %v3160_v43 = vld [vmem:[%s5914_s0 + $0x34] ss:$8 sps:$4 sm:$0xff]  }
  0x17   :  { %679 = vadd.xlane.f32.xlu1 %v626_v47  ;;  %677 = vadd.xlane.f32.xlu0 %v625_v48  ;;  %v616_v47 = vmul.f32 %v3845_v44, %v3845_v44  ;;  %v615_v48 = vmul.f32 %v3838_v42, %v3838_v42 }
  0x19   :  { %2798 = vmatpush3.bf16.msra.mxu0 %v81_v49  ;;  %3136 = vmatpush3.bf16.msra.mxu1 %v81_v49  ;;  %v634_v49 = vmul.f32 %v3855_v46, %v3855_v46 }
  0x1a   :  { %2799 = vmatprep.subr.bf16.mxu0 %v90_v51  ;;  %3129 = vmatprep.subr.bf16.mxu1 %v90_v51  ;;  %v633_v51 = vmul.f32 %v3850_v45, %v3850_v45 }
  0x1b   :  { %647 = vadd.xlane.f32.xlu1 %v610_v55  ;;  %645 = vadd.xlane.f32.xlu0 %v609_v56  ;;  %v3159_v55 = vld [vmem:[%s5914_s0 + $0xb0] ss:$8 sps:$4 sm:$0xff]  }
  0x1c   :  { %v3162_v56 = vld [vmem:[%s5914_s0 + $0x30] ss:$8 sps:$4 sm:$0xff]  }
  0x1d   :  { %2800 = vmatpush3.bf16.msra.mxu0 %v82_v57  ;;  %3137 = vmatpush3.bf16.msra.mxu1 %v82_v57  ;;  %v3163_v57 = vld [vmem:[%s5914_s0 + $0xc4] ss:$8 sps:$4 sm:$0xff]  }
  0x1e   :  { %2801 = vmatprep.subr.bf16.mxu0 %v91_v59  ;;  %3130 = vmatprep.subr.bf16.mxu1 %v91_v59  ;;  %v3166_v59 = vld [vmem:[%s5914_s0 + $0x44] ss:$8 sps:$4 sm:$0xff]  }
  0x1f   :  { %683 = vadd.xlane.f32.xlu1 %v628_v61  ;;  %681 = vadd.xlane.f32.xlu0 %v627_v62  ;;  %v618_v61 = vmul.f32 %v3873_v52, %v3873_v52  ;;  %v617_v62 = vmul.f32 %v3866_v50, %v3866_v50 }
  0x21   :  { %2802 = vmatpush3.bf16.msra.mxu0 %v83_v63  ;;  %3138 = vmatpush3.bf16.msra.mxu1 %v83_v63  ;;  %v636_v63 = vmul.f32 %v3883_v54, %v3883_v54 }
  0x23   :  { %651 = vadd.xlane.f32.xlu1 %v612_v13  ;;  %649 = vadd.xlane.f32.xlu0 %v611_v15  ;;  %v3172_v13 = vld [vmem:[%s5914_s0 + $0x54] ss:$8 sps:$4 sm:$0xff]   ;;  %v3171_v15 = vld [vmem:[%s5914_s0 + $0xd0] ss:$8 sps:$4 sm:$0xff]  }
  0x24   :  { %285 = vmatmul.mubr.bf16.vlgmr.msra.gmra.mrb[0].mxu0 %v3143_v3  ;;  %349 = vmatmul.mubr.bf16.vlgmr.msra.gmra.mrb[0].mxu1 %v3144_v7  ;;  %v635_v3 = vmul.f32 %v3878_v53, %v3878_v53  ;;  %v3165_v7 = vld [vmem:[%s5914_s0 + $0xc0] ss:$8 sps:$4 sm:$0xff]  }
  0x25   :  { %356 = vmatprep.mubr.bf16.mxu1 %v3145_v8  ;;  %292 = vmatprep.mubr.bf16.mxu0 %v3148_v12  ;;  %v3168_v8 = vld [vmem:[%s5914_s0 + $0x40] ss:$8 sps:$4 sm:$0xff]   ;;  %v3169_v12 = vld [vmem:[%s5914_s0 + $0xd4] ss:$8 sps:$4 sm:$0xff]  }
  0x27   :  { %687 = vadd.xlane.f32.xlu1 %v630_v16  ;;  %685 = vadd.xlane.f32.xlu0 %v629_v21  ;;  %v3174_v16 = vld [vmem:[%s5914_s0 + $0x50] ss:$8 sps:$4 sm:$0xff]   ;;  %v3175_v21 = vld [vmem:[%s5914_s0 + $0xe4] ss:$8 sps:$4 sm:$0xff]  }
  0x2b   :  { %655 = vadd.xlane.f32.xlu1 %v614_v31  ;;  %653 = vadd.xlane.f32.xlu0 %v613_v32  ;;  %v3184_v31 = vld [vmem:[%s5914_s0 + $0x74] ss:$8 sps:$4 sm:$0xff]   ;;  %v3183_v32 = vld [vmem:[%s5914_s0 + $0xf0] ss:$8 sps:$4 sm:$0xff]  }
  0x2c   :  { %357 = vmatmul.mubr.bf16.gmra.mrb[4].mxu1 %v3147_v22  ;;  %293 = vmatmul.mubr.bf16.gmra.mrb[4].mxu0 %v3150_v23  ;;  %v3178_v22 = vld [vmem:[%s5914_s0 + $0x64] ss:$8 sps:$4 sm:$0xff]   ;;  %v3177_v23 = vld [vmem:[%s5914_s0 + $0xe0] ss:$8 sps:$4 sm:$0xff]  }
  0x2d   :  { %364 = vmatprep.mubr.bf16.mxu1 %v3151_v24  ;;  %300 = vmatprep.mubr.bf16.mxu0 %v3154_v30  ;;  %v3180_v24 = vld [vmem:[%s5914_s0 + $0x60] ss:$8 sps:$4 sm:$0xff]   ;;  %v3181_v30 = vld [vmem:[%s5914_s0 + $0xf4] ss:$8 sps:$4 sm:$0xff]  }
  0x2f   :  { %691 = vadd.xlane.f32.xlu1 %v632_v34  ;;  %689 = vadd.xlane.f32.xlu0 %v631_v35  ;;  %v3186_v34 = vld [vmem:[%s5914_s0 + $0x70] ss:$8 sps:$4 sm:$0xff]   ;;  %v620_v35 = vmul.f32 %v3901_v60, %v3901_v60 }
  0x33   :  { %659 = vadd.xlane.f32.xlu1 %v616_v47  ;;  %657 = vadd.xlane.f32.xlu0 %v615_v48 }
  0x34   :  { %365 = vmatmul.mubr.bf16.gmra.mrb[8].mxu1 %v3153_v39  ;;  %301 = vmatmul.mubr.bf16.gmra.mrb[8].mxu0 %v3156_v40  ;;  %v619_v39 = vmul.f32 %v3894_v58, %v3894_v58 }
  0x35   :  { %372 = vmatprep.mubr.bf16.mxu1 %v3157_v41  ;;  %308 = vmatprep.mubr.bf16.mxu0 %v3160_v43 }
  0x37   :  { %695 = vadd.xlane.f32.xlu1 %v634_v49  ;;  %693 = vadd.xlane.f32.xlu0 %v633_v51 }
  0x3b   :  { %663 = vadd.xlane.f32.xlu1 %v618_v61  ;;  %661 = vadd.xlane.f32.xlu0 %v617_v62 }
  0x3c   :  { %373 = vmatmul.mubr.bf16.gmra.mrb[12].mxu1 %v3159_v55  ;;  %309 = vmatmul.mubr.bf16.gmra.mrb[12].mxu0 %v3162_v56 }
  0x3d   :  { %380 = vmatprep.mubr.bf16.mxu1 %v3163_v57  ;;  %316 = vmatprep.mubr.bf16.mxu0 %v3166_v59 }
  0x3f   :  { %699 = vadd.xlane.f32.xlu1 %v636_v63  ;;  %697 = vadd.xlane.f32.xlu0 %v635_v3 }
  0x43   :  { %667 = vadd.xlane.f32.xlu1 %v620_v35  ;;  %665 = vadd.xlane.f32.xlu0 %v619_v39 }
  0x44   :  { %381 = vmatmul.mubr.bf16.gmra.mrb[16].mxu1 %v3165_v7  ;;  %317 = vmatmul.mubr.bf16.gmra.mrb[16].mxu0 %v3168_v8 }
  0x45   :  { %388 = vmatprep.mubr.bf16.mxu1 %v3169_v12  ;;  %324 = vmatprep.mubr.bf16.mxu0 %v3172_v13 }
  0x4c   :  { %389 = vmatmul.mubr.bf16.gmra.mrb[20].mxu1 %v3171_v15  ;;  %325 = vmatmul.mubr.bf16.gmra.mrb[20].mxu0 %v3174_v16 }
  0x4d   :  { %396 = vmatprep.mubr.bf16.mxu1 %v3175_v21  ;;  %332 = vmatprep.mubr.bf16.mxu0 %v3178_v22 }
  0x54   :  { %397 = vmatmul.mubr.bf16.gmra.mrb[24].mxu1 %v3177_v23  ;;  %333 = vmatmul.mubr.bf16.gmra.mrb[24].mxu0 %v3180_v24 }
  0x55   :  { %404 = vmatprep.mubr.bf16.mxu1 %v3181_v30  ;;  %340 = vmatprep.mubr.bf16.mxu0 %v3184_v31 }
  0x5c   :  { %405 = vmatmul.mubr.bf16.gmra.mrb[28].mxu1 %v3183_v32  ;;  %341 = vmatmul.mubr.bf16.gmra.mrb[28].mxu0 %v3186_v34 }
  0x5d   :  { %1101 = vmatprep.mubr.bf16.mxu1 %v3795_v29  ;;  %1918 = vmatprep.mubr.bf16.mxu0 %v3795_v29 }
  0xf7   :  { %v2803_v40 = vpop.f32.mrb[0].mxu0  ;;  %v2851_v41 = vpop.f32.mrb[0].mxu1 }
  0xf8   :  { %v2804_v43 = vpop.f32.mrb[1].mxu0  ;;  %v2852_v47 = vpop.f32.mrb[1].mxu1 }
  0xf9   :  { %v4037_v48 = vadd.f32 %v2804_v43, %v2803_v40  ;;  %v4039_v49 = vadd.f32 %v2852_v47, %v2851_v41  ;;  %v2806_v51 = vpop.f32.mrb[2].mxu0  ;;  %v2854_v55 = vpop.f32.mrb[2].mxu1 }
  0xfa   :  { %v2807_v56 = vpop.f32.mrb[3].mxu0  ;;  %v2855_v29 = vpop.f32.mrb[3].mxu1 }
  0xfb   :  { %v4041_v57 = vadd.f32 %v2807_v56, %v2806_v51  ;;  %v4043_v59 = vadd.f32 %v2855_v29, %v2854_v55  ;;  %v525_v61 = vmul.f32 %v4039_v49, %v4039_v49  ;;  %v509_v62 = vmul.f32 %v4037_v48, %v4037_v48 }
  0xfc   :  { %v429_v63 = vmul.f32 %v4039_v49, %v3683_v0  ;;  %v413_v31 = vmul.f32 %v4037_v48, %v3693_v2 }
  0xfd   :  { %573 = vadd.xlane.f32.xlu0 %v525_v61  ;;  %541 = vadd.xlane.f32.xlu1 %v509_v62  ;;  %v510_v3 = vmul.f32 %v4041_v57, %v4041_v57  ;;  %v430_v0 = vmul.f32 %v4043_v59, %v3688_v1  ;;  %v414_v34 = vmul.f32 %v4041_v57, %v3700_v4 }
  0xfe   :  { %v526_v35 = vmul.f32 %v4043_v59, %v4043_v59 }
  0xff   :  { %v2857_v7 = vpop.f32.mrb[4].mxu1  ;;  %v2809_v8 = vpop.f32.mrb[4].mxu0 }
 0x100   :  { %v2858_v12 = vpop.f32.mrb[5].mxu1  ;;  %v2810_v13 = vpop.f32.mrb[5].mxu0 }
 0x101   :  { %477 = vadd.xlane.f32.xlu0 %v429_v63  ;;  %543 = vadd.xlane.f32.xlu1 %v510_v3  ;;  %v4053_v15 = vadd.f32 %v2858_v12, %v2857_v7  ;;  %v2860_v16 = vpop.f32.mrb[6].mxu1  ;;  %v4055_v21 = vadd.f32 %v2810_v13, %v2809_v8  ;;  %v2812_v22 = vpop.f32.mrb[6].mxu0 }
 0x102   :  { %v2861_v23 = vpop.f32.mrb[7].mxu1  ;;  %v2813_v24 = vpop.f32.mrb[7].mxu0 }
 0x103   :  { %v4057_v30 = vadd.f32 %v2861_v23, %v2860_v16  ;;  %v4063_v32 = vadd.f32 %v2813_v24, %v2812_v22  ;;  %v527_v29 = vmul.f32 %v4053_v15, %v4053_v15  ;;  %v511_v3 = vmul.f32 %v4055_v21, %v4055_v21 }
 0x105   :  { %479 = vadd.xlane.f32.xlu1 %v430_v0  ;;  %445 = vadd.xlane.f32.xlu0 %v413_v31  ;;  %v528_v4 = vmul.f32 %v4057_v30, %v4057_v30  ;;  %v512_v63 = vmul.f32 %v4063_v32, %v4063_v32 }
 0x107   :  { %v2863_v39 = vpop.f32.mrb[8].mxu1  ;;  %v2815_v40 = vpop.f32.mrb[8].mxu0 }
 0x108   :  { %v2864_v41 = vpop.f32.mrb[9].mxu1  ;;  %v2816_v43 = vpop.f32.mrb[9].mxu0 }
 0x109   :  { %447 = vadd.xlane.f32.xlu1 %v414_v34  ;;  %575 = vadd.xlane.f32.xlu0 %v526_v35  ;;  %v4069_v1 = vadd.f32 %v2864_v41, %v2863_v39  ;;  %v2866_v47 = vpop.f32.mrb[10].mxu1  ;;  %v4071_v2 = vadd.f32 %v2816_v43, %v2815_v40  ;;  %v2818_v51 = vpop.f32.mrb[10].mxu0  ;;  %v432_v34 = vmul.f32 %v4057_v30, %v3710_v6 }
 0x10a   :  { %v2867_v55 = vpop.f32.mrb[11].mxu1  ;;  %v2819_v56 = vpop.f32.mrb[11].mxu0  ;;  %v431_v35 = vmul.f32 %v4053_v15, %v3705_v5  ;;  %v416_v41 = vmul.f32 %v4063_v32, %v3724_v10  ;;  %v415_v43 = vmul.f32 %v4055_v21, %v3719_v9 }
 0x10b   :  { %6059 = vst [vmem:[#allocation2_spill] sm:$0xff] %v4069_v1  ;;  %6060 = vst [vmem:[#allocation3_spill] sm:$0xff] %v4071_v2  ;;  %v4077_v61 = vadd.f32 %v2867_v55, %v2866_v47  ;;  %v4079_v62 = vadd.f32 %v2819_v56, %v2818_v51  ;;  %v529_v9 = vmul.f32 %v4069_v1, %v4069_v1 }
 0x10d   :  { %6061 = vst [vmem:[#allocation4_spill] sm:$0xff] %v4077_v61  ;;  %6062 = vst [vmem:[#allocation5_spill] sm:$0xff] %v4079_v62  ;;  %579 = vadd.xlane.f32.xlu1 %v528_v4  ;;  %577 = vadd.xlane.f32.xlu0 %v527_v29  ;;  %v530_v10 = vmul.f32 %v4077_v61, %v4077_v61 }
 0x10f   :  { %v2869_v7 = vpop.f32.mrb[12].mxu1  ;;  %v2821_v8 = vpop.f32.mrb[12].mxu0 }
 0x110   :  { %v2870_v12 = vpop.f32.mrb[13].mxu1  ;;  %v2822_v13 = vpop.f32.mrb[13].mxu0 }
 0x111   :  { %547 = vadd.xlane.f32.xlu1 %v512_v63  ;;  %545 = vadd.xlane.f32.xlu0 %v511_v3  ;;  %v4085_v16 = vadd.f32 %v2870_v12, %v2869_v7  ;;  %v2872_v22 = vpop.f32.mrb[14].mxu1  ;;  %v4087_v23 = vadd.f32 %v2822_v13, %v2821_v8  ;;  %v2824_v24 = vpop.f32.mrb[14].mxu0  ;;  %v514_v12 = vmul.f32 %v4079_v62, %v4079_v62 }
 0x112   :  { %v2873_v0 = vpop.f32.mrb[15].mxu1  ;;  %v2825_v31 = vpop.f32.mrb[15].mxu0  ;;  %v513_v13 = vmul.f32 %v4071_v2, %v4071_v2 }
 0x113   :  { %v4093_v39 = vadd.f32 %v2873_v0, %v2872_v22  ;;  %v4095_v40 = vadd.f32 %v2825_v31, %v2824_v24 }
 0x115   :  { %483 = vadd.xlane.f32.xlu1 %v432_v34  ;;  %481 = vadd.xlane.f32.xlu0 %v431_v35 }
 0x117   :  { %v2875_v47 = vpop.f32.mrb[16].mxu1  ;;  %v2827_v51 = vpop.f32.mrb[16].mxu0 }
 0x118   :  { %v2876_v55 = vpop.f32.mrb[17].mxu1  ;;  %v2828_v56 = vpop.f32.mrb[17].mxu0 }
 0x119   :  { %451 = vadd.xlane.f32.xlu1 %v416_v41  ;;  %449 = vadd.xlane.f32.xlu0 %v415_v43  ;;  %v4101_v6 = vadd.f32 %v2876_v55, %v2875_v47  ;;  %v2878_v5 = vpop.f32.mrb[18].mxu1  ;;  %v4103_v4 = vadd.f32 %v2828_v56, %v2827_v51  ;;  %v2830_v29 = vpop.f32.mrb[18].mxu0  ;;  %v434_v55 = vmul.f32 %v4077_v61, %v3738_v14 }
 0x11a   :  { %v2879_v63 = vpop.f32.mrb[19].mxu1  ;;  %v2831_v3 = vpop.f32.mrb[19].mxu0  ;;  %v433_v56 = vmul.f32 %v4069_v1, %v3729_v11 }
 0x11b   :  { %v4109_v7 = vadd.f32 %v2879_v63, %v2878_v5  ;;  %v4111_v8 = vadd.f32 %v2831_v3, %v2830_v29  ;;  %v4129_v63 = vpop.xlane.xlu1 %671  ;;  %v4131_v3 = vpop.xlane.xlu0 %669 }
 0x11d   :  { %583 = vadd.xlane.f32.xlu1 %v530_v10  ;;  %581 = vadd.xlane.f32.xlu0 %v529_v9  ;;  %v418_v10 = vmul.f32 %v4079_v62, %v3752_v18  ;;  %v417_v9 = vmul.f32 %v4071_v2, %v3747_v17  ;;  %v532_v18 = vmul.f32 %v4093_v39, %v4093_v39 }
 0x11e   :  { %v531_v17 = vmul.f32 %v4085_v16, %v4085_v16  ;;  %v436_v2 = vmul.f32 %v4093_v39, %v3762_v20  ;;  %v435_v62 = vmul.f32 %v4085_v16, %v3757_v19  ;;  %v534_v19 = vmul.f32 %v4109_v7, %v4109_v7 }
 0x11f   :  { %v2881_v22 = vpop.f32.mrb[20].mxu1  ;;  %v2833_v24 = vpop.f32.mrb[20].mxu0  ;;  %v533_v20 = vmul.f32 %v4101_v6, %v4101_v6 }
 0x120   :  { %v2882_v0 = vpop.f32.mrb[21].mxu1  ;;  %v2834_v31 = vpop.f32.mrb[21].mxu0 }
 0x121   :  { %551 = vadd.xlane.f32.xlu1 %v514_v12  ;;  %549 = vadd.xlane.f32.xlu0 %v513_v13  ;;  %v4117_v34 = vadd.f32 %v2882_v0, %v2881_v22  ;;  %v2884_v35 = vpop.f32.mrb[22].mxu1  ;;  %v4119_v41 = vadd.f32 %v2834_v31, %v2833_v24  ;;  %v2836_v43 = vpop.f32.mrb[22].mxu0 }
 0x122   :  { %v2885_v47 = vpop.f32.mrb[23].mxu1  ;;  %v2837_v51 = vpop.f32.mrb[23].mxu0 }
 0x123   :  { %6063 = vst [vmem:[#allocation6_spill] sm:$0xff] %v4119_v41  ;;  %v4125_v5 = vadd.f32 %v2885_v47, %v2884_v35  ;;  %v4127_v29 = vadd.f32 %v2837_v51, %v2836_v43 }
 0x125   :  { %6064 = vst [vmem:[#allocation7_spill] sm:$0xff] %v4127_v29  ;;  %487 = vadd.xlane.f32.xlu1 %v434_v55  ;;  %485 = vadd.xlane.f32.xlu0 %v433_v56  ;;  %v4149_v55 = vpop.xlane.xlu1 %639  ;;  %v4151_v56 = vpop.xlane.xlu0 %637 }
 0x127   :  { %v2887_v14 = vpop.f32.mrb[24].mxu1  ;;  %v2839_v12 = vpop.f32.mrb[24].mxu0 }
 0x128   :  { %v2888_v13 = vpop.f32.mrb[25].mxu1  ;;  %v2840_v11 = vpop.f32.mrb[25].mxu0 }
 0x129   :  { %455 = vadd.xlane.f32.xlu1 %v418_v10  ;;  %453 = vadd.xlane.f32.xlu0 %v417_v9  ;;  %v4137_v22 = vadd.f32 %v2888_v13, %v2887_v14  ;;  %v2890_v24 = vpop.f32.mrb[26].mxu1  ;;  %v4139_v0 = vadd.f32 %v2840_v11, %v2839_v12  ;;  %v2842_v31 = vpop.f32.mrb[26].mxu0  ;;  %v516_v10 = vmul.f32 %v4095_v40, %v4095_v40 }
 0x12a   :  { %v2891_v35 = vpop.f32.mrb[27].mxu1  ;;  %v2843_v43 = vpop.f32.mrb[27].mxu0  ;;  %v515_v9 = vmul.f32 %v4087_v23, %v4087_v23 }
 0x12b   :  { %6065 = vst [vmem:[#allocation8_spill] sm:$0xff] %v4137_v22  ;;  %6066 = vst [vmem:[#allocation9_spill] sm:$0xff] %v4139_v0  ;;  %v4145_v47 = vadd.f32 %v2891_v35, %v2890_v24  ;;  %v4147_v51 = vadd.f32 %v2843_v43, %v2842_v31 }
 0x12d   :  { %6067 = vst [vmem:[#allocation10_spill] sm:$0xff] %v4145_v47  ;;  %6068 = vst [vmem:[#allocation11_spill] sm:$0xff] %v4147_v51  ;;  %587 = vadd.xlane.f32.xlu1 %v532_v18  ;;  %585 = vadd.xlane.f32.xlu0 %v531_v17 }
 0x12f   :  { %v2893_v14 = vpop.f32.mrb[28].mxu1  ;;  %v2845_v12 = vpop.f32.mrb[28].mxu0 }
 0x130   :  { %v2894_v13 = vpop.f32.mrb[29].mxu1  ;;  %v2846_v11 = vpop.f32.mrb[29].mxu0 }
 0x131   :  { %555 = vadd.xlane.f32.xlu1 %v516_v10  ;;  %553 = vadd.xlane.f32.xlu0 %v515_v9  ;;  %v4157_v24 = vadd.f32 %v2894_v13, %v2893_v14  ;;  %v2896_v31 = vpop.f32.mrb[30].mxu1  ;;  %v4159_v35 = vadd.f32 %v2846_v11, %v2845_v12  ;;  %v2848_v43 = vpop.f32.mrb[30].mxu0  ;;  %v420_v14 = vmul.f32 %v4095_v40, %v3780_v26 }
 0x132   :  { %v2897_v18 = vpop.f32.mrb[31].mxu1  ;;  %v2849_v17 = vpop.f32.mrb[31].mxu0  ;;  %v419_v12 = vmul.f32 %v4087_v23, %v3775_v25  ;;  %v518_v26 = vmul.f32 %v4111_v8, %v4111_v8  ;;  %v517_v25 = vmul.f32 %v4103_v4, %v4103_v4 }
 0x133   :  { %6069 = vst [vmem:[#allocation12_spill] sm:$0xff] %v4157_v24  ;;  %6070 = vst [vmem:[#allocation13_spill] sm:$0xff] %v4159_v35  ;;  %v4165_v1 = vadd.f32 %v2897_v18, %v2896_v31  ;;  %v4167_v61 = vadd.f32 %v2849_v17, %v2848_v43  ;;  %v4169_v10 = vpop.xlane.xlu1 %675  ;;  %v4171_v9 = vpop.xlane.xlu0 %673  ;;  %v438_v31 = vmul.f32 %v4109_v7, %v3790_v28 }
 0x134   :  { %v437_v43 = vmul.f32 %v4101_v6, %v3785_v27  ;;  %v422_v18 = vmul.f32 %v4111_v8, %v3816_v36  ;;  %v421_v17 = vmul.f32 %v4103_v4, %v3806_v33  ;;  %v536_v28 = vmul.f32 %v4125_v5, %v4125_v5 }
 0x135   :  { %6071 = vst [vmem:[#allocation14_spill] sm:$0xff] %v4165_v1  ;;  %6072 = vst [vmem:[#allocation15_spill] sm:$0xff] %v4167_v61  ;;  %491 = vadd.xlane.f32.xlu1 %v436_v2  ;;  %489 = vadd.xlane.f32.xlu0 %v435_v62  ;;  %v535_v27 = vmul.f32 %v4117_v34, %v4117_v34  ;;  %v520_v33 = vmul.f32 %v4127_v29, %v4127_v29 }
 0x137   :  { %v4181_v2 = vpop.xlane.xlu1 %643  ;;  %v4183_v62 = vpop.xlane.xlu0 %641 }
 0x139   :  { %459 = vadd.xlane.f32.xlu1 %v420_v14  ;;  %457 = vadd.xlane.f32.xlu0 %v419_v12 }
 0x13b   :  { %v4189_v13 = vpop.xlane.xlu1 %679  ;;  %v4191_v11 = vpop.xlane.xlu0 %677 }
 0x13d   :  { %591 = vadd.xlane.f32.xlu1 %v534_v19  ;;  %589 = vadd.xlane.f32.xlu0 %v533_v20  ;;  %v519_v20 = vmul.f32 %v4119_v41, %v4119_v41 }
 0x13f   :  { %v4201_v14 = vpop.xlane.xlu1 %647  ;;  %v4203_v12 = vpop.xlane.xlu0 %645 }
 0x141   :  { %559 = vadd.xlane.f32.xlu1 %v518_v26  ;;  %557 = vadd.xlane.f32.xlu0 %v517_v25  ;;  %v440_v26 = vmul.f32 %v4125_v5, %v3826_v38  ;;  %v439_v25 = vmul.f32 %v4117_v34, %v3821_v37  ;;  %v538_v37 = vmul.f32 %v4145_v47, %v4145_v47 }
 0x143   :  { %v4209_v19 = vpop.xlane.xlu1 %683  ;;  %v4211_v36 = vpop.xlane.xlu0 %681 }
 0x145   :  { %495 = vadd.xlane.f32.xlu1 %v438_v31  ;;  %493 = vadd.xlane.f32.xlu0 %v437_v43 }
 0x147   :  { %v4221_v31 = vpop.xlane.xlu1 %651  ;;  %v4223_v43 = vpop.xlane.xlu0 %649 }
 0x149   :  { %463 = vadd.xlane.f32.xlu1 %v422_v18  ;;  %461 = vadd.xlane.f32.xlu0 %v421_v17  ;;  %v424_v18 = vmul.f32 %v4127_v29, %v3845_v44  ;;  %v423_v17 = vmul.f32 %v4119_v41, %v3838_v42  ;;  %v522_v44 = vmul.f32 %v4147_v51, %v4147_v51 }
 0x14a   :  { %v521_v42 = vmul.f32 %v4139_v0, %v4139_v0  ;;  %v426_v41 = vmul.f32 %v4147_v51, %v3873_v52  ;;  %v425_v29 = vmul.f32 %v4139_v0, %v3866_v50  ;;  %v428_v52 = vmul.f32 %v4167_v61, %v3901_v60 }
 0x14b   :  { %v4231_v38 = vpop.xlane.xlu0 %685  ;;  %v427_v50 = vmul.f32 %v4159_v35, %v3894_v58  ;;  %v813_v60 = vmax.f32 %v4131_v3, 1e-16 }
 0x14d   :  { %595 = vadd.xlane.f32.xlu1 %v536_v28  ;;  %593 = vadd.xlane.f32.xlu0 %v535_v27  ;;  %v4229_v28 = vpop.xlane.xlu1 %687  ;;  %v537_v27 = vmul.f32 %v4137_v22, %v4137_v22 }
 0x151   :  { %563 = vadd.xlane.f32.xlu1 %v520_v33  ;;  %561 = vadd.xlane.f32.xlu0 %v519_v20  ;;  %v4241_v33 = vpop.xlane.xlu1 %655  ;;  %v4243_v20 = vpop.xlane.xlu0 %653 }
 0x155   :  { %499 = vadd.xlane.f32.xlu1 %v440_v26  ;;  %497 = vadd.xlane.f32.xlu0 %v439_v25  ;;  %v540_v26 = vmul.f32 %v4165_v1, %v4165_v1  ;;  %v539_v25 = vmul.f32 %v4157_v24, %v4157_v24 }
 0x159   :  { %467 = vadd.xlane.f32.xlu1 %v424_v18  ;;  %465 = vadd.xlane.f32.xlu0 %v423_v17  ;;  %v4249_v18 = vpop.xlane.xlu1 %691  ;;  %v4251_v17 = vpop.xlane.xlu0 %689 }
 0x15d   :  { %599 = vadd.xlane.f32.xlu1 %v538_v37  ;;  %597 = vadd.xlane.f32.xlu0 %v537_v27  ;;  %v524_v37 = vmul.f32 %v4167_v61, %v4167_v61  ;;  %v523_v27 = vmul.f32 %v4159_v35, %v4159_v35  ;;  %v797_v35 = vmax.f32 %v4151_v56, 1e-16 }
 0x161   :  { %567 = vadd.xlane.f32.xlu1 %v522_v44  ;;  %565 = vadd.xlane.f32.xlu0 %v521_v42  ;;  %v442_v44 = vmul.f32 %v4145_v47, %v3855_v46  ;;  %v441_v42 = vmul.f32 %v4137_v22, %v3850_v45  ;;  %v444_v45 = vmul.f32 %v4165_v1, %v3883_v54  ;;  %v814_v22 = vmax.f32 %v4129_v63, 1e-16 }
 0x165   :  { %603 = vadd.xlane.f32.xlu1 %v540_v26  ;;  %601 = vadd.xlane.f32.xlu0 %v539_v25  ;;  %v4261_v26 = vpop.xlane.xlu1 %659  ;;  %v4263_v25 = vpop.xlane.xlu0 %657 }
 0x169   :  { %571 = vadd.xlane.f32.xlu1 %v524_v37  ;;  %569 = vadd.xlane.f32.xlu0 %v523_v27  ;;  %v4269_v37 = vpop.xlane.xlu1 %695  ;;  %v4271_v46 = vpop.xlane.xlu0 %693  ;;  %v443_v27 = vmul.f32 %v4157_v24, %v3878_v53  ;;  %v798_v24 = vmax.f32 %v4149_v55, 1e-16 }
 0x16d   :  { %503 = vadd.xlane.f32.xlu1 %v442_v44  ;;  %501 = vadd.xlane.f32.xlu0 %v441_v42 }
 0x171   :  { %471 = vadd.xlane.f32.xlu1 %v426_v41  ;;  %469 = vadd.xlane.f32.xlu0 %v425_v29  ;;  %v4281_v41 = vpop.xlane.xlu1 %663  ;;  %v4283_v29 = vpop.xlane.xlu0 %661 }
 0x172   :  { %6073 = vst [vmem:[#allocation16_spill] sm:$0xff] %v4283_v29 }
 0x175   :  { %507 = vadd.xlane.f32.xlu1 %v444_v45  ;;  %505 = vadd.xlane.f32.xlu0 %v443_v27  ;;  %v4285_v44 = vpop.xlane.xlu1 %699  ;;  %v4287_v54 = vpop.xlane.xlu0 %697 }
 0x176   :  { %6074 = vst [vmem:[#allocation17_spill] sm:$0xff] %v4285_v44  ;;  %6075 = vst [vmem:[#allocation18_spill] sm:$0xff] %v4287_v54  ;;  %v815_v44 = vmax.f32 %v4171_v9, 1e-16  ;;  %v799_v9 = vmax.f32 %v4183_v62, 1e-16 }
 0x179   :  { %475 = vadd.xlane.f32.xlu1 %v428_v52  ;;  %473 = vadd.xlane.f32.xlu0 %v427_v50  ;;  %v4289_v42 = vpop.xlane.xlu1 %667  ;;  %v4291_v53 = vpop.xlane.xlu0 %665 }
 0x17a   :  { %6076 = vst [vmem:[#allocation19_spill] sm:$0xff] %v4289_v42  ;;  %6077 = vst [vmem:[#allocation20_spill] sm:$0xff] %v4291_v53  ;;  %v816_v42 = vmax.f32 %v4169_v10, 1e-16 }
 0x18a   :  { %v574_v45 = vpop.xlane.xlu0 %573  ;;  %v542_v27 = vpop.xlane.xlu1 %541 }
 0x18b   :  { %v717_v61 = vmax.f32 %v574_v45, 1e-16  ;;  %v701_v58 = vmax.f32 %v542_v27, 1e-16 }
 0x18d   :  { %3187 = vrsqrt.f32 %v717_v61 }
 0x18e   :  { %3189 = vrsqrt.f32 %v701_v58  ;;  %v478_v52 = vpop.xlane.xlu0 %477  ;;  %v544_v50 = vpop.xlane.xlu1 %543 }
 0x18f   :  { %3191 = vrsqrt.f32 %v813_v60  ;;  %v702_v1 = vmax.f32 %v544_v50, 1e-16 }
 0x190   :  { %3193 = vrsqrt.f32 %v797_v35 }
 0x191   :  { %3195 = vrsqrt.f32 %v702_v1 }
 0x192   :  { %v480_v0 = vpop.xlane.xlu1 %479  ;;  %v446_v51 = vpop.xlane.xlu0 %445  ;;  %3197 = vrsqrt.f32 %v798_v24 }
 0x196   :  { %v448_v3 = vpop.xlane.xlu1 %447  ;;  %v576_v45 = vpop.xlane.xlu0 %575 }
 0x197   :  { %v3188_v27 = vpop.eup %3187  ;;  %v718_v47 = vmax.f32 %v576_v45, 1e-16 }
 0x198   :  { %v3190_v56 = vpop.eup %3189  ;;  %v781_v61 = vmul.f32 %v3188_v27, %v478_v52 }
 0x199   :  { %v3192_v58 = vpop.eup %3191  ;;  %v765_v53 = vmul.f32 %v3190_v56, %v446_v51  ;;  %3199 = vrsqrt.f32 %v718_v47 }
 0x19a   :  { %v3194_v60 = vpop.eup %3193  ;;  %3201 = vrsqrt.f32 %v814_v22  ;;  %v877_v55 = vmul.f32 %v3192_v58, %v781_v61  ;;  %v580_v50 = vpop.xlane.xlu1 %579  ;;  %v800_v22 = vmax.f32 %v4181_v2, 1e-16  ;;  %v3572_v2 = vld [vmem:[%s5913_s1] sm:$0xff] }
 0x19b   :  { %v578_v35 = vpop.xlane.xlu0 %577  ;;  %v3196_v1 = vpop.eup %3195  ;;  %v861_v24 = vmul.f32 %v3194_v60, %v765_v53  ;;  %v720_v54 = vmax.f32 %v580_v50, 1e-16 }
 0x19c   :  { %v719_v63 = vmax.f32 %v578_v35, 1e-16  ;;  %v909_v45 = vmul.f32 %v4039_v49, %v877_v55  ;;  %v766_v29 = vmul.f32 %v3196_v1, %v448_v3  ;;  %v3198_v52 = vpop.eup %3197  ;;  %v3571_v49 = vld [vmem:[%s5913_s1 + $0x80] sm:$0xff]  ;;  %v818_v1 = vmax.f32 %v4189_v13, 1e-16  ;;  %v3573_v13 = vld [vmem:[%s5913_s1 + $0x8] sm:$0xff] }
 0x19d   :  { %v893_v51 = vmul.f32 %v4037_v48, %v861_v24  ;;  %3203 = vrsqrt.f32 %v720_v54 }
 0x19e   :  { %v941_v47 = vmul.f32 0.5, %v909_v45  ;;  %v862_v27 = vmul.f32 %v3198_v52, %v766_v29  ;;  %3205 = vrsqrt.f32 %v719_v63  ;;  %v548_v56 = vpop.xlane.xlu1 %547 }
 0x19f   :  { %v546_v61 = vpop.xlane.xlu0 %545  ;;  %3207 = vrsqrt.f32 %v816_v42  ;;  %v925_v10 = vmul.f32 0.5, %v893_v51  ;;  %v704_v53 = vmax.f32 %v548_v56, 1e-16 }
 0x1a0   :  { %v703_v58 = vmax.f32 %v546_v61, 1e-16  ;;  %3209 = vrsqrt.f32 %v815_v44  ;;  %v973_v48 = vadd.f32 %v3571_v49, %v941_v47  ;;  %v894_v54 = vmul.f32 %v4041_v57, %v862_v27 }
 0x1a1   :  { %v957_v29 = vadd.f32 %v3572_v2, %v925_v10  ;;  %3211 = vrsqrt.f32 %v704_v53  ;;  %v817_v57 = vmax.f32 %v4191_v11, 1e-16  ;;  %v802_v2 = vmax.f32 %v4201_v14, 1e-16 }
 0x1a2   :  { %v4310_v42 = vmax.f32 %v973_v48, 0.0  ;;  %3213 = vrsqrt.f32 %v703_v58  ;;  %v484_v3 = vpop.xlane.xlu1 %483  ;;  %v926_v24 = vmul.f32 0.5, %v894_v54 }
 0x1a3   :  { %v482_v44 = vpop.xlane.xlu0 %481  ;;  %v3200_v60 = vpop.eup %3199  ;;  %3215 = vrsqrt.f32 %v800_v22  ;;  %v4312_v55 = vmax.f32 %v957_v29, 0.0 }
 0x1a4   :  { %6078 = vst [vmem:[#allocation21_spill] sm:$0xff] %v4310_v42  ;;  %v3202_v62 = vpop.eup %3201  ;;  %3217 = vrsqrt.f32 %v799_v9  ;;  %v782_v50 = vmul.f32 %v3200_v60, %v480_v0  ;;  %v1438_v35 = vmul.f32 %v4310_v42, %v4310_v42  ;;  %v958_v61 = vadd.f32 %v3573_v13, %v926_v24  ;;  %v3575_v13 = vld [vmem:[%s5913_s1 + $0x98] sm:$0xff] }
 0x1a5   :  { %v1422_v27 = vmul.f32 %v4312_v55, %v4312_v55  ;;  %3219 = vrsqrt.f32 %v818_v1  ;;  %v801_v60 = vmax.f32 %v4203_v12, 1e-16 }
 0x1a6   :  { %v878_v63 = vmul.f32 %v3202_v62, %v782_v50  ;;  %v452_v45 = vpop.xlane.xlu1 %451  ;;  %1486 = vadd.xlane.f32.xlu0 %v1438_v35  ;;  %3221 = vrsqrt.f32 %v817_v57  ;;  %v4330_v24 = vmax.f32 %v958_v61, 0.0 }
 0x1a7   :  { %v450_v52 = vpop.xlane.xlu0 %449  ;;  %v3204_v51 = vpop.eup %3203 }
 0x1a8   :  { %v3206_v47 = vpop.eup %3205  ;;  %v784_v22 = vmul.f32 %v3204_v51, %v484_v3  ;;  %v910_v0 = vmul.f32 %v4043_v59, %v878_v63 }
 0x1a9   :  { %v3208_v56 = vpop.eup %3207  ;;  %v783_v11 = vmul.f32 %v3206_v47, %v482_v44  ;;  %v3574_v44 = vld [vmem:[%s5913_s1 + $0x88] sm:$0xff] }
 0x1aa   :  { %v3210_v10 = vpop.eup %3209  ;;  %v880_v53 = vmul.f32 %v3208_v56, %v784_v22  ;;  %v584_v58 = vpop.xlane.xlu1 %583  ;;  %1454 = vadd.xlane.f32.xlu0 %v1422_v27  ;;  %v942_v49 = vmul.f32 0.5, %v910_v0 }
 0x1ab   :  { %v582_v9 = vpop.xlane.xlu0 %581  ;;  %v3212_v48 = vpop.eup %3211  ;;  %v879_v29 = vmul.f32 %v3210_v10, %v783_v11  ;;  %v722_v59 = vmax.f32 %v584_v58, 1e-16  ;;  %v3576_v10 = vld [vmem:[%s5913_s1 + $0x90] sm:$0xff] }
 0x1ac   :  { %v721_v54 = vmax.f32 %v582_v9, 1e-16  ;;  %v3214_v3 = vpop.eup %3213  ;;  %v912_v62 = vmul.f32 %v4057_v30, %v880_v53  ;;  %v768_v50 = vmul.f32 %v3212_v48, %v452_v45  ;;  %v974_v35 = vadd.f32 %v3574_v44, %v942_v49 }
 0x1ad   :  { %v3216_v1 = vpop.eup %3215  ;;  %v911_v57 = vmul.f32 %v4053_v15, %v879_v29  ;;  %v767_v14 = vmul.f32 %v3214_v3, %v450_v52  ;;  %3223 = vrsqrt.f32 %v722_v59  ;;  %v1053_v9 = vpack.c.bf16 %v4330_v24, %v4312_v55 }
 0x1ae   :  { %v3218_v63 = vpop.eup %3217  ;;  %v944_v51 = vmul.f32 0.5, %v912_v62  ;;  %v864_v47 = vmul.f32 %v3216_v1, %v768_v50  ;;  %3225 = vrsqrt.f32 %v721_v54  ;;  %v552_v12 = vpop.xlane.xlu1 %551  ;;  %v4333_v30 = vmax.f32 %v974_v35, 0.0  ;;  %v3578_v35 = vld [vmem:[%s5913_s1 + $0x10] sm:$0xff] }
 0x1af   :  { %v550_v22 = vpop.xlane.xlu0 %549  ;;  %v943_v45 = vmul.f32 0.5, %v911_v57  ;;  %v863_v27 = vmul.f32 %v3218_v63, %v767_v14  ;;  %v706_v0 = vmax.f32 %v552_v12, 1e-16  ;;  %v3220_v59 = vpop.eup %3219  ;;  %v1423_v44 = vmul.f32 %v4330_v24, %v4330_v24 }
 0x1b0   :  { %6079 = vst [vmem:[#allocation22_spill] sm:$0xff] %v4333_v30  ;;  %v705_v56 = vmax.f32 %v550_v22, 1e-16  ;;  %v976_v61 = vadd.f32 %v3575_v13, %v944_v51  ;;  %v896_v15 = vmul.f32 %v4063_v32, %v864_v47  ;;  %v1439_v52 = vmul.f32 %v4333_v30, %v4333_v30  ;;  %v3222_v62 = vpop.eup %3221 }
 0x1b1   :  { %v1061_v11 = vpack.c.bf16 %v4333_v30, %v4310_v42  ;;  %v975_v53 = vadd.f32 %v3576_v10, %v943_v45  ;;  %v895_v58 = vmul.f32 %v4055_v21, %v863_v27  ;;  %3227 = vrsqrt.f32 %v706_v0  ;;  %v3577_v21 = vld [vmem:[%s5913_s1 + $0x18] sm:$0xff] }
 0x1b2   :  { %v4349_v49 = vmax.f32 %v976_v61, 0.0  ;;  %v928_v32 = vmul.f32 0.5, %v896_v15  ;;  %3229 = vrsqrt.f32 %v705_v56  ;;  %v488_v48 = vpop.xlane.xlu1 %487  ;;  %1488 = vadd.xlane.f32.xlu1 %v1439_v52  ;;  %v820_v22 = vmax.f32 %v4209_v19, 1e-16 }
 0x1b3   :  { %2899 = vmatprep.subr.bf16.mxu1 %v1061_v11  ;;  %v486_v29 = vpop.xlane.xlu0 %485  ;;  %3231 = vrsqrt.f32 %v802_v2  ;;  %v4351_v54 = vmax.f32 %v975_v53, 0.0  ;;  %v927_v3 = vmul.f32 0.5, %v895_v58  ;;  %v819_v10 = vmax.f32 %v4211_v36, 1e-16 }
 0x1b4   :  { %6080 = vst [vmem:[#allocation23_spill] sm:$0xff] %v4349_v49  ;;  %2900 = vmatpush3.bf16.msra.mxu1 %v1053_v9  ;;  %3233 = vrsqrt.f32 %v801_v60  ;;  %v960_v50 = vadd.f32 %v3577_v21, %v928_v32  ;;  %v1441_v27 = vmul.f32 %v4349_v49, %v4349_v49  ;;  %v6082_v32 = vld [vmem:[#allocation4_spill] sm:$0xff]  ;;  %v6083_v21 = vld [vmem:[#allocation2_spill] sm:$0xff]  ;;  %v804_v36 = vmax.f32 %v4221_v31, 1e-16 }
 0x1b5   :  { %6081 = vst [vmem:[#allocation24_spill] sm:$0xff] %v4351_v54  ;;  %v959_v1 = vadd.f32 %v3578_v35, %v927_v3  ;;  %v1440_v2 = vmul.f32 %v4351_v54, %v4351_v54  ;;  %v1062_v57 = vpack.c.bf16 %v4349_v49, %v4351_v54  ;;  %3235 = vrsqrt.f32 %v820_v22 }
 0x1b6   :  { %v4365_v60 = vmax.f32 %v960_v50, 0.0  ;;  %v456_v14 = vpop.xlane.xlu1 %455  ;;  %1456 = vadd.xlane.f32.xlu1 %v1423_v44 }
 0x1b7   :  { %v454_v63 = vpop.xlane.xlu0 %453  ;;  %v3224_v51 = vpop.eup %3223  ;;  %v4367_v47 = vmax.f32 %v959_v1, 0.0  ;;  %1490 = vadd.xlane.f32.xlu0 %v1440_v2  ;;  %2901 = vmatprep.subr.bf16.mxu1 %v1062_v57 }
 0x1b8   :  { %v3226_v12 = vpop.eup %3225  ;;  %v786_v45 = vmul.f32 %v3224_v51, %v488_v48  ;;  %v1425_v3 = vmul.f32 %v4365_v60, %v4365_v60 }
 0x1b9   :  { %v785_v0 = vmul.f32 %v3226_v12, %v486_v29  ;;  %v1424_v56 = vmul.f32 %v4367_v47, %v4367_v47  ;;  %v1054_v13 = vpack.c.bf16 %v4365_v60, %v4367_v47 }
 0x1ba   :  { %v882_v61 = vmul.f32 %v3220_v59, %v786_v45  ;;  %v588_v15 = vpop.xlane.xlu1 %587  ;;  %1492 = vadd.xlane.f32.xlu1 %v1441_v27  ;;  %v803_v45 = vmax.f32 %v4223_v43, 1e-16 }
 0x1bb   :  { %v586_v52 = vpop.xlane.xlu0 %585  ;;  %v3228_v11 = vpop.eup %3227  ;;  %v881_v53 = vmul.f32 %v3222_v62, %v785_v0  ;;  %v724_v19 = vmax.f32 %v588_v15, 1e-16  ;;  %1458 = vadd.xlane.f32.xlu0 %v1424_v56  ;;  %2902 = vmatpush3.bf16.msra.mxu1 %v1054_v13  ;;  %v6084_v0 = vld [vmem:[#allocation5_spill] sm:$0xff]  ;;  %v3580_v56 = vld [vmem:[%s5913_s1 + $0xa0] sm:$0xff] }
 0x1bc   :  { %v723_v58 = vmax.f32 %v586_v52, 1e-16  ;;  %v3230_v9 = vpop.eup %3229  ;;  %v914_v48 = vmul.f32 %v6082_v32, %v882_v61  ;;  %v770_v29 = vmul.f32 %v3228_v11, %v456_v14  ;;  %v6085_v61 = vld [vmem:[#allocation3_spill] sm:$0xff] }
 0x1bd   :  { %v3232_v59 = vpop.eup %3231  ;;  %v913_v50 = vmul.f32 %v6083_v21, %v881_v53  ;;  %v769_v44 = vmul.f32 %v3230_v9, %v454_v63  ;;  %3237 = vrsqrt.f32 %v724_v19  ;;  %v3579_v63 = vld [vmem:[%s5913_s1 + $0xa8] sm:$0xff] }
 0x1be   :  { %v3234_v35 = vpop.eup %3233  ;;  %v946_v62 = vmul.f32 0.5, %v914_v48  ;;  %v866_v1 = vmul.f32 %v3232_v59, %v770_v29  ;;  %3239 = vrsqrt.f32 %v723_v58  ;;  %v556_v2 = vpop.xlane.xlu1 %555  ;;  %1460 = vadd.xlane.f32.xlu1 %v1425_v3  ;;  %v3581_v58 = vld [vmem:[%s5913_s1 + $0x28] sm:$0xff]  ;;  %v3582_v48 = vld [vmem:[%s5913_s1 + $0x20] sm:$0xff] }
 0x1bf   :  { %v554_v57 = vpop.xlane.xlu0 %553  ;;  %v945_v51 = vmul.f32 0.5, %v913_v50  ;;  %v865_v12 = vmul.f32 %v3234_v35, %v769_v44  ;;  %v708_v14 = vmax.f32 %v556_v2, 1e-16  ;;  %3241 = vrsqrt.f32 %v819_v10  ;;  %v3236_v21 = vpop.eup %3235 }
 0x1c0   :  { %v707_v22 = vmax.f32 %v554_v57, 1e-16  ;;  %v978_v27 = vadd.f32 %v3579_v63, %v946_v62  ;;  %v898_v31 = vmul.f32 %v6084_v0, %v866_v1  ;;  %v822_v2 = vmax.f32 %v4229_v28, 1e-16 }
 0x1c1   :  { %v977_v13 = vadd.f32 %v3580_v56, %v945_v51  ;;  %v897_v15 = vmul.f32 %v6085_v61, %v865_v12  ;;  %3243 = vrsqrt.f32 %v708_v14 }
 0x1c2   :  { %v4391_v52 = vmax.f32 %v978_v27, 0.0  ;;  %v930_v11 = vmul.f32 0.5, %v898_v31  ;;  %3245 = vrsqrt.f32 %v707_v22  ;;  %v492_v43 = vpop.xlane.xlu1 %491 }
 0x1c3   :  { %v490_v10 = vpop.xlane.xlu0 %489  ;;  %3247 = vrsqrt.f32 %v804_v36  ;;  %v4393_v53 = vmax.f32 %v977_v13, 0.0  ;;  %v929_v19 = vmul.f32 0.5, %v897_v15  ;;  %v821_v15 = vmax.f32 %v4231_v38, 1e-16 }
 0x1c4   :  { %6086 = vst [vmem:[#allocation4_spill] sm:$0xff] %v4391_v52  ;;  %3249 = vrsqrt.f32 %v803_v45  ;;  %v962_v9 = vadd.f32 %v3581_v58, %v930_v11  ;;  %v1443_v32 = vmul.f32 %v4391_v52, %v4391_v52 }
 0x1c5   :  { %6087 = vst [vmem:[#allocation2_spill] sm:$0xff] %v4393_v53  ;;  %v961_v29 = vadd.f32 %v3582_v48, %v929_v19  ;;  %v1442_v3 = vmul.f32 %v4393_v53, %v4393_v53  ;;  %v1063_v59 = vpack.c.bf16 %v4391_v52, %v4393_v53  ;;  %3251 = vrsqrt.f32 %v822_v2 }
 0x1c6   :  { %v4407_v50 = vmax.f32 %v962_v9, 0.0  ;;  %v460_v44 = vpop.xlane.xlu1 %459  ;;  %1496 = vadd.xlane.f32.xlu1 %v1443_v32  ;;  %v806_v32 = vmax.f32 %v4241_v33, 1e-16  ;;  %v3584_v33 = vld [vmem:[%s5913_s1 + $0xb0] sm:$0xff] }
 0x1c7   :  { %v458_v35 = vpop.xlane.xlu0 %457  ;;  %v3238_v36 = vpop.eup %3237  ;;  %v4409_v62 = vmax.f32 %v961_v29, 0.0  ;;  %1494 = vadd.xlane.f32.xlu0 %v1442_v3  ;;  %2903 = vmatprep.subr.bf16.mxu1 %v1063_v59 }
 0x1c8   :  { %v3240_v1 = vpop.eup %3239  ;;  %v788_v57 = vmul.f32 %v3238_v36, %v492_v43  ;;  %v1427_v51 = vmul.f32 %v4407_v50, %v4407_v50 }
 0x1c9   :  { %v787_v12 = vmul.f32 %v3240_v1, %v490_v10  ;;  %v1426_v14 = vmul.f32 %v4409_v62, %v4409_v62  ;;  %v1055_v22 = vpack.c.bf16 %v4407_v50, %v4409_v62  ;;  %v3242_v45 = vpop.eup %3241 }
 0x1ca   :  { %v884_v63 = vmul.f32 %v3236_v21, %v788_v57  ;;  %v592_v27 = vpop.xlane.xlu1 %591  ;;  %1464 = vadd.xlane.f32.xlu1 %v1427_v51 }
 0x1cb   :  { %v590_v0 = vpop.xlane.xlu0 %589  ;;  %v3244_v31 = vpop.eup %3243  ;;  %v883_v56 = vmul.f32 %v3242_v45, %v787_v12  ;;  %v726_v13 = vmax.f32 %v592_v27, 1e-16  ;;  %1462 = vadd.xlane.f32.xlu0 %v1426_v14  ;;  %2904 = vmatpush3.bf16.msra.mxu1 %v1055_v22  ;;  %v3586_v27 = vld [vmem:[%s5913_s1 + $0x30] sm:$0xff] }
 0x1cc   :  { %v725_v28 = vmax.f32 %v590_v0, 1e-16  ;;  %v3246_v61 = vpop.eup %3245  ;;  %v916_v11 = vmul.f32 %v4093_v39, %v884_v63  ;;  %v772_v43 = vmul.f32 %v3244_v31, %v460_v44  ;;  %v805_v39 = vmax.f32 %v4243_v20, 1e-16 }
 0x1cd   :  { %v3248_v10 = vpop.eup %3247  ;;  %v915_v19 = vmul.f32 %v4085_v16, %v883_v56  ;;  %v771_v58 = vmul.f32 %v3246_v61, %v458_v35  ;;  %3253 = vrsqrt.f32 %v726_v13  ;;  %v3583_v16 = vld [vmem:[%s5913_s1 + $0xb8] sm:$0xff] }
 0x1ce   :  { %v3250_v9 = vpop.eup %3249  ;;  %v948_v48 = vmul.f32 0.5, %v916_v11  ;;  %v868_v29 = vmul.f32 %v3248_v10, %v772_v43  ;;  %3255 = vrsqrt.f32 %v725_v28  ;;  %v560_v3 = vpop.xlane.xlu1 %559 }
 0x1cf   :  { %v558_v59 = vpop.xlane.xlu0 %557  ;;  %v947_v21 = vmul.f32 0.5, %v915_v19  ;;  %v867_v36 = vmul.f32 %v3250_v9, %v771_v58  ;;  %v710_v1 = vmax.f32 %v560_v3, 1e-16  ;;  %3257 = vrsqrt.f32 %v821_v15  ;;  %v3252_v13 = vpop.eup %3251 }
 0x1d0   :  { %v709_v38 = vmax.f32 %v558_v59, 1e-16  ;;  %v980_v44 = vadd.f32 %v3583_v16, %v948_v48  ;;  %v900_v35 = vmul.f32 %v4095_v40, %v868_v29  ;;  %v3585_v40 = vld [vmem:[%s5913_s1 + $0x38] sm:$0xff]  ;;  %v824_v19 = vmax.f32 %v4249_v18, 1e-16 }
 0x1d1   :  { %v979_v2 = vadd.f32 %v3584_v33, %v947_v21  ;;  %v899_v57 = vmul.f32 %v4087_v23, %v867_v36  ;;  %3259 = vrsqrt.f32 %v710_v1 }
 0x1d2   :  { %v4431_v51 = vmax.f32 %v980_v44, 0.0  ;;  %v932_v12 = vmul.f32 0.5, %v900_v35  ;;  %3261 = vrsqrt.f32 %v709_v38  ;;  %v496_v20 = vpop.xlane.xlu1 %495  ;;  %v823_v44 = vmax.f32 %v4251_v17, 1e-16 }
 0x1d3   :  { %v494_v14 = vpop.xlane.xlu0 %493  ;;  %3263 = vrsqrt.f32 %v806_v32  ;;  %v4433_v22 = vmax.f32 %v979_v2, 0.0  ;;  %v931_v45 = vmul.f32 0.5, %v899_v57 }
 0x1d4   :  { %6088 = vst [vmem:[#allocation5_spill] sm:$0xff] %v4431_v51  ;;  %3265 = vrsqrt.f32 %v805_v39  ;;  %v964_v63 = vadd.f32 %v3585_v40, %v932_v12  ;;  %v1445_v23 = vmul.f32 %v4431_v51, %v4431_v51 }
 0x1d5   :  { %6089 = vst [vmem:[#allocation3_spill] sm:$0xff] %v4433_v22  ;;  %v963_v0 = vadd.f32 %v3586_v27, %v931_v45  ;;  %v1444_v31 = vmul.f32 %v4433_v22, %v4433_v22  ;;  %v1064_v56 = vpack.c.bf16 %v4431_v51, %v4433_v22  ;;  %3267 = vrsqrt.f32 %v824_v19 }
 0x1d6   :  { %v4447_v28 = vmax.f32 %v964_v63, 0.0  ;;  %v464_v61 = vpop.xlane.xlu1 %463  ;;  %1500 = vadd.xlane.f32.xlu1 %v1445_v23 }
 0x1d7   :  { %v462_v15 = vpop.xlane.xlu0 %461  ;;  %v3254_v11 = vpop.eup %3253  ;;  %v4449_v43 = vmax.f32 %v963_v0, 0.0  ;;  %1498 = vadd.xlane.f32.xlu0 %v1444_v31  ;;  %2905 = vmatprep.subr.bf16.mxu1 %v1064_v56 }
 0x1d8   :  { %v3256_v10 = vpop.eup %3255  ;;  %v790_v58 = vmul.f32 %v3254_v11, %v496_v20  ;;  %v1429_v9 = vmul.f32 %v4447_v28, %v4447_v28 }
 0x1d9   :  { %v789_v32 = vmul.f32 %v3256_v10, %v494_v14  ;;  %v1428_v48 = vmul.f32 %v4449_v43, %v4449_v43  ;;  %v1056_v29 = vpack.c.bf16 %v4447_v28, %v4449_v43  ;;  %v3258_v3 = vpop.eup %3257  ;;  %v808_v14 = vmax.f32 %v4261_v26, 1e-16  ;;  %v3588_v26 = vld [vmem:[%s5913_s1 + $0xc0] sm:$0xff] }
 0x1da   :  { %v886_v59 = vmul.f32 %v3252_v13, %v790_v58  ;;  %v596_v21 = vpop.xlane.xlu1 %595  ;;  %1468 = vadd.xlane.f32.xlu1 %v1429_v9 }
 0x1db   :  { %v594_v36 = vpop.xlane.xlu0 %593  ;;  %v3260_v1 = vpop.eup %3259  ;;  %v885_v38 = vmul.f32 %v3258_v3, %v789_v32  ;;  %v728_v39 = vmax.f32 %v596_v21, 1e-16  ;;  %1466 = vadd.xlane.f32.xlu0 %v1428_v48  ;;  %2906 = vmatpush3.bf16.msra.mxu1 %v1056_v29  ;;  %v3590_v48 = vld [vmem:[%s5913_s1 + $0x40] sm:$0xff] }
 0x1dc   :  { %v727_v18 = vmax.f32 %v594_v36, 1e-16  ;;  %v3262_v16 = vpop.eup %3261  ;;  %v918_v35 = vmul.f32 %v4109_v7, %v886_v59  ;;  %v774_v33 = vmul.f32 %v3260_v1, %v464_v61  ;;  %v807_v7 = vmax.f32 %v4263_v25, 1e-16 }
 0x1dd   :  { %v3264_v2 = vpop.eup %3263  ;;  %v917_v57 = vmul.f32 %v4101_v6, %v885_v38  ;;  %v773_v12 = vmul.f32 %v3262_v16, %v462_v15  ;;  %3269 = vrsqrt.f32 %v728_v39  ;;  %v3587_v6 = vld [vmem:[%s5913_s1 + $0xc8] sm:$0xff] }
 0x1de   :  { %v3266_v20 = vpop.eup %3265  ;;  %v950_v45 = vmul.f32 0.5, %v918_v35  ;;  %v870_v40 = vmul.f32 %v3264_v2, %v774_v33  ;;  %3271 = vrsqrt.f32 %v727_v18  ;;  %v564_v63 = vpop.xlane.xlu1 %563 }
 0x1df   :  { %v562_v23 = vpop.xlane.xlu0 %561  ;;  %v949_v27 = vmul.f32 0.5, %v917_v57  ;;  %v869_v0 = vmul.f32 %v3266_v20, %v773_v12  ;;  %v712_v31 = vmax.f32 %v564_v63, 1e-16  ;;  %3273 = vrsqrt.f32 %v823_v44  ;;  %v3268_v21 = vpop.eup %3267 }
 0x1e0   :  { %v711_v17 = vmax.f32 %v562_v23, 1e-16  ;;  %v982_v56 = vadd.f32 %v3587_v6, %v950_v45  ;;  %v902_v13 = vmul.f32 %v4111_v8, %v870_v40  ;;  %v3589_v8 = vld [vmem:[%s5913_s1 + $0x48] sm:$0xff]  ;;  %v826_v20 = vmax.f32 %v4269_v37, 1e-16 }
 0x1e1   :  { %v981_v61 = vadd.f32 %v3588_v26, %v949_v27  ;;  %v901_v15 = vmul.f32 %v4103_v4, %v869_v0  ;;  %3275 = vrsqrt.f32 %v712_v31 }
 0x1e2   :  { %v4471_v11 = vmax.f32 %v982_v56, 0.0  ;;  %v934_v10 = vmul.f32 0.5, %v902_v13  ;;  %3277 = vrsqrt.f32 %v711_v17  ;;  %v500_v25 = vpop.xlane.xlu1 %499  ;;  %v825_v56 = vmax.f32 %v4271_v46, 1e-16 }
 0x1e3   :  { %v498_v19 = vpop.xlane.xlu0 %497  ;;  %3279 = vrsqrt.f32 %v808_v14  ;;  %v4473_v58 = vmax.f32 %v981_v61, 0.0  ;;  %v933_v9 = vmul.f32 0.5, %v901_v15  ;;  %v810_v61 = vmax.f32 %v4281_v41, 1e-16  ;;  %v3592_v41 = vld [vmem:[%s5913_s1 + $0xd0] sm:$0xff] }
 0x1e4   :  { %6090 = vst [vmem:[#allocation25_spill] sm:$0xff] %v4471_v11  ;;  %3281 = vrsqrt.f32 %v807_v7  ;;  %v966_v32 = vadd.f32 %v3589_v8, %v934_v10  ;;  %v1447_v4 = vmul.f32 %v4471_v11, %v4471_v11 }
 0x1e5   :  { %6091 = vst [vmem:[#allocation26_spill] sm:$0xff] %v4473_v58  ;;  %v965_v29 = vadd.f32 %v3590_v48, %v933_v9  ;;  %v1446_v3 = vmul.f32 %v4473_v58, %v4473_v58  ;;  %v1065_v59 = vpack.c.bf16 %v4471_v11, %v4473_v58  ;;  %3283 = vrsqrt.f32 %v826_v20 }
 0x1e6   :  { %v4487_v36 = vmax.f32 %v966_v32, 0.0  ;;  %v468_v1 = vpop.xlane.xlu1 %467  ;;  %1504 = vadd.xlane.f32.xlu1 %v1447_v4  ;;  %v3591_v32 = vld [vmem:[%s5913_s1 + $0xd8] sm:$0xff]  ;;  %v6093_v4 = vld [vmem:[#allocation7_spill] sm:$0xff] }
 0x1e7   :  { %v466_v38 = vpop.xlane.xlu0 %465  ;;  %v3270_v39 = vpop.eup %3269  ;;  %v4489_v18 = vmax.f32 %v965_v29, 0.0  ;;  %1502 = vadd.xlane.f32.xlu0 %v1446_v3  ;;  %2907 = vmatprep.subr.bf16.mxu1 %v1065_v59  ;;  %v6094_v3 = vld [vmem:[#allocation6_spill] sm:$0xff] }
 0x1e8   :  { %6092 = vst [vmem:[#allocation27_spill] sm:$0xff] %v4487_v36  ;;  %v3272_v16 = vpop.eup %3271  ;;  %v792_v44 = vmul.f32 %v3270_v39, %v500_v25  ;;  %v1431_v35 = vmul.f32 %v4487_v36, %v4487_v36 }
 0x1e9   :  { %v791_v33 = vmul.f32 %v3272_v16, %v498_v19  ;;  %v1430_v2 = vmul.f32 %v4489_v18, %v4489_v18  ;;  %v1057_v57 = vpack.c.bf16 %v4487_v36, %v4489_v18  ;;  %v3274_v12 = vpop.eup %3273 }
 0x1ea   :  { %v888_v14 = vmul.f32 %v3268_v21, %v792_v44  ;;  %v600_v45 = vpop.xlane.xlu1 %599  ;;  %1472 = vadd.xlane.f32.xlu1 %v1431_v35  ;;  %v6095_v21 = vld [vmem:[#allocation16_spill] sm:$0xff]  ;;  %v6097_v35 = vld [vmem:[#allocation17_spill] sm:$0xff] }
 0x1eb   :  { %v598_v40 = vpop.xlane.xlu0 %597  ;;  %v3276_v63 = vpop.eup %3275  ;;  %v887_v23 = vmul.f32 %v3274_v12, %v791_v33  ;;  %v730_v27 = vmax.f32 %v600_v45, 1e-16  ;;  %1470 = vadd.xlane.f32.xlu0 %v1430_v2  ;;  %2908 = vmatpush3.bf16.msra.mxu1 %v1057_v57  ;;  %v828_v33 = vmax.f32 %v6097_v35, 1e-16  ;;  %v3593_v12 = vld [vmem:[%s5913_s1 + $0x58] sm:$0xff]  ;;  %v6104_v35 = vld [vmem:[#allocation10_spill] sm:$0xff] }
 0x1ec   :  { %v3278_v0 = vpop.eup %3277  ;;  %v920_v31 = vmul.f32 %v4125_v5, %v888_v14  ;;  %v776_v17 = vmul.f32 %v3276_v63, %v468_v1  ;;  %v729_v7 = vmax.f32 %v598_v40, 1e-16  ;;  %v809_v1 = vmax.f32 %v6095_v21, 1e-16  ;;  %v3594_v40 = vld [vmem:[%s5913_s1 + $0x50] sm:$0xff] }
 0x1ed   :  { %v3280_v6 = vpop.eup %3279  ;;  %v919_v13 = vmul.f32 %v4117_v34, %v887_v23  ;;  %v775_v37 = vmul.f32 %v3278_v0, %v466_v38  ;;  %3285 = vrsqrt.f32 %v730_v27 }
 0x1ee   :  { %v3282_v26 = vpop.eup %3281  ;;  %v952_v15 = vmul.f32 0.5, %v920_v31  ;;  %v872_v10 = vmul.f32 %v3280_v6, %v776_v17  ;;  %v568_v25 = vpop.xlane.xlu1 %567  ;;  %3287 = vrsqrt.f32 %v729_v7  ;;  %v6099_v31 = vld [vmem:[#allocation18_spill] sm:$0xff] }
 0x1ef   :  { %v566_v19 = vpop.xlane.xlu0 %565  ;;  %v951_v9 = vmul.f32 0.5, %v919_v13  ;;  %v871_v8 = vmul.f32 %v3282_v26, %v775_v37  ;;  %v714_v5 = vmax.f32 %v568_v25, 1e-16  ;;  %3289 = vrsqrt.f32 %v825_v56  ;;  %v3284_v26 = vpop.eup %3283  ;;  %v6102_v25 = vld [vmem:[#allocation19_spill] sm:$0xff] }
 0x1f0   :  { %v984_v46 = vadd.f32 %v3591_v32, %v952_v15  ;;  %v904_v34 = vmul.f32 %v6093_v4, %v872_v10  ;;  %v713_v48 = vmax.f32 %v566_v19, 1e-16  ;;  %3291 = vrsqrt.f32 %v810_v61  ;;  %v6103_v32 = vld [vmem:[#allocation20_spill] sm:$0xff] }
 0x1f1   :  { %v983_v29 = vadd.f32 %v3592_v41, %v951_v9  ;;  %v903_v59 = vmul.f32 %v6094_v3, %v871_v8  ;;  %3293 = vrsqrt.f32 %v714_v5  ;;  %v827_v17 = vmax.f32 %v6099_v31, 1e-16 }
 0x1f2   :  { %v4511_v38 = vmax.f32 %v984_v46, 0.0  ;;  %v936_v39 = vmul.f32 0.5, %v904_v34  ;;  %v604_v16 = vpop.xlane.xlu1 %603  ;;  %3295 = vrsqrt.f32 %v713_v48  ;;  %v812_v19 = vmax.f32 %v6102_v25, 1e-16 }
 0x1f3   :  { %v602_v44 = vpop.xlane.xlu0 %601  ;;  %v4514_v2 = vmax.f32 %v983_v29, 0.0  ;;  %v935_v57 = vmul.f32 0.5, %v903_v59  ;;  %v732_v14 = vmax.f32 %v604_v16, 1e-16  ;;  %3297 = vrsqrt.f32 %v809_v1 }
 0x1f4   :  { %6096 = vst [vmem:[#allocation7_spill] sm:$0xff] %v4511_v38  ;;  %v968_v20 = vadd.f32 %v3593_v12, %v936_v39  ;;  %v1449_v45 = vmul.f32 %v4511_v38, %v4511_v38  ;;  %v731_v23 = vmax.f32 %v602_v44, 1e-16  ;;  %3299 = vrsqrt.f32 %v828_v33 }
 0x1f5   :  { %6098 = vst [vmem:[#allocation6_spill] sm:$0xff] %v4514_v2  ;;  %v967_v63 = vadd.f32 %v3594_v40, %v935_v57  ;;  %v1448_v27 = vmul.f32 %v4514_v2, %v4514_v2  ;;  %v1066_v0 = vpack.c.bf16 %v4511_v38, %v4514_v2  ;;  %3301 = vrsqrt.f32 %v732_v14  ;;  %v6105_v57 = vld [vmem:[#allocation8_spill] sm:$0xff] }
 0x1f6   :  { %v4529_v7 = vmax.f32 %v968_v20, 0.0  ;;  %v572_v6 = vpop.xlane.xlu1 %571  ;;  %1508 = vadd.xlane.f32.xlu1 %v1449_v45  ;;  %3303 = vrsqrt.f32 %v731_v23  ;;  %v811_v46 = vmax.f32 %v6103_v32, 1e-16 }
 0x1f7   :  { %v570_v56 = vpop.xlane.xlu0 %569  ;;  %v4531_v13 = vmax.f32 %v967_v63, 0.0  ;;  %v716_v37 = vmax.f32 %v572_v6, 1e-16  ;;  %1506 = vadd.xlane.f32.xlu0 %v1448_v27  ;;  %2909 = vmatprep.subr.bf16.mxu1 %v1066_v0  ;;  %v3286_v10 = vpop.eup %3285  ;;  %3305 = vrsqrt.f32 %v827_v17 }
 0x1f8   :  { %6100 = vst [vmem:[#allocation16_spill] sm:$0xff] %v4529_v7  ;;  %v715_v61 = vmax.f32 %v570_v56, 1e-16  ;;  %v1433_v15 = vmul.f32 %v4529_v7, %v4529_v7  ;;  %v3288_v5 = vpop.eup %3287 }
 0x1f9   :  { %6101 = vst [vmem:[#allocation17_spill] sm:$0xff] %v4531_v13  ;;  %v1432_v9 = vmul.f32 %v4531_v13, %v4531_v13  ;;  %v1058_v8 = vpack.c.bf16 %v4529_v7, %v4531_v13  ;;  %v3290_v48 = vpop.eup %3289  ;;  %3307 = vrsqrt.f32 %v716_v37  ;;  %v3595_v37 = vld [vmem:[%s5913_s1 + $0xe8] sm:$0xff] }
 0x1fa   :  { %v504_v4 = vpop.xlane.xlu1 %503  ;;  %1476 = vadd.xlane.f32.xlu1 %v1433_v15  ;;  %v3292_v3 = vpop.eup %3291  ;;  %3309 = vrsqrt.f32 %v715_v61  ;;  %v3596_v61 = vld [vmem:[%s5913_s1 + $0xe0] sm:$0xff] }
 0x1fb   :  { %v502_v34 = vpop.xlane.xlu0 %501  ;;  %v794_v41 = vmul.f32 %v3286_v10, %v504_v4  ;;  %1474 = vadd.xlane.f32.xlu0 %v1432_v9  ;;  %2910 = vmatpush3.bf16.msra.mxu1 %v1058_v8  ;;  %v3294_v59 = vpop.eup %3293  ;;  %3311 = vrsqrt.f32 %v812_v19  ;;  %v6106_v10 = vld [vmem:[#allocation11_spill] sm:$0xff]  ;;  %v6107_v19 = vld [vmem:[#allocation9_spill] sm:$0xff] }
 0x1fc   :  { %v793_v29 = vmul.f32 %v3288_v5, %v502_v34  ;;  %v3296_v39 = vpop.eup %3295  ;;  %3313 = vrsqrt.f32 %v811_v46 }
 0x1fd   :  { %v890_v21 = vmul.f32 %v3284_v26, %v794_v41  ;;  %v3298_v45 = vpop.eup %3297 }
 0x1fe   :  { %v889_v1 = vmul.f32 %v3290_v48, %v793_v29  ;;  %v472_v16 = vpop.xlane.xlu1 %471  ;;  %v3300_v40 = vpop.eup %3299 }
 0x1ff   :  { %v470_v44 = vpop.xlane.xlu0 %469  ;;  %v922_v33 = vmul.f32 %v6104_v35, %v890_v21  ;;  %v778_v20 = vmul.f32 %v3294_v59, %v472_v16  ;;  %v3302_v31 = vpop.eup %3301  ;;  %v3597_v16 = vld [vmem:[%s5913_s1 + $0x68] sm:$0xff]  ;;  %v3598_v35 = vld [vmem:[%s5913_s1 + $0x60] sm:$0xff] }
 0x200   :  { %v921_v12 = vmul.f32 %v6105_v57, %v889_v1  ;;  %v777_v14 = vmul.f32 %v3296_v39, %v470_v44  ;;  %v3304_v56 = vpop.eup %3303 }
 0x201   :  { %v954_v63 = vmul.f32 0.5, %v922_v33  ;;  %v874_v27 = vmul.f32 %v3292_v3, %v778_v20  ;;  %v3306_v8 = vpop.eup %3305 }
 0x202   :  { %v953_v23 = vmul.f32 0.5, %v921_v12  ;;  %v873_v0 = vmul.f32 %v3298_v45, %v777_v14  ;;  %v508_v17 = vpop.xlane.xlu1 %507  ;;  %v6110_v14 = vld [vmem:[#allocation14_spill] sm:$0xff] }
 0x203   :  { %v506_v6 = vpop.xlane.xlu0 %505  ;;  %v986_v26 = vadd.f32 %v3595_v37, %v954_v63  ;;  %v906_v25 = vmul.f32 %v6106_v10, %v874_v27  ;;  %v796_v5 = vmul.f32 %v3302_v31, %v508_v17  ;;  %v3308_v46 = vpop.eup %3307  ;;  %v6115_v10 = vld [vmem:[#allocation13_spill] sm:$0xff] }
 0x204   :  { %v985_v15 = vadd.f32 %v3596_v61, %v953_v23  ;;  %v905_v9 = vmul.f32 %v6107_v19, %v873_v0  ;;  %v795_v32 = vmul.f32 %v3304_v56, %v506_v6  ;;  %v3310_v29 = vpop.eup %3309  ;;  %v6114_v61 = vld [vmem:[#allocation15_spill] sm:$0xff] }
 0x205   :  { %v4551_v4 = vmax.f32 %v986_v26, 0.0  ;;  %v938_v48 = vmul.f32 0.5, %v906_v25  ;;  %v892_v3 = vmul.f32 %v3300_v40, %v796_v5  ;;  %v3312_v39 = vpop.eup %3311  ;;  %v6111_v40 = vld [vmem:[#allocation12_spill] sm:$0xff] }
 0x206   :  { %v4553_v34 = vmax.f32 %v985_v15, 0.0  ;;  %v937_v41 = vmul.f32 0.5, %v905_v9  ;;  %v891_v59 = vmul.f32 %v3306_v8, %v795_v32  ;;  %v476_v21 = vpop.xlane.xlu1 %475  ;;  %v3314_v20 = vpop.eup %3313  ;;  %v3599_v8 = vld [vmem:[%s5913_s1 + $0xf8] sm:$0xff]  ;;  %v3600_v32 = vld [vmem:[%s5913_s1 + $0xf0] sm:$0xff] }
 0x207   :  { %6108 = vst [vmem:[#allocation18_spill] sm:$0xff] %v4551_v4  ;;  %v474_v1 = vpop.xlane.xlu0 %473  ;;  %v970_v44 = vadd.f32 %v3597_v16, %v938_v48  ;;  %v780_v57 = vmul.f32 %v3308_v46, %v476_v21  ;;  %v924_v45 = vmul.f32 %v6110_v14, %v892_v3  ;;  %v1451_v23 = vmul.f32 %v4551_v4, %v4551_v4  ;;  %v3601_v21 = vld [vmem:[%s5913_s1 + $0x78] sm:$0xff] }
 0x208   :  { %6109 = vst [vmem:[#allocation19_spill] sm:$0xff] %v4553_v34  ;;  %v969_v33 = vadd.f32 %v3598_v35, %v937_v41  ;;  %v779_v12 = vmul.f32 %v3310_v29, %v474_v1  ;;  %v923_v63 = vmul.f32 %v6111_v40, %v891_v59  ;;  %v1450_v27 = vmul.f32 %v4553_v34, %v4553_v34  ;;  %v3603_v40 = vld [vmem:[%s5914_s0] ss:$8 sps:$4 sm:$0xff]  }
 0x209   :  { %v4567_v0 = vmax.f32 %v970_v44, 0.0  ;;  %v876_v17 = vmul.f32 %v3312_v39, %v780_v57  ;;  %v956_v56 = vmul.f32 0.5, %v924_v45  ;;  %1512 = vadd.xlane.f32.xlu1 %v1451_v23  ;;  %v1067_v26 = vpack.c.bf16 %v4551_v4, %v4553_v34  ;;  %v3602_v39 = vld [vmem:[%s5913_s1 + $0x70] sm:$0xff] }
 0x20a   :  { %v4569_v31 = vmax.f32 %v969_v33, 0.0  ;;  %v875_v6 = vmul.f32 %v3314_v20, %v779_v12  ;;  %v955_v37 = vmul.f32 0.5, %v923_v63  ;;  %1510 = vadd.xlane.f32.xlu0 %v1450_v27  ;;  %v3604_v63 = vld [vmem:[%s5914_s0 + $0x14] ss:$8 sps:$4 sm:$0xff]   ;;  %v3605_v23 = vld [vmem:[%s5914_s0 + $0x10] ss:$8 sps:$4 sm:$0xff]  }
 0x20b   :  { %6112 = vst [vmem:[#allocation20_spill] sm:$0xff] %v4567_v0  ;;  %v908_v15 = vmul.f32 %v6114_v61, %v876_v17  ;;  %v1435_v19 = vmul.f32 %v4567_v0, %v4567_v0  ;;  %v988_v5 = vadd.f32 %v3599_v8, %v956_v56  ;;  %2911 = vmatprep.subr.bf16.mxu1 %v1067_v26  ;;  %v3606_v27 = vld [vmem:[%s5914_s0 + $0x24] ss:$8 sps:$4 sm:$0xff]   ;;  %v3607_v17 = vld [vmem:[%s5914_s0 + $0x20] ss:$8 sps:$4 sm:$0xff]  }
 0x20c   :  { %6113 = vst [vmem:[#allocation10_spill] sm:$0xff] %v4569_v31  ;;  %v907_v25 = vmul.f32 %v6115_v10, %v875_v6  ;;  %v1434_v9 = vmul.f32 %v4569_v31, %v4569_v31  ;;  %v987_v46 = vadd.f32 %v3600_v32, %v955_v37  ;;  %v1059_v48 = vpack.c.bf16 %v4567_v0, %v4569_v31  ;;  %v3608_v6 = vld [vmem:[%s5914_s0 + $0x34] ss:$8 sps:$4 sm:$0xff]   ;;  %v3609_v56 = vld [vmem:[%s5914_s0 + $0x30] ss:$8 sps:$4 sm:$0xff]  }
 0x20d   :  { %v940_v41 = vmul.f32 0.5, %v908_v15  ;;  %v4587_v3 = vmax.f32 %v988_v5, 0.0  ;;  %1480 = vadd.xlane.f32.xlu1 %v1435_v19  ;;  %v3610_v37 = vld [vmem:[%s5914_s0 + $0x44] ss:$8 sps:$4 sm:$0xff]   ;;  %v3611_v26 = vld [vmem:[%s5914_s0 + $0x40] ss:$8 sps:$4 sm:$0xff]  }
 0x20e   :  { %v939_v29 = vmul.f32 0.5, %v907_v25  ;;  %v4589_v59 = vmax.f32 %v987_v46, 0.0  ;;  %1478 = vadd.xlane.f32.xlu0 %v1434_v9  ;;  %2912 = vmatpush3.bf16.msra.mxu1 %v1059_v48  ;;  %v3612_v61 = vld [vmem:[%s5914_s0 + $0x54] ss:$8 sps:$4 sm:$0xff]   ;;  %v3613_v15 = vld [vmem:[%s5914_s0 + $0x50] ss:$8 sps:$4 sm:$0xff]  }
 0x20f   :  { %6116 = vst [vmem:[#allocation8_spill] sm:$0xff] %v4587_v3  ;;  %v972_v1 = vadd.f32 %v3601_v21, %v940_v41  ;;  %v1453_v44 = vmul.f32 %v4587_v3, %v4587_v3  ;;  %v3614_v10 = vld [vmem:[%s5914_s0 + $0x64] ss:$8 sps:$4 sm:$0xff]   ;;  %v3615_v25 = vld [vmem:[%s5914_s0 + $0x60] ss:$8 sps:$4 sm:$0xff]  }
 0x210   :  { %6117 = vst [vmem:[#allocation11_spill] sm:$0xff] %v4589_v59  ;;  %v971_v16 = vadd.f32 %v3602_v39, %v939_v29  ;;  %v1452_v35 = vmul.f32 %v4589_v59, %v4589_v59  ;;  %v1068_v33 = vpack.c.bf16 %v4587_v3, %v4589_v59  ;;  %v3616_v19 = vld [vmem:[%s5914_s0 + $0x74] ss:$8 sps:$4 sm:$0xff]   ;;  %v3617_v9 = vld [vmem:[%s5914_s0 + $0x70] ss:$8 sps:$4 sm:$0xff]  }
 0x211   :  { %v4603_v57 = vmax.f32 %v972_v1, 0.0  ;;  %1516 = vadd.xlane.f32.xlu1 %v1453_v44  ;;  %v3618_v8 = vld [vmem:[%s5914_s0 + $0x84] ss:$8 sps:$4 sm:$0xff]   ;;  %v3619_v5 = vld [vmem:[%s5914_s0 + $0x80] ss:$8 sps:$4 sm:$0xff]  }
 0x212   :  { %v4605_v12 = vmax.f32 %v971_v16, 0.0  ;;  %1514 = vadd.xlane.f32.xlu0 %v1452_v35  ;;  %2913 = vmatprep.subr.bf16.mxu1 %v1068_v33  ;;  %v3620_v32 = vld [vmem:[%s5914_s0 + $0x94] ss:$8 sps:$4 sm:$0xff]   ;;  %v3621_v46 = vld [vmem:[%s5914_s0 + $0x90] ss:$8 sps:$4 sm:$0xff]  }
 0x213   :  { %6118 = vst [vmem:[#allocation9_spill] sm:$0xff] %v4603_v57  ;;  %v1437_v20 = vmul.f32 %v4603_v57, %v4603_v57  ;;  %v3622_v48 = vld [vmem:[%s5914_s0 + $0xa4] ss:$8 sps:$4 sm:$0xff]   ;;  %v3623_v41 = vld [vmem:[%s5914_s0 + $0xa0] ss:$8 sps:$4 sm:$0xff]  }
 0x214   :  { %6119 = vst [vmem:[#allocation14_spill] sm:$0xff] %v4605_v12  ;;  %v1436_v14 = vmul.f32 %v4605_v12, %v4605_v12  ;;  %v1060_v45 = vpack.c.bf16 %v4603_v57, %v4605_v12  ;;  %v3624_v29 = vld [vmem:[%s5914_s0 + $0xb4] ss:$8 sps:$4 sm:$0xff]   ;;  %v3625_v21 = vld [vmem:[%s5914_s0 + $0xb0] ss:$8 sps:$4 sm:$0xff]  }
 0x215   :  { %1484 = vadd.xlane.f32.xlu1 %v1437_v20  ;;  %v3626_v1 = vld [vmem:[%s5914_s0 + $0xc4] ss:$8 sps:$4 sm:$0xff]   ;;  %v3627_v39 = vld [vmem:[%s5914_s0 + $0xc0] ss:$8 sps:$4 sm:$0xff]   ;;  %v3628_v16 = vld [vmem:[%s5914_s0 + $0xd4] ss:$8 sps:$4 sm:$0xff]  }
 0x216   :  { %2914 = vmatpush3.bf16.msra.mxu1 %v1060_v45  ;;  %1482 = vadd.xlane.f32.xlu0 %v1436_v14  ;;  %v3629_v44 = vld [vmem:[%s5914_s0 + $0xd0] ss:$8 sps:$4 sm:$0xff]   ;;  %v3630_v35 = vld [vmem:[%s5914_s0 + $0xe4] ss:$8 sps:$4 sm:$0xff]   ;;  %v3631_v33 = vld [vmem:[%s5914_s0 + $0xe0] ss:$8 sps:$4 sm:$0xff]  }
 0x217   :  { %v3632_v20 = vld [vmem:[%s5914_s0 + $0xf4] ss:$8 sps:$4 sm:$0xff]   ;;  %v3633_v14 = vld [vmem:[%s5914_s0 + $0xf0] ss:$8 sps:$4 sm:$0xff]  }
 0x219   :  { %1102 = vmatmul.mubr.bf16.vlgmr.msra.gmra.mrb[32].mxu1 %v3603_v40 }
 0x21a   :  { %1109 = vmatprep.mubr.bf16.mxu1 %v3604_v63 }
 0x221   :  { %1110 = vmatmul.mubr.bf16.gmra.mrb[36].mxu1 %v3605_v23 }
 0x222   :  { %1117 = vmatprep.mubr.bf16.mxu1 %v3606_v27 }
 0x229   :  { %1118 = vmatmul.mubr.bf16.gmra.mrb[40].mxu1 %v3607_v17 }
 0x22a   :  { %1125 = vmatprep.mubr.bf16.mxu1 %v3608_v6 }
 0x231   :  { %1126 = vmatmul.mubr.bf16.gmra.mrb[44].mxu1 %v3609_v56 }
 0x232   :  { %1133 = vmatprep.mubr.bf16.mxu1 %v3610_v37 }
 0x239   :  { %1134 = vmatmul.mubr.bf16.gmra.mrb[48].mxu1 %v3611_v26 }
 0x23a   :  { %1141 = vmatprep.mubr.bf16.mxu1 %v3612_v61 }
 0x241   :  { %1142 = vmatmul.mubr.bf16.gmra.mrb[52].mxu1 %v3613_v15 }
 0x242   :  { %1149 = vmatprep.mubr.bf16.mxu1 %v3614_v10 }
 0x249   :  { %1150 = vmatmul.mubr.bf16.gmra.mrb[56].mxu1 %v3615_v25 }
 0x24a   :  { %1157 = vmatprep.mubr.bf16.mxu1 %v3616_v19 }
 0x251   :  { %1158 = vmatmul.mubr.bf16.gmra.mrb[60].mxu1 %v3617_v9 }
 0x252   :  { %1165 = vmatprep.mubr.bf16.mxu1 %v3618_v8 }
 0x259   :  { %1166 = vmatmul.mubr.bf16.gmra.mrb[64].mxu1 %v3619_v5 }
 0x25a   :  { %1173 = vmatprep.mubr.bf16.mxu1 %v3620_v32 }
 0x261   :  { %1174 = vmatmul.mubr.bf16.gmra.mrb[68].mxu1 %v3621_v46 }
 0x262   :  { %1181 = vmatprep.mubr.bf16.mxu1 %v3622_v48 }
 0x269   :  { %1182 = vmatmul.mubr.bf16.gmra.mrb[72].mxu1 %v3623_v41 }
 0x26a   :  { %1189 = vmatprep.mubr.bf16.mxu1 %v3624_v29 }
 0x271   :  { %1190 = vmatmul.mubr.bf16.gmra.mrb[76].mxu1 %v3625_v21 }
 0x272   :  { %1197 = vmatprep.mubr.bf16.mxu1 %v3626_v1 }
 0x279   :  { %1198 = vmatmul.mubr.bf16.gmra.mrb[80].mxu1 %v3627_v39 }
 0x27a   :  { %1205 = vmatprep.mubr.bf16.mxu1 %v3628_v16 }
 0x281   :  { %1206 = vmatmul.mubr.bf16.gmra.mrb[84].mxu1 %v3629_v44 }
 0x282   :  { %1213 = vmatprep.mubr.bf16.mxu1 %v3630_v35 }
 0x289   :  { %1214 = vmatmul.mubr.bf16.gmra.mrb[88].mxu1 %v3631_v33 }
 0x28a   :  { %1221 = vmatprep.mubr.bf16.mxu1 %v3632_v20 }
 0x291   :  { %1222 = vmatmul.mubr.bf16.gmra.mrb[92].mxu1 %v3633_v14 }
 0x2ec   :  { %v2915_v45 = vpop.f32.mrb[32].mxu1 }
 0x2ed   :  { %v2916_v40 = vpop.f32.mrb[33].mxu1 }
 0x2ee   :  { %v4706_v63 = vadd.f32 %v2916_v40, %v2915_v45  ;;  %v2918_v23 = vpop.f32.mrb[34].mxu1 }
 0x2ef   :  { %v2919_v27 = vpop.f32.mrb[35].mxu1 }
 0x2f0   :  { %v4708_v17 = vadd.f32 %v2919_v27, %v2918_v23  ;;  %v1326_v6 = vmul.f32 %v4706_v63, %v4706_v63  ;;  %v1230_v26 = vmul.f32 %v4706_v63, %v4312_v55 }
 0x2f2   :  { %1358 = vadd.xlane.f32.xlu0 %v1326_v6  ;;  %v1327_v56 = vmul.f32 %v4708_v17, %v4708_v17  ;;  %v1231_v25 = vmul.f32 %v4708_v17, %v4330_v24 }
 0x2f4   :  { %v2921_v37 = vpop.f32.mrb[36].mxu1  ;;  %1360 = vadd.xlane.f32.xlu1 %v1327_v56 }
 0x2f5   :  { %v2922_v61 = vpop.f32.mrb[37].mxu1 }
 0x2f6   :  { %v4716_v15 = vadd.f32 %v2922_v61, %v2921_v37  ;;  %v2924_v10 = vpop.f32.mrb[38].mxu1  ;;  %1262 = vadd.xlane.f32.xlu0 %v1230_v26 }
 0x2f7   :  { %v2925_v19 = vpop.f32.mrb[39].mxu1 }
 0x2f8   :  { %v4720_v9 = vadd.f32 %v2925_v19, %v2924_v10  ;;  %1264 = vadd.xlane.f32.xlu1 %v1231_v25  ;;  %v1328_v8 = vmul.f32 %v4716_v15, %v4716_v15  ;;  %v1232_v46 = vmul.f32 %v4716_v15, %v4367_v47 }
 0x2fa   :  { %1362 = vadd.xlane.f32.xlu0 %v1328_v8  ;;  %v1329_v5 = vmul.f32 %v4720_v9, %v4720_v9  ;;  %v1233_v21 = vmul.f32 %v4720_v9, %v4365_v60 }
 0x2fc   :  { %v2927_v32 = vpop.f32.mrb[40].mxu1  ;;  %1364 = vadd.xlane.f32.xlu1 %v1329_v5 }
 0x2fd   :  { %v2928_v48 = vpop.f32.mrb[41].mxu1 }
 0x2fe   :  { %v4728_v41 = vadd.f32 %v2928_v48, %v2927_v32  ;;  %v2930_v29 = vpop.f32.mrb[42].mxu1  ;;  %1266 = vadd.xlane.f32.xlu0 %v1232_v46 }
 0x2ff   :  { %v2931_v1 = vpop.f32.mrb[43].mxu1 }
 0x300   :  { %v4732_v39 = vadd.f32 %v2931_v1, %v2930_v29  ;;  %1268 = vadd.xlane.f32.xlu1 %v1233_v21  ;;  %v1330_v16 = vmul.f32 %v4728_v41, %v4728_v41  ;;  %v1234_v33 = vmul.f32 %v4728_v41, %v4409_v62 }
 0x302   :  { %1366 = vadd.xlane.f32.xlu0 %v1330_v16  ;;  %v1331_v44 = vmul.f32 %v4732_v39, %v4732_v39  ;;  %v1235_v40 = vmul.f32 %v4732_v39, %v4407_v50 }
 0x304   :  { %v2933_v35 = vpop.f32.mrb[44].mxu1  ;;  %1368 = vadd.xlane.f32.xlu1 %v1331_v44 }
 0x305   :  { %v2934_v20 = vpop.f32.mrb[45].mxu1 }
 0x306   :  { %v4740_v14 = vadd.f32 %v2934_v20, %v2933_v35  ;;  %v2936_v45 = vpop.f32.mrb[46].mxu1  ;;  %1270 = vadd.xlane.f32.xlu0 %v1234_v33 }
 0x307   :  { %v2937_v23 = vpop.f32.mrb[47].mxu1 }
 0x308   :  { %v4744_v27 = vadd.f32 %v2937_v23, %v2936_v45  ;;  %1272 = vadd.xlane.f32.xlu1 %v1235_v40  ;;  %v1332_v6 = vmul.f32 %v4740_v14, %v4740_v14  ;;  %v1236_v26 = vmul.f32 %v4740_v14, %v4449_v43 }
 0x30a   :  { %1370 = vadd.xlane.f32.xlu0 %v1332_v6  ;;  %v1333_v56 = vmul.f32 %v4744_v27, %v4744_v27  ;;  %v1237_v19 = vmul.f32 %v4744_v27, %v4447_v28 }
 0x30c   :  { %v2939_v37 = vpop.f32.mrb[48].mxu1  ;;  %1372 = vadd.xlane.f32.xlu1 %v1333_v56 }
 0x30d   :  { %v2940_v61 = vpop.f32.mrb[49].mxu1 }
 0x30e   :  { %v4752_v10 = vadd.f32 %v2940_v61, %v2939_v37  ;;  %v2942_v25 = vpop.f32.mrb[50].mxu1  ;;  %1274 = vadd.xlane.f32.xlu0 %v1236_v26 }
 0x30f   :  { %v2943_v8 = vpop.f32.mrb[51].mxu1 }
 0x310   :  { %v4756_v5 = vadd.f32 %v2943_v8, %v2942_v25  ;;  %1276 = vadd.xlane.f32.xlu1 %v1237_v19  ;;  %v1334_v32 = vmul.f32 %v4752_v10, %v4752_v10  ;;  %v1238_v29 = vmul.f32 %v4752_v10, %v4489_v18 }
 0x312   :  { %1374 = vadd.xlane.f32.xlu0 %v1334_v32  ;;  %v1335_v46 = vmul.f32 %v4756_v5, %v4756_v5  ;;  %v1239_v44 = vmul.f32 %v4756_v5, %v4487_v36 }
 0x314   :  { %v2945_v48 = vpop.f32.mrb[52].mxu1  ;;  %1376 = vadd.xlane.f32.xlu1 %v1335_v46 }
 0x315   :  { %v2946_v21 = vpop.f32.mrb[53].mxu1 }
 0x316   :  { %v4764_v1 = vadd.f32 %v2946_v21, %v2945_v48  ;;  %v2948_v16 = vpop.f32.mrb[54].mxu1  ;;  %1278 = vadd.xlane.f32.xlu0 %v1238_v29 }
 0x317   :  { %v2949_v35 = vpop.f32.mrb[55].mxu1 }
 0x318   :  { %v4768_v33 = vadd.f32 %v2949_v35, %v2948_v16  ;;  %1280 = vadd.xlane.f32.xlu1 %v1239_v44  ;;  %v1336_v20 = vmul.f32 %v4764_v1, %v4764_v1  ;;  %v1240_v23 = vmul.f32 %v4764_v1, %v4531_v13 }
 0x31a   :  { %1378 = vadd.xlane.f32.xlu0 %v1336_v20  ;;  %v1337_v45 = vmul.f32 %v4768_v33, %v4768_v33  ;;  %v1241_v26 = vmul.f32 %v4768_v33, %v4529_v7  ;;  %v4794_v20 = vpop.xlane.xlu0 %1486 }
 0x31c   :  { %v2951_v40 = vpop.f32.mrb[56].mxu1  ;;  %1380 = vadd.xlane.f32.xlu1 %v1337_v45 }
 0x31d   :  { %v2952_v6 = vpop.f32.mrb[57].mxu1 }
 0x31e   :  { %v4776_v56 = vadd.f32 %v2952_v6, %v2951_v40  ;;  %v2954_v37 = vpop.f32.mrb[58].mxu1  ;;  %1282 = vadd.xlane.f32.xlu0 %v1240_v23  ;;  %v4796_v40 = vpop.xlane.xlu1 %1488 }
 0x31f   :  { %v2955_v61 = vpop.f32.mrb[59].mxu1  ;;  %6124 = vst [vmem:[#allocation29_spill] sm:$0xff] %v4796_v40 }
 0x320   :  { %6120 = vst [vmem:[#allocation12_spill] sm:$0xff] %v4776_v56  ;;  %v4780_v25 = vadd.f32 %v2955_v61, %v2954_v37  ;;  %1284 = vadd.xlane.f32.xlu1 %v1241_v26  ;;  %v1338_v19 = vmul.f32 %v4776_v56, %v4776_v56 }
 0x322   :  { %6121 = vst [vmem:[#allocation15_spill] sm:$0xff] %v4780_v25  ;;  %1382 = vadd.xlane.f32.xlu0 %v1338_v19  ;;  %v1339_v8 = vmul.f32 %v4780_v25, %v4780_v25 }
 0x324   :  { %v2957_v32 = vpop.f32.mrb[60].mxu1  ;;  %1384 = vadd.xlane.f32.xlu1 %v1339_v8 }
 0x325   :  { %v2958_v46 = vpop.f32.mrb[61].mxu1 }
 0x326   :  { %v4786_v48 = vadd.f32 %v2958_v46, %v2957_v32  ;;  %v2960_v29 = vpop.f32.mrb[62].mxu1  ;;  %v4806_v32 = vpop.xlane.xlu0 %1454 }
 0x327   :  { %v2961_v21 = vpop.f32.mrb[63].mxu1  ;;  %v4808_v46 = vpop.xlane.xlu1 %1456 }
 0x328   :  { %6122 = vst [vmem:[#allocation13_spill] sm:$0xff] %v4786_v48  ;;  %v4788_v16 = vadd.f32 %v2961_v21, %v2960_v29  ;;  %v1340_v44 = vmul.f32 %v4786_v48, %v4786_v48 }
 0x32a   :  { %6123 = vst [vmem:[#allocation28_spill] sm:$0xff] %v4788_v16  ;;  %1386 = vadd.xlane.f32.xlu0 %v1340_v44  ;;  %v1341_v35 = vmul.f32 %v4788_v16, %v4788_v16 }
 0x32b   :  { %v4822_v40 = vpop.xlane.xlu1 %1492 }
 0x32c   :  { %v2963_v45 = vpop.f32.mrb[64].mxu1  ;;  %1388 = vadd.xlane.f32.xlu1 %v1341_v35 }
 0x32d   :  { %v2964_v23 = vpop.f32.mrb[65].mxu1 }
 0x32e   :  { %v4798_v6 = vadd.f32 %v2964_v23, %v2963_v45  ;;  %v2966_v37 = vpop.f32.mrb[66].mxu1 }
 0x32f   :  { %v2967_v26 = vpop.f32.mrb[67].mxu1 }
 0x330   :  { %6125 = vst [vmem:[#allocation30_spill] sm:$0xff] %v4798_v6  ;;  %v4800_v61 = vadd.f32 %v2967_v26, %v2966_v37  ;;  %v1342_v19 = vmul.f32 %v4798_v6, %v4798_v6  ;;  %v1246_v21 = vmul.f32 %v4798_v6, %v4310_v42  ;;  %v4816_v37 = vpop.xlane.xlu0 %1490 }
 0x332   :  { %6126 = vst [vmem:[#allocation31_spill] sm:$0xff] %v4800_v61  ;;  %1390 = vadd.xlane.f32.xlu0 %v1342_v19  ;;  %v1343_v8 = vmul.f32 %v4800_v61, %v4800_v61  ;;  %v1247_v23 = vmul.f32 %v4800_v61, %v4333_v30  ;;  %v4834_v61 = vpop.xlane.xlu1 %1460 }
 0x334   :  { %v2969_v29 = vpop.f32.mrb[68].mxu1  ;;  %1392 = vadd.xlane.f32.xlu1 %v1343_v8  ;;  %v4828_v30 = vpop.xlane.xlu0 %1458 }
 0x335   :  { %v2970_v44 = vpop.f32.mrb[69].mxu1 }
 0x336   :  { %v4812_v35 = vadd.f32 %v2970_v44, %v2969_v29  ;;  %v2972_v45 = vpop.f32.mrb[70].mxu1  ;;  %1294 = vadd.xlane.f32.xlu0 %v1246_v21 }
 0x337   :  { %v2973_v26 = vpop.f32.mrb[71].mxu1 }
 0x338   :  { %6127 = vst [vmem:[#allocation32_spill] sm:$0xff] %v4812_v35  ;;  %v4818_v19 = vadd.f32 %v2973_v26, %v2972_v45  ;;  %1296 = vadd.xlane.f32.xlu1 %v1247_v23  ;;  %v1344_v8 = vmul.f32 %v4812_v35, %v4812_v35  ;;  %v1248_v21 = vmul.f32 %v4812_v35, %v4351_v54  ;;  %v4840_v54 = vpop.xlane.xlu0 %1494 }
 0x339   :  { %6131 = vst [vmem:[#allocation36_spill] sm:$0xff] %v4840_v54 }
 0x33a   :  { %6128 = vst [vmem:[#allocation33_spill] sm:$0xff] %v4818_v19  ;;  %1394 = vadd.xlane.f32.xlu0 %v1344_v8  ;;  %v1345_v29 = vmul.f32 %v4818_v19, %v4818_v19  ;;  %v1249_v26 = vmul.f32 %v4818_v19, %v4349_v49 }
 0x33c   :  { %v2975_v44 = vpop.f32.mrb[72].mxu1  ;;  %1396 = vadd.xlane.f32.xlu1 %v1345_v29  ;;  %v4852_v35 = vpop.xlane.xlu0 %1462 }
 0x33d   :  { %v2976_v42 = vpop.f32.mrb[73].mxu1 }
 0x33e   :  { %v4830_v45 = vadd.f32 %v2976_v42, %v2975_v44  ;;  %v2978_v23 = vpop.f32.mrb[74].mxu1  ;;  %1298 = vadd.xlane.f32.xlu0 %v1248_v21  ;;  %v4844_v44 = vpop.xlane.xlu1 %1496 }
 0x33f   :  { %v2979_v8 = vpop.f32.mrb[75].mxu1  ;;  %6132 = vst [vmem:[#allocation37_spill] sm:$0xff] %v4844_v44 }
 0x340   :  { %6129 = vst [vmem:[#allocation34_spill] sm:$0xff] %v4830_v45  ;;  %v4836_v6 = vadd.f32 %v2979_v8, %v2978_v23  ;;  %1300 = vadd.xlane.f32.xlu1 %v1249_v26  ;;  %v1346_v29 = vmul.f32 %v4830_v45, %v4830_v45  ;;  %v1250_v49 = vmul.f32 %v4830_v45, %v4393_v53 }
 0x342   :  { %6130 = vst [vmem:[#allocation35_spill] sm:$0xff] %v4836_v6  ;;  %1398 = vadd.xlane.f32.xlu0 %v1346_v29  ;;  %v1347_v42 = vmul.f32 %v4836_v6, %v4836_v6  ;;  %v1251_v8 = vmul.f32 %v4836_v6, %v4391_v52  ;;  %v4858_v44 = vpop.xlane.xlu1 %1464 }
 0x344   :  { %v2981_v21 = vpop.f32.mrb[76].mxu1  ;;  %1400 = vadd.xlane.f32.xlu1 %v1347_v42 }
 0x345   :  { %v2982_v19 = vpop.f32.mrb[77].mxu1 }
 0x346   :  { %v4848_v23 = vadd.f32 %v2982_v19, %v2981_v21  ;;  %v2984_v26 = vpop.f32.mrb[78].mxu1  ;;  %1302 = vadd.xlane.f32.xlu0 %v1250_v49  ;;  %v4862_v21 = vpop.xlane.xlu0 %1498 }
 0x347   :  { %v2985_v29 = vpop.f32.mrb[79].mxu1  ;;  %6135 = vst [vmem:[#allocation40_spill] sm:$0xff] %v4862_v21  ;;  %v4866_v53 = vpop.xlane.xlu1 %1500 }
 0x348   :  { %6133 = vst [vmem:[#allocation38_spill] sm:$0xff] %v4848_v23  ;;  %v4854_v54 = vadd.f32 %v2985_v29, %v2984_v26  ;;  %1304 = vadd.xlane.f32.xlu1 %v1251_v8  ;;  %v1348_v42 = vmul.f32 %v4848_v23, %v4848_v23  ;;  %v1252_v52 = vmul.f32 %v4848_v23, %v4433_v22  ;;  %6136 = vst [vmem:[#allocation41_spill] sm:$0xff] %v4866_v53 }
 0x34a   :  { %6134 = vst [vmem:[#allocation39_spill] sm:$0xff] %v4854_v54  ;;  %1402 = vadd.xlane.f32.xlu0 %v1348_v42  ;;  %v1349_v19 = vmul.f32 %v4854_v54, %v4854_v54  ;;  %v1253_v42 = vmul.f32 %v4854_v54, %v4431_v51  ;;  %v4876_v21 = vpop.xlane.xlu0 %1466 }
 0x34c   :  { %v2987_v49 = vpop.f32.mrb[80].mxu1  ;;  %1404 = vadd.xlane.f32.xlu1 %v1349_v19 }
 0x34d   :  { %v2988_v26 = vpop.f32.mrb[81].mxu1 }
 0x34e   :  { %v4868_v8 = vadd.f32 %v2988_v26, %v2987_v49  ;;  %v2990_v29 = vpop.f32.mrb[82].mxu1  ;;  %1306 = vadd.xlane.f32.xlu0 %v1252_v52  ;;  %v4880_v49 = vpop.xlane.xlu1 %1468 }
 0x34f   :  { %v2991_v6 = vpop.f32.mrb[83].mxu1  ;;  %v4884_v51 = vpop.xlane.xlu0 %1502 }
 0x350   :  { %6137 = vst [vmem:[#allocation42_spill] sm:$0xff] %v4868_v8  ;;  %v4872_v45 = vadd.f32 %v2991_v6, %v2990_v29  ;;  %1308 = vadd.xlane.f32.xlu1 %v1253_v42  ;;  %v1350_v19 = vmul.f32 %v4868_v8, %v4868_v8  ;;  %v1254_v52 = vmul.f32 %v4868_v8, %v4473_v58 }
 0x352   :  { %6138 = vst [vmem:[#allocation43_spill] sm:$0xff] %v4872_v45  ;;  %1406 = vadd.xlane.f32.xlu0 %v1350_v19  ;;  %v1351_v22 = vmul.f32 %v4872_v45, %v4872_v45  ;;  %v1255_v19 = vmul.f32 %v4872_v45, %v4471_v11  ;;  %v4890_v54 = vpop.xlane.xlu1 %1504 }
 0x353   :  { %6140 = vst [vmem:[#allocation45_spill] sm:$0xff] %v4890_v54 }
 0x354   :  { %v2993_v26 = vpop.f32.mrb[84].mxu1  ;;  %1408 = vadd.xlane.f32.xlu1 %v1351_v22 }
 0x355   :  { %v2994_v6 = vpop.f32.mrb[85].mxu1 }
 0x356   :  { %v4886_v29 = vadd.f32 %v2994_v6, %v2993_v26  ;;  %v2996_v42 = vpop.f32.mrb[86].mxu1  ;;  %1310 = vadd.xlane.f32.xlu0 %v1254_v52  ;;  %v4898_v26 = vpop.xlane.xlu0 %1470 }
 0x357   :  { %v2997_v23 = vpop.f32.mrb[87].mxu1  ;;  %v4902_v11 = vpop.xlane.xlu1 %1472 }
 0x358   :  { %6139 = vst [vmem:[#allocation44_spill] sm:$0xff] %v4886_v29  ;;  %v4892_v53 = vadd.f32 %v2997_v23, %v2996_v42  ;;  %1312 = vadd.xlane.f32.xlu1 %v1255_v19  ;;  %v1352_v22 = vmul.f32 %v4886_v29, %v4886_v29  ;;  %v1256_v52 = vmul.f32 %v4886_v29, %v4514_v2 }
 0x35a   :  { %6141 = vst [vmem:[#allocation46_spill] sm:$0xff] %v4892_v53  ;;  %1410 = vadd.xlane.f32.xlu0 %v1352_v22  ;;  %v1353_v58 = vmul.f32 %v4892_v53, %v4892_v53  ;;  %v1257_v19 = vmul.f32 %v4892_v53, %v4511_v38  ;;  %v4908_v22 = vpop.xlane.xlu0 %1506 }
 0x35b   :  { %6143 = vst [vmem:[#allocation48_spill] sm:$0xff] %v4908_v22  ;;  %v4914_v2 = vpop.xlane.xlu1 %1508 }
 0x35c   :  { %v2999_v6 = vpop.f32.mrb[88].mxu1  ;;  %1412 = vadd.xlane.f32.xlu1 %v1353_v58  ;;  %6145 = vst [vmem:[#allocation50_spill] sm:$0xff] %v4914_v2 }
 0x35d   :  { %v3000_v45 = vpop.f32.mrb[89].mxu1 }
 0x35e   :  { %v4904_v23 = vadd.f32 %v3000_v45, %v2999_v6  ;;  %v3002_v42 = vpop.f32.mrb[90].mxu1  ;;  %1314 = vadd.xlane.f32.xlu0 %v1256_v52  ;;  %v4918_v52 = vpop.xlane.xlu0 %1474 }
 0x35f   :  { %v3003_v8 = vpop.f32.mrb[91].mxu1 }
 0x360   :  { %6142 = vst [vmem:[#allocation47_spill] sm:$0xff] %v4904_v23  ;;  %v4910_v54 = vadd.f32 %v3003_v8, %v3002_v42  ;;  %1316 = vadd.xlane.f32.xlu1 %v1257_v19  ;;  %v1354_v58 = vmul.f32 %v4904_v23, %v4904_v23  ;;  %v4922_v8 = vpop.xlane.xlu1 %1476 }
 0x362   :  { %6144 = vst [vmem:[#allocation49_spill] sm:$0xff] %v4910_v54  ;;  %1414 = vadd.xlane.f32.xlu0 %v1354_v58  ;;  %v1355_v45 = vmul.f32 %v4910_v54, %v4910_v54  ;;  %v4928_v58 = vpop.xlane.xlu0 %1510 }
 0x363   :  { %6148 = vst [vmem:[#allocation53_spill] sm:$0xff] %v4928_v58  ;;  %v1243_v58 = vmul.f32 %v4780_v25, %v4567_v0  ;;  %v1617_v25 = vmax.f32 %v4834_v61, 1e-16 }
 0x364   :  { %v3005_v6 = vpop.f32.mrb[92].mxu1  ;;  %1416 = vadd.xlane.f32.xlu1 %v1355_v45  ;;  %v4932_v2 = vpop.xlane.xlu1 %1512 }
 0x365   :  { %v3006_v38 = vpop.f32.mrb[93].mxu1 }
 0x366   :  { %v4920_v53 = vadd.f32 %v3006_v38, %v3005_v6  ;;  %v3008_v29 = vpop.f32.mrb[94].mxu1  ;;  %v1258_v38 = vmul.f32 %v4904_v23, %v4553_v34  ;;  %v4938_v6 = vpop.xlane.xlu0 %1478 }
 0x367   :  { %v3009_v42 = vpop.f32.mrb[95].mxu1 }
 0x368   :  { %6146 = vst [vmem:[#allocation51_spill] sm:$0xff] %v4920_v53  ;;  %v4924_v19 = vadd.f32 %v3009_v42, %v3008_v29  ;;  %v1356_v22 = vmul.f32 %v4920_v53, %v4920_v53  ;;  %v1259_v29 = vmul.f32 %v4910_v54, %v4551_v4  ;;  %v1242_v42 = vmul.f32 %v4776_v56, %v4569_v31 }
 0x369   :  { %v1244_v31 = vmul.f32 %v4786_v48, %v4605_v12 }
 0x36a   :  { %6147 = vst [vmem:[#allocation52_spill] sm:$0xff] %v4924_v19  ;;  %1418 = vadd.xlane.f32.xlu0 %v1356_v22  ;;  %v1357_v45 = vmul.f32 %v4924_v19, %v4924_v19  ;;  %v4942_v22 = vpop.xlane.xlu1 %1480  ;;  %v1261_v4 = vmul.f32 %v4924_v19, %v4587_v3  ;;  %v1615_v19 = vmax.f32 %v4808_v46, 1e-16 }
 0x36c   :  { %1420 = vadd.xlane.f32.xlu1 %v1357_v45  ;;  %v1260_v45 = vmul.f32 %v4920_v53, %v4589_v59 }
 0x36e   :  { %1318 = vadd.xlane.f32.xlu0 %v1258_v38  ;;  %v4948_v38 = vpop.xlane.xlu0 %1514 }
 0x370   :  { %1320 = vadd.xlane.f32.xlu1 %v1259_v29  ;;  %v4952_v29 = vpop.xlane.xlu1 %1516 }
 0x372   :  { %1286 = vadd.xlane.f32.xlu0 %v1242_v42  ;;  %v1245_v42 = vmul.f32 %v4788_v16, %v4603_v57  ;;  %v1616_v57 = vmax.f32 %v4828_v30, 1e-16 }
 0x374   :  { %1288 = vadd.xlane.f32.xlu1 %v1243_v58  ;;  %v4958_v58 = vpop.xlane.xlu0 %1482  ;;  %v4960_v59 = vpop.xlane.xlu1 %1484 }
 0x376   :  { %1322 = vadd.xlane.f32.xlu0 %v1260_v45  ;;  %v1614_v45 = vmax.f32 %v4806_v32, 1e-16 }
 0x378   :  { %1324 = vadd.xlane.f32.xlu1 %v1261_v4 }
 0x37a   :  { %1290 = vadd.xlane.f32.xlu0 %v1244_v31 }
 0x37c   :  { %1292 = vadd.xlane.f32.xlu1 %v1245_v42 }
 0x37f   :  { %v1359_v0 = vpop.xlane.xlu0 %1358 }
 0x380   :  { %v1518_v53 = vmax.f32 %v1359_v0, 1e-16 }
 0x381   :  { %v1361_v3 = vpop.xlane.xlu1 %1360 }
 0x382   :  { %3315 = vrsqrt.f32 %v1518_v53  ;;  %v1519_v4 = vmax.f32 %v1361_v3, 1e-16 }
 0x383   :  { %3317 = vrsqrt.f32 %v1614_v45  ;;  %v1263_v12 = vpop.xlane.xlu0 %1262 }
 0x384   :  { %3319 = vrsqrt.f32 %v1519_v4 }
 0x385   :  { %v1265_v31 = vpop.xlane.xlu1 %1264  ;;  %3321 = vrsqrt.f32 %v1615_v19  ;;  %v1618_v19 = vmax.f32 %v4852_v35, 1e-16 }
 0x387   :  { %v1363_v16 = vpop.xlane.xlu0 %1362 }
 0x388   :  { %v1520_v42 = vmax.f32 %v1363_v16, 1e-16 }
 0x389   :  { %v1365_v48 = vpop.xlane.xlu1 %1364 }
 0x38a   :  { %3323 = vrsqrt.f32 %v1520_v42  ;;  %v1521_v32 = vmax.f32 %v1365_v48, 1e-16 }
 0x38b   :  { %3325 = vrsqrt.f32 %v1616_v57  ;;  %v1267_v0 = vpop.xlane.xlu0 %1266  ;;  %v1619_v57 = vmax.f32 %v4858_v44, 1e-16 }
 0x38c   :  { %v3316_v34 = vpop.eup %3315  ;;  %3327 = vrsqrt.f32 %v1521_v32 }
 0x38d   :  { %v3318_v53 = vpop.eup %3317  ;;  %v1582_v3 = vmul.f32 %v3316_v34, %v1263_v12  ;;  %v1269_v46 = vpop.xlane.xlu1 %1268  ;;  %3329 = vrsqrt.f32 %v1617_v25 }
 0x38e   :  { %v3320_v45 = vpop.eup %3319 }
 0x38f   :  { %v1678_v4 = vmul.f32 %v3318_v53, %v1582_v3  ;;  %v1583_v30 = vmul.f32 %v3320_v45, %v1265_v31  ;;  %v1367_v56 = vpop.xlane.xlu0 %1366  ;;  %v3322_v16 = vpop.eup %3321  ;;  %v1620_v45 = vmax.f32 %v4876_v21, 1e-16 }
 0x390   :  { %v1522_v54 = vmax.f32 %v1367_v56, 1e-16 }
 0x391   :  { %v1710_v61 = vmul.f32 %v4706_v63, %v1678_v4  ;;  %v1679_v42 = vmul.f32 %v3322_v16, %v1583_v30  ;;  %v1369_v48 = vpop.xlane.xlu1 %1368 }
 0x392   :  { %3331 = vrsqrt.f32 %v1522_v54  ;;  %v1523_v32 = vmax.f32 %v1369_v48, 1e-16 }
 0x393   :  { %3333 = vrsqrt.f32 %v1618_v19  ;;  %v1742_v34 = vmul.f32 0.5, %v1710_v61  ;;  %v1711_v12 = vmul.f32 %v4708_v17, %v1679_v42  ;;  %v1271_v25 = vpop.xlane.xlu0 %1270 }
 0x394   :  { %v3324_v23 = vpop.eup %3323  ;;  %3335 = vrsqrt.f32 %v1523_v32 }
 0x395   :  { %v3326_v35 = vpop.eup %3325  ;;  %v1774_v31 = vadd.f32 %v1742_v34, %v4312_v55  ;;  %v1743_v53 = vmul.f32 0.5, %v1711_v12  ;;  %v1584_v56 = vmul.f32 %v3324_v23, %v1267_v0  ;;  %v1273_v3 = vpop.xlane.xlu1 %1272  ;;  %3337 = vrsqrt.f32 %v1619_v57 }
 0x396   :  { %v3328_v63 = vpop.eup %3327  ;;  %v1621_v0 = vmax.f32 %v4880_v49, 1e-16 }
 0x397   :  { %v4972_v44 = vmax.f32 %v1774_v31, 0.0  ;;  %v1775_v54 = vadd.f32 %v1743_v53, %v4330_v24  ;;  %v1680_v19 = vmul.f32 %v3326_v35, %v1584_v56  ;;  %v1585_v4 = vmul.f32 %v3328_v63, %v1269_v46  ;;  %v1371_v17 = vpop.xlane.xlu0 %1370  ;;  %v3330_v30 = vpop.eup %3329 }
 0x398   :  { %v1524_v16 = vmax.f32 %v1371_v17, 1e-16 }
 0x399   :  { %v4975_v61 = vmax.f32 %v1775_v54, 0.0  ;;  %v1712_v42 = vmul.f32 %v4716_v15, %v1680_v19  ;;  %v1681_v48 = vmul.f32 %v3330_v30, %v1585_v4  ;;  %v1373_v23 = vpop.xlane.xlu1 %1372  ;;  %v2239_v21 = vmul.f32 %v4972_v44, %v4972_v44 }
 0x39a   :  { %3339 = vrsqrt.f32 %v1524_v16  ;;  %v1525_v57 = vmax.f32 %v1373_v23, 1e-16 }
 0x39b   :  { %3341 = vrsqrt.f32 %v1620_v45  ;;  %v1744_v32 = vmul.f32 0.5, %v1712_v42  ;;  %v1713_v46 = vmul.f32 %v4720_v9, %v1681_v48  ;;  %v1275_v34 = vpop.xlane.xlu0 %1274  ;;  %v2240_v12 = vmul.f32 %v4975_v61, %v4975_v61  ;;  %2271 = vadd.xlane.f32.xlu0 %v2239_v21 }
 0x39c   :  { %v3332_v35 = vpop.eup %3331  ;;  %3343 = vrsqrt.f32 %v1525_v57  ;;  %v1622_v45 = vmax.f32 %v4898_v26, 1e-16  ;;  %v1623_v57 = vmax.f32 %v4902_v11, 1e-16 }
 0x39d   :  { %v3334_v15 = vpop.eup %3333  ;;  %v1776_v31 = vadd.f32 %v1744_v32, %v4367_v47  ;;  %v1745_v49 = vmul.f32 0.5, %v1713_v46  ;;  %v1586_v53 = vmul.f32 %v3332_v35, %v1271_v25  ;;  %2273 = vadd.xlane.f32.xlu1 %v2240_v12  ;;  %v1277_v56 = vpop.xlane.xlu1 %1276  ;;  %3345 = vrsqrt.f32 %v1621_v0 }
 0x39e   :  { %v3336_v63 = vpop.eup %3335 }
 0x39f   :  { %v4986_v54 = vmax.f32 %v1776_v31, 0.0  ;;  %v1777_v9 = vadd.f32 %v1745_v49, %v4365_v60  ;;  %v1682_v19 = vmul.f32 %v3334_v15, %v1586_v53  ;;  %v1587_v4 = vmul.f32 %v3336_v63, %v1273_v3  ;;  %v1375_v17 = vpop.xlane.xlu0 %1374  ;;  %v3338_v30 = vpop.eup %3337 }
 0x3a0   :  { %v1526_v16 = vmax.f32 %v1375_v17, 1e-16  ;;  %v1624_v53 = vmax.f32 %v4918_v52, 1e-16 }
 0x3a1   :  { %v4989_v42 = vmax.f32 %v1777_v9, 0.0  ;;  %v1714_v48 = vmul.f32 %v4728_v41, %v1682_v19  ;;  %v1683_v25 = vmul.f32 %v3338_v30, %v1587_v4  ;;  %v1377_v23 = vpop.xlane.xlu1 %1376  ;;  %v2241_v26 = vmul.f32 %v4986_v54, %v4986_v54 }
 0x3a2   :  { %3347 = vrsqrt.f32 %v1526_v16  ;;  %v1527_v0 = vmax.f32 %v1377_v23, 1e-16 }
 0x3a3   :  { %3349 = vrsqrt.f32 %v1622_v45  ;;  %v1746_v21 = vmul.f32 0.5, %v1714_v48  ;;  %v1715_v3 = vmul.f32 %v4732_v39, %v1683_v25  ;;  %v1279_v32 = vpop.xlane.xlu0 %1278  ;;  %v2242_v46 = vmul.f32 %v4989_v42, %v4989_v42  ;;  %2275 = vadd.xlane.f32.xlu0 %v2241_v26 }
 0x3a4   :  { %v3340_v12 = vpop.eup %3339  ;;  %3351 = vrsqrt.f32 %v1527_v0  ;;  %v1625_v25 = vmax.f32 %v4922_v8, 1e-16 }
 0x3a5   :  { %v3342_v41 = vpop.eup %3341  ;;  %v1778_v35 = vadd.f32 %v1746_v21, %v4409_v62  ;;  %v1747_v11 = vmul.f32 0.5, %v1715_v3  ;;  %v1588_v15 = vmul.f32 %v3340_v12, %v1275_v34  ;;  %2277 = vadd.xlane.f32.xlu1 %v2242_v46  ;;  %v1281_v31 = vpop.xlane.xlu1 %1280  ;;  %3353 = vrsqrt.f32 %v1623_v57 }
 0x3a6   :  { %v3344_v49 = vpop.eup %3343 }
 0x3a7   :  { %v5000_v63 = vmax.f32 %v1778_v35, 0.0  ;;  %v1779_v39 = vadd.f32 %v1747_v11, %v4407_v50  ;;  %v1684_v45 = vmul.f32 %v3342_v41, %v1588_v15  ;;  %v1589_v9 = vmul.f32 %v3344_v49, %v1277_v56  ;;  %v1379_v19 = vpop.xlane.xlu0 %1378  ;;  %v3346_v4 = vpop.eup %3345 }
 0x3a8   :  { %v1528_v17 = vmax.f32 %v1379_v19, 1e-16 }
 0x3a9   :  { %v5003_v30 = vmax.f32 %v1779_v39, 0.0  ;;  %v1716_v16 = vmul.f32 %v4740_v14, %v1684_v45  ;;  %v1685_v34 = vmul.f32 %v3346_v4, %v1589_v9  ;;  %v1381_v48 = vpop.xlane.xlu1 %1380  ;;  %v2243_v52 = vmul.f32 %v5000_v63, %v5000_v63 }
 0x3aa   :  { %3355 = vrsqrt.f32 %v1528_v17  ;;  %v1529_v23 = vmax.f32 %v1381_v48, 1e-16 }
 0x3ab   :  { %3357 = vrsqrt.f32 %v1624_v53  ;;  %v1748_v57 = vmul.f32 0.5, %v1716_v16  ;;  %v1717_v56 = vmul.f32 %v4744_v27, %v1685_v34  ;;  %v2244_v0 = vmul.f32 %v5003_v30, %v5003_v30  ;;  %2279 = vadd.xlane.f32.xlu0 %v2243_v52  ;;  %v1283_v39 = vpop.xlane.xlu0 %1282 }
 0x3ac   :  { %v3348_v26 = vpop.eup %3347  ;;  %3359 = vrsqrt.f32 %v1529_v23 }
 0x3ad   :  { %v3350_v14 = vpop.eup %3349  ;;  %v1780_v21 = vadd.f32 %v1748_v57, %v4449_v43  ;;  %v1749_v3 = vmul.f32 0.5, %v1717_v56  ;;  %v1590_v8 = vmul.f32 %v3348_v26, %v1279_v32  ;;  %2281 = vadd.xlane.f32.xlu1 %v2244_v0  ;;  %3361 = vrsqrt.f32 %v1625_v25  ;;  %v1285_v19 = vpop.xlane.xlu1 %1284 }
 0x3ae   :  { %v3352_v46 = vpop.eup %3351 }
 0x3af   :  { %v5013_v12 = vmax.f32 %v1780_v21, 0.0  ;;  %v1781_v41 = vadd.f32 %v1749_v3, %v4447_v28  ;;  %v1686_v35 = vmul.f32 %v3350_v14, %v1590_v8  ;;  %v1591_v27 = vmul.f32 %v3352_v46, %v1281_v31  ;;  %v3354_v11 = vpop.eup %3353 }
 0x3b1   :  { %v5016_v15 = vmax.f32 %v1781_v41, 0.0  ;;  %v1718_v49 = vmul.f32 %v4752_v10, %v1686_v35  ;;  %v1687_v53 = vmul.f32 %v3354_v11, %v1591_v27  ;;  %v2245_v45 = vmul.f32 %v5013_v12, %v5013_v12  ;;  %v5033_v21 = vpop.xlane.xlu1 %1384 }
 0x3b3   :  { %v1750_v32 = vmul.f32 0.5, %v1718_v49  ;;  %v1719_v9 = vmul.f32 %v4756_v5, %v1687_v53  ;;  %v2246_v4 = vmul.f32 %v5016_v15, %v5016_v15  ;;  %2283 = vadd.xlane.f32.xlu0 %v2245_v45  ;;  %v5028_v5 = vpop.xlane.xlu0 %1382 }
 0x3b4   :  { %v3356_v17 = vpop.eup %3355 }
 0x3b5   :  { %v3358_v31 = vpop.eup %3357  ;;  %v1782_v16 = vadd.f32 %v1750_v32, %v4489_v18  ;;  %v1751_v34 = vmul.f32 0.5, %v1719_v9  ;;  %v1592_v48 = vmul.f32 %v3356_v17, %v1283_v39  ;;  %2285 = vadd.xlane.f32.xlu1 %v2246_v4  ;;  %v6151_v4 = vld [vmem:[#allocation29_spill] sm:$0xff] }
 0x3b6   :  { %v3360_v10 = vpop.eup %3359  ;;  %v1631_v17 = vmax.f32 %v6151_v4, 1e-16 }
 0x3b7   :  { %v5025_v25 = vmax.f32 %v1782_v16, 0.0  ;;  %v1783_v23 = vadd.f32 %v1751_v34, %v4487_v36  ;;  %v1688_v52 = vmul.f32 %v3358_v31, %v1592_v48  ;;  %v1593_v57 = vmul.f32 %v3360_v10, %v1285_v19  ;;  %v3362_v56 = vpop.eup %3361  ;;  %v5038_v41 = vpop.xlane.xlu0 %1386 }
 0x3b8   :  { %v1632_v48 = vmax.f32 %v4816_v37, 1e-16 }
 0x3b9   :  { %v5030_v0 = vmax.f32 %v1783_v23, 0.0  ;;  %v1720_v26 = vmul.f32 %v4764_v1, %v1688_v52  ;;  %v1689_v14 = vmul.f32 %v3362_v56, %v1593_v57  ;;  %v2247_v3 = vmul.f32 %v5025_v25, %v5025_v25  ;;  %v5043_v49 = vpop.xlane.xlu1 %1388 }
 0x3ba   :  { %v1630_v1 = vmax.f32 %v4794_v20, 1e-16  ;;  %v1633_v57 = vmax.f32 %v4822_v40, 1e-16 }
 0x3bb   :  { %v1752_v8 = vmul.f32 0.5, %v1720_v26  ;;  %v1721_v46 = vmul.f32 %v4768_v33, %v1689_v14  ;;  %v2248_v35 = vmul.f32 %v5030_v0, %v5030_v0  ;;  %2287 = vadd.xlane.f32.xlu0 %v2247_v3 }
 0x3bd   :  { %v1784_v27 = vadd.f32 %v1752_v8, %v4531_v13  ;;  %v1753_v11 = vmul.f32 0.5, %v1721_v46  ;;  %2289 = vadd.xlane.f32.xlu1 %v2248_v35 }
 0x3bf   :  { %v5046_v53 = vmax.f32 %v1784_v27, 0.0  ;;  %v1785_v39 = vadd.f32 %v1753_v11, %v4529_v7  ;;  %v1391_v45 = vpop.xlane.xlu0 %1390  ;;  %v6152_v27 = vld [vmem:[#allocation36_spill] sm:$0xff] }
 0x3c0   :  { %v1534_v33 = vmax.f32 %v1391_v45, 1e-16  ;;  %v1634_v11 = vmax.f32 %v6152_v27, 1e-16  ;;  %v6157_v27 = vld [vmem:[#allocation40_spill] sm:$0xff] }
 0x3c1   :  { %6149 = vst [vmem:[#allocation54_spill] sm:$0xff] %v5046_v53  ;;  %v5049_v32 = vmax.f32 %v1785_v39, 0.0  ;;  %v1393_v9 = vpop.xlane.xlu1 %1392  ;;  %v2249_v19 = vmul.f32 %v5046_v53, %v5046_v53 }
 0x3c2   :  { %3363 = vrsqrt.f32 %v1534_v33  ;;  %v1535_v31 = vmax.f32 %v1393_v9, 1e-16  ;;  %v6153_v9 = vld [vmem:[#allocation30_spill] sm:$0xff] }
 0x3c3   :  { %6150 = vst [vmem:[#allocation55_spill] sm:$0xff] %v5049_v32  ;;  %3365 = vrsqrt.f32 %v1630_v1  ;;  %2291 = vadd.xlane.f32.xlu0 %v2249_v19  ;;  %v1295_v16 = vpop.xlane.xlu0 %1294  ;;  %v2250_v20 = vmul.f32 %v5049_v32, %v5049_v32 }
 0x3c4   :  { %3367 = vrsqrt.f32 %v1535_v31 }
 0x3c5   :  { %2293 = vadd.xlane.f32.xlu1 %v2250_v20  ;;  %v1297_v34 = vpop.xlane.xlu1 %1296  ;;  %3369 = vrsqrt.f32 %v1631_v17  ;;  %v6154_v17 = vld [vmem:[#allocation37_spill] sm:$0xff] }
 0x3c6   :  { %v1635_v31 = vmax.f32 %v6154_v17, 1e-16  ;;  %v6161_v17 = vld [vmem:[#allocation32_spill] sm:$0xff] }
 0x3c7   :  { %v1395_v10 = vpop.xlane.xlu0 %1394 }
 0x3c8   :  { %v1536_v23 = vmax.f32 %v1395_v10, 1e-16 }
 0x3c9   :  { %v1397_v52 = vpop.xlane.xlu1 %1396 }
 0x3ca   :  { %3371 = vrsqrt.f32 %v1536_v23  ;;  %v1537_v56 = vmax.f32 %v1397_v52, 1e-16 }
 0x3cb   :  { %3373 = vrsqrt.f32 %v1632_v48  ;;  %v1299_v26 = vpop.xlane.xlu0 %1298  ;;  %v6155_v48 = vld [vmem:[#allocation31_spill] sm:$0xff] }
 0x3cc   :  { %v3364_v14 = vpop.eup %3363  ;;  %3375 = vrsqrt.f32 %v1537_v56 }
 0x3cd   :  { %v3366_v3 = vpop.eup %3365  ;;  %v1598_v8 = vmul.f32 %v3364_v14, %v1295_v16  ;;  %v1301_v46 = vpop.xlane.xlu1 %1300  ;;  %3377 = vrsqrt.f32 %v1633_v57 }
 0x3ce   :  { %v3368_v35 = vpop.eup %3367 }
 0x3cf   :  { %v1694_v1 = vmul.f32 %v3366_v3, %v1598_v8  ;;  %v1599_v37 = vmul.f32 %v3368_v35, %v1297_v34  ;;  %v1399_v39 = vpop.xlane.xlu0 %1398  ;;  %v3370_v45 = vpop.eup %3369  ;;  %v6156_v34 = vld [vmem:[#allocation21_spill] sm:$0xff] }
 0x3d0   :  { %v1538_v33 = vmax.f32 %v1399_v39, 1e-16 }
 0x3d1   :  { %v1726_v40 = vmul.f32 %v6153_v9, %v1694_v1  ;;  %v1695_v19 = vmul.f32 %v3370_v45, %v1599_v37  ;;  %v1401_v4 = vpop.xlane.xlu1 %1400  ;;  %v1636_v1 = vmax.f32 %v6157_v27, 1e-16  ;;  %v6158_v37 = vld [vmem:[#allocation22_spill] sm:$0xff]  ;;  %v1870_v27 = vpack.c.bf16 %v4975_v61, %v4972_v44 }
 0x3d2   :  { %3379 = vrsqrt.f32 %v1538_v33  ;;  %v1539_v20 = vmax.f32 %v1401_v4, 1e-16 }
 0x3d3   :  { %3381 = vrsqrt.f32 %v1634_v11  ;;  %v1758_v16 = vmul.f32 0.5, %v1726_v40  ;;  %v1727_v10 = vmul.f32 %v6155_v48, %v1695_v19  ;;  %v1303_v23 = vpop.xlane.xlu0 %1302  ;;  %v6162_v48 = vld [vmem:[#allocation41_spill] sm:$0xff] }
 0x3d4   :  { %v3372_v52 = vpop.eup %3371  ;;  %3383 = vrsqrt.f32 %v1539_v20 }
 0x3d5   :  { %v3374_v57 = vpop.eup %3373  ;;  %v1790_v56 = vadd.f32 %v1758_v16, %v6156_v34  ;;  %v1759_v14 = vmul.f32 0.5, %v1727_v10  ;;  %v1600_v3 = vmul.f32 %v3372_v52, %v1299_v26  ;;  %v1305_v8 = vpop.xlane.xlu1 %1304  ;;  %3385 = vrsqrt.f32 %v1635_v31 }
 0x3d6   :  { %v3376_v35 = vpop.eup %3375  ;;  %v1637_v10 = vmax.f32 %v6162_v48, 1e-16  ;;  %v1643_v34 = vmax.f32 %v4932_v2, 1e-16 }
 0x3d7   :  { %v1791_v39 = vadd.f32 %v1759_v14, %v6158_v37  ;;  %v1696_v45 = vmul.f32 %v3374_v57, %v1600_v3  ;;  %v1601_v11 = vmul.f32 %v3376_v35, %v1301_v46  ;;  %v1403_v33 = vpop.xlane.xlu0 %1402  ;;  %v3378_v9 = vpop.eup %3377  ;;  %v5065_v19 = vmax.f32 %v1790_v56, 0.0  ;;  %v6163_v14 = vld [vmem:[#allocation33_spill] sm:$0xff] }
 0x3d8   :  { %v1540_v40 = vmax.f32 %v1403_v33, 1e-16  ;;  %v1638_v35 = vmax.f32 %v4884_v51, 1e-16 }
 0x3d9   :  { %6159 = vst [vmem:[#allocation29_spill] sm:$0xff] %v5065_v19  ;;  %v5067_v4 = vmax.f32 %v1791_v39, 0.0  ;;  %v1728_v20 = vmul.f32 %v6161_v17, %v1696_v45  ;;  %v1697_v16 = vmul.f32 %v3378_v9, %v1601_v11  ;;  %v1405_v26 = vpop.xlane.xlu1 %1404  ;;  %v6164_v45 = vld [vmem:[#allocation24_spill] sm:$0xff]  ;;  %v6165_v17 = vld [vmem:[#allocation23_spill] sm:$0xff] }
 0x3da   :  { %3387 = vrsqrt.f32 %v1540_v40  ;;  %v1541_v31 = vmax.f32 %v1405_v26, 1e-16 }
 0x3db   :  { %6160 = vst [vmem:[#allocation36_spill] sm:$0xff] %v5067_v4  ;;  %3389 = vrsqrt.f32 %v1636_v1  ;;  %v1760_v52 = vmul.f32 0.5, %v1728_v20  ;;  %v1729_v57 = vmul.f32 %v6163_v14, %v1697_v16  ;;  %v1307_v46 = vpop.xlane.xlu0 %1306  ;;  %v1878_v3 = vpack.c.bf16 %v5067_v4, %v5065_v19 }
 0x3dc   :  { %v3380_v56 = vpop.eup %3379  ;;  %3391 = vrsqrt.f32 %v1541_v31 }
 0x3dd   :  { %v3382_v39 = vpop.eup %3381  ;;  %v1792_v11 = vadd.f32 %v1760_v52, %v6164_v45  ;;  %v1761_v33 = vmul.f32 0.5, %v1729_v57  ;;  %v1602_v9 = vmul.f32 %v3380_v56, %v1303_v23  ;;  %v1309_v1 = vpop.xlane.xlu1 %1308  ;;  %3011 = vmatprep.subr.bf16.mxu0 %v1878_v3  ;;  %3393 = vrsqrt.f32 %v1637_v10  ;;  %v6168_v52 = vld [vmem:[#allocation34_spill] sm:$0xff]  ;;  %v6169_v3 = vld [vmem:[#allocation45_spill] sm:$0xff] }
 0x3de   :  { %v3384_v40 = vpop.eup %3383  ;;  %3012 = vmatpush3.bf16.msra.mxu0 %v1870_v27  ;;  %3395 = vrsqrt.f32 %v1638_v35  ;;  %v1639_v45 = vmax.f32 %v6169_v3, 1e-16  ;;  %v6170_v27 = vld [vmem:[#allocation50_spill] sm:$0xff] }
 0x3df   :  { %v1793_v20 = vadd.f32 %v1761_v33, %v6165_v17  ;;  %v1698_v16 = vmul.f32 %v3382_v39, %v1602_v9  ;;  %v1603_v26 = vmul.f32 %v3384_v40, %v1305_v8  ;;  %v1407_v48 = vpop.xlane.xlu0 %1406  ;;  %v3386_v51 = vpop.eup %3385  ;;  %v5079_v14 = vmax.f32 %v1792_v11, 0.0  ;;  %v6171_v8 = vld [vmem:[#allocation35_spill] sm:$0xff] }
 0x3e0   :  { %v1542_v31 = vmax.f32 %v1407_v48, 1e-16  ;;  %v1641_v33 = vmax.f32 %v6170_v27, 1e-16 }
 0x3e1   :  { %6166 = vst [vmem:[#allocation30_spill] sm:$0xff] %v5079_v14  ;;  %v5081_v37 = vmax.f32 %v1793_v20, 0.0  ;;  %v1730_v57 = vmul.f32 %v6168_v52, %v1698_v16  ;;  %v1699_v23 = vmul.f32 %v3386_v51, %v1603_v26  ;;  %v1409_v56 = vpop.xlane.xlu1 %1408  ;;  %v6172_v20 = vld [vmem:[#allocation48_spill] sm:$0xff]  ;;  %v1871_v16 = vpack.c.bf16 %v4989_v42, %v4986_v54  ;;  %v6173_v51 = vld [vmem:[#allocation2_spill] sm:$0xff] }
 0x3e2   :  { %3397 = vrsqrt.f32 %v1542_v31  ;;  %v1543_v10 = vmax.f32 %v1409_v56, 1e-16  ;;  %v1640_v48 = vmax.f32 %v6172_v20, 1e-16 }
 0x3e3   :  { %6167 = vst [vmem:[#allocation37_spill] sm:$0xff] %v5081_v37  ;;  %v1762_v39 = vmul.f32 0.5, %v1730_v57  ;;  %v1731_v9 = vmul.f32 %v6171_v8, %v1699_v23  ;;  %v1311_v40 = vpop.xlane.xlu0 %1310  ;;  %v1879_v35 = vpack.c.bf16 %v5081_v37, %v5079_v14  ;;  %v6174_v23 = vld [vmem:[#allocation4_spill] sm:$0xff] }
 0x3e4   :  { %v3388_v11 = vpop.eup %3387  ;;  %3399 = vrsqrt.f32 %v1543_v10 }
 0x3e5   :  { %v3390_v26 = vpop.eup %3389  ;;  %v1794_v31 = vadd.f32 %v1762_v39, %v6173_v51  ;;  %v1763_v52 = vmul.f32 0.5, %v1731_v9  ;;  %v1604_v56 = vmul.f32 %v3388_v11, %v1307_v46  ;;  %v1313_v3 = vpop.xlane.xlu1 %1312  ;;  %3013 = vmatprep.subr.bf16.mxu0 %v1879_v35  ;;  %3401 = vrsqrt.f32 %v1639_v45  ;;  %v6177_v46 = vld [vmem:[#allocation38_spill] sm:$0xff] }
 0x3e6   :  { %v3392_v57 = vpop.eup %3391  ;;  %3014 = vmatpush3.bf16.msra.mxu0 %v1871_v16  ;;  %3403 = vrsqrt.f32 %v1641_v33  ;;  %v6178_v33 = vld [vmem:[#allocation53_spill] sm:$0xff] }
 0x3e7   :  { %v1795_v27 = vadd.f32 %v1763_v52, %v6174_v23  ;;  %v1700_v8 = vmul.f32 %v3390_v26, %v1604_v56  ;;  %v1605_v17 = vmul.f32 %v3392_v57, %v1309_v1  ;;  %v1411_v20 = vpop.xlane.xlu0 %1410  ;;  %v3394_v10 = vpop.eup %3393  ;;  %3405 = vrsqrt.f32 %v1640_v48  ;;  %v6179_v48 = vld [vmem:[#allocation39_spill] sm:$0xff] }
 0x3e8   :  { %v1544_v7 = vmax.f32 %v1411_v20, 1e-16  ;;  %v5095_v13 = vmax.f32 %v1794_v31, 0.0  ;;  %v3396_v11 = vpop.eup %3395  ;;  %v1642_v16 = vmax.f32 %v6178_v33, 1e-16 }
 0x3e9   :  { %v5097_v39 = vmax.f32 %v1795_v27, 0.0  ;;  %v1732_v9 = vmul.f32 %v6177_v46, %v1700_v8  ;;  %v1701_v35 = vmul.f32 %v3394_v10, %v1605_v17  ;;  %v1413_v45 = vpop.xlane.xlu1 %1412  ;;  %v1627_v1 = vmax.f32 %v4942_v22, 1e-16  ;;  %v6180_v8 = vld [vmem:[#allocation3_spill] sm:$0xff] }
 0x3ea   :  { %6175 = vst [vmem:[#allocation31_spill] sm:$0xff] %v5095_v13  ;;  %3407 = vrsqrt.f32 %v1544_v7  ;;  %v1545_v26 = vmax.f32 %v1413_v45, 1e-16  ;;  %v1626_v27 = vmax.f32 %v4938_v6, 1e-16  ;;  %v1872_v17 = vpack.c.bf16 %v5003_v30, %v5000_v63 }
 0x3eb   :  { %6176 = vst [vmem:[#allocation40_spill] sm:$0xff] %v5097_v39  ;;  %v1764_v52 = vmul.f32 0.5, %v1732_v9  ;;  %v1733_v56 = vmul.f32 %v6179_v48, %v1701_v35  ;;  %v1315_v2 = vpop.xlane.xlu0 %1314  ;;  %v1880_v31 = vpack.c.bf16 %v5097_v39, %v5095_v13  ;;  %v6181_v9 = vld [vmem:[#allocation5_spill] sm:$0xff]  ;;  %v1530_v48 = vmax.f32 %v5028_v5, 1e-16 }
 0x3ec   :  { %v3398_v57 = vpop.eup %3397  ;;  %3409 = vrsqrt.f32 %v1545_v26 }
 0x3ed   :  { %3411 = vrsqrt.f32 %v1643_v34  ;;  %v1796_v7 = vadd.f32 %v1764_v52, %v6180_v8  ;;  %v1765_v20 = vmul.f32 0.5, %v1733_v56  ;;  %v1606_v10 = vmul.f32 %v3398_v57, %v1311_v40  ;;  %v1317_v22 = vpop.xlane.xlu1 %1316  ;;  %3015 = vmatprep.subr.bf16.mxu0 %v1880_v31  ;;  %v6184_v56 = vld [vmem:[#allocation42_spill] sm:$0xff] }
 0x3ee   :  { %v3400_v46 = vpop.eup %3399  ;;  %3413 = vrsqrt.f32 %v1642_v16  ;;  %3016 = vmatpush3.bf16.msra.mxu0 %v1872_v17  ;;  %v1645_v17 = vmax.f32 %v4952_v29, 1e-16 }
 0x3ef   :  { %3415 = vrsqrt.f32 %v1627_v1  ;;  %v1797_v35 = vadd.f32 %v1765_v20, %v6181_v9  ;;  %v1702_v45 = vmul.f32 %v3396_v11, %v1606_v10  ;;  %v1607_v33 = vmul.f32 %v3400_v46, %v1313_v3  ;;  %v1415_v6 = vpop.xlane.xlu0 %1414  ;;  %v3402_v26 = vpop.eup %3401  ;;  %v6185_v20 = vld [vmem:[#allocation43_spill] sm:$0xff] }
 0x3f0   :  { %3417 = vrsqrt.f32 %v1626_v27  ;;  %v1546_v34 = vmax.f32 %v1415_v6, 1e-16  ;;  %v3404_v23 = vpop.eup %3403  ;;  %v5111_v52 = vmax.f32 %v1796_v7, 0.0  ;;  %v1531_v11 = vmax.f32 %v5033_v21, 1e-16 }
 0x3f1   :  { %v5113_v40 = vmax.f32 %v1797_v35, 0.0  ;;  %v1734_v31 = vmul.f32 %v6184_v56, %v1702_v45  ;;  %v1703_v16 = vmul.f32 %v3402_v26, %v1607_v33  ;;  %v1417_v57 = vpop.xlane.xlu1 %1416  ;;  %v3406_v1 = vpop.eup %3405  ;;  %v1644_v46 = vmax.f32 %v4948_v38, 1e-16  ;;  %v6186_v45 = vld [vmem:[#allocation26_spill] sm:$0xff] }
 0x3f2   :  { %6182 = vst [vmem:[#allocation32_spill] sm:$0xff] %v5111_v52  ;;  %3419 = vrsqrt.f32 %v1546_v34  ;;  %v1547_v3 = vmax.f32 %v1417_v57, 1e-16  ;;  %v1873_v35 = vpack.c.bf16 %v5016_v15, %v5013_v12  ;;  %v6187_v34 = vld [vmem:[#allocation25_spill] sm:$0xff] }
 0x3f3   :  { %6183 = vst [vmem:[#allocation41_spill] sm:$0xff] %v5113_v40  ;;  %v1766_v27 = vmul.f32 0.5, %v1734_v31  ;;  %v1735_v5 = vmul.f32 %v6185_v20, %v1703_v16  ;;  %v1881_v7 = vpack.c.bf16 %v5113_v40, %v5111_v52 }
 0x3f4   :  { %v3408_v10 = vpop.eup %3407  ;;  %3421 = vrsqrt.f32 %v1547_v3  ;;  %v1532_v3 = vmax.f32 %v5038_v41, 1e-16 }
 0x3f5   :  { %3423 = vrsqrt.f32 %v1530_v48  ;;  %v1798_v29 = vadd.f32 %v1766_v27, %v6186_v45  ;;  %v1767_v33 = vmul.f32 0.5, %v1735_v5  ;;  %v1608_v6 = vmul.f32 %v3408_v10, %v1315_v2  ;;  %3017 = vmatprep.subr.bf16.mxu0 %v1881_v7  ;;  %v6190_v5 = vld [vmem:[#allocation44_spill] sm:$0xff] }
 0x3f6   :  { %v3410_v21 = vpop.eup %3409  ;;  %3425 = vrsqrt.f32 %v1645_v17  ;;  %3018 = vmatpush3.bf16.msra.mxu0 %v1873_v35  ;;  %v1628_v35 = vmax.f32 %v4958_v58, 1e-16  ;;  %v6192_v58 = vld [vmem:[#allocation6_spill] sm:$0xff] }
 0x3f7   :  { %v3412_v26 = vpop.eup %3411  ;;  %3427 = vrsqrt.f32 %v1531_v11  ;;  %v1799_v56 = vadd.f32 %v1767_v33, %v6187_v34  ;;  %v1704_v31 = vmul.f32 %v3406_v1, %v1608_v6  ;;  %v1609_v16 = vmul.f32 %v3410_v21, %v1317_v22  ;;  %v1419_v38 = vpop.xlane.xlu0 %1418  ;;  %v6191_v33 = vld [vmem:[#allocation46_spill] sm:$0xff] }
 0x3f8   :  { %v3414_v57 = vpop.eup %3413  ;;  %3429 = vrsqrt.f32 %v1644_v46  ;;  %v1548_v48 = vmax.f32 %v1419_v38, 1e-16  ;;  %v5127_v27 = vmax.f32 %v1798_v29, 0.0  ;;  %v1533_v1 = vmax.f32 %v5043_v49, 1e-16 }
 0x3f9   :  { %v3416_v20 = vpop.eup %3415  ;;  %v5129_v2 = vmax.f32 %v1799_v56, 0.0  ;;  %v1736_v17 = vmul.f32 %v6190_v5, %v1704_v31  ;;  %v1705_v7 = vmul.f32 %v3404_v23, %v1609_v16  ;;  %v1421_v10 = vpop.xlane.xlu1 %1420  ;;  %v1629_v56 = vmax.f32 %v4960_v59, 1e-16 }
 0x3fa   :  { %6188 = vst [vmem:[#allocation33_spill] sm:$0xff] %v5127_v27  ;;  %v3418_v11 = vpop.eup %3417  ;;  %3431 = vrsqrt.f32 %v1548_v48  ;;  %v1549_v22 = vmax.f32 %v1421_v10, 1e-16  ;;  %v1874_v23 = vpack.c.bf16 %v5030_v0, %v5025_v25 }
 0x3fb   :  { %6189 = vst [vmem:[#allocation34_spill] sm:$0xff] %v5129_v2  ;;  %v1768_v46 = vmul.f32 0.5, %v1736_v17  ;;  %v1737_v41 = vmul.f32 %v6191_v33, %v1705_v7  ;;  %v1319_v6 = vpop.xlane.xlu0 %1318  ;;  %v1882_v29 = vpack.c.bf16 %v5129_v2, %v5127_v27  ;;  %v6193_v17 = vld [vmem:[#allocation7_spill] sm:$0xff] }
 0x3fc   :  { %v3420_v21 = vpop.eup %3419  ;;  %3433 = vrsqrt.f32 %v1549_v22 }
 0x3fd   :  { %3435 = vrsqrt.f32 %v1532_v3  ;;  %v1800_v31 = vadd.f32 %v1768_v46, %v6192_v58  ;;  %v1769_v16 = vmul.f32 0.5, %v1737_v41  ;;  %v1610_v38 = vmul.f32 %v3420_v21, %v1319_v6  ;;  %v1321_v49 = vpop.xlane.xlu1 %1320  ;;  %3019 = vmatprep.subr.bf16.mxu0 %v1882_v29  ;;  %v6196_v41 = vld [vmem:[#allocation47_spill] sm:$0xff] }
 0x3fe   :  { %v3422_v48 = vpop.eup %3421  ;;  %3437 = vrsqrt.f32 %v1628_v35  ;;  %3020 = vmatpush3.bf16.msra.mxu0 %v1874_v23 }
 0x3ff   :  { %v3424_v5 = vpop.eup %3423  ;;  %3439 = vrsqrt.f32 %v1533_v1  ;;  %v1801_v7 = vadd.f32 %v1769_v16, %v6193_v17  ;;  %v1706_v10 = vmul.f32 %v3414_v57, %v1610_v38  ;;  %v1611_v59 = vmul.f32 %v3422_v48, %v1321_v49  ;;  %v1287_v22 = vpop.xlane.xlu0 %1286  ;;  %v6197_v16 = vld [vmem:[#allocation49_spill] sm:$0xff]  ;;  %v6198_v48 = vld [vmem:[#allocation12_spill] sm:$0xff] }
 0x400   :  { %v3426_v33 = vpop.eup %3425  ;;  %3441 = vrsqrt.f32 %v1629_v56  ;;  %v1594_v34 = vmul.f32 %v3424_v5, %v1287_v22  ;;  %v5142_v45 = vmax.f32 %v1800_v31, 0.0 }
 0x401   :  { %v3428_v3 = vpop.eup %3427  ;;  %v5144_v46 = vmax.f32 %v1801_v7, 0.0  ;;  %v1738_v6 = vmul.f32 %v6196_v41, %v1706_v10  ;;  %v1707_v29 = vmul.f32 %v3412_v26, %v1611_v59  ;;  %v1289_v35 = vpop.xlane.xlu1 %1288  ;;  %v1875_v7 = vpack.c.bf16 %v5049_v32, %v5046_v53  ;;  %v6199_v10 = vld [vmem:[#allocation19_spill] sm:$0xff] }
 0x402   :  { %6194 = vst [vmem:[#allocation45_spill] sm:$0xff] %v5142_v45  ;;  %v3430_v21 = vpop.eup %3429  ;;  %v1690_v23 = vmul.f32 %v3418_v11, %v1594_v34  ;;  %v1595_v1 = vmul.f32 %v3428_v3, %v1289_v35  ;;  %v6200_v41 = vld [vmem:[#allocation15_spill] sm:$0xff]  ;;  %v6201_v35 = vld [vmem:[#allocation18_spill] sm:$0xff] }
 0x403   :  { %6195 = vst [vmem:[#allocation50_spill] sm:$0xff] %v5144_v46  ;;  %v1770_v58 = vmul.f32 0.5, %v1738_v6  ;;  %v1739_v57 = vmul.f32 %v6197_v16, %v1707_v29  ;;  %v1323_v38 = vpop.xlane.xlu0 %1322  ;;  %v1883_v56 = vpack.c.bf16 %v5144_v46, %v5142_v45 }
 0x404   :  { %v3432_v49 = vpop.eup %3431  ;;  %v1722_v31 = vmul.f32 %v6198_v48, %v1690_v23  ;;  %v1691_v5 = vmul.f32 %v3416_v20, %v1595_v1  ;;  %v6202_v48 = vld [vmem:[#allocation10_spill] sm:$0xff] }
 0x405   :  { %v1802_v26 = vadd.f32 %v1770_v58, %v6199_v10  ;;  %v1771_v59 = vmul.f32 0.5, %v1739_v57  ;;  %v1612_v22 = vmul.f32 %v3432_v49, %v1323_v38  ;;  %v1325_v34 = vpop.xlane.xlu1 %1324  ;;  %3021 = vmatprep.subr.bf16.mxu0 %v1883_v56  ;;  %v6205_v49 = vld [vmem:[#allocation51_spill] sm:$0xff] }
 0x406   :  { %v3434_v11 = vpop.eup %3433  ;;  %v1754_v3 = vmul.f32 0.5, %v1722_v31  ;;  %v1723_v6 = vmul.f32 %v6200_v41, %v1691_v5  ;;  %3022 = vmatpush3.bf16.msra.mxu0 %v1875_v7 }
 0x407   :  { %v3436_v29 = vpop.eup %3435  ;;  %v1803_v16 = vadd.f32 %v1771_v59, %v6201_v35  ;;  %v1708_v17 = vmul.f32 %v3430_v21, %v1612_v22  ;;  %v1613_v23 = vmul.f32 %v3434_v11, %v1325_v34  ;;  %v1291_v20 = vpop.xlane.xlu0 %1290  ;;  %v5157_v38 = vmax.f32 %v1802_v26, 0.0  ;;  %v6207_v21 = vld [vmem:[#allocation20_spill] sm:$0xff] }
 0x408   :  { %v3438_v1 = vpop.eup %3437  ;;  %v1786_v9 = vadd.f32 %v1754_v3, %v6202_v48  ;;  %v1755_v8 = vmul.f32 0.5, %v1723_v6  ;;  %v1596_v58 = vmul.f32 %v3436_v29, %v1291_v20  ;;  %v6208_v3 = vld [vmem:[#allocation52_spill] sm:$0xff] }
 0x409   :  { %v3440_v57 = vpop.eup %3439  ;;  %6203 = vst [vmem:[#allocation35_spill] sm:$0xff] %v5157_v38  ;;  %v5159_v56 = vmax.f32 %v1803_v16, 0.0  ;;  %v1740_v31 = vmul.f32 %v6205_v49, %v1708_v17  ;;  %v1709_v5 = vmul.f32 %v3426_v33, %v1613_v23  ;;  %v1293_v7 = vpop.xlane.xlu1 %1292  ;;  %v6210_v16 = vld [vmem:[#allocation13_spill] sm:$0xff]  ;;  %v6211_v33 = vld [vmem:[#allocation11_spill] sm:$0xff] }
 0x40a   :  { %v3442_v41 = vpop.eup %3441  ;;  %v5162_v10 = vmax.f32 %v1786_v9, 0.0  ;;  %v1787_v59 = vadd.f32 %v1755_v8, %v6207_v21  ;;  %v1692_v22 = vmul.f32 %v3438_v1, %v1596_v58  ;;  %v1597_v34 = vmul.f32 %v3440_v57, %v1293_v7  ;;  %v6212_v1 = vld [vmem:[#allocation28_spill] sm:$0xff] }
 0x40b   :  { %6204 = vst [vmem:[#allocation48_spill] sm:$0xff] %v5159_v56  ;;  %v1772_v11 = vmul.f32 0.5, %v1740_v31  ;;  %v1741_v6 = vmul.f32 %v6208_v3, %v1709_v5  ;;  %v1884_v26 = vpack.c.bf16 %v5159_v56, %v5157_v38  ;;  %v6213_v31 = vld [vmem:[#allocation8_spill] sm:$0xff] }
 0x40c   :  { %6206 = vst [vmem:[#allocation38_spill] sm:$0xff] %v5162_v10  ;;  %v5168_v29 = vmax.f32 %v1787_v59, 0.0  ;;  %v1724_v20 = vmul.f32 %v6210_v16, %v1692_v22  ;;  %v1693_v17 = vmul.f32 %v3442_v41, %v1597_v34  ;;  %v2251_v8 = vmul.f32 %v5162_v10, %v5162_v10  ;;  %v6214_v41 = vld [vmem:[#allocation14_spill] sm:$0xff] }
 0x40d   :  { %v1804_v23 = vadd.f32 %v1772_v11, %v6211_v33  ;;  %v1773_v49 = vmul.f32 0.5, %v1741_v6  ;;  %3023 = vmatprep.subr.bf16.mxu0 %v1884_v26  ;;  %v6218_v6 = vld [vmem:[#allocation9_spill] sm:$0xff] }
 0x40e   :  { %6209 = vst [vmem:[#allocation53_spill] sm:$0xff] %v5168_v29  ;;  %v1756_v9 = vmul.f32 0.5, %v1724_v20  ;;  %v1725_v58 = vmul.f32 %v6212_v1, %v1693_v17  ;;  %v2252_v57 = vmul.f32 %v5168_v29, %v5168_v29  ;;  %2295 = vadd.xlane.f32.xlu0 %v2251_v8  ;;  %v1876_v7 = vpack.c.bf16 %v5168_v29, %v5162_v10  ;;  %v3634_v1 = vld [vmem:[%s5914_s0] ss:$8 sps:$4 sm:$0xff]  }
 0x40f   :  { %v1805_v5 = vadd.f32 %v1773_v49, %v6213_v31  ;;  %v5181_v34 = vmax.f32 %v1804_v23, 0.0  ;;  %v2255_v8 = vmul.f32 %v5065_v19, %v5065_v19 }
 0x410   :  { %v1788_v59 = vadd.f32 %v1756_v9, %v6214_v41  ;;  %v1757_v22 = vmul.f32 0.5, %v1725_v58  ;;  %2297 = vadd.xlane.f32.xlu1 %v2252_v57  ;;  %3024 = vmatpush3.bf16.msra.mxu0 %v1876_v7  ;;  %v2256_v9 = vmul.f32 %v5067_v4, %v5067_v4  ;;  %v2257_v58 = vmul.f32 %v5079_v14, %v5079_v14  ;;  %v3635_v57 = vld [vmem:[%s5914_s0 + $0x14] ss:$8 sps:$4 sm:$0xff]  }
 0x411   :  { %6215 = vst [vmem:[#allocation39_spill] sm:$0xff] %v5181_v34  ;;  %v5183_v11 = vmax.f32 %v1805_v5, 0.0  ;;  %v2258_v5 = vmul.f32 %v5081_v37, %v5081_v37  ;;  %v2259_v7 = vmul.f32 %v5095_v13, %v5095_v13 }
 0x412   :  { %v5185_v3 = vmax.f32 %v1788_v59, 0.0  ;;  %v1789_v26 = vadd.f32 %v1757_v22, %v6218_v6  ;;  %v2260_v59 = vmul.f32 %v5097_v39, %v5097_v39  ;;  %v3636_v22 = vld [vmem:[%s5914_s0 + $0x10] ss:$8 sps:$4 sm:$0xff]  }
 0x413   :  { %6216 = vst [vmem:[#allocation42_spill] sm:$0xff] %v5183_v11  ;;  %v1885_v16 = vpack.c.bf16 %v5183_v11, %v5181_v34 }
 0x414   :  { %6217 = vst [vmem:[#allocation43_spill] sm:$0xff] %v5185_v3  ;;  %v5190_v20 = vmax.f32 %v1789_v26, 0.0  ;;  %v2253_v17 = vmul.f32 %v5185_v3, %v5185_v3  ;;  %v2261_v26 = vmul.f32 %v5111_v52, %v5111_v52 }
 0x415   :  { %3025 = vmatprep.subr.bf16.mxu0 %v1885_v16  ;;  %v3637_v16 = vld [vmem:[%s5914_s0 + $0x24] ss:$8 sps:$4 sm:$0xff]  }
 0x416   :  { %6219 = vst [vmem:[#allocation44_spill] sm:$0xff] %v5190_v20  ;;  %2299 = vadd.xlane.f32.xlu0 %v2253_v17  ;;  %v2254_v23 = vmul.f32 %v5190_v20, %v5190_v20  ;;  %v1877_v49 = vpack.c.bf16 %v5190_v20, %v5185_v3  ;;  %v2262_v17 = vmul.f32 %v5113_v40, %v5113_v40 }
 0x418   :  { %2301 = vadd.xlane.f32.xlu1 %v2254_v23  ;;  %3026 = vmatpush3.bf16.msra.mxu0 %v1877_v49  ;;  %v2263_v23 = vmul.f32 %v5127_v27, %v5127_v27  ;;  %v2264_v49 = vmul.f32 %v5129_v2, %v5129_v2 }
 0x41a   :  { %2303 = vadd.xlane.f32.xlu0 %v2255_v8  ;;  %v3638_v8 = vld [vmem:[%s5914_s0 + $0x20] ss:$8 sps:$4 sm:$0xff]  }
 0x41b   :  { %1919 = vmatmul.mubr.bf16.vlgmr.msra.gmra.mrb[32].mxu0 %v3634_v1  ;;  %v3639_v1 = vld [vmem:[%s5914_s0 + $0x34] ss:$8 sps:$4 sm:$0xff]  }
 0x41c   :  { %2305 = vadd.xlane.f32.xlu1 %v2256_v9  ;;  %1926 = vmatprep.mubr.bf16.mxu0 %v3635_v57  ;;  %v2265_v9 = vmul.f32 %v5142_v45, %v5142_v45  ;;  %v2267_v57 = vmul.f32 %v5157_v38, %v5157_v38 }
 0x41e   :  { %2307 = vadd.xlane.f32.xlu0 %v2257_v58  ;;  %v2266_v58 = vmul.f32 %v5144_v46, %v5144_v46 }
 0x420   :  { %2309 = vadd.xlane.f32.xlu1 %v2258_v5  ;;  %v2268_v5 = vmul.f32 %v5159_v56, %v5159_v56 }
 0x422   :  { %2311 = vadd.xlane.f32.xlu0 %v2259_v7  ;;  %v3640_v7 = vld [vmem:[%s5914_s0 + $0x30] ss:$8 sps:$4 sm:$0xff]  }
 0x423   :  { %1927 = vmatmul.mubr.bf16.gmra.mrb[36].mxu0 %v3636_v22  ;;  %v3642_v22 = vld [vmem:[%s5914_s0 + $0x40] ss:$8 sps:$4 sm:$0xff]  }
 0x424   :  { %2313 = vadd.xlane.f32.xlu1 %v2260_v59  ;;  %1934 = vmatprep.mubr.bf16.mxu0 %v3637_v16  ;;  %v3641_v59 = vld [vmem:[%s5914_s0 + $0x44] ss:$8 sps:$4 sm:$0xff]   ;;  %v3644_v16 = vld [vmem:[%s5914_s0 + $0x50] ss:$8 sps:$4 sm:$0xff]  }
 0x426   :  { %2315 = vadd.xlane.f32.xlu0 %v2261_v26  ;;  %v3643_v26 = vld [vmem:[%s5914_s0 + $0x54] ss:$8 sps:$4 sm:$0xff]  }
 0x428   :  { %2317 = vadd.xlane.f32.xlu1 %v2262_v17  ;;  %v3645_v17 = vld [vmem:[%s5914_s0 + $0x64] ss:$8 sps:$4 sm:$0xff]  }
 0x42a   :  { %2319 = vadd.xlane.f32.xlu0 %v2263_v23  ;;  %v3646_v23 = vld [vmem:[%s5914_s0 + $0x60] ss:$8 sps:$4 sm:$0xff]  }
 0x42b   :  { %1935 = vmatmul.mubr.bf16.gmra.mrb[40].mxu0 %v3638_v8  ;;  %v3648_v8 = vld [vmem:[%s5914_s0 + $0x70] ss:$8 sps:$4 sm:$0xff]  }
 0x42c   :  { %2321 = vadd.xlane.f32.xlu1 %v2264_v49  ;;  %1942 = vmatprep.mubr.bf16.mxu0 %v3639_v1  ;;  %v3647_v49 = vld [vmem:[%s5914_s0 + $0x74] ss:$8 sps:$4 sm:$0xff]   ;;  %v3650_v1 = vld [vmem:[%s5914_s0 + $0x80] ss:$8 sps:$4 sm:$0xff]  }
 0x42e   :  { %2323 = vadd.xlane.f32.xlu0 %v2265_v9  ;;  %v3649_v9 = vld [vmem:[%s5914_s0 + $0x84] ss:$8 sps:$4 sm:$0xff]  }
 0x430   :  { %2325 = vadd.xlane.f32.xlu1 %v2266_v58  ;;  %v3651_v58 = vld [vmem:[%s5914_s0 + $0x94] ss:$8 sps:$4 sm:$0xff]  }
 0x432   :  { %2327 = vadd.xlane.f32.xlu0 %v2267_v57  ;;  %v3652_v57 = vld [vmem:[%s5914_s0 + $0x90] ss:$8 sps:$4 sm:$0xff]  }
 0x433   :  { %1943 = vmatmul.mubr.bf16.gmra.mrb[44].mxu0 %v3640_v7  ;;  %v3654_v7 = vld [vmem:[%s5914_s0 + $0xa0] ss:$8 sps:$4 sm:$0xff]  }
 0x434   :  { %2329 = vadd.xlane.f32.xlu1 %v2268_v5  ;;  %1950 = vmatprep.mubr.bf16.mxu0 %v3641_v59  ;;  %v3653_v5 = vld [vmem:[%s5914_s0 + $0xa4] ss:$8 sps:$4 sm:$0xff]   ;;  %v3655_v59 = vld [vmem:[%s5914_s0 + $0xb4] ss:$8 sps:$4 sm:$0xff]  }
 0x43b   :  { %1951 = vmatmul.mubr.bf16.gmra.mrb[48].mxu0 %v3642_v22  ;;  %v3656_v22 = vld [vmem:[%s5914_s0 + $0xb0] ss:$8 sps:$4 sm:$0xff]  }
 0x43c   :  { %1958 = vmatprep.mubr.bf16.mxu0 %v3643_v26  ;;  %v3657_v26 = vld [vmem:[%s5914_s0 + $0xc4] ss:$8 sps:$4 sm:$0xff]  }
 0x443   :  { %1959 = vmatmul.mubr.bf16.gmra.mrb[52].mxu0 %v3644_v16  ;;  %v3658_v16 = vld [vmem:[%s5914_s0 + $0xc0] ss:$8 sps:$4 sm:$0xff]  }
 0x444   :  { %1966 = vmatprep.mubr.bf16.mxu0 %v3645_v17  ;;  %v3659_v17 = vld [vmem:[%s5914_s0 + $0xd4] ss:$8 sps:$4 sm:$0xff]  }
 0x44b   :  { %1967 = vmatmul.mubr.bf16.gmra.mrb[56].mxu0 %v3646_v23  ;;  %v3660_v23 = vld [vmem:[%s5914_s0 + $0xd0] ss:$8 sps:$4 sm:$0xff]  }
 0x44c   :  { %1974 = vmatprep.mubr.bf16.mxu0 %v3647_v49  ;;  %v3661_v49 = vld [vmem:[%s5914_s0 + $0xe4] ss:$8 sps:$4 sm:$0xff]  }
 0x453   :  { %1975 = vmatmul.mubr.bf16.gmra.mrb[60].mxu0 %v3648_v8  ;;  %v3662_v8 = vld [vmem:[%s5914_s0 + $0xe0] ss:$8 sps:$4 sm:$0xff]  }
 0x454   :  { %1982 = vmatprep.mubr.bf16.mxu0 %v3649_v9  ;;  %v3663_v9 = vld [vmem:[%s5914_s0 + $0xf4] ss:$8 sps:$4 sm:$0xff]  }
 0x45b   :  { %1983 = vmatmul.mubr.bf16.gmra.mrb[64].mxu0 %v3650_v1  ;;  %v3664_v1 = vld [vmem:[%s5914_s0 + $0xf0] ss:$8 sps:$4 sm:$0xff]  }
 0x45c   :  { %1990 = vmatprep.mubr.bf16.mxu0 %v3651_v58 }
 0x463   :  { %1991 = vmatmul.mubr.bf16.gmra.mrb[68].mxu0 %v3652_v57 }
 0x464   :  { %1998 = vmatprep.mubr.bf16.mxu0 %v3653_v5 }
 0x46b   :  { %1999 = vmatmul.mubr.bf16.gmra.mrb[72].mxu0 %v3654_v7 }
 0x46c   :  { %2006 = vmatprep.mubr.bf16.mxu0 %v3655_v59 }
 0x473   :  { %2007 = vmatmul.mubr.bf16.gmra.mrb[76].mxu0 %v3656_v22 }
 0x474   :  { %2014 = vmatprep.mubr.bf16.mxu0 %v3657_v26 }
 0x47b   :  { %2015 = vmatmul.mubr.bf16.gmra.mrb[80].mxu0 %v3658_v16 }
 0x47c   :  { %2022 = vmatprep.mubr.bf16.mxu0 %v3659_v17 }
 0x483   :  { %2023 = vmatmul.mubr.bf16.gmra.mrb[84].mxu0 %v3660_v23 }
 0x484   :  { %2030 = vmatprep.mubr.bf16.mxu0 %v3661_v49 }
 0x48b   :  { %2031 = vmatmul.mubr.bf16.gmra.mrb[88].mxu0 %v3662_v8 }
 0x48c   :  { %2038 = vmatprep.mubr.bf16.mxu0 %v3663_v9 }
 0x493   :  { %2039 = vmatmul.mubr.bf16.gmra.mrb[92].mxu0 %v3664_v1 }
 0x4ee   :  { %v3027_v58 = vpop.f32.mrb[32].mxu0 }
 0x4ef   :  { %v3028_v57 = vpop.f32.mrb[33].mxu0 }
 0x4f0   :  { %v5319_v5 = vadd.f32 %v3028_v57, %v3027_v58  ;;  %v3030_v7 = vpop.f32.mrb[34].mxu0 }
 0x4f1   :  { %v3031_v59 = vpop.f32.mrb[35].mxu0 }
 0x4f2   :  { %v5321_v22 = vadd.f32 %v3031_v59, %v3030_v7  ;;  %v2047_v26 = vmul.f32 %v5319_v5, %v4972_v44  ;;  %v2143_v23 = vmul.f32 %v5319_v5, %v5319_v5 }
 0x4f4   :  { %2079 = vadd.xlane.f32.xlu0 %v2047_v26  ;;  %v2048_v16 = vmul.f32 %v5321_v22, %v4975_v61  ;;  %v2144_v1 = vmul.f32 %v5321_v22, %v5321_v22 }
 0x4f6   :  { %v3033_v17 = vpop.f32.mrb[36].mxu0  ;;  %2081 = vadd.xlane.f32.xlu1 %v2048_v16 }
 0x4f7   :  { %v3034_v49 = vpop.f32.mrb[37].mxu0 }
 0x4f8   :  { %v5329_v8 = vadd.f32 %v3034_v49, %v3033_v17  ;;  %v3036_v9 = vpop.f32.mrb[38].mxu0  ;;  %2175 = vadd.xlane.f32.xlu0 %v2143_v23 }
 0x4f9   :  { %v3037_v58 = vpop.f32.mrb[39].mxu0 }
 0x4fa   :  { %v5333_v57 = vadd.f32 %v3037_v58, %v3036_v9  ;;  %2177 = vadd.xlane.f32.xlu1 %v2144_v1  ;;  %v2049_v7 = vmul.f32 %v5329_v8, %v4986_v54  ;;  %v2145_v16 = vmul.f32 %v5329_v8, %v5329_v8 }
 0x4fc   :  { %2083 = vadd.xlane.f32.xlu0 %v2049_v7  ;;  %v2050_v59 = vmul.f32 %v5333_v57, %v4989_v42  ;;  %v2146_v9 = vmul.f32 %v5333_v57, %v5333_v57 }
 0x4fe   :  { %v3039_v26 = vpop.f32.mrb[40].mxu0  ;;  %2085 = vadd.xlane.f32.xlu1 %v2050_v59 }
 0x4ff   :  { %v3040_v17 = vpop.f32.mrb[41].mxu0 }
 0x500   :  { %v5341_v23 = vadd.f32 %v3040_v17, %v3039_v26  ;;  %v3042_v49 = vpop.f32.mrb[42].mxu0  ;;  %2179 = vadd.xlane.f32.xlu0 %v2145_v16 }
 0x501   :  { %v3043_v1 = vpop.f32.mrb[43].mxu0 }
 0x502   :  { %v5345_v58 = vadd.f32 %v3043_v1, %v3042_v49  ;;  %2181 = vadd.xlane.f32.xlu1 %v2146_v9  ;;  %v2051_v7 = vmul.f32 %v5341_v23, %v5000_v63  ;;  %v2147_v26 = vmul.f32 %v5341_v23, %v5341_v23 }
 0x504   :  { %2087 = vadd.xlane.f32.xlu0 %v2051_v7  ;;  %v2052_v59 = vmul.f32 %v5345_v58, %v5003_v30  ;;  %v2148_v49 = vmul.f32 %v5345_v58, %v5345_v58 }
 0x506   :  { %v3045_v31 = vpop.f32.mrb[44].mxu0  ;;  %2089 = vadd.xlane.f32.xlu1 %v2052_v59 }
 0x507   :  { %v3046_v16 = vpop.f32.mrb[45].mxu0 }
 0x508   :  { %v5353_v17 = vadd.f32 %v3046_v16, %v3045_v31  ;;  %v3048_v33 = vpop.f32.mrb[46].mxu0  ;;  %2183 = vadd.xlane.f32.xlu0 %v2147_v26 }
 0x509   :  { %v3049_v9 = vpop.f32.mrb[47].mxu0 }
 0x50a   :  { %v5357_v1 = vadd.f32 %v3049_v9, %v3048_v33  ;;  %2185 = vadd.xlane.f32.xlu1 %v2148_v49  ;;  %v2053_v7 = vmul.f32 %v5353_v17, %v5013_v12  ;;  %v2149_v31 = vmul.f32 %v5353_v17, %v5353_v17 }
 0x50c   :  { %2091 = vadd.xlane.f32.xlu0 %v2053_v7  ;;  %v2054_v59 = vmul.f32 %v5357_v1, %v5016_v15  ;;  %v2150_v33 = vmul.f32 %v5357_v1, %v5357_v1 }
 0x50e   :  { %v3051_v35 = vpop.f32.mrb[48].mxu0  ;;  %2093 = vadd.xlane.f32.xlu1 %v2054_v59 }
 0x50f   :  { %v3052_v26 = vpop.f32.mrb[49].mxu0 }
 0x510   :  { %v5365_v16 = vadd.f32 %v3052_v26, %v3051_v35  ;;  %v3054_v51 = vpop.f32.mrb[50].mxu0  ;;  %2187 = vadd.xlane.f32.xlu0 %v2149_v31 }
 0x511   :  { %v3055_v49 = vpop.f32.mrb[51].mxu0 }
 0x512   :  { %v5369_v9 = vadd.f32 %v3055_v49, %v3054_v51  ;;  %2189 = vadd.xlane.f32.xlu1 %v2150_v33  ;;  %v2055_v7 = vmul.f32 %v5365_v16, %v5025_v25  ;;  %v2151_v35 = vmul.f32 %v5365_v16, %v5365_v16 }
 0x514   :  { %2095 = vadd.xlane.f32.xlu0 %v2055_v7  ;;  %v2056_v59 = vmul.f32 %v5369_v9, %v5030_v0  ;;  %v2152_v51 = vmul.f32 %v5369_v9, %v5369_v9 }
 0x516   :  { %v3057_v6 = vpop.f32.mrb[52].mxu0  ;;  %2097 = vadd.xlane.f32.xlu1 %v2056_v59 }
 0x517   :  { %v3058_v31 = vpop.f32.mrb[53].mxu0 }
 0x518   :  { %v5377_v26 = vadd.f32 %v3058_v31, %v3057_v6  ;;  %v3060_v41 = vpop.f32.mrb[54].mxu0  ;;  %2191 = vadd.xlane.f32.xlu0 %v2151_v35 }
 0x519   :  { %v3061_v33 = vpop.f32.mrb[55].mxu0 }
 0x51a   :  { %6220 = vst [vmem:[#allocation46_spill] sm:$0xff] %v5377_v26  ;;  %v5381_v49 = vadd.f32 %v3061_v33, %v3060_v41  ;;  %2193 = vadd.xlane.f32.xlu1 %v2152_v51  ;;  %v2057_v7 = vmul.f32 %v5377_v26, %v5046_v53  ;;  %v2153_v6 = vmul.f32 %v5377_v26, %v5377_v26 }
 0x51c   :  { %6221 = vst [vmem:[#allocation47_spill] sm:$0xff] %v5381_v49  ;;  %2099 = vadd.xlane.f32.xlu0 %v2057_v7  ;;  %v2058_v59 = vmul.f32 %v5381_v49, %v5049_v32  ;;  %v2154_v41 = vmul.f32 %v5381_v49, %v5381_v49 }
 0x51e   :  { %v3063_v21 = vpop.f32.mrb[56].mxu0  ;;  %2101 = vadd.xlane.f32.xlu1 %v2058_v59 }
 0x51f   :  { %v3064_v35 = vpop.f32.mrb[57].mxu0 }
 0x520   :  { %v5389_v31 = vadd.f32 %v3064_v35, %v3063_v21  ;;  %v3066_v48 = vpop.f32.mrb[58].mxu0  ;;  %2195 = vadd.xlane.f32.xlu0 %v2153_v6 }
 0x521   :  { %v3067_v51 = vpop.f32.mrb[59].mxu0 }
 0x522   :  { %6222 = vst [vmem:[#allocation49_spill] sm:$0xff] %v5389_v31  ;;  %v5393_v33 = vadd.f32 %v3067_v51, %v3066_v48  ;;  %2197 = vadd.xlane.f32.xlu1 %v2154_v41  ;;  %v2059_v7 = vmul.f32 %v5389_v31, %v5162_v10  ;;  %v2155_v21 = vmul.f32 %v5389_v31, %v5389_v31 }
 0x524   :  { %6223 = vst [vmem:[#allocation12_spill] sm:$0xff] %v5393_v33  ;;  %2103 = vadd.xlane.f32.xlu0 %v2059_v7  ;;  %v2060_v59 = vmul.f32 %v5393_v33, %v5168_v29  ;;  %v2156_v48 = vmul.f32 %v5393_v33, %v5393_v33 }
 0x526   :  { %v3069_v32 = vpop.f32.mrb[60].mxu0  ;;  %2105 = vadd.xlane.f32.xlu1 %v2060_v59 }
 0x527   :  { %v3070_v6 = vpop.f32.mrb[61].mxu0 }
 0x528   :  { %v5401_v35 = vadd.f32 %v3070_v6, %v3069_v32  ;;  %v3072_v53 = vpop.f32.mrb[62].mxu0  ;;  %2199 = vadd.xlane.f32.xlu0 %v2155_v21 }
 0x529   :  { %v3073_v41 = vpop.f32.mrb[63].mxu0 }
 0x52a   :  { %6224 = vst [vmem:[#allocation15_spill] sm:$0xff] %v5401_v35  ;;  %v5405_v51 = vadd.f32 %v3073_v41, %v3072_v53  ;;  %2201 = vadd.xlane.f32.xlu1 %v2156_v48  ;;  %v2061_v7 = vmul.f32 %v5401_v35, %v5185_v3  ;;  %v2157_v32 = vmul.f32 %v5401_v35, %v5401_v35 }
 0x52c   :  { %6225 = vst [vmem:[#allocation51_spill] sm:$0xff] %v5405_v51  ;;  %2107 = vadd.xlane.f32.xlu0 %v2061_v7  ;;  %v2062_v59 = vmul.f32 %v5405_v51, %v5190_v20  ;;  %v2158_v53 = vmul.f32 %v5405_v51, %v5405_v51 }
 0x52e   :  { %v3075_v29 = vpop.f32.mrb[64].mxu0  ;;  %2109 = vadd.xlane.f32.xlu1 %v2062_v59 }
 0x52f   :  { %v3076_v21 = vpop.f32.mrb[65].mxu0 }
 0x530   :  { %v5413_v6 = vadd.f32 %v3076_v21, %v3075_v29  ;;  %v3078_v10 = vpop.f32.mrb[66].mxu0  ;;  %2203 = vadd.xlane.f32.xlu0 %v2157_v32  ;;  %v5425_v32 = vpop.xlane.xlu0 %2271 }
 0x531   :  { %v3079_v48 = vpop.f32.mrb[67].mxu0 }
 0x532   :  { %6226 = vst [vmem:[#allocation52_spill] sm:$0xff] %v5413_v6  ;;  %v5417_v41 = vadd.f32 %v3079_v48, %v3078_v10  ;;  %2205 = vadd.xlane.f32.xlu1 %v2158_v53  ;;  %v2063_v7 = vmul.f32 %v5413_v6, %v5065_v19  ;;  %v2159_v29 = vmul.f32 %v5413_v6, %v5413_v6  ;;  %v5431_v48 = vpop.xlane.xlu1 %2273 }
 0x534   :  { %6227 = vst [vmem:[#allocation13_spill] sm:$0xff] %v5417_v41  ;;  %2111 = vadd.xlane.f32.xlu0 %v2063_v7  ;;  %v2064_v59 = vmul.f32 %v5417_v41, %v5067_v4  ;;  %v2160_v53 = vmul.f32 %v5417_v41, %v5417_v41  ;;  %v5437_v4 = vpop.xlane.xlu0 %2275 }
 0x536   :  { %v3081_v20 = vpop.f32.mrb[68].mxu0  ;;  %2113 = vadd.xlane.f32.xlu1 %v2064_v59 }
 0x537   :  { %v3082_v21 = vpop.f32.mrb[69].mxu0 }
 0x538   :  { %v5427_v3 = vadd.f32 %v3082_v21, %v3081_v20  ;;  %v3084_v10 = vpop.f32.mrb[70].mxu0  ;;  %2207 = vadd.xlane.f32.xlu0 %v2159_v29  ;;  %v5441_v21 = vpop.xlane.xlu1 %2277 }
 0x539   :  { %v3085_v7 = vpop.f32.mrb[71].mxu0  ;;  %v5445_v6 = vpop.xlane.xlu0 %2279 }
 0x53a   :  { %6228 = vst [vmem:[#allocation28_spill] sm:$0xff] %v5427_v3  ;;  %v5433_v19 = vadd.f32 %v3085_v7, %v3084_v10  ;;  %2209 = vadd.xlane.f32.xlu1 %v2160_v53  ;;  %v2065_v59 = vmul.f32 %v5427_v3, %v5079_v14  ;;  %v2161_v41 = vmul.f32 %v5427_v3, %v5427_v3 }
 0x53c   :  { %6229 = vst [vmem:[#allocation56_spill] sm:$0xff] %v5433_v19  ;;  %2115 = vadd.xlane.f32.xlu0 %v2065_v59  ;;  %v2066_v20 = vmul.f32 %v5433_v19, %v5081_v37  ;;  %v2162_v59 = vmul.f32 %v5433_v19, %v5433_v19  ;;  %v5451_v14 = vpop.xlane.xlu1 %2281 }
 0x53d   :  { %v5457_v3 = vpop.xlane.xlu0 %2283 }
 0x53e   :  { %v3087_v29 = vpop.f32.mrb[72].mxu0  ;;  %2117 = vadd.xlane.f32.xlu1 %v2066_v20 }
 0x53f   :  { %v3088_v10 = vpop.f32.mrb[73].mxu0 }
 0x540   :  { %v5447_v53 = vadd.f32 %v3088_v10, %v3087_v29  ;;  %v3090_v7 = vpop.f32.mrb[74].mxu0  ;;  %2211 = vadd.xlane.f32.xlu0 %v2161_v41  ;;  %v5461_v10 = vpop.xlane.xlu1 %2285 }
 0x541   :  { %v3091_v37 = vpop.f32.mrb[75].mxu0  ;;  %v5465_v35 = vpop.xlane.xlu0 %2287 }
 0x542   :  { %6230 = vst [vmem:[#allocation57_spill] sm:$0xff] %v5447_v53  ;;  %v5453_v51 = vadd.f32 %v3091_v37, %v3090_v7  ;;  %2213 = vadd.xlane.f32.xlu1 %v2162_v59  ;;  %v2067_v20 = vmul.f32 %v5447_v53, %v5095_v13  ;;  %v2163_v19 = vmul.f32 %v5447_v53, %v5447_v53 }
 0x544   :  { %6231 = vst [vmem:[#allocation58_spill] sm:$0xff] %v5453_v51  ;;  %2119 = vadd.xlane.f32.xlu0 %v2067_v20  ;;  %v2068_v29 = vmul.f32 %v5453_v51, %v5097_v39  ;;  %v2164_v20 = vmul.f32 %v5453_v51, %v5453_v51  ;;  %v5471_v13 = vpop.xlane.xlu1 %2289 }
 0x545   :  { %v5477_v53 = vpop.xlane.xlu0 %2291 }
 0x546   :  { %v3093_v41 = vpop.f32.mrb[76].mxu0  ;;  %2121 = vadd.xlane.f32.xlu1 %v2068_v29 }
 0x547   :  { %v3094_v37 = vpop.f32.mrb[77].mxu0 }
 0x548   :  { %v5467_v7 = vadd.f32 %v3094_v37, %v3093_v41  ;;  %v3096_v59 = vpop.f32.mrb[78].mxu0  ;;  %2215 = vadd.xlane.f32.xlu0 %v2163_v19  ;;  %v5481_v37 = vpop.xlane.xlu1 %2293 }
 0x549   :  { %v3097_v39 = vpop.f32.mrb[79].mxu0  ;;  %v5485_v31 = vpop.xlane.xlu0 %2295 }
 0x54a   :  { %6232 = vst [vmem:[#allocation59_spill] sm:$0xff] %v5467_v7  ;;  %v5473_v33 = vadd.f32 %v3097_v39, %v3096_v59  ;;  %2217 = vadd.xlane.f32.xlu1 %v2164_v20  ;;  %v2069_v29 = vmul.f32 %v5467_v7, %v5111_v52  ;;  %v2165_v51 = vmul.f32 %v5467_v7, %v5467_v7 }
 0x54c   :  { %6233 = vst [vmem:[#allocation60_spill] sm:$0xff] %v5473_v33  ;;  %2123 = vadd.xlane.f32.xlu0 %v2069_v29  ;;  %v2070_v41 = vmul.f32 %v5473_v33, %v5113_v40  ;;  %v2166_v29 = vmul.f32 %v5473_v33, %v5473_v33  ;;  %v5491_v52 = vpop.xlane.xlu1 %2297 }
 0x54d   :  { %v5497_v7 = vpop.xlane.xlu0 %2299 }
 0x54e   :  { %v3099_v19 = vpop.f32.mrb[80].mxu0  ;;  %2125 = vadd.xlane.f32.xlu1 %v2070_v41 }
 0x54f   :  { %v3100_v39 = vpop.f32.mrb[81].mxu0 }
 0x550   :  { %v5487_v59 = vadd.f32 %v3100_v39, %v3099_v19  ;;  %v3102_v20 = vpop.f32.mrb[82].mxu0  ;;  %2219 = vadd.xlane.f32.xlu0 %v2165_v51  ;;  %v5501_v39 = vpop.xlane.xlu1 %2301 }
 0x551   :  { %v3103_v40 = vpop.f32.mrb[83].mxu0 }
 0x552   :  { %6234 = vst [vmem:[#allocation61_spill] sm:$0xff] %v5487_v59  ;;  %v5493_v49 = vadd.f32 %v3103_v40, %v3102_v20  ;;  %2221 = vadd.xlane.f32.xlu1 %v2166_v29  ;;  %v2071_v41 = vmul.f32 %v5487_v59, %v5127_v27  ;;  %v2167_v33 = vmul.f32 %v5487_v59, %v5487_v59  ;;  %v5509_v27 = vpop.xlane.xlu0 %2303 }
 0x554   :  { %6235 = vst [vmem:[#allocation62_spill] sm:$0xff] %v5493_v49  ;;  %2127 = vadd.xlane.f32.xlu0 %v2071_v41  ;;  %v2072_v19 = vmul.f32 %v5493_v49, %v5129_v2  ;;  %v2168_v29 = vmul.f32 %v5493_v49, %v5493_v49  ;;  %v5515_v2 = vpop.xlane.xlu1 %2305 }
 0x555   :  { %6238 = vst [vmem:[#allocation65_spill] sm:$0xff] %v5515_v2 }
 0x556   :  { %v3105_v51 = vpop.f32.mrb[84].mxu0  ;;  %2129 = vadd.xlane.f32.xlu1 %v2072_v19  ;;  %v5521_v49 = vpop.xlane.xlu0 %2307 }
 0x557   :  { %v3106_v26 = vpop.f32.mrb[85].mxu0  ;;  %6239 = vst [vmem:[#allocation66_spill] sm:$0xff] %v5521_v49  ;;  %v2436_v49 = vmax.f32 %v5451_v14, 1e-16 }
 0x558   :  { %v5505_v40 = vadd.f32 %v3106_v26, %v3105_v51  ;;  %v3108_v20 = vpop.f32.mrb[86].mxu0  ;;  %2223 = vadd.xlane.f32.xlu0 %v2167_v33 }
 0x559   :  { %v3109_v41 = vpop.f32.mrb[87].mxu0 }
 0x55a   :  { %6236 = vst [vmem:[#allocation63_spill] sm:$0xff] %v5505_v40  ;;  %v5511_v36 = vadd.f32 %v3109_v41, %v3108_v20  ;;  %2225 = vadd.xlane.f32.xlu1 %v2168_v29  ;;  %v2073_v19 = vmul.f32 %v5505_v40, %v5142_v45  ;;  %v2169_v33 = vmul.f32 %v5505_v40, %v5505_v40  ;;  %v5527_v45 = vpop.xlane.xlu1 %2309 }
 0x55b   :  { %6241 = vst [vmem:[#allocation68_spill] sm:$0xff] %v5527_v45 }
 0x55c   :  { %6237 = vst [vmem:[#allocation64_spill] sm:$0xff] %v5511_v36  ;;  %2131 = vadd.xlane.f32.xlu0 %v2073_v19  ;;  %v2074_v26 = vmul.f32 %v5511_v36, %v5144_v46  ;;  %v2170_v41 = vmul.f32 %v5511_v36, %v5511_v36 }
 0x55e   :  { %v3111_v51 = vpop.f32.mrb[88].mxu0  ;;  %2133 = vadd.xlane.f32.xlu1 %v2074_v26  ;;  %v5539_v36 = vpop.xlane.xlu1 %2313 }
 0x55f   :  { %v3112_v59 = vpop.f32.mrb[89].mxu0  ;;  %6244 = vst [vmem:[#allocation71_spill] sm:$0xff] %v5539_v36  ;;  %v2434_v36 = vmax.f32 %v5441_v21, 1e-16 }
 0x560   :  { %v5523_v20 = vadd.f32 %v3112_v59, %v3111_v51  ;;  %v3114_v29 = vpop.f32.mrb[90].mxu0  ;;  %2227 = vadd.xlane.f32.xlu0 %v2169_v33  ;;  %v5535_v59 = vpop.xlane.xlu0 %2311 }
 0x561   :  { %v3115_v19 = vpop.f32.mrb[91].mxu0  ;;  %6243 = vst [vmem:[#allocation70_spill] sm:$0xff] %v5535_v59 }
 0x562   :  { %6240 = vst [vmem:[#allocation67_spill] sm:$0xff] %v5523_v20  ;;  %v5529_v2 = vadd.f32 %v3115_v19, %v3114_v29  ;;  %2229 = vadd.xlane.f32.xlu1 %v2170_v41  ;;  %v2075_v26 = vmul.f32 %v5523_v20, %v5157_v38  ;;  %v2171_v33 = vmul.f32 %v5523_v20, %v5523_v20 }
 0x564   :  { %6242 = vst [vmem:[#allocation69_spill] sm:$0xff] %v5529_v2  ;;  %2135 = vadd.xlane.f32.xlu0 %v2075_v26  ;;  %v2076_v46 = vmul.f32 %v5529_v2, %v5159_v56  ;;  %v2172_v19 = vmul.f32 %v5529_v2, %v5529_v2  ;;  %v5549_v56 = vpop.xlane.xlu0 %2315 }
 0x565   :  { %6247 = vst [vmem:[#allocation74_spill] sm:$0xff] %v5549_v56 }
 0x566   :  { %v3117_v51 = vpop.f32.mrb[92].mxu0  ;;  %2137 = vadd.xlane.f32.xlu1 %v2076_v46 }
 0x567   :  { %v3118_v40 = vpop.f32.mrb[93].mxu0 }
 0x568   :  { %v5541_v29 = vadd.f32 %v3118_v40, %v3117_v51  ;;  %v3120_v41 = vpop.f32.mrb[94].mxu0  ;;  %2231 = vadd.xlane.f32.xlu0 %v2171_v33  ;;  %v5553_v40 = vpop.xlane.xlu1 %2317 }
 0x569   :  { %v3121_v26 = vpop.f32.mrb[95].mxu0  ;;  %6248 = vst [vmem:[#allocation75_spill] sm:$0xff] %v5553_v40 }
 0x56a   :  { %6245 = vst [vmem:[#allocation72_spill] sm:$0xff] %v5541_v29  ;;  %v5545_v38 = vadd.f32 %v3121_v26, %v3120_v41  ;;  %2233 = vadd.xlane.f32.xlu1 %v2172_v19  ;;  %v2077_v46 = vmul.f32 %v5541_v29, %v5181_v34  ;;  %v2173_v51 = vmul.f32 %v5541_v29, %v5541_v29  ;;  %v5559_v41 = vpop.xlane.xlu0 %2319 }
 0x56b   :  { %6249 = vst [vmem:[#allocation76_spill] sm:$0xff] %v5559_v41  ;;  %v2269_v19 = vmul.f32 %v5181_v34, %v5181_v34  ;;  %v2431_v41 = vmax.f32 %v5425_v32, 1e-16 }
 0x56c   :  { %6246 = vst [vmem:[#allocation73_spill] sm:$0xff] %v5545_v38  ;;  %2139 = vadd.xlane.f32.xlu0 %v2077_v46  ;;  %v2078_v20 = vmul.f32 %v5545_v38, %v5183_v11  ;;  %v2174_v33 = vmul.f32 %v5545_v38, %v5545_v38  ;;  %v5563_v26 = vpop.xlane.xlu1 %2321  ;;  %v2270_v46 = vmul.f32 %v5183_v11, %v5183_v11 }
 0x56d   :  { %6250 = vst [vmem:[#allocation77_spill] sm:$0xff] %v5563_v26 }
 0x56e   :  { %2141 = vadd.xlane.f32.xlu1 %v2078_v20  ;;  %v5567_v20 = vpop.xlane.xlu0 %2323 }
 0x56f   :  { %6251 = vst [vmem:[#allocation78_spill] sm:$0xff] %v5567_v20 }
 0x570   :  { %2235 = vadd.xlane.f32.xlu0 %v2173_v51  ;;  %v5569_v29 = vpop.xlane.xlu1 %2325 }
 0x571   :  { %6252 = vst [vmem:[#allocation79_spill] sm:$0xff] %v5569_v29 }
 0x572   :  { %2237 = vadd.xlane.f32.xlu1 %v2174_v33  ;;  %v5571_v51 = vpop.xlane.xlu0 %2327 }
 0x573   :  { %6253 = vst [vmem:[#allocation80_spill] sm:$0xff] %v5571_v51  ;;  %v2433_v51 = vmax.f32 %v5437_v4, 1e-16  ;;  %v2435_v4 = vmax.f32 %v5445_v6, 1e-16 }
 0x574   :  { %2331 = vadd.xlane.f32.xlu0 %v2269_v19  ;;  %v5573_v38 = vpop.xlane.xlu1 %2329  ;;  %v2432_v19 = vmax.f32 %v5431_v48, 1e-16 }
 0x575   :  { %6254 = vst [vmem:[#allocation81_spill] sm:$0xff] %v5573_v38 }
 0x576   :  { %2333 = vadd.xlane.f32.xlu1 %v2270_v46 }
 0x581   :  { %v2080_v2 = vpop.xlane.xlu0 %2079 }
 0x583   :  { %v2082_v33 = vpop.xlane.xlu1 %2081 }
 0x585   :  { %v2176_v34 = vpop.xlane.xlu0 %2175 }
 0x586   :  { %v2335_v40 = vmax.f32 %v2176_v34, 1e-16 }
 0x587   :  { %v2178_v26 = vpop.xlane.xlu1 %2177 }
 0x588   :  { %3443 = vrsqrt.f32 %v2335_v40  ;;  %v2336_v11 = vmax.f32 %v2178_v26, 1e-16 }
 0x589   :  { %3445 = vrsqrt.f32 %v2431_v41  ;;  %v2084_v46 = vpop.xlane.xlu0 %2083 }
 0x58a   :  { %3447 = vrsqrt.f32 %v2336_v11 }
 0x58b   :  { %v2086_v20 = vpop.xlane.xlu1 %2085  ;;  %3449 = vrsqrt.f32 %v2432_v19 }
 0x58d   :  { %v2180_v29 = vpop.xlane.xlu0 %2179 }
 0x58e   :  { %v2337_v38 = vmax.f32 %v2180_v29, 1e-16 }
 0x58f   :  { %v2182_v56 = vpop.xlane.xlu1 %2181 }
 0x590   :  { %3451 = vrsqrt.f32 %v2337_v38  ;;  %v2338_v32 = vmax.f32 %v2182_v56, 1e-16 }
 0x591   :  { %3453 = vrsqrt.f32 %v2433_v51  ;;  %v5579_v34 = vpop.xlane.xlu0 %2087 }
 0x592   :  { %v3444_v48 = vpop.eup %3443  ;;  %3455 = vrsqrt.f32 %v2338_v32 }
 0x593   :  { %v3446_v40 = vpop.eup %3445  ;;  %v2399_v41 = vmul.f32 %v3444_v48, %v2080_v2  ;;  %v5581_v26 = vpop.xlane.xlu1 %2089  ;;  %3457 = vrsqrt.f32 %v2434_v36 }
 0x594   :  { %v3448_v11 = vpop.eup %3447 }
 0x595   :  { %v2495_v19 = vmul.f32 %v3446_v40, %v2399_v41  ;;  %v2400_v29 = vmul.f32 %v3448_v11, %v2082_v33  ;;  %v2184_v59 = vpop.xlane.xlu0 %2183  ;;  %v3450_v45 = vpop.eup %3449  ;;  %v2437_v33 = vmax.f32 %v5457_v3, 1e-16  ;;  %v1838_v11 = vadd.f32 %v4972_v44, %v4312_v55 }
 0x596   :  { %v2339_v21 = vmax.f32 %v2184_v59, 1e-16  ;;  %v2438_v55 = vmax.f32 %v5461_v10, 1e-16 }
 0x597   :  { %v2527_v38 = vmul.f32 %v5319_v5, %v2495_v19  ;;  %v2496_v56 = vmul.f32 %v3450_v45, %v2400_v29  ;;  %v2186_v51 = vpop.xlane.xlu1 %2185 }
 0x598   :  { %3459 = vrsqrt.f32 %v2339_v21  ;;  %v2340_v32 = vmax.f32 %v2186_v51, 1e-16 }
 0x599   :  { %3461 = vrsqrt.f32 %v2435_v4  ;;  %v2559_v2 = vmul.f32 0.5, %v2527_v38  ;;  %v2528_v48 = vmul.f32 %v5321_v22, %v2496_v56  ;;  %v5587_v36 = vpop.xlane.xlu0 %2091  ;;  %v1839_v38 = vadd.f32 %v4975_v61, %v4330_v24 }
 0x59a   :  { %v3452_v6 = vpop.eup %3451  ;;  %3463 = vrsqrt.f32 %v2340_v32 }
 0x59b   :  { %v3454_v40 = vpop.eup %3453  ;;  %v2591_v59 = vadd.f32 %v2559_v2, %v4972_v44  ;;  %v2560_v5 = vmul.f32 0.5, %v2528_v48  ;;  %v2401_v45 = vmul.f32 %v3452_v6, %v2084_v46  ;;  %v5591_v41 = vpop.xlane.xlu1 %2093  ;;  %3465 = vrsqrt.f32 %v2436_v49 }
 0x59c   :  { %v3456_v14 = vpop.eup %3455  ;;  %3467 = vrsqrt.f32 %v2437_v33 }
 0x59d   :  { %v2623_v4 = vmax.f32 %v2591_v59, 0.0  ;;  %v2592_v22 = vadd.f32 %v2560_v5, %v4975_v61  ;;  %v2497_v19 = vmul.f32 %v3454_v40, %v2401_v45  ;;  %v2402_v29 = vmul.f32 %v3456_v14, %v2086_v20  ;;  %v2188_v21 = vpop.xlane.xlu0 %2187  ;;  %v3458_v3 = vpop.eup %3457 }
 0x59e   :  { %v2341_v56 = vmax.f32 %v2188_v21, 1e-16  ;;  %v2439_v61 = vmax.f32 %v5465_v35, 1e-16 }
 0x59f   :  { %v2655_v46 = vadd.f32 %v2623_v4, %v1838_v11  ;;  %v2624_v51 = vmax.f32 %v2592_v22, 0.0  ;;  %v2529_v32 = vmul.f32 %v5329_v8, %v2497_v19  ;;  %v2498_v2 = vmul.f32 %v3458_v3, %v2402_v29  ;;  %v2190_v48 = vpop.xlane.xlu1 %2189 }
 0x5a0   :  { %3469 = vrsqrt.f32 %v2341_v56  ;;  %v2342_v44 = vmax.f32 %v2190_v48, 1e-16  ;;  %v1840_v11 = vadd.f32 %v4986_v54, %v4367_v47 }
 0x5a1   :  { %v2687_v49 = vmul.f32 0.33333334, %v2655_v46  ;;  %v2656_v6 = vadd.f32 %v2624_v51, %v1839_v38  ;;  %v2561_v20 = vmul.f32 0.5, %v2529_v32  ;;  %v2530_v40 = vmul.f32 %v5333_v57, %v2498_v2  ;;  %v5601_v59 = vpop.xlane.xlu0 %2095 }
 0x5a2   :  { %v3460_v24 = vpop.eup %3459  ;;  %3471 = vrsqrt.f32 %v2342_v44  ;;  %v2440_v32 = vmax.f32 %v5471_v13, 1e-16 }
 0x5a3   :  { %v3462_v33 = vpop.eup %3461  ;;  %2719 = vst [vmem:[%s5915_s2] sm:$0xff] %v2687_v49  ;;  %v2688_v8 = vmul.f32 0.33333334, %v2656_v6  ;;  %v2593_v10 = vadd.f32 %v2561_v20, %v4986_v54  ;;  %v2562_v5 = vmul.f32 0.5, %v2530_v40  ;;  %v2403_v45 = vmul.f32 %v3460_v24, %v5579_v34  ;;  %v5609_v14 = vpop.xlane.xlu1 %2097 }
 0x5a4   :  { %v3464_v57 = vpop.eup %3463  ;;  %3473 = vrsqrt.f32 %v2438_v55  ;;  %v1841_v34 = vadd.f32 %v4989_v42, %v4365_v60 }
 0x5a5   :  { %2720 = vst [vmem:[%s5915_s2 + $0x8] sm:$0xff] %v2688_v8  ;;  %v2625_v35 = vmax.f32 %v2593_v10, 0.0  ;;  %v2594_v4 = vadd.f32 %v2562_v5, %v4989_v42  ;;  %v2499_v22 = vmul.f32 %v3462_v33, %v2403_v45  ;;  %v2404_v19 = vmul.f32 %v3464_v57, %v5581_v26  ;;  %v2192_v29 = vpop.xlane.xlu0 %2191  ;;  %v3466_v21 = vpop.eup %3465 }
 0x5a6   :  { %3475 = vrsqrt.f32 %v2439_v61  ;;  %v2343_v3 = vmax.f32 %v2192_v29, 1e-16  ;;  %v3468_v51 = vpop.eup %3467  ;;  %v2441_v42 = vmax.f32 %v5477_v53, 1e-16 }
 0x5a7   :  { %v2657_v38 = vadd.f32 %v2625_v35, %v1840_v11  ;;  %v2626_v47 = vmax.f32 %v2594_v4, 0.0  ;;  %v2531_v54 = vmul.f32 %v5341_v23, %v2499_v22  ;;  %v2500_v56 = vmul.f32 %v3466_v21, %v2404_v19  ;;  %v2194_v46 = vpop.xlane.xlu1 %2193 }
 0x5a8   :  { %3477 = vrsqrt.f32 %v2343_v3  ;;  %v2344_v2 = vmax.f32 %v2194_v46, 1e-16  ;;  %v2442_v22 = vmax.f32 %v5481_v37, 1e-16 }
 0x5a9   :  { %v2689_v48 = vmul.f32 0.33333334, %v2657_v38  ;;  %v2658_v26 = vadd.f32 %v2626_v47, %v1841_v34  ;;  %v2563_v55 = vmul.f32 0.5, %v2531_v54  ;;  %v2532_v44 = vmul.f32 %v5345_v58, %v2500_v56  ;;  %v5623_v49 = vpop.xlane.xlu0 %2099 }
 0x5aa   :  { %v3470_v60 = vpop.eup %3469  ;;  %3479 = vrsqrt.f32 %v2344_v2  ;;  %v1842_v58 = vadd.f32 %v5000_v63, %v4409_v62 }
 0x5ab   :  { %2721 = vst [vmem:[%s5915_s2 + $0x10] sm:$0xff] %v2689_v48  ;;  %v2690_v23 = vmul.f32 0.33333334, %v2658_v26  ;;  %v2595_v13 = vadd.f32 %v2563_v55, %v5000_v63  ;;  %v2564_v6 = vmul.f32 0.5, %v2532_v44  ;;  %v2405_v20 = vmul.f32 %v3470_v60, %v5587_v36  ;;  %v5631_v40 = vpop.xlane.xlu1 %2101 }
 0x5ac   :  { %v3472_v24 = vpop.eup %3471  ;;  %3481 = vrsqrt.f32 %v2440_v32  ;;  %v1843_v36 = vadd.f32 %v5003_v30, %v4407_v50 }
 0x5ad   :  { %2722 = vst [vmem:[%s5915_s2 + $0x18] sm:$0xff] %v2690_v23  ;;  %v2627_v53 = vmax.f32 %v2595_v13, 0.0  ;;  %v2596_v61 = vadd.f32 %v2564_v6, %v5003_v30  ;;  %v2501_v33 = vmul.f32 %v3468_v51, %v2405_v20  ;;  %v2406_v8 = vmul.f32 %v3472_v24, %v5591_v41  ;;  %v2196_v10 = vpop.xlane.xlu0 %2195 }
 0x5ae   :  { %v3474_v5 = vpop.eup %3473  ;;  %3483 = vrsqrt.f32 %v2441_v42  ;;  %v2345_v45 = vmax.f32 %v2196_v10, 1e-16  ;;  %v2443_v30 = vmax.f32 %v5485_v31, 1e-16  ;;  %v2444_v23 = vmax.f32 %v5491_v52, 1e-16 }
 0x5af   :  { %v2659_v57 = vadd.f32 %v2627_v53, %v1842_v58  ;;  %v2628_v62 = vmax.f32 %v2596_v61, 0.0  ;;  %v2533_v63 = vmul.f32 %v5353_v17, %v2501_v33  ;;  %v2502_v11 = vmul.f32 %v3474_v5, %v2406_v8  ;;  %v2198_v35 = vpop.xlane.xlu1 %2197 }
 0x5b0   :  { %v3476_v4 = vpop.eup %3475  ;;  %3485 = vrsqrt.f32 %v2345_v45  ;;  %v2346_v19 = vmax.f32 %v2198_v35, 1e-16 }
 0x5b1   :  { %v2691_v29 = vmul.f32 0.33333334, %v2659_v57  ;;  %v2660_v41 = vadd.f32 %v2628_v62, %v1843_v36  ;;  %v2565_v21 = vmul.f32 0.5, %v2533_v63  ;;  %v2534_v34 = vmul.f32 %v5357_v1, %v2502_v11  ;;  %v5645_v3 = vpop.xlane.xlu0 %2103 }
 0x5b2   :  { %v3478_v50 = vpop.eup %3477  ;;  %3487 = vrsqrt.f32 %v2346_v19  ;;  %v1844_v1 = vadd.f32 %v5013_v12, %v4449_v43 }
 0x5b3   :  { %2723 = vst [vmem:[%s5915_s2 + $0x20] sm:$0xff] %v2691_v29  ;;  %v2692_v17 = vmul.f32 0.33333334, %v2660_v41  ;;  %v2597_v37 = vadd.f32 %v2565_v21, %v5013_v12  ;;  %v2566_v38 = vmul.f32 0.5, %v2534_v34  ;;  %v2407_v47 = vmul.f32 %v3478_v50, %v5601_v59  ;;  %v5653_v54 = vpop.xlane.xlu1 %2105  ;;  %v6257_v50 = vld [vmem:[#allocation47_spill] sm:$0xff] }
 0x5b4   :  { %v3480_v56 = vpop.eup %3479  ;;  %3489 = vrsqrt.f32 %v2442_v22  ;;  %v1845_v59 = vadd.f32 %v5016_v15, %v4447_v28  ;;  %v2446_v29 = vmax.f32 %v5501_v39, 1e-16 }
 0x5b5   :  { %2724 = vst [vmem:[%s5915_s2 + $0x28] sm:$0xff] %v2692_v17  ;;  %v2629_v31 = vmax.f32 %v2597_v37, 0.0  ;;  %v2598_v46 = vadd.f32 %v2566_v38, %v5016_v15  ;;  %v2503_v51 = vmul.f32 %v3476_v4, %v2407_v47  ;;  %v2408_v32 = vmul.f32 %v3480_v56, %v5609_v14  ;;  %v2200_v2 = vpop.xlane.xlu0 %2199  ;;  %v6258_v47 = vld [vmem:[#allocation54_spill] sm:$0xff] }
 0x5b6   :  { %v3482_v48 = vpop.eup %3481  ;;  %3491 = vrsqrt.f32 %v2443_v30  ;;  %v2347_v26 = vmax.f32 %v2200_v2, 1e-16  ;;  %v2445_v15 = vmax.f32 %v5497_v7, 1e-16  ;;  %v2447_v37 = vmax.f32 %v5509_v27, 1e-16 }
 0x5b7   :  { %v2661_v55 = vadd.f32 %v2629_v31, %v1844_v1  ;;  %v2630_v43 = vmax.f32 %v2598_v46, 0.0  ;;  %v2535_v12 = vmul.f32 %v5365_v16, %v2503_v51  ;;  %v2504_v44 = vmul.f32 %v3482_v48, %v2408_v32  ;;  %v2202_v60 = vpop.xlane.xlu1 %2201  ;;  %v6259_v51 = vld [vmem:[#allocation17_spill] sm:$0xff]  ;;  %v6260_v2 = vld [vmem:[#allocation55_spill] sm:$0xff] }
 0x5b8   :  { %v3484_v42 = vpop.eup %3483  ;;  %3493 = vrsqrt.f32 %v2347_v26  ;;  %v2348_v13 = vmax.f32 %v2202_v60, 1e-16  ;;  %v1848_v32 = vadd.f32 %v6258_v47, %v6259_v51 }
 0x5b9   :  { %v2693_v6 = vmul.f32 0.33333334, %v2661_v55  ;;  %v2662_v14 = vadd.f32 %v2630_v43, %v1845_v59  ;;  %v2567_v20 = vmul.f32 0.5, %v2535_v12  ;;  %v2536_v24 = vmul.f32 %v5369_v9, %v2504_v44  ;;  %v5667_v58 = vpop.xlane.xlu0 %2107 }
 0x5ba   :  { %v3486_v28 = vpop.eup %3485  ;;  %3495 = vrsqrt.f32 %v2348_v13  ;;  %v1846_v9 = vadd.f32 %v5025_v25, %v4489_v18 }
 0x5bb   :  { %2725 = vst [vmem:[%s5915_s2 + $0x30] sm:$0xff] %v2693_v6  ;;  %v2694_v16 = vmul.f32 0.33333334, %v2662_v14  ;;  %v2599_v52 = vadd.f32 %v2567_v20, %v5025_v25  ;;  %v2568_v53 = vmul.f32 0.5, %v2536_v24  ;;  %v2409_v61 = vmul.f32 %v3486_v28, %v5623_v49  ;;  %v5675_v33 = vpop.xlane.xlu1 %2109  ;;  %v6255_v49 = vld [vmem:[#allocation27_spill] sm:$0xff]  ;;  %v6256_v25 = vld [vmem:[#allocation46_spill] sm:$0xff] }
 0x5bc   :  { %v3488_v8 = vpop.eup %3487  ;;  %3497 = vrsqrt.f32 %v2444_v23  ;;  %v1847_v62 = vadd.f32 %v5030_v0, %v6255_v49  ;;  %v6262_v23 = vld [vmem:[#allocation49_spill] sm:$0xff] }
 0x5bd   :  { %2726 = vst [vmem:[%s5915_s2 + $0x38] sm:$0xff] %v2694_v16  ;;  %v2631_v7 = vmax.f32 %v2599_v52, 0.0  ;;  %v2600_v10 = vadd.f32 %v2568_v53, %v5030_v0  ;;  %v2505_v5 = vmul.f32 %v3484_v42, %v2409_v61  ;;  %v2410_v36 = vmul.f32 %v3488_v8, %v5631_v40  ;;  %v2204_v45 = vpop.xlane.xlu0 %2203  ;;  %v6263_v24 = vld [vmem:[#allocation65_spill] sm:$0xff]  ;;  %v6264_v53 = vld [vmem:[#allocation12_spill] sm:$0xff] }
 0x5be   :  { %v3490_v57 = vpop.eup %3489  ;;  %3499 = vrsqrt.f32 %v2445_v15  ;;  %v2349_v63 = vmax.f32 %v2204_v45, 1e-16  ;;  %v2448_v28 = vmax.f32 %v6263_v24, 1e-16 }
 0x5bf   :  { %v2663_v11 = vadd.f32 %v2631_v7, %v1846_v9  ;;  %v2632_v18 = vmax.f32 %v2600_v10, 0.0  ;;  %v2537_v35 = vmul.f32 %v6256_v25, %v2505_v5  ;;  %v2506_v4 = vmul.f32 %v3490_v57, %v2410_v36  ;;  %v2206_v22 = vpop.xlane.xlu1 %2205  ;;  %v6265_v7 = vld [vmem:[#allocation66_spill] sm:$0xff] }
 0x5c0   :  { %v3492_v19 = vpop.eup %3491  ;;  %3501 = vrsqrt.f32 %v2349_v63  ;;  %v2350_v41 = vmax.f32 %v2206_v22, 1e-16  ;;  %v2449_v10 = vmax.f32 %v6265_v7, 1e-16  ;;  %v6266_v36 = vld [vmem:[#allocation38_spill] sm:$0xff] }
 0x5c1   :  { %v2695_v21 = vmul.f32 0.33333334, %v2663_v11  ;;  %v2664_v40 = vadd.f32 %v2632_v18, %v1847_v62  ;;  %v2569_v34 = vmul.f32 0.5, %v2537_v35  ;;  %v2538_v30 = vmul.f32 %v6257_v50, %v2506_v4  ;;  %v5689_v17 = vpop.xlane.xlu0 %2111  ;;  %v6267_v11 = vld [vmem:[#allocation10_spill] sm:$0xff]  ;;  %v6268_v35 = vld [vmem:[#allocation53_spill] sm:$0xff] }
 0x5c2   :  { %v3494_v0 = vpop.eup %3493  ;;  %3503 = vrsqrt.f32 %v2350_v41  ;;  %v1850_v18 = vadd.f32 %v6266_v36, %v6267_v11 }
 0x5c3   :  { %2727 = vst [vmem:[%s5915_s2 + $0x40] sm:$0xff] %v2695_v21  ;;  %v2696_v38 = vmul.f32 0.33333334, %v2664_v40  ;;  %v2601_v39 = vadd.f32 %v2569_v34, %v6258_v47  ;;  %v2570_v56 = vmul.f32 0.5, %v2538_v30  ;;  %v2411_v1 = vmul.f32 %v3494_v0, %v5645_v3  ;;  %v5697_v31 = vpop.xlane.xlu1 %2113  ;;  %v6261_v3 = vld [vmem:[#allocation16_spill] sm:$0xff]  ;;  %v6270_v30 = vld [vmem:[#allocation15_spill] sm:$0xff] }
 0x5c4   :  { %v3496_v46 = vpop.eup %3495  ;;  %3505 = vrsqrt.f32 %v2446_v29  ;;  %v1849_v12 = vadd.f32 %v6260_v2, %v6261_v3 }
 0x5c5   :  { %2728 = vst [vmem:[%s5915_s2 + $0x48] sm:$0xff] %v2696_v38  ;;  %v2633_v27 = vmax.f32 %v2601_v39, 0.0  ;;  %v2602_v48 = vadd.f32 %v2570_v56, %v6260_v2  ;;  %v2507_v59 = vmul.f32 %v3492_v19, %v2411_v1  ;;  %v2412_v26 = vmul.f32 %v3496_v46, %v5653_v54  ;;  %v2208_v55 = vpop.xlane.xlu0 %2207  ;;  %v6271_v39 = vld [vmem:[#allocation68_spill] sm:$0xff] }
 0x5c6   :  { %v3498_v43 = vpop.eup %3497  ;;  %3507 = vrsqrt.f32 %v2447_v37  ;;  %v2351_v44 = vmax.f32 %v2208_v55, 1e-16  ;;  %v2450_v56 = vmax.f32 %v6271_v39, 1e-16 }
 0x5c7   :  { %v2665_v60 = vadd.f32 %v2633_v27, %v1848_v32  ;;  %v2634_v42 = vmax.f32 %v2602_v48, 0.0  ;;  %v2539_v13 = vmul.f32 %v6262_v23, %v2507_v59  ;;  %v2508_v6 = vmul.f32 %v3498_v43, %v2412_v26  ;;  %v2210_v14 = vpop.xlane.xlu1 %2209  ;;  %v6272_v32 = vld [vmem:[#allocation51_spill] sm:$0xff]  ;;  %v6273_v59 = vld [vmem:[#allocation70_spill] sm:$0xff] }
 0x5c8   :  { %v3500_v20 = vpop.eup %3499  ;;  %3509 = vrsqrt.f32 %v2351_v44  ;;  %v2352_v15 = vmax.f32 %v2210_v14, 1e-16  ;;  %v2451_v26 = vmax.f32 %v6273_v59, 1e-16  ;;  %v6274_v43 = vld [vmem:[#allocation43_spill] sm:$0xff]  ;;  %v6275_v23 = vld [vmem:[#allocation14_spill] sm:$0xff] }
 0x5c9   :  { %v2697_v16 = vmul.f32 0.33333334, %v2665_v60  ;;  %v2666_v54 = vadd.f32 %v2634_v42, %v1849_v12  ;;  %v2571_v52 = vmul.f32 0.5, %v2539_v13  ;;  %v2540_v61 = vmul.f32 %v6264_v53, %v2508_v6  ;;  %v5711_v8 = vpop.xlane.xlu0 %2115  ;;  %v6276_v14 = vld [vmem:[#allocation44_spill] sm:$0xff] }
 0x5ca   :  { %v3502_v9 = vpop.eup %3501  ;;  %3511 = vrsqrt.f32 %v2352_v15  ;;  %v1852_v13 = vadd.f32 %v6274_v43, %v6275_v23 }
 0x5cb   :  { %2729 = vst [vmem:[%s5915_s2 + $0x50] sm:$0xff] %v2697_v16  ;;  %v2698_v5 = vmul.f32 0.33333334, %v2666_v54  ;;  %v2603_v45 = vadd.f32 %v2571_v52, %v6266_v36  ;;  %v2572_v57 = vmul.f32 0.5, %v2540_v61  ;;  %v2413_v49 = vmul.f32 %v3502_v9, %v5667_v58  ;;  %v5719_v62 = vpop.xlane.xlu1 %2117  ;;  %v6269_v58 = vld [vmem:[#allocation20_spill] sm:$0xff] }
 0x5cc   :  { %v3504_v63 = vpop.eup %3503  ;;  %3513 = vrsqrt.f32 %v2448_v28  ;;  %v1851_v21 = vadd.f32 %v6268_v35, %v6269_v58  ;;  %v6278_v9 = vld [vmem:[#allocation52_spill] sm:$0xff] }
 0x5cd   :  { %2730 = vst [vmem:[%s5915_s2 + $0x58] sm:$0xff] %v2698_v5  ;;  %v2635_v25 = vmax.f32 %v2603_v45, 0.0  ;;  %v2604_v4 = vadd.f32 %v2572_v57, %v6268_v35  ;;  %v2509_v22 = vmul.f32 %v3500_v20, %v2413_v49  ;;  %v2414_v19 = vmul.f32 %v3504_v63, %v5675_v33  ;;  %v2212_v29 = vpop.xlane.xlu0 %2211  ;;  %v6279_v45 = vld [vmem:[#allocation71_spill] sm:$0xff] }
 0x5ce   :  { %v3506_v41 = vpop.eup %3505  ;;  %3515 = vrsqrt.f32 %v2449_v10  ;;  %v2353_v40 = vmax.f32 %v2212_v29, 1e-16  ;;  %v2452_v57 = vmax.f32 %v6279_v45, 1e-16 }
 0x5cf   :  { %v2667_v34 = vadd.f32 %v2635_v25, %v1850_v18  ;;  %v2636_v50 = vmax.f32 %v2604_v4, 0.0  ;;  %v2541_v0 = vmul.f32 %v6270_v30, %v2509_v22  ;;  %v2510_v37 = vmul.f32 %v3506_v41, %v2414_v19  ;;  %v2214_v38 = vpop.xlane.xlu1 %2213  ;;  %v6280_v18 = vld [vmem:[#allocation13_spill] sm:$0xff]  ;;  %v6281_v22 = vld [vmem:[#allocation74_spill] sm:$0xff] }
 0x5d0   :  { %v3508_v47 = vpop.eup %3507  ;;  %3517 = vrsqrt.f32 %v2353_v40  ;;  %v2354_v1 = vmax.f32 %v2214_v38, 1e-16  ;;  %v2453_v19 = vmax.f32 %v6281_v22, 1e-16  ;;  %v6282_v41 = vld [vmem:[#allocation29_spill] sm:$0xff]  ;;  %v6284_v38 = vld [vmem:[#allocation36_spill] sm:$0xff] }
 0x5d1   :  { %v2699_v46 = vmul.f32 0.33333334, %v2667_v34  ;;  %v2668_v33 = vadd.f32 %v2636_v50, %v1851_v21  ;;  %v2573_v51 = vmul.f32 0.5, %v2541_v0  ;;  %v2542_v27 = vmul.f32 %v6272_v32, %v2510_v37  ;;  %v5733_v2 = vpop.xlane.xlu0 %2119  ;;  %v6283_v30 = vld [vmem:[#allocation21_spill] sm:$0xff] }
 0x5d2   :  { %v3510_v48 = vpop.eup %3509  ;;  %3519 = vrsqrt.f32 %v2354_v1  ;;  %v1854_v0 = vadd.f32 %v6282_v41, %v6283_v30 }
 0x5d3   :  { %2731 = vst [vmem:[%s5915_s2 + $0x60] sm:$0xff] %v2699_v46  ;;  %v2700_v55 = vmul.f32 0.33333334, %v2668_v33  ;;  %v2605_v3 = vadd.f32 %v2573_v51, %v6274_v43  ;;  %v2574_v12 = vmul.f32 0.5, %v2542_v27  ;;  %v2415_v44 = vmul.f32 %v3510_v48, %v5689_v17  ;;  %v5741_v60 = vpop.xlane.xlu1 %2121  ;;  %v6277_v17 = vld [vmem:[#allocation9_spill] sm:$0xff]  ;;  %v6286_v48 = vld [vmem:[#allocation28_spill] sm:$0xff] }
 0x5d4   :  { %v3512_v42 = vpop.eup %3511  ;;  %3521 = vrsqrt.f32 %v2450_v56  ;;  %v1853_v54 = vadd.f32 %v6276_v14, %v6277_v17 }
 0x5d5   :  { %2732 = vst [vmem:[%s5915_s2 + $0x68] sm:$0xff] %v2700_v55  ;;  %v2637_v6 = vmax.f32 %v2605_v3, 0.0  ;;  %v2606_v20 = vadd.f32 %v2574_v12, %v6276_v14  ;;  %v2511_v24 = vmul.f32 %v3508_v47, %v2415_v44  ;;  %v2416_v28 = vmul.f32 %v3512_v42, %v5697_v31  ;;  %v2216_v15 = vpop.xlane.xlu0 %2215  ;;  %v6287_v3 = vld [vmem:[#allocation75_spill] sm:$0xff] }
 0x5d6   :  { %v3514_v16 = vpop.eup %3513  ;;  %3523 = vrsqrt.f32 %v2451_v26  ;;  %v2355_v52 = vmax.f32 %v2216_v15, 1e-16  ;;  %v2454_v12 = vmax.f32 %v6287_v3, 1e-16 }
 0x5d7   :  { %v2669_v53 = vadd.f32 %v2637_v6, %v1852_v13  ;;  %v2638_v61 = vmax.f32 %v2606_v20, 0.0  ;;  %v2543_v7 = vmul.f32 %v6278_v9, %v2511_v24  ;;  %v2512_v10 = vmul.f32 %v3514_v16, %v2416_v28  ;;  %v2218_v5 = vpop.xlane.xlu1 %2217  ;;  %v6288_v13 = vld [vmem:[#allocation56_spill] sm:$0xff]  ;;  %v6290_v16 = vld [vmem:[#allocation30_spill] sm:$0xff] }
 0x5d8   :  { %v3516_v36 = vpop.eup %3515  ;;  %3525 = vrsqrt.f32 %v2355_v52  ;;  %v2356_v49 = vmax.f32 %v2218_v5, 1e-16  ;;  %v6289_v24 = vld [vmem:[#allocation76_spill] sm:$0xff]  ;;  %v6292_v5 = vld [vmem:[#allocation37_spill] sm:$0xff] }
 0x5d9   :  { %v2701_v63 = vmul.f32 0.33333334, %v2669_v53  ;;  %v2670_v31 = vadd.f32 %v2638_v61, %v1853_v54  ;;  %v2575_v11 = vmul.f32 0.5, %v2543_v7  ;;  %v2544_v25 = vmul.f32 %v6280_v18, %v2512_v10  ;;  %v5755_v35 = vpop.xlane.xlu0 %2123  ;;  %v6291_v9 = vld [vmem:[#allocation24_spill] sm:$0xff] }
 0x5da   :  { %v3518_v4 = vpop.eup %3517  ;;  %3527 = vrsqrt.f32 %v2356_v49  ;;  %v2455_v28 = vmax.f32 %v6289_v24, 1e-16  ;;  %v1856_v7 = vadd.f32 %v6290_v16, %v6291_v9 }
 0x5db   :  { %2733 = vst [vmem:[%s5915_s2 + $0x70] sm:$0xff] %v2701_v63  ;;  %v2702_v29 = vmul.f32 0.33333334, %v2670_v31  ;;  %v2607_v58 = vadd.f32 %v2575_v11, %v6282_v41  ;;  %v2576_v21 = vmul.f32 0.5, %v2544_v25  ;;  %v2417_v40 = vmul.f32 %v3518_v4, %v5711_v8  ;;  %v5763_v34 = vpop.xlane.xlu1 %2125  ;;  %v6285_v8 = vld [vmem:[#allocation22_spill] sm:$0xff]  ;;  %v6294_v4 = vld [vmem:[#allocation57_spill] sm:$0xff] }
 0x5dc   :  { %v3520_v50 = vpop.eup %3519  ;;  %3529 = vrsqrt.f32 %v2452_v57  ;;  %v1855_v33 = vadd.f32 %v6284_v38, %v6285_v8 }
 0x5dd   :  { %2734 = vst [vmem:[%s5915_s2 + $0x78] sm:$0xff] %v2702_v29  ;;  %v2639_v37 = vmax.f32 %v2607_v58, 0.0  ;;  %v2608_v47 = vadd.f32 %v2576_v21, %v6284_v38  ;;  %v2513_v39 = vmul.f32 %v3516_v36, %v2417_v40  ;;  %v2418_v56 = vmul.f32 %v3520_v50, %v5719_v62  ;;  %v2220_v1 = vpop.xlane.xlu0 %2219  ;;  %v6295_v58 = vld [vmem:[#allocation77_spill] sm:$0xff] }
 0x5de   :  { %v3522_v46 = vpop.eup %3521  ;;  %3531 = vrsqrt.f32 %v2453_v19  ;;  %v2357_v51 = vmax.f32 %v2220_v1, 1e-16  ;;  %v2456_v21 = vmax.f32 %v6295_v58, 1e-16 }
 0x5df   :  { %v2671_v32 = vadd.f32 %v2639_v37, %v1854_v0  ;;  %v2640_v27 = vmax.f32 %v2608_v47, 0.0  ;;  %v2545_v59 = vmul.f32 %v6286_v48, %v2513_v39  ;;  %v2514_v26 = vmul.f32 %v3522_v46, %v2418_v56  ;;  %v2222_v55 = vpop.xlane.xlu1 %2221  ;;  %v6296_v0 = vld [vmem:[#allocation58_spill] sm:$0xff]  ;;  %v6298_v46 = vld [vmem:[#allocation31_spill] sm:$0xff] }
 0x5e0   :  { %v3524_v43 = vpop.eup %3523  ;;  %3533 = vrsqrt.f32 %v2357_v51  ;;  %v2358_v44 = vmax.f32 %v2222_v55, 1e-16  ;;  %v6297_v39 = vld [vmem:[#allocation78_spill] sm:$0xff]  ;;  %v6300_v55 = vld [vmem:[#allocation40_spill] sm:$0xff] }
 0x5e1   :  { %v2703_v42 = vmul.f32 0.33333334, %v2671_v32  ;;  %v2672_v62 = vadd.f32 %v2640_v27, %v1855_v33  ;;  %v2577_v23 = vmul.f32 0.5, %v2545_v59  ;;  %v2546_v6 = vmul.f32 %v6288_v13, %v2514_v26  ;;  %v5777_v14 = vpop.xlane.xlu0 %2127  ;;  %v6299_v48 = vld [vmem:[#allocation2_spill] sm:$0xff] }
 0x5e2   :  { %v3526_v20 = vpop.eup %3525  ;;  %3535 = vrsqrt.f32 %v2358_v44  ;;  %v2457_v56 = vmax.f32 %v6297_v39, 1e-16  ;;  %v1858_v59 = vadd.f32 %v6298_v46, %v6299_v48 }
 0x5e3   :  { %2735 = vst [vmem:[%s5915_s2 + $0x80] sm:$0xff] %v2703_v42  ;;  %v2704_v15 = vmul.f32 0.33333334, %v2672_v62  ;;  %v2609_v17 = vadd.f32 %v2577_v23, %v6290_v16  ;;  %v2578_v54 = vmul.f32 0.5, %v2546_v6  ;;  %v2419_v52 = vmul.f32 %v3526_v20, %v5733_v2  ;;  %v5785_v53 = vpop.xlane.xlu1 %2129  ;;  %v6293_v2 = vld [vmem:[#allocation23_spill] sm:$0xff] }
 0x5e4   :  { %v3528_v61 = vpop.eup %3527  ;;  %3537 = vrsqrt.f32 %v2454_v12  ;;  %v1857_v31 = vadd.f32 %v6292_v5, %v6293_v2  ;;  %v6302_v20 = vld [vmem:[#allocation59_spill] sm:$0xff] }
 0x5e5   :  { %2736 = vst [vmem:[%s5915_s2 + $0x88] sm:$0xff] %v2704_v15  ;;  %v2641_v10 = vmax.f32 %v2609_v17, 0.0  ;;  %v2610_v36 = vadd.f32 %v2578_v54, %v6292_v5  ;;  %v2515_v45 = vmul.f32 %v3524_v43, %v2419_v52  ;;  %v2420_v57 = vmul.f32 %v3528_v61, %v5741_v60  ;;  %v2224_v49 = vpop.xlane.xlu0 %2223  ;;  %v6303_v17 = vld [vmem:[#allocation79_spill] sm:$0xff] }
 0x5e6   :  { %v3530_v63 = vpop.eup %3529  ;;  %3539 = vrsqrt.f32 %v2455_v28  ;;  %v2359_v11 = vmax.f32 %v2224_v49, 1e-16  ;;  %v2458_v54 = vmax.f32 %v6303_v17, 1e-16 }
 0x5e7   :  { %v2673_v18 = vadd.f32 %v2641_v10, %v1856_v7  ;;  %v2642_v25 = vmax.f32 %v2610_v36, 0.0  ;;  %v2547_v22 = vmul.f32 %v6294_v4, %v2515_v45  ;;  %v2516_v19 = vmul.f32 %v3530_v63, %v2420_v57  ;;  %v2226_v29 = vpop.xlane.xlu1 %2225  ;;  %v6304_v7 = vld [vmem:[#allocation60_spill] sm:$0xff]  ;;  %v6307_v4 = vld [vmem:[#allocation3_spill] sm:$0xff] }
 0x5e8   :  { %v3532_v41 = vpop.eup %3531  ;;  %3541 = vrsqrt.f32 %v2359_v11  ;;  %v2360_v40 = vmax.f32 %v2226_v29, 1e-16  ;;  %v6305_v45 = vld [vmem:[#allocation80_spill] sm:$0xff]  ;;  %v6308_v29 = vld [vmem:[#allocation41_spill] sm:$0xff] }
 0x5e9   :  { %v2705_v50 = vmul.f32 0.33333334, %v2673_v18  ;;  %v2674_v60 = vadd.f32 %v2642_v25, %v1857_v31  ;;  %v2579_v30 = vmul.f32 0.5, %v2547_v22  ;;  %v2548_v37 = vmul.f32 %v6296_v0, %v2516_v19  ;;  %v5799_v38 = vpop.xlane.xlu0 %2131  ;;  %v6306_v63 = vld [vmem:[#allocation32_spill] sm:$0xff] }
 0x5ea   :  { %v3534_v47 = vpop.eup %3533  ;;  %3543 = vrsqrt.f32 %v2360_v40  ;;  %v2459_v57 = vmax.f32 %v6305_v45, 1e-16  ;;  %v1860_v22 = vadd.f32 %v6306_v63, %v6307_v4 }
 0x5eb   :  { %2737 = vst [vmem:[%s5915_s2 + $0x90] sm:$0xff] %v2705_v50  ;;  %v2706_v1 = vmul.f32 0.33333334, %v2674_v60  ;;  %v2611_v8 = vadd.f32 %v2579_v30, %v6298_v46  ;;  %v2580_v33 = vmul.f32 0.5, %v2548_v37  ;;  %v2421_v51 = vmul.f32 %v3534_v47, %v5755_v35  ;;  %v5807_v32 = vpop.xlane.xlu1 %2133  ;;  %v6301_v35 = vld [vmem:[#allocation4_spill] sm:$0xff]  ;;  %v6310_v47 = vld [vmem:[#allocation61_spill] sm:$0xff] }
 0x5ec   :  { %v3536_v27 = vpop.eup %3535  ;;  %3545 = vrsqrt.f32 %v2456_v21  ;;  %v1859_v62 = vadd.f32 %v6300_v55, %v6301_v35 }
 0x5ed   :  { %2738 = vst [vmem:[%s5915_s2 + $0x98] sm:$0xff] %v2706_v1  ;;  %v2643_v26 = vmax.f32 %v2611_v8, 0.0  ;;  %v2612_v43 = vadd.f32 %v2580_v33, %v6300_v55  ;;  %v2517_v3 = vmul.f32 %v3532_v41, %v2421_v51  ;;  %v2422_v12 = vmul.f32 %v3536_v27, %v5763_v34  ;;  %v2228_v44 = vpop.xlane.xlu0 %2227  ;;  %v6311_v8 = vld [vmem:[#allocation81_spill] sm:$0xff] }
 0x5ee   :  { %v3538_v42 = vpop.eup %3537  ;;  %3547 = vrsqrt.f32 %v2457_v56  ;;  %v2361_v23 = vmax.f32 %v2228_v44, 1e-16  ;;  %v2460_v33 = vmax.f32 %v6311_v8, 1e-16 }
 0x5ef   :  { %v2675_v13 = vadd.f32 %v2643_v26, %v1858_v59  ;;  %v2644_v6 = vmax.f32 %v2612_v43, 0.0  ;;  %v2549_v24 = vmul.f32 %v6302_v20, %v2517_v3  ;;  %v2518_v28 = vmul.f32 %v3538_v42, %v2422_v12  ;;  %v2230_v15 = vpop.xlane.xlu1 %2229  ;;  %v6312_v59 = vld [vmem:[#allocation62_spill] sm:$0xff]  ;;  %v6313_v12 = vld [vmem:[#allocation33_spill] sm:$0xff] }
 0x5f0   :  { %v3540_v16 = vpop.eup %3539  ;;  %3549 = vrsqrt.f32 %v2361_v23  ;;  %v2362_v52 = vmax.f32 %v2230_v15, 1e-16 }
 0x5f1   :  { %v2707_v61 = vmul.f32 0.33333334, %v2675_v13  ;;  %v2676_v34 = vadd.f32 %v2644_v6, %v1859_v62  ;;  %v2581_v9 = vmul.f32 0.5, %v2549_v24  ;;  %v2550_v10 = vmul.f32 %v6304_v7, %v2518_v28  ;;  %v5821_v5 = vpop.xlane.xlu0 %2135  ;;  %v6314_v13 = vld [vmem:[#allocation26_spill] sm:$0xff]  ;;  %v6317_v7 = vld [vmem:[#allocation63_spill] sm:$0xff] }
 0x5f2   :  { %v3542_v36 = vpop.eup %3541  ;;  %3551 = vrsqrt.f32 %v2362_v52  ;;  %v1862_v6 = vadd.f32 %v6313_v12, %v6314_v13  ;;  %v6315_v24 = vld [vmem:[#allocation34_spill] sm:$0xff]  ;;  %v6326_v13 = vld [vmem:[#allocation19_spill] sm:$0xff] }
 0x5f3   :  { %2739 = vst [vmem:[%s5915_s2 + $0xa0] sm:$0xff] %v2707_v61  ;;  %v2708_v49 = vmul.f32 0.33333334, %v2676_v34  ;;  %v2613_v2 = vadd.f32 %v2581_v9, %v6306_v63  ;;  %v2582_v31 = vmul.f32 0.5, %v2550_v10  ;;  %v2423_v11 = vmul.f32 %v3542_v36, %v5777_v14  ;;  %v5829_v18 = vpop.xlane.xlu1 %2137  ;;  %v6309_v14 = vld [vmem:[#allocation5_spill] sm:$0xff] }
 0x5f4   :  { %v3544_v25 = vpop.eup %3543  ;;  %3553 = vrsqrt.f32 %v2458_v54  ;;  %v1861_v60 = vadd.f32 %v6308_v29, %v6309_v14  ;;  %v6320_v14 = vld [vmem:[#allocation6_spill] sm:$0xff] }
 0x5f5   :  { %2740 = vst [vmem:[%s5915_s2 + $0xa8] sm:$0xff] %v2708_v49  ;;  %v2645_v19 = vmax.f32 %v2613_v2, 0.0  ;;  %v2614_v41 = vadd.f32 %v2582_v31, %v6308_v29  ;;  %v2519_v58 = vmul.f32 %v3540_v16, %v2423_v11  ;;  %v2424_v21 = vmul.f32 %v3544_v25, %v5785_v53  ;;  %v2232_v40 = vpop.xlane.xlu0 %2231  ;;  %v6318_v11 = vld [vmem:[#allocation64_spill] sm:$0xff]  ;;  %v6319_v29 = vld [vmem:[#allocation45_spill] sm:$0xff] }
 0x5f6   :  { %v3546_v50 = vpop.eup %3545  ;;  %3555 = vrsqrt.f32 %v2459_v57  ;;  %v2363_v30 = vmax.f32 %v2232_v40, 1e-16 }
 0x5f7   :  { %v2677_v0 = vadd.f32 %v2645_v19, %v1860_v22  ;;  %v2646_v37 = vmax.f32 %v2614_v41, 0.0  ;;  %v2551_v39 = vmul.f32 %v6310_v47, %v2519_v58  ;;  %v2520_v56 = vmul.f32 %v3546_v50, %v2424_v21  ;;  %v2234_v1 = vpop.xlane.xlu1 %2233 }
 0x5f8   :  { %v3548_v46 = vpop.eup %3547  ;;  %3557 = vrsqrt.f32 %v2363_v30  ;;  %v2364_v51 = vmax.f32 %v2234_v1, 1e-16 }
 0x5f9   :  { %v2709_v27 = vmul.f32 0.33333334, %v2677_v0  ;;  %v2678_v53 = vadd.f32 %v2646_v37, %v1861_v60  ;;  %v2583_v48 = vmul.f32 0.5, %v2551_v39  ;;  %v2552_v26 = vmul.f32 %v6312_v59, %v2520_v56  ;;  %v5843_v55 = vpop.xlane.xlu0 %2139  ;;  %v6321_v37 = vld [vmem:[#allocation50_spill] sm:$0xff] }
 0x5fa   :  { %v3550_v43 = vpop.eup %3549  ;;  %3559 = vrsqrt.f32 %v2364_v51  ;;  %v1864_v60 = vadd.f32 %v6319_v29, %v6320_v14  ;;  %v6323_v51 = vld [vmem:[#allocation67_spill] sm:$0xff] }
 0x5fb   :  { %2741 = vst [vmem:[%s5915_s2 + $0xb0] sm:$0xff] %v2709_v27  ;;  %v2710_v3 = vmul.f32 0.33333334, %v2678_v53  ;;  %v2615_v44 = vadd.f32 %v2583_v48, %v6313_v12  ;;  %v2584_v42 = vmul.f32 0.5, %v2552_v26  ;;  %v2425_v35 = vmul.f32 %v3550_v43, %v5799_v38  ;;  %v5850_v62 = vpop.xlane.xlu1 %2141  ;;  %v6316_v38 = vld [vmem:[#allocation25_spill] sm:$0xff] }
 0x5fc   :  { %v3552_v23 = vpop.eup %3551  ;;  %3561 = vrsqrt.f32 %v2460_v33  ;;  %v1863_v52 = vadd.f32 %v6315_v24, %v6316_v38  ;;  %v6324_v43 = vld [vmem:[#allocation69_spill] sm:$0xff] }
 0x5fd   :  { %2742 = vst [vmem:[%s5915_s2 + $0xb8] sm:$0xff] %v2710_v3  ;;  %v2647_v20 = vmax.f32 %v2615_v44, 0.0  ;;  %v2616_v28 = vadd.f32 %v2584_v42, %v6315_v24  ;;  %v2521_v15 = vmul.f32 %v3548_v46, %v2425_v35  ;;  %v2426_v16 = vmul.f32 %v3552_v23, %v5807_v32  ;;  %v2236_v17 = vpop.xlane.xlu0 %2235  ;;  %v6322_v46 = vld [vmem:[#allocation7_spill] sm:$0xff]  ;;  %v6327_v24 = vld [vmem:[#allocation48_spill] sm:$0xff] }
 0x5fe   :  { %v3554_v54 = vpop.eup %3553  ;;  %v2365_v61 = vmax.f32 %v2236_v17, 1e-16  ;;  %v6325_v44 = vld [vmem:[#allocation35_spill] sm:$0xff]  ;;  %v6328_v17 = vld [vmem:[#allocation18_spill] sm:$0xff] }
 0x5ff   :  { %v2679_v34 = vadd.f32 %v2647_v20, %v1862_v6  ;;  %v2648_v9 = vmax.f32 %v2616_v28, 0.0  ;;  %v2553_v10 = vmul.f32 %v6317_v7, %v2521_v15  ;;  %v2522_v36 = vmul.f32 %v3554_v54, %v2426_v16  ;;  %v2238_v45 = vpop.xlane.xlu1 %2237 }
 0x600   :  { %v3556_v57 = vpop.eup %3555  ;;  %3563 = vrsqrt.f32 %v2365_v61  ;;  %v2366_v49 = vmax.f32 %v2238_v45, 1e-16  ;;  %v1866_v6 = vadd.f32 %v6325_v44, %v6326_v13  ;;  %v1867_v54 = vadd.f32 %v6327_v24, %v6328_v17 }
 0x601   :  { %v2711_v63 = vmul.f32 0.33333334, %v2679_v34  ;;  %v2680_v2 = vadd.f32 %v2648_v9, %v1863_v52  ;;  %v2585_v31 = vmul.f32 0.5, %v2553_v10  ;;  %v2554_v32 = vmul.f32 %v6318_v11, %v2522_v36  ;;  %v2332_v25 = vpop.xlane.xlu0 %2331  ;;  %v6329_v36 = vld [vmem:[#allocation72_spill] sm:$0xff] }
 0x602   :  { %v3558_v4 = vpop.eup %3557  ;;  %3565 = vrsqrt.f32 %v2366_v49  ;;  %v2461_v22 = vmax.f32 %v2332_v25, 1e-16 }
 0x603   :  { %2743 = vst [vmem:[%s5915_s2 + $0xc0] sm:$0xff] %v2711_v63  ;;  %v2712_v19 = vmul.f32 0.33333334, %v2680_v2  ;;  %v2617_v41 = vadd.f32 %v2585_v31, %v6319_v29  ;;  %v2586_v58 = vmul.f32 0.5, %v2554_v32  ;;  %v2427_v21 = vmul.f32 %v3558_v4, %v5821_v5  ;;  %v2334_v40 = vpop.xlane.xlu1 %2333  ;;  %v6330_v63 = vld [vmem:[#allocation73_spill] sm:$0xff]  ;;  %v6332_v32 = vld [vmem:[#allocation11_spill] sm:$0xff] }
 0x604   :  { %v3560_v50 = vpop.eup %3559  ;;  %3567 = vrsqrt.f32 %v2461_v22  ;;  %v2462_v30 = vmax.f32 %v2334_v40, 1e-16  ;;  %v1865_v5 = vadd.f32 %v6321_v37, %v6322_v46  ;;  %v6333_v22 = vld [vmem:[#allocation42_spill] sm:$0xff] }
 0x605   :  { %2744 = vst [vmem:[%s5915_s2 + $0xc8] sm:$0xff] %v2712_v19  ;;  %v2649_v0 = vmax.f32 %v2617_v41, 0.0  ;;  %v2618_v47 = vadd.f32 %v2586_v58, %v6321_v37  ;;  %v2523_v39 = vmul.f32 %v3556_v57, %v2427_v21  ;;  %v2428_v56 = vmul.f32 %v3560_v50, %v5829_v18  ;;  %v6334_v41 = vld [vmem:[#allocation8_spill] sm:$0xff] }
 0x606   :  { %v3562_v1 = vpop.eup %3561  ;;  %3569 = vrsqrt.f32 %v2462_v30  ;;  %v1869_v58 = vadd.f32 %v6333_v22, %v6334_v41 }
 0x607   :  { %v2681_v8 = vadd.f32 %v2649_v0, %v1864_v60  ;;  %v2650_v33 = vmax.f32 %v2618_v47, 0.0  ;;  %v2555_v27 = vmul.f32 %v6323_v51, %v2523_v39  ;;  %v2524_v53 = vmul.f32 %v3562_v1, %v2428_v56 }
 0x609   :  { %v2713_v48 = vmul.f32 0.33333334, %v2681_v8  ;;  %v2682_v59 = vadd.f32 %v2650_v33, %v1865_v5  ;;  %v2587_v26 = vmul.f32 0.5, %v2555_v27  ;;  %v2556_v3 = vmul.f32 %v6324_v43, %v2524_v53 }
 0x60a   :  { %v3564_v12 = vpop.eup %3563 }
 0x60b   :  { %2745 = vst [vmem:[%s5915_s2 + $0xd0] sm:$0xff] %v2713_v48  ;;  %v2714_v18 = vmul.f32 0.33333334, %v2682_v59  ;;  %v2619_v42 = vadd.f32 %v2587_v26, %v6325_v44  ;;  %v2588_v35 = vmul.f32 0.5, %v2556_v3  ;;  %v2429_v15 = vmul.f32 %v3564_v12, %v5843_v55 }
 0x60c   :  { %v3566_v23 = vpop.eup %3565 }
 0x60d   :  { %2746 = vst [vmem:[%s5915_s2 + $0xd8] sm:$0xff] %v2714_v18  ;;  %v2651_v20 = vmax.f32 %v2619_v42, 0.0  ;;  %v2620_v28 = vadd.f32 %v2588_v35, %v6327_v24  ;;  %v2430_v61 = vmul.f32 %v3566_v23, %v5850_v62  ;;  %v6331_v62 = vld [vmem:[#allocation39_spill] sm:$0xff] }
 0x60e   :  { %v3568_v16 = vpop.eup %3567  ;;  %v1868_v25 = vadd.f32 %v6331_v62, %v6332_v32 }
 0x60f   :  { %v2683_v38 = vadd.f32 %v2651_v20, %v1866_v6  ;;  %v2652_v52 = vmax.f32 %v2620_v28, 0.0  ;;  %v2525_v34 = vmul.f32 %v3568_v16, %v2429_v15 }
 0x610   :  { %v3570_v9 = vpop.eup %3569 }
 0x611   :  { %v2715_v7 = vmul.f32 0.33333334, %v2683_v38  ;;  %v2684_v10 = vadd.f32 %v2652_v52, %v1867_v54  ;;  %v2557_v45 = vmul.f32 %v6329_v36, %v2525_v34  ;;  %v2526_v57 = vmul.f32 %v3570_v9, %v2430_v61 }
 0x613   :  { %2747 = vst [vmem:[%s5915_s2 + $0xe0] sm:$0xff] %v2715_v7  ;;  %v2716_v55 = vmul.f32 0.33333334, %v2684_v10  ;;  %v2589_v49 = vmul.f32 0.5, %v2557_v45  ;;  %v2558_v2 = vmul.f32 %v6330_v63, %v2526_v57 }
 0x615   :  { %2748 = vst [vmem:[%s5915_s2 + $0xe8] sm:$0xff] %v2716_v55  ;;  %v2621_v31 = vadd.f32 %v2589_v49, %v6331_v62  ;;  %v2590_v11 = vmul.f32 0.5, %v2558_v2 }
 0x617   :  { %v2653_v4 = vmax.f32 %v2621_v31, 0.0  ;;  %v2622_v19 = vadd.f32 %v2590_v11, %v6333_v22 }
 0x619   :  { %v2685_v29 = vadd.f32 %v2653_v4, %v1868_v25  ;;  %v2654_v21 = vmax.f32 %v2622_v19, 0.0 }
 0x61b   :  { %v2717_v40 = vmul.f32 0.33333334, %v2685_v29  ;;  %v2686_v50 = vadd.f32 %v2654_v21, %v1869_v58 }
 0x61d   :  { %2749 = vst [vmem:[%s5915_s2 + $0xf0] sm:$0xff] %v2717_v40  ;;  %v2718_v14 = vmul.f32 0.33333334, %v2686_v50 }
 0x61f   :  { %2750 = vst [vmem:[%s5915_s2 + $0xf8] sm:$0xff] %v2718_v14 }

// kernel: dwr_gcn_forward.21
= control target key start
LH: loop header
LB: loop body
LE: loop exit
PB: predicated region body
PF: predicated region fallthrough
CT: control target
= control target key end

     0   :  { %11 = vsyncpa [#allocation3], 0  ;;  %s2034_s0 = inlined_call_operand.vmem [shape: bf16[256,256], index: 0, kind: input, shape index: {}]   ;;  %s2035_s1 = inlined_call_operand.vmem [shape: bf16[256,128], index: 1, kind: input, shape index: {}]   ;;  %s2036_s2 = inlined_call_operand.vmem [shape: bf16[128,128], index: 2, kind: input, shape index: {}]   ;;  %s2037_s3 = inlined_call_operand.vmem [shape: f32[1,128], index: 3, kind: input, shape index: {}]   ;;  %s2038_s4 = inlined_call_operand.hbm [shape: f32[256,128], index: 4, kind: output, shape index: {0}]   ;;  %s2039_s5 = inlined_call_operand.hbm [shape: f32[256,128], index: 5, kind: output, shape index: {1}]  }
   0x1   :  { %13 = vsyncpa [#allocation3 + $0x1], 0 }
   0x2   :  { %14 = vsyncpa [#allocation5], 0 }
   0x3   :  { %16 = vsyncpa [#allocation5 + $0x1], 0  ;;  %s1572_s18 = smov 0   ;;  %s1574_s19 = smov 0  }
   0x4   :  { %s1576_s20 = smov 0   ;;  %s1578_s21 = smov 0  }
   0x5 LB: > { %s1593_s22 = sadd.s32 4294967295, %s1536_s21   ;;  %s1079_s23 = sadd.s32 4294967294, %s1536_s21   ;;  %s1536_s21 = sphi %s1578_s21, %s2045_s21   ;;  %s1532_s20 = sphi %s1576_s20, %s2044_s20   ;;  %s1528_s19 = sphi %s1574_s19, %s2043_s19   ;;  %s1524_s18 = sphi %s1572_s18, %s2042_s18  }
   0x6   : > { %s1597_s24 = sadd.s32 1, %s1536_s21   ;;  %s118_s25 = sadd.s32 1, %s1532_s20 }
   0x7   : > { %s115_s26 = ssub.s32 %s1536_s21, %s1597_s24  ;;  %p128_p0 = scmp.ne.s32.totalorder %s1532_s20, %s1528_s19 }
   0x8   : > { %p116_p1 = scmp.eq.s32.totalorder %s115_s26, 0  ;;  %p129_p2 = scmp.eq.s32.totalorder %s1593_s22, 1 }
   0x9   : > { %p134_p3 = scmp.ne.s32.totalorder %s1528_s19, %s1524_s18  ;;  %p135_p4 = scmp.eq.s32.totalorder %s1079_s23, 1 }
   0xa   : > { %s1608_s27 = scalar_select %p116_p1, %s1532_s20, %s118_s25  }
   0xb   : > { %p1610_p5 = por %p129_p2, %p128_p0  ;;  %p1614_p6 = por %p135_p4, %p134_p3 }
   0xc   : > { %p1082_p7 = scmp.ge.s32.totalorder %s1536_s21, 1  ;;  %p198_p8 = scmp.lt.s32.totalorder %s1536_s21, 3 }
   0xe   : > { %p199_p9 = pnand %p1082_p7, %p198_p8 }
   0xf   : > { %v1298_v0 = vld [vmem:[%s2035_s1 + $0x40] sm:$0xff] (!%p199_p9)   ;;  %s1085_s7 = sshll.u32 (!%p199_p9), %s1593_s22, 4  ;;  %v1300_v2 = vld [vmem:[%s2035_s1 + $0x48] sm:$0xff] (!%p199_p9)   ;;  %v1302_v4 = vld [vmem:[%s2035_s1 + $0x50] sm:$0xff] (!%p199_p9)   ;;  %s1724_s14 = sand.u32 (!%p199_p9), 1, %s1528_s19  }
  0x10   : > { %202 = sbr.rel (%p199_p9) target bundleno = 882 (0x372), region = 36  ;;  %v1299_v1 = vld [vmem:[%s2035_s1] sm:$0xff] (!%p199_p9)   ;;  %1140 = vmatprep.subr.bf16.mxu0 (!%p199_p9), %v1298_v0  ;;  %v1301_v3 = vld [vmem:[%s2035_s1 + $0x8] sm:$0xff] (!%p199_p9)   ;;  %p233_p10 = scmp.lt.s32.totalorder (!%p199_p9), %s1085_s7, 31  ;;  %v1303_v5 = vld [vmem:[%s2035_s1 + $0x10] sm:$0xff] (!%p199_p9)  }
  0x11   : > { %1141 = vmatpush3.bf16.msra.mxu0 (!%p199_p9), %v1299_v1  ;;  %v1304_v6 = vld [vmem:[%s2035_s1 + $0x58] sm:$0xff] (!%p199_p9)   ;;  %v1306_v8 = vld [vmem:[%s2035_s1 + $0x60] sm:$0xff] (!%p199_p9)   ;;  %v1308_v10 = vld [vmem:[%s2035_s1 + $0x68] sm:$0xff] (!%p199_p9)   ;;  %s1083_s15 = sshll.u32 (!%p199_p9), %s1724_s14, 7  ;;  %s951_s30 = scalar_lea.sflag (!%p199_p9), [#allocation3], %s1724_s14 }
  0x12   : > { %1142 = vmatprep.subr.bf16.mxu0 (!%p199_p9), %v1300_v2  ;;  %v1305_v7 = vld [vmem:[%s2035_s1 + $0x18] sm:$0xff] (!%p199_p9)   ;;  %v1307_v9 = vld [vmem:[%s2035_s1 + $0x20] sm:$0xff] (!%p199_p9)   ;;  %v1309_v12 = vld [vmem:[%s2035_s1 + $0x28] sm:$0xff] (!%p199_p9)   ;;  %s1732_s16 = scalar_lea.vmem (!%p199_p9), [#allocation2], %s1083_s15  ;;  %s1538_s8 = smov (!%p199_p9), [#allocation2]  }
  0x13   : > { %v1310_v13 = vld [vmem:[%s2035_s1 + $0x70] sm:$0xff] (!%p199_p9)   ;;  %v1312_v15 = vld [vmem:[%s2035_s1 + $0x78] sm:$0xff] (!%p199_p9)   ;;  %v1338_v17 = vld [vmem:[%s2036_s2] sm:$0xff] (!%p199_p9)   ;;  %s969_s17 = sshll.u32 (!%p199_p9), %s1732_s16, 4  ;;  %s1446_s9 = sshll.u32 (!%p199_p9), %s1538_s8, 4  ;;  %s1915_s17 = int_to_ptr.vmem [resolvable:$true] %s969_s17  ;;  %s1447_s9 = int_to_ptr.vmem [resolvable:$false] %s1446_s9 }
  0x14   : > { %v1311_v14 = vld [vmem:[%s2035_s1 + $0x30] sm:$0xff] (!%p199_p9)   ;;  %v1313_v16 = vld [vmem:[%s2035_s1 + $0x38] sm:$0xff] (!%p199_p9)   ;;  %v1339_v19 = vld [vmem:[%s2036_s2 + $0x8] sm:$0xff] (!%p199_p9)   ;;  %1220 = vmatprep.subr.bf16.mxu1 (!%p199_p9), %v1338_v17  ;;  %p1449_p0 = scmp.lt.s32.totalorder (!%p199_p9), %s1915_s17, %s1447_s9 }
  0x15   : > { %1143 = vmatpush3.bf16.msra.mxu0 (!%p199_p9), %v1301_v3  ;;  %1221 = vmatpush3.bf16.msra.mxu1 (!%p199_p9), %v1338_v17  ;;  %v1340_v21 = vld [vmem:[%s2036_s2 + $0x10] sm:$0xff] (!%p199_p9)   ;;  %v1341_v22 = vld [vmem:[%s2036_s2 + $0x18] sm:$0xff] (!%p199_p9)   ;;  %v1342_v36 = vld [vmem:[%s2036_s2 + $0x20] sm:$0xff] (!%p199_p9)  }
  0x16   : > { %1144 = vmatprep.subr.bf16.mxu0 (!%p199_p9), %v1302_v4  ;;  %1222 = vmatprep.subr.bf16.mxu1 (!%p199_p9), %v1339_v19  ;;  %v1343_v37 = vld [vmem:[%s2036_s2 + $0x28] sm:$0xff] (!%p199_p9)   ;;  %v1344_v38 = vld [vmem:[%s2036_s2 + $0x30] sm:$0xff] (!%p199_p9)   ;;  %v1345_v39 = vld [vmem:[%s2036_s2 + $0x38] sm:$0xff] (!%p199_p9)  }
  0x17   : > { %s2047_s7 = smov (!%p233_p10, %s1085_s7), 31 }
  0x18   : > { %s1137_s6 = sshll.u32 %s2047_s7, 3  ;;  %s1138_s7 = sshll.u32 %s1593_s22, 11 }
  0x19   : > { %1145 = vmatpush3.bf16.msra.mxu0 %v1303_v5  ;;  %s1651_s12 = scalar_lea.vmem %s2034_s0, %s1137_s6  ;;  %1223 = vmatpush3.bf16.msra.mxu1 %v1339_v19  ;;  %s1913_s26 = scalar_lea.hbm %s2038_s4, %s1138_s7 }
  0x1a   : > { %1146 = vmatprep.subr.bf16.mxu0 %v1304_v6  ;;  %v1316_v11 = vld [vmem:[%s1651_s12 + $0x4] ss:$8 sps:$4 sm:$0xff]   ;;  %v1314_v18 = vld [vmem:[%s1651_s12] ss:$8 sps:$4 sm:$0xff]   ;;  %v1317_v20 = vld [vmem:[%s1651_s12 + $0x14] ss:$8 sps:$4 sm:$0xff]   ;;  %1224 = vmatprep.subr.bf16.mxu1 %v1340_v21 }
  0x1b   : > { %498 = vmatprep.mubr.bf16.mxu0 %v1316_v11  ;;  %v1319_v23 = vld [vmem:[%s1651_s12 + $0x10] ss:$8 sps:$4 sm:$0xff]   ;;  %v1320_v24 = vld [vmem:[%s1651_s12 + $0x24] ss:$8 sps:$4 sm:$0xff]   ;;  %v1322_v25 = vld [vmem:[%s1651_s12 + $0x20] ss:$8 sps:$4 sm:$0xff]  }
  0x1c   : > { %v1323_v26 = vld [vmem:[%s1651_s12 + $0x34] ss:$8 sps:$4 sm:$0xff]   ;;  %v1325_v27 = vld [vmem:[%s1651_s12 + $0x30] ss:$8 sps:$4 sm:$0xff]   ;;  %v1326_v28 = vld [vmem:[%s1651_s12 + $0x44] ss:$8 sps:$4 sm:$0xff]  }
  0x1d   : > { %1147 = vmatpush3.bf16.msra.mxu0 %v1305_v7  ;;  %1225 = vmatpush3.bf16.msra.mxu1 %v1340_v21  ;;  %v1328_v29 = vld [vmem:[%s1651_s12 + $0x40] ss:$8 sps:$4 sm:$0xff]   ;;  %v1329_v30 = vld [vmem:[%s1651_s12 + $0x54] ss:$8 sps:$4 sm:$0xff]   ;;  %v1331_v31 = vld [vmem:[%s1651_s12 + $0x50] ss:$8 sps:$4 sm:$0xff]  }
  0x1e   : > { %1148 = vmatprep.subr.bf16.mxu0 %v1306_v8  ;;  %1226 = vmatprep.subr.bf16.mxu1 %v1341_v22  ;;  %v1332_v32 = vld [vmem:[%s1651_s12 + $0x64] ss:$8 sps:$4 sm:$0xff]   ;;  %v1334_v33 = vld [vmem:[%s1651_s12 + $0x60] ss:$8 sps:$4 sm:$0xff]   ;;  %v1335_v34 = vld [vmem:[%s1651_s12 + $0x74] ss:$8 sps:$4 sm:$0xff]  }
  0x1f   : > { %v1337_v35 = vld [vmem:[%s1651_s12 + $0x70] ss:$8 sps:$4 sm:$0xff]   ;;  %s1442_s6 = scalar_lea.vmem %s1915_s17, 2048  ;;  %s1448_s12 = scalar_lea.vmem %s1447_s9, 4096 }
  0x20   : > { %p1443_p11 = scmp.ne.s32.totalorder %s1915_s17, %s1442_s6  ;;  %p1450_p1 = scmp.lt.s32.totalorder %s1448_s12, %s1442_s6 }
  0x21   : > { %1149 = vmatpush3.bf16.msra.mxu0 %v1307_v9  ;;  %1227 = vmatpush3.bf16.msra.mxu1 %v1341_v22 }
  0x22   : > { %1150 = vmatprep.subr.bf16.mxu0 %v1308_v10  ;;  %1228 = vmatprep.subr.bf16.mxu1 %v1342_v36  ;;  %p1444_p12 = pnand %p1443_p11, %p1610_p5  ;;  %p1451_p2 = por %p1450_p1, %p1449_p0 }
  0x24   : > { %p1445_p13 = pneg %p1444_p12 }
  0x25   : > { %1151 = vmatpush3.bf16.msra.mxu0 %v1309_v12  ;;  %1229 = vmatpush3.bf16.msra.mxu1 %v1342_v36 }
  0x26   : > { %1152 = vmatprep.subr.bf16.mxu0 %v1310_v13  ;;  %1230 = vmatprep.subr.bf16.mxu1 %v1343_v37  ;;  %p1452_p3 = pnand %p1451_p2, %p1445_p13 }
  0x29   : > { %1153 = vmatpush3.bf16.msra.mxu0 %v1311_v14  ;;  %1231 = vmatpush3.bf16.msra.mxu1 %v1343_v37 }
  0x2a   : > { %1154 = vmatprep.subr.bf16.mxu0 %v1312_v15  ;;  %1232 = vmatprep.subr.bf16.mxu1 %v1344_v38 }
  0x2d   : > { %1155 = vmatpush3.bf16.msra.mxu0 %v1313_v16  ;;  %1233 = vmatpush3.bf16.msra.mxu1 %v1344_v38 }
  0x2e   : > { %1234 = vmatprep.subr.bf16.mxu1 %v1345_v39 }
  0x30   : > { %499 = vmatmul.mubr.bf16.vlgmr.msra.gmra.mrb[0].mxu0 %v1314_v18 }
  0x31   : > { %506 = vmatprep.mubr.bf16.mxu0 %v1317_v20  ;;  %1235 = vmatpush3.bf16.msra.mxu1 %v1345_v39 }
  0x38   : > { %507 = vmatmul.mubr.bf16.gmra.mrb[4].mxu0 %v1319_v23 }
  0x39   : > { %514 = vmatprep.mubr.bf16.mxu0 %v1320_v24 }
  0x40   : > { %515 = vmatmul.mubr.bf16.gmra.mrb[8].mxu0 %v1322_v25 }
  0x41   : > { %522 = vmatprep.mubr.bf16.mxu0 %v1323_v26 }
  0x48   : > { %523 = vmatmul.mubr.bf16.gmra.mrb[12].mxu0 %v1325_v27 }
  0x49   : > { %530 = vmatprep.mubr.bf16.mxu0 %v1326_v28 }
  0x50   : > { %531 = vmatmul.mubr.bf16.gmra.mrb[16].mxu0 %v1328_v29 }
  0x51   : > { %538 = vmatprep.mubr.bf16.mxu0 %v1329_v30 }
  0x58   : > { %539 = vmatmul.mubr.bf16.gmra.mrb[20].mxu0 %v1331_v31 }
  0x59   : > { %546 = vmatprep.mubr.bf16.mxu0 %v1332_v32  ;;  %v1717_v32 = vld [vmem:[%s2037_s3] ss:$0 sm:$0xff] }
  0x60   : > { %547 = vmatmul.mubr.bf16.gmra.mrb[24].mxu0 %v1334_v33 }
  0x61   : > { %554 = vmatprep.mubr.bf16.mxu0 %v1335_v34 }
  0x68   : > { %555 = vmatmul.mubr.bf16.gmra.mrb[28].mxu0 %v1337_v35 }
 0x103   : > { %v1156_v40 = vpop.f32.mrb[0].mxu0 }
 0x104   : > { %v1157_v41 = vpop.f32.mrb[1].mxu0 }
 0x105   : > { %v1158_v42 = vadd.f32 %v1157_v41, %v1156_v40  ;;  %v1159_v43 = vpop.f32.mrb[2].mxu0  ;;  %v739_v40 = vlaneseq }
 0x106   : > { %v1160_v44 = vpop.f32.mrb[3].mxu0 }
 0x107   : > { %v1161_v45 = vadd.f32 %v1160_v44, %v1159_v43 }
 0x109   : > { %v563_v46 = vpack.c.bf16 %v1161_v45, %v1158_v42  ;;  %v1726_v42 = vand.u32 127, %v739_v40 }
 0x10b   : > { %v1162_v47 = vpop.f32.mrb[4].mxu0  ;;  %1236 = vmatprep.mubr.bf16.mxu1 %v563_v46  ;;  %vm741_vm0 = vcmp.lt.s32.totalorder %v1726_v42, 10 }
 0x10c   : > { %v1163_v48 = vpop.f32.mrb[5].mxu0 }
 0x10d   : > { %v1164_v49 = vadd.f32 %v1163_v48, %v1162_v47  ;;  %v1165_v50 = vpop.f32.mrb[6].mxu0 }
 0x10e   : > { %v1166_v51 = vpop.f32.mrb[7].mxu0 }
 0x10f   : > { %v1167_v52 = vadd.f32 %v1166_v51, %v1165_v50 }
 0x111   : > { %v564_v53 = vpack.c.bf16 %v1167_v52, %v1164_v49 }
 0x113   : > { %v1168_v54 = vpop.f32.mrb[8].mxu0  ;;  %1237 = vmatmul.mubr.bf16.vlgmr.msra.gmra.mrb[0].mxu1 %v564_v53 }
 0x114   : > { %v1169_v55 = vpop.f32.mrb[9].mxu0 }
 0x115   : > { %v1170_v56 = vadd.f32 %v1169_v55, %v1168_v54  ;;  %v1171_v57 = vpop.f32.mrb[10].mxu0 }
 0x116   : > { %v1172_v58 = vpop.f32.mrb[11].mxu0 }
 0x117   : > { %v1173_v59 = vadd.f32 %v1172_v58, %v1171_v57 }
 0x119   : > { %v565_v60 = vpack.c.bf16 %v1173_v59, %v1170_v56 }
 0x11b   : > { %v1174_v61 = vpop.f32.mrb[12].mxu0  ;;  %1240 = vmatprep.mubr.bf16.mxu1 %v565_v60 }
 0x11c   : > { %v1175_v62 = vpop.f32.mrb[13].mxu0 }
 0x11d   : > { %v1176_v63 = vadd.f32 %v1175_v62, %v1174_v61  ;;  %v1177_v0 = vpop.f32.mrb[14].mxu0 }
 0x11e   : > { %v1178_v1 = vpop.f32.mrb[15].mxu0 }
 0x11f   : > { %v1179_v2 = vadd.f32 %v1178_v1, %v1177_v0 }
 0x121   : > { %v566_v3 = vpack.c.bf16 %v1179_v2, %v1176_v63 }
 0x123   : > { %v1180_v4 = vpop.f32.mrb[16].mxu0  ;;  %1241 = vmatmul.mubr.bf16.gmra.mrb[4].mxu1 %v566_v3 }
 0x124   : > { %v1181_v5 = vpop.f32.mrb[17].mxu0 }
 0x125   : > { %v1182_v6 = vadd.f32 %v1181_v5, %v1180_v4  ;;  %v1183_v7 = vpop.f32.mrb[18].mxu0 }
 0x126   : > { %v1184_v8 = vpop.f32.mrb[19].mxu0 }
 0x127   : > { %v1185_v9 = vadd.f32 %v1184_v8, %v1183_v7 }
 0x129   : > { %v567_v10 = vpack.c.bf16 %v1185_v9, %v1182_v6 }
 0x12b   : > { %v1186_v11 = vpop.f32.mrb[20].mxu0  ;;  %1244 = vmatprep.mubr.bf16.mxu1 %v567_v10 }
 0x12c   : > { %v1187_v12 = vpop.f32.mrb[21].mxu0 }
 0x12d   : > { %v1188_v13 = vadd.f32 %v1187_v12, %v1186_v11  ;;  %v1189_v14 = vpop.f32.mrb[22].mxu0 }
 0x12e   : > { %v1190_v15 = vpop.f32.mrb[23].mxu0 }
 0x12f   : > { %v1191_v16 = vadd.f32 %v1190_v15, %v1189_v14 }
 0x131   : > { %v568_v17 = vpack.c.bf16 %v1191_v16, %v1188_v13 }
 0x133   : > { %v1192_v18 = vpop.f32.mrb[24].mxu0  ;;  %1245 = vmatmul.mubr.bf16.gmra.mrb[8].mxu1 %v568_v17 }
 0x134   : > { %v1193_v19 = vpop.f32.mrb[25].mxu0 }
 0x135   : > { %v1194_v20 = vadd.f32 %v1193_v19, %v1192_v18  ;;  %v1195_v21 = vpop.f32.mrb[26].mxu0 }
 0x136   : > { %v1196_v22 = vpop.f32.mrb[27].mxu0 }
 0x137   : > { %v1197_v23 = vadd.f32 %v1196_v22, %v1195_v21 }
 0x139   : > { %v569_v24 = vpack.c.bf16 %v1197_v23, %v1194_v20 }
 0x13b   : > { %v1198_v25 = vpop.f32.mrb[28].mxu0  ;;  %1248 = vmatprep.mubr.bf16.mxu1 %v569_v24 }
 0x13c   : > { %v1199_v26 = vpop.f32.mrb[29].mxu0 }
 0x13d   : > { %v1200_v27 = vadd.f32 %v1199_v26, %v1198_v25  ;;  %v1201_v28 = vpop.f32.mrb[30].mxu0 }
 0x13e   : > { %v1202_v29 = vpop.f32.mrb[31].mxu0 }
 0x13f   : > { %v1203_v30 = vadd.f32 %v1202_v29, %v1201_v28 }
 0x141   : > { %v570_v31 = vpack.c.bf16 %v1203_v30, %v1200_v27 }
 0x143   : > { %1249 = vmatmul.mubr.bf16.gmra.mrb[12].mxu1 %v570_v31 }
 0x1e6   : > { %v1238_v33 = vpop.f32.mrb[0].mxu1 }
 0x1e7   : > { %v685_v34 = vadd.f32 %v1238_v33, %v1717_v32  ;;  %v676_v35 = vpop.f32.mrb[1].mxu1 }
 0x1e8   : > { %v677_v36 = vadd.f32 %v1717_v32, %v676_v35  ;;  %v1239_v37 = vpop.f32.mrb[2].mxu1 }
 0x1e9   : > { %1346 = vtanh.f32 %v685_v34  ;;  %v688_v38 = vadd.f32 %v1239_v37, %v1717_v32  ;;  %v679_v39 = vpop.f32.mrb[3].mxu1 }
 0x1ea   : > { %1348 = vtanh.f32 %v677_v36  ;;  %v680_v41 = vadd.f32 %v1717_v32, %v679_v39 }
 0x1eb   : > { %1350 = vtanh.f32 %v688_v38 }
 0x1ec   : > { %1352 = vtanh.f32 %v680_v41 }
 0x1f3   : > { %v1347_v43 = vpop.eup %1346 }
 0x1f4   : > { %v1349_v44 = vpop.eup %1348  ;;  %760 = vst [vmem:[%s1732_s16 + $0x10] sm:$0xff] %v1347_v43  ;;  %v1737_v45 = vsel %vm741_vm0, %v1347_v43, -1e+30 }
 0x1f5   : > { %v1351_v46 = vpop.eup %1350  ;;  %758 = vst [vmem:[%s1732_s16] sm:$0xff] %v1349_v44  ;;  %794 = vmax.xlane.f32.xlu1 %v1737_v45  ;;  %v1743_v47 = vsel %vm741_vm0, %v1349_v44, -1e+30 }
 0x1f6   : > { %v1353_v48 = vpop.eup %1352  ;;  %761 = vst [vmem:[%s1732_s16 + $0x18] sm:$0xff] %v1351_v46  ;;  %v1242_v49 = vpop.f32.mrb[4].mxu1  ;;  %790 = vmax.xlane.f32.xlu0 %v1743_v47  ;;  %v1752_v54 = vsel %vm741_vm0, %v1351_v46, -1e+30 }
 0x1f7   : > { %759 = vst [vmem:[%s1732_s16 + $0x8] sm:$0xff] %v1353_v48  ;;  %v701_v50 = vadd.f32 %v1242_v49, %v1717_v32  ;;  %v692_v51 = vpop.f32.mrb[5].mxu1  ;;  %v1758_v57 = vsel %vm741_vm0, %v1353_v48, -1e+30 }
 0x1f8   : > { %v693_v52 = vadd.f32 %v1717_v32, %v692_v51  ;;  %v1243_v53 = vpop.f32.mrb[6].mxu1 }
 0x1f9   : > { %1354 = vtanh.f32 %v701_v50  ;;  %v704_v55 = vadd.f32 %v1243_v53, %v1717_v32  ;;  %796 = vmax.xlane.f32.xlu1 %v1752_v54  ;;  %v695_v56 = vpop.f32.mrb[7].mxu1 }
 0x1fa   : > { %1356 = vtanh.f32 %v693_v52  ;;  %v696_v58 = vadd.f32 %v1717_v32, %v695_v56  ;;  %792 = vmax.xlane.f32.xlu0 %v1758_v57 }
 0x1fb   : > { %1358 = vtanh.f32 %v704_v55 }
 0x1fc   : > { %1360 = vtanh.f32 %v696_v58 }
 0x203   : > { %v1355_v59 = vpop.eup %1354 }
 0x204   : > { %v1357_v60 = vpop.eup %1356  ;;  %764 = vst [vmem:[%s1732_s16 + $0x30] sm:$0xff] %v1355_v59  ;;  %v1765_v61 = vsel %vm741_vm0, %v1355_v59, -1e+30 }
 0x205   : > { %v1359_v62 = vpop.eup %1358  ;;  %762 = vst [vmem:[%s1732_s16 + $0x20] sm:$0xff] %v1357_v60  ;;  %802 = vmax.xlane.f32.xlu0 %v1765_v61  ;;  %v1780_v6 = vsel %vm741_vm0, %v1357_v60, -1e+30 }
 0x206   : > { %v1361_v63 = vpop.eup %1360  ;;  %765 = vst [vmem:[%s1732_s16 + $0x38] sm:$0xff] %v1359_v62  ;;  %v1246_v0 = vpop.f32.mrb[8].mxu1  ;;  %v1772_v1 = vsel %vm741_vm0, %v1359_v62, -1e+30 }
 0x207   : > { %763 = vst [vmem:[%s1732_s16 + $0x28] sm:$0xff] %v1361_v63  ;;  %v717_v2 = vadd.f32 %v1246_v0, %v1717_v32  ;;  %804 = vmax.xlane.f32.xlu1 %v1772_v1  ;;  %v708_v3 = vpop.f32.mrb[9].mxu1  ;;  %v1787_v10 = vsel %vm741_vm0, %v1361_v63, -1e+30 }
 0x208   : > { %v709_v4 = vadd.f32 %v1717_v32, %v708_v3  ;;  %v1247_v5 = vpop.f32.mrb[10].mxu1 }
 0x209   : > { %1362 = vtanh.f32 %v717_v2  ;;  %v720_v7 = vadd.f32 %v1247_v5, %v1717_v32  ;;  %v711_v8 = vpop.f32.mrb[11].mxu1  ;;  %798 = vmax.xlane.f32.xlu0 %v1780_v6 }
 0x20a   : > { %1364 = vtanh.f32 %v709_v4  ;;  %v712_v9 = vadd.f32 %v1717_v32, %v711_v8 }
 0x20b   : > { %1366 = vtanh.f32 %v720_v7  ;;  %800 = vmax.xlane.f32.xlu1 %v1787_v10 }
 0x20c   : > { %1368 = vtanh.f32 %v712_v9 }
 0x213   : > { %v1363_v11 = vpop.eup %1362 }
 0x214   : > { %v1365_v12 = vpop.eup %1364  ;;  %768 = vst [vmem:[%s1732_s16 + $0x50] sm:$0xff] %v1363_v11  ;;  %v1793_v13 = vsel %vm741_vm0, %v1363_v11, -1e+30 }
 0x215   : > { %v1367_v14 = vpop.eup %1366  ;;  %766 = vst [vmem:[%s1732_s16 + $0x40] sm:$0xff] %v1365_v12  ;;  %810 = vmax.xlane.f32.xlu0 %v1793_v13  ;;  %v1808_v22 = vsel %vm741_vm0, %v1365_v12, -1e+30 }
 0x216   : > { %v1369_v15 = vpop.eup %1368  ;;  %769 = vst [vmem:[%s1732_s16 + $0x58] sm:$0xff] %v1367_v14  ;;  %v1250_v16 = vpop.f32.mrb[12].mxu1  ;;  %v1800_v17 = vsel %vm741_vm0, %v1367_v14, -1e+30 }
 0x217   : > { %767 = vst [vmem:[%s1732_s16 + $0x48] sm:$0xff] %v1369_v15  ;;  %v733_v18 = vadd.f32 %v1250_v16, %v1717_v32  ;;  %v724_v19 = vpop.f32.mrb[13].mxu1  ;;  %812 = vmax.xlane.f32.xlu1 %v1800_v17  ;;  %v1815_v26 = vsel %vm741_vm0, %v1369_v15, -1e+30 }
 0x218   : > { %v725_v20 = vadd.f32 %v1717_v32, %v724_v19  ;;  %v1251_v21 = vpop.f32.mrb[14].mxu1 }
 0x219   : > { %1370 = vtanh.f32 %v733_v18  ;;  %v736_v23 = vadd.f32 %v1251_v21, %v1717_v32  ;;  %v727_v24 = vpop.f32.mrb[15].mxu1  ;;  %806 = vmax.xlane.f32.xlu0 %v1808_v22 }
 0x21a   : > { %1372 = vtanh.f32 %v725_v20  ;;  %v728_v25 = vadd.f32 %v1717_v32, %v727_v24 }
 0x21b   : > { %1374 = vtanh.f32 %v736_v23  ;;  %808 = vmax.xlane.f32.xlu1 %v1815_v26 }
 0x21c   : > { %1376 = vtanh.f32 %v728_v25 }
 0x223   : > { %v1371_v27 = vpop.eup %1370 }
 0x224   : > { %v1373_v28 = vpop.eup %1372  ;;  %772 = vst [vmem:[%s1732_s16 + $0x70] sm:$0xff] %v1371_v27  ;;  %v1834_v33 = vsel %vm741_vm0, %v1371_v27, -1e+30 }
 0x225   : > { %v1375_v29 = vpop.eup %1374  ;;  %770 = vst [vmem:[%s1732_s16 + $0x60] sm:$0xff] %v1373_v28  ;;  %v1822_v30 = vsel %vm741_vm0, %v1373_v28, -1e+30 }
 0x226   : > { %v1377_v31 = vpop.eup %1376  ;;  %773 = vst [vmem:[%s1732_s16 + $0x78] sm:$0xff] %v1375_v29  ;;  %814 = vmax.xlane.f32.xlu0 %v1822_v30  ;;  %v1839_v34 = vsel %vm741_vm0, %v1375_v29, -1e+30 }
 0x227   : > { %771 = vst [vmem:[%s1732_s16 + $0x68] sm:$0xff] %v1377_v31  ;;  %v1829_v32 = vsel %vm741_vm0, %v1377_v31, -1e+30 }
 0x228   : > { %816 = vmax.xlane.f32.xlu1 %v1829_v32 }
 0x22a   : > { %818 = vmax.xlane.f32.xlu0 %v1834_v33 }
 0x22c   : > { %820 = vmax.xlane.f32.xlu1 %v1839_v34 }
 0x282   : > { %v795_v35 = vpop.xlane.xlu1 %794 }
 0x283   : > { %v824_v36 = vsub.f32 %v1737_v45, %v795_v35  ;;  %v791_v37 = vpop.xlane.xlu0 %790 }
 0x284   : > { %v822_v38 = vsub.f32 %v1743_v47, %v791_v37 }
 0x285   : > { %v842_v39 = vmul.f32 1.442695, %v824_v36 }
 0x286   : > { %v838_v40 = vmul.f32 1.442695, %v822_v38  ;;  %v797_v41 = vpop.xlane.xlu1 %796 }
 0x287   : > { %1378 = vpow2.f32 %v842_v39  ;;  %v825_v43 = vsub.f32 %v1752_v54, %v797_v41  ;;  %v793_v44 = vpop.xlane.xlu0 %792 }
 0x288   : > { %v823_v46 = vsub.f32 %v1758_v57, %v793_v44  ;;  %1380 = vpow2.f32 %v838_v40 }
 0x289   : > { %v844_v42 = vmul.f32 1.442695, %v825_v43 }
 0x28a   : > { %v840_v48 = vmul.f32 1.442695, %v823_v46 }
 0x28b   : > { %1382 = vpow2.f32 %v844_v42 }
 0x28c   : > { %1384 = vpow2.f32 %v840_v48 }
 0x291   : > { %v1846_v49 = vpop.eup %1378 }
 0x292   : > { %874 = vadd.xlane.f32.xlu0 %v1846_v49  ;;  %v803_v45 = vpop.xlane.xlu0 %802  ;;  %v1850_v50 = vpop.eup %1380 }
 0x293   : > { %v828_v47 = vsub.f32 %v1765_v61, %v803_v45 }
 0x294   : > { %v805_v51 = vpop.xlane.xlu1 %804 }
 0x295   : > { %v1852_v52 = vpop.eup %1382  ;;  %v850_v53 = vmul.f32 1.442695, %v828_v47  ;;  %v829_v54 = vsub.f32 %v1772_v1, %v805_v51 }
 0x296   : > { %876 = vadd.xlane.f32.xlu1 %v1852_v52  ;;  %870 = vadd.xlane.f32.xlu0 %v1850_v50  ;;  %v799_v55 = vpop.xlane.xlu0 %798  ;;  %v1858_v59 = vpop.eup %1384 }
 0x297   : > { %1386 = vpow2.f32 %v850_v53  ;;  %v852_v56 = vmul.f32 1.442695, %v829_v54  ;;  %v826_v57 = vsub.f32 %v1780_v6, %v799_v55 }
 0x298   : > { %v801_v58 = vpop.xlane.xlu1 %800 }
 0x299   : > { %1388 = vpow2.f32 %v852_v56  ;;  %v846_v60 = vmul.f32 1.442695, %v826_v57  ;;  %v827_v61 = vsub.f32 %v1787_v10, %v801_v58 }
 0x29a   : > { %872 = vadd.xlane.f32.xlu1 %v1858_v59 }
 0x29b   : > { %1390 = vpow2.f32 %v846_v60  ;;  %v848_v62 = vmul.f32 1.442695, %v827_v61 }
 0x29d   : > { %1392 = vpow2.f32 %v848_v62 }
 0x2a1   : > { %v1862_v63 = vpop.eup %1386 }
 0x2a2   : > { %882 = vadd.xlane.f32.xlu0 %v1862_v63  ;;  %v811_v0 = vpop.xlane.xlu0 %810 }
 0x2a3   : > { %v1865_v1 = vpop.eup %1388  ;;  %v832_v2 = vsub.f32 %v1793_v13, %v811_v0 }
 0x2a4   : > { %v813_v3 = vpop.xlane.xlu1 %812  ;;  %884 = vadd.xlane.f32.xlu1 %v1865_v1 }
 0x2a5   : > { %v1869_v4 = vpop.eup %1390  ;;  %v858_v5 = vmul.f32 1.442695, %v832_v2  ;;  %v833_v6 = vsub.f32 %v1800_v17, %v813_v3 }
 0x2a6   : > { %878 = vadd.xlane.f32.xlu0 %v1869_v4  ;;  %v807_v7 = vpop.xlane.xlu0 %806 }
 0x2a7   : > { %v1873_v8 = vpop.eup %1392  ;;  %1394 = vpow2.f32 %v858_v5  ;;  %v860_v9 = vmul.f32 1.442695, %v833_v6  ;;  %v830_v10 = vsub.f32 %v1808_v22, %v807_v7 }
 0x2a8   : > { %v809_v11 = vpop.xlane.xlu1 %808  ;;  %880 = vadd.xlane.f32.xlu1 %v1873_v8 }
 0x2a9   : > { %1396 = vpow2.f32 %v860_v9  ;;  %v854_v12 = vmul.f32 1.442695, %v830_v10  ;;  %v831_v13 = vsub.f32 %v1815_v26, %v809_v11 }
 0x2ab   : > { %1398 = vpow2.f32 %v854_v12  ;;  %v856_v14 = vmul.f32 1.442695, %v831_v13 }
 0x2ad   : > { %1400 = vpow2.f32 %v856_v14 }
 0x2b1   : > { %v1878_v15 = vpop.eup %1394 }
 0x2b2   : > { %890 = vadd.xlane.f32.xlu0 %v1878_v15 }
 0x2b3   : > { %v1881_v16 = vpop.eup %1396  ;;  %v815_v17 = vpop.xlane.xlu0 %814 }
 0x2b4   : > { %v834_v18 = vsub.f32 %v1822_v30, %v815_v17  ;;  %892 = vadd.xlane.f32.xlu1 %v1881_v16 }
 0x2b5   : > { %v1885_v19 = vpop.eup %1398  ;;  %v817_v20 = vpop.xlane.xlu1 %816 }
 0x2b6   : > { %v862_v21 = vmul.f32 1.442695, %v834_v18  ;;  %v835_v22 = vsub.f32 %v1829_v32, %v817_v20  ;;  %886 = vadd.xlane.f32.xlu0 %v1885_v19 }
 0x2b7   : > { %v1889_v23 = vpop.eup %1400  ;;  %v819_v24 = vpop.xlane.xlu0 %818 }
 0x2b8   : > { %1402 = vpow2.f32 %v862_v21  ;;  %v864_v25 = vmul.f32 1.442695, %v835_v22  ;;  %v836_v26 = vsub.f32 %v1834_v33, %v819_v24  ;;  %888 = vadd.xlane.f32.xlu1 %v1889_v23 }
 0x2b9   : > { %v821_v27 = vpop.xlane.xlu1 %820 }
 0x2ba   : > { %1404 = vpow2.f32 %v864_v25  ;;  %v866_v28 = vmul.f32 1.442695, %v836_v26  ;;  %v837_v29 = vsub.f32 %v1839_v34, %v821_v27 }
 0x2bc   : > { %1406 = vpow2.f32 %v866_v28  ;;  %v868_v30 = vmul.f32 1.442695, %v837_v29 }
 0x2be   : > { %1408 = vpow2.f32 %v868_v30 }
 0x2c2   : > { %v1894_v31 = vpop.eup %1402 }
 0x2c3   : > { %894 = vadd.xlane.f32.xlu0 %v1894_v31 }
 0x2c4   : > { %v1897_v32 = vpop.eup %1404 }
 0x2c5   : > { %896 = vadd.xlane.f32.xlu1 %v1897_v32 }
 0x2c6   : > { %v1900_v33 = vpop.eup %1406 }
 0x2c7   : > { %898 = vadd.xlane.f32.xlu0 %v1900_v33 }
 0x2c8   : > { %v1903_v35 = vpop.eup %1408 }
 0x2c9   : > { %900 = vadd.xlane.f32.xlu1 %v1903_v35 }
 0x2ca   : > { %1455 = shalt.err (!%p1452_p3)
}
 0x2cb   : > { %s1456_s10 = scalar_lea.hbm %s1913_s26, 2048  ;;  %s1460_s16 = scalar_lea.hbm %s2038_s4, 4096 }
 0x2cc   : > { %p1457_p4 = scmp.ne.s32.totalorder %s1913_s26, %s1456_s10  ;;  %p1461_p9 = scmp.lt.u32.totalorder %s1913_s26, %s2038_s4 }
 0x2cd   : > { %p1462_p10 = scmp.lt.u32.totalorder %s1460_s16, %s1456_s10  ;;  %p1464_p12 = scmp.lt.u32.totalorder %s1456_s10, %s1913_s26 }
 0x2ce   : > { %p1458_p7 = pnand %p1457_p4, %p1610_p5 }
 0x2cf   : > { %p1463_p11 = por %p1462_p10, %p1461_p9 }
 0x2d0   : > { %p1459_p8 = pneg %p1458_p7 }
 0x2d1   : > { %p1465_p13 = por %p1464_p12, %p1463_p11 }
 0x2d3   : > { %p1466_p0 = pnand %p1465_p13, %p1459_p8 }
 0x2d5   : > { %1469 = shalt.err (!%p1466_p0)
}
 0x2d6   : > { %s1539_s6 = smov 128   ;;  %s1540_s8 = smov 8  }
 0x2d7   : > { %1252 = dma.vmem_to_hbm [thread:$0]  (%p1610_p5), %s1915_s17, 2048, %s1913_s26, %s951_s30, %s1539_s6, %s1539_s6, %s1540_s8  }
 0x2d8   : > { %s1947_s9 = scalar_lea.vmem [#allocation4], %s1083_s15  ;;  %s1985_s30 = scalar_lea.hbm %s2039_s5, %s1138_s7 }
 0x2d9   : > { %s985_s15 = sshll.u32 %s1947_s9, 4  ;;  %s956_s12 = scalar_lea.sflag [#allocation5], %s1724_s14  ;;  %s1987_s15 = int_to_ptr.vmem [resolvable:$true] %s985_s15 }
 0x2da   : > { %s1470_s10 = scalar_lea.vmem %s1987_s15, 2048  ;;  %s1541_s11 = smov [#allocation4]  }
 0x2db   : > { %p1471_p1 = scmp.ne.s32.totalorder %s1987_s15, %s1470_s10  ;;  %s1474_s13 = sshll.u32 %s1541_s11, 4  ;;  %s1475_s13 = int_to_ptr.vmem [resolvable:$false] %s1474_s13 }
 0x2dc   : > { %s1476_s22 = scalar_lea.vmem %s1475_s13, 4096  ;;  %p1477_p4 = scmp.lt.s32.totalorder %s1987_s15, %s1475_s13 }
 0x2dd   : > { %p1472_p2 = pnand %p1471_p1, %p1610_p5  ;;  %p1478_p7 = scmp.lt.s32.totalorder %s1476_s22, %s1470_s10 }
 0x2df   : > { %p1473_p3 = pneg %p1472_p2  ;;  %p1479_p8 = por %p1478_p7, %p1477_p4 }
 0x2e1   : > { %p1480_p9 = pnand %p1479_p8, %p1473_p3 }
 0x31f   : > { %v875_v34 = vpop.xlane.xlu0 %874 }
 0x320   : > { %1410 = vrcp.f32 %v875_v34 }
 0x323   : > { %v877_v36 = vpop.xlane.xlu1 %876  ;;  %v871_v37 = vpop.xlane.xlu0 %870 }
 0x324   : > { %1412 = vrcp.f32 %v877_v36 }
 0x325   : > { %1414 = vrcp.f32 %v871_v37 }
 0x327   : > { %v873_v38 = vpop.xlane.xlu1 %872 }
 0x328   : > { %1416 = vrcp.f32 %v873_v38 }
 0x32a   : > { %v1411_v39 = vpop.eup %1410 }
 0x32b   : > { %v920_v40 = vmul.f32 %v1411_v39, %v1846_v49 }
 0x32d   : > { %936 = vst [vmem:[%s1947_s9 + $0x10] sm:$0xff] %v920_v40 }
 0x32e   : > { %v1413_v41 = vpop.eup %1412 }
 0x32f   : > { %v1415_v43 = vpop.eup %1414  ;;  %v921_v44 = vmul.f32 %v1413_v41, %v1852_v52  ;;  %v883_v46 = vpop.xlane.xlu0 %882 }
 0x330   : > { %v918_v42 = vmul.f32 %v1415_v43, %v1850_v50  ;;  %1418 = vrcp.f32 %v883_v46 }
 0x331   : > { %937 = vst [vmem:[%s1947_s9 + $0x18] sm:$0xff] %v921_v44  ;;  %v885_v48 = vpop.xlane.xlu1 %884 }
 0x332   : > { %v1417_v49 = vpop.eup %1416  ;;  %934 = vst [vmem:[%s1947_s9] sm:$0xff] %v918_v42  ;;  %1420 = vrcp.f32 %v885_v48 }
 0x333   : > { %v919_v45 = vmul.f32 %v1417_v49, %v1858_v59  ;;  %v879_v47 = vpop.xlane.xlu0 %878 }
 0x334   : > { %1422 = vrcp.f32 %v879_v47 }
 0x335   : > { %935 = vst [vmem:[%s1947_s9 + $0x8] sm:$0xff] %v919_v45  ;;  %v881_v51 = vpop.xlane.xlu1 %880 }
 0x336   : > { %1424 = vrcp.f32 %v881_v51 }
 0x33a   : > { %v1419_v52 = vpop.eup %1418 }
 0x33b   : > { %v924_v50 = vmul.f32 %v1419_v52, %v1862_v63 }
 0x33c   : > { %v1421_v53 = vpop.eup %1420 }
 0x33d   : > { %940 = vst [vmem:[%s1947_s9 + $0x30] sm:$0xff] %v924_v50  ;;  %v925_v54 = vmul.f32 %v1421_v53, %v1865_v1 }
 0x33e   : > { %v1423_v55 = vpop.eup %1422 }
 0x33f   : > { %941 = vst [vmem:[%s1947_s9 + $0x38] sm:$0xff] %v925_v54  ;;  %v922_v56 = vmul.f32 %v1423_v55, %v1869_v4  ;;  %v891_v57 = vpop.xlane.xlu0 %890 }
 0x340   : > { %v1425_v58 = vpop.eup %1424  ;;  %1426 = vrcp.f32 %v891_v57 }
 0x341   : > { %938 = vst [vmem:[%s1947_s9 + $0x20] sm:$0xff] %v922_v56  ;;  %v923_v59 = vmul.f32 %v1425_v58, %v1873_v8  ;;  %v893_v60 = vpop.xlane.xlu1 %892 }
 0x342   : > { %1428 = vrcp.f32 %v893_v60 }
 0x343   : > { %939 = vst [vmem:[%s1947_s9 + $0x28] sm:$0xff] %v923_v59  ;;  %v887_v61 = vpop.xlane.xlu0 %886 }
 0x344   : > { %1430 = vrcp.f32 %v887_v61 }
 0x345   : > { %v889_v62 = vpop.xlane.xlu1 %888 }
 0x346   : > { %1432 = vrcp.f32 %v889_v62 }
 0x34a   : > { %v1427_v63 = vpop.eup %1426 }
 0x34b   : > { %v928_v0 = vmul.f32 %v1427_v63, %v1878_v15 }
 0x34c   : > { %v1429_v1 = vpop.eup %1428 }
 0x34d   : > { %944 = vst [vmem:[%s1947_s9 + $0x50] sm:$0xff] %v928_v0  ;;  %v929_v2 = vmul.f32 %v1429_v1, %v1881_v16 }
 0x34e   : > { %v1431_v3 = vpop.eup %1430 }
 0x34f   : > { %945 = vst [vmem:[%s1947_s9 + $0x58] sm:$0xff] %v929_v2  ;;  %v926_v4 = vmul.f32 %v1431_v3, %v1885_v19 }
 0x350   : > { %v1433_v5 = vpop.eup %1432  ;;  %v895_v6 = vpop.xlane.xlu0 %894 }
 0x351   : > { %942 = vst [vmem:[%s1947_s9 + $0x40] sm:$0xff] %v926_v4  ;;  %v927_v7 = vmul.f32 %v1433_v5, %v1889_v23  ;;  %1434 = vrcp.f32 %v895_v6 }
 0x352   : > { %v897_v8 = vpop.xlane.xlu1 %896 }
 0x353   : > { %943 = vst [vmem:[%s1947_s9 + $0x48] sm:$0xff] %v927_v7  ;;  %1436 = vrcp.f32 %v897_v8 }
 0x354   : > { %v899_v9 = vpop.xlane.xlu0 %898 }
 0x355   : > { %1438 = vrcp.f32 %v899_v9 }
 0x356   : > { %v901_v10 = vpop.xlane.xlu1 %900 }
 0x357   : > { %1440 = vrcp.f32 %v901_v10 }
 0x35b   : > { %v1435_v11 = vpop.eup %1434 }
 0x35c   : > { %v930_v12 = vmul.f32 %v1435_v11, %v1894_v31 }
 0x35d   : > { %v1437_v13 = vpop.eup %1436 }
 0x35e   : > { %946 = vst [vmem:[%s1947_s9 + $0x60] sm:$0xff] %v930_v12  ;;  %v931_v14 = vmul.f32 %v1437_v13, %v1897_v32 }
 0x35f   : > { %v1439_v15 = vpop.eup %1438 }
 0x360   : > { %947 = vst [vmem:[%s1947_s9 + $0x68] sm:$0xff] %v931_v14  ;;  %v932_v16 = vmul.f32 %v1439_v15, %v1900_v33 }
 0x361   : > { %v1441_v17 = vpop.eup %1440 }
 0x362   : > { %948 = vst [vmem:[%s1947_s9 + $0x70] sm:$0xff] %v932_v16  ;;  %v933_v18 = vmul.f32 %v1441_v17, %v1903_v35 }
 0x364   : > { %949 = vst [vmem:[%s1947_s9 + $0x78] sm:$0xff] %v933_v18 }
 0x365   : > { %1483 = shalt.err (!%p1480_p9)
}
 0x366   : > { %s1484_s7 = scalar_lea.hbm %s1985_s30, 2048  ;;  %s1488_s25 = scalar_lea.hbm %s2039_s5, 4096 }
 0x367   : > { %p1485_p10 = scmp.ne.s32.totalorder %s1985_s30, %s1484_s7  ;;  %p1489_p13 = scmp.lt.u32.totalorder %s1985_s30, %s2039_s5 }
 0x368   : > { %p1490_p0 = scmp.lt.u32.totalorder %s1488_s25, %s1484_s7  ;;  %p1492_p2 = scmp.lt.u32.totalorder %s1484_s7, %s1985_s30 }
 0x369   : > { %p1486_p11 = pnand %p1485_p10, %p1610_p5 }
 0x36a   : > { %p1491_p1 = por %p1490_p0, %p1489_p13 }
 0x36b   : > { %p1487_p12 = pneg %p1486_p11 }
 0x36c   : > { %p1493_p3 = por %p1492_p2, %p1491_p1 }
 0x36e   : > { %p1494_p4 = pnand %p1493_p3, %p1487_p12 }
 0x370   : > { %1497 = shalt.err (!%p1494_p4)
}
 0x371   : > { %1253 = dma.vmem_to_hbm [thread:$0]  (%p1610_p5), %s1987_s15, 2048, %s1985_s30, %s956_s12, %s1539_s6, %s1539_s6, %s1540_s8  }
 0x372 PF: > { %p1263_p7 = scmp.ge.s32.totalorder %s1536_s21, 2  ;;  %s1000_s26 = sand.u32 1, %s1524_s18  }
 0x373   : > { %s1001_s10 = scalar_lea.sflag [#allocation3], %s1000_s26 }
 0x374   : > { %p1257_p8 = pnand %p1263_p7, %p1614_p6 }
 0x376   : > { %1515 = dma.done.wait (!%p1257_p8), %s1001_s10, 2048  }
 0x377   : > { %1517 = vsyncadd (!%p1257_p8), %s1001_s10, 4294965248  ;;  %s1010_s28 = scalar_lea.sflag [#allocation5], %s1000_s26 }
 0x378   : > { %1519 = dma.done.wait (!%p1257_p8), %s1010_s28, 2048  }
 0x379   : > { %1521 = vsyncadd (!%p1257_p8), %s1010_s28, 4294965248  ;;  %p19_p5 = scmp.ge.s32.totalorder %s1597_s24, 4   ;;  %s2042_s18 = smov %s1528_s19 }
 0x37a   : > { %s2043_s19 = smov %s1532_s20  ;;  %s2044_s20 = smov %s1608_s27 }
 0x37b   : > { %s2045_s21 = smov %s1597_s24  ;;  %21 = sbr.rel (!%p19_p5) target bundleno = 5 (0x5), region = 88 }
 0x382   :  { %1015 = vsyncpa [#allocation3], 1 }
 0x383   :  { %1017 = vsyncpa [#allocation3 + $0x1], 1 }
 0x384   :  { %1018 = vsyncpa [#allocation5], 1 }
 0x385   :  { %1020 = vsyncpa [#allocation5 + $0x1], 1 }

// kernel: dwr_gcn_forward.18
= control target key start
LH: loop header
LB: loop body
LE: loop exit
PB: predicated region body
PF: predicated region fallthrough
CT: control target
= control target key end

     0   :  { %9 = vsyncpa [#allocation3], 0  ;;  %s1359_s0 = inlined_call_operand.vmem [shape: bf16[256,256], index: 0, kind: input, shape index: {}]   ;;  %s1360_s1 = inlined_call_operand.vmem [shape: bf16[256,128], index: 1, kind: input, shape index: {}]   ;;  %s1361_s2 = inlined_call_operand.vmem [shape: bf16[128,128], index: 2, kind: input, shape index: {}]   ;;  %s1362_s3 = inlined_call_operand.vmem [shape: f32[1,128], index: 3, kind: input, shape index: {}]   ;;  %s1363_s4 = inlined_call_operand.hbm [shape: f32[256,128], index: 4, kind: output, shape index: {}]  }
   0x1   :  { %11 = vsyncpa [#allocation3 + $0x1], 0  ;;  %s1141_s15 = smov 0   ;;  %s1143_s16 = smov 0  }
   0x2   :  { %s1145_s17 = smov 0   ;;  %s1147_s18 = smov 0  }
   0x3 LB: > { %s1162_s19 = sadd.s32 4294967295, %s1111_s18   ;;  %s792_s20 = sadd.s32 4294967294, %s1111_s18   ;;  %s1111_s18 = sphi %s1147_s18, %s1369_s18   ;;  %s1107_s17 = sphi %s1145_s17, %s1368_s17   ;;  %s1103_s16 = sphi %s1143_s16, %s1367_s16   ;;  %s1099_s15 = sphi %s1141_s15, %s1366_s15  }
   0x4   : > { %s1166_s21 = sadd.s32 1, %s1111_s18   ;;  %s113_s22 = sadd.s32 1, %s1107_s17 }
   0x5   : > { %s110_s23 = ssub.s32 %s1111_s18, %s1166_s21  ;;  %p123_p0 = scmp.ne.s32.totalorder %s1107_s17, %s1103_s16 }
   0x6   : > { %p111_p1 = scmp.eq.s32.totalorder %s110_s23, 0  ;;  %p124_p2 = scmp.eq.s32.totalorder %s1162_s19, 1 }
   0x7   : > { %p129_p3 = scmp.ne.s32.totalorder %s1103_s16, %s1099_s15  ;;  %p130_p4 = scmp.eq.s32.totalorder %s792_s20, 1 }
   0x8   : > { %s1177_s24 = scalar_select %p111_p1, %s1107_s17, %s113_s22  }
   0x9   : > { %p1179_p5 = por %p124_p2, %p123_p0  ;;  %p1183_p6 = por %p130_p4, %p129_p3 }
   0xa   : > { %p795_p7 = scmp.ge.s32.totalorder %s1111_s18, 1  ;;  %p167_p8 = scmp.lt.s32.totalorder %s1111_s18, 3 }
   0xc   : > { %p168_p9 = pnand %p795_p7, %p167_p8 }
   0xd   : > { %v1001_v0 = vld [vmem:[%s1360_s1 + $0x40] sm:$0xff] (!%p168_p9)   ;;  %s797_s29 = sshll.u32 (!%p168_p9), %s1162_s19, 4  ;;  %v1003_v2 = vld [vmem:[%s1360_s1 + $0x48] sm:$0xff] (!%p168_p9)   ;;  %v1005_v4 = vld [vmem:[%s1360_s1 + $0x50] sm:$0xff] (!%p168_p9)   ;;  %s191_s30 = sand.u32 (!%p168_p9), 1, %s1103_s16  }
   0xe   : > { %171 = sbr.rel (%p168_p9) target bundleno = 553 (0x229), region = 36  ;;  %v1002_v1 = vld [vmem:[%s1360_s1] sm:$0xff] (!%p168_p9)   ;;  %848 = vmatprep.subr.bf16.mxu0 (!%p168_p9), %v1001_v0  ;;  %v1004_v3 = vld [vmem:[%s1360_s1 + $0x8] sm:$0xff] (!%p168_p9)   ;;  %p195_p10 = scmp.lt.s32.totalorder (!%p168_p9), %s797_s29, 31  ;;  %v1006_v5 = vld [vmem:[%s1360_s1 + $0x10] sm:$0xff] (!%p168_p9)  }
   0xf   : > { %849 = vmatpush3.bf16.msra.mxu0 (!%p168_p9), %v1002_v1  ;;  %v1007_v6 = vld [vmem:[%s1360_s1 + $0x58] sm:$0xff] (!%p168_p9)   ;;  %v1009_v8 = vld [vmem:[%s1360_s1 + $0x60] sm:$0xff] (!%p168_p9)   ;;  %v1011_v10 = vld [vmem:[%s1360_s1 + $0x68] sm:$0xff] (!%p168_p9)   ;;  %s796_s5 = sshll.u32 (!%p168_p9), %s191_s30, 7  ;;  %s847_s10 = sshll.u32 (!%p168_p9), %s1162_s19, 11 }
  0x10   : > { %850 = vmatprep.subr.bf16.mxu0 (!%p168_p9), %v1003_v2  ;;  %v1008_v7 = vld [vmem:[%s1360_s1 + $0x18] sm:$0xff] (!%p168_p9)   ;;  %v1010_v9 = vld [vmem:[%s1360_s1 + $0x20] sm:$0xff] (!%p168_p9)   ;;  %v1012_v12 = vld [vmem:[%s1360_s1 + $0x28] sm:$0xff] (!%p168_p9)   ;;  %s1289_s9 = scalar_lea.vmem (!%p168_p9), [#allocation2], %s796_s5  ;;  %s1309_s13 = scalar_lea.hbm (!%p168_p9), %s1363_s4, %s847_s10 }
  0x11   : > { %v1013_v13 = vld [vmem:[%s1360_s1 + $0x70] sm:$0xff] (!%p168_p9)   ;;  %v1015_v15 = vld [vmem:[%s1360_s1 + $0x78] sm:$0xff] (!%p168_p9)   ;;  %v1041_v17 = vld [vmem:[%s1361_s2] sm:$0xff] (!%p168_p9)   ;;  %s730_s11 = sshll.u32 (!%p168_p9), %s1289_s9, 4  ;;  %s1318_s19 = scalar_lea.sflag (!%p168_p9), [#allocation3], %s191_s30  ;;  %s1311_s11 = int_to_ptr.vmem [resolvable:$true] %s730_s11 }
  0x12   : > { %v1014_v14 = vld [vmem:[%s1360_s1 + $0x30] sm:$0xff] (!%p168_p9)   ;;  %v1016_v16 = vld [vmem:[%s1360_s1 + $0x38] sm:$0xff] (!%p168_p9)   ;;  %v1042_v19 = vld [vmem:[%s1361_s2 + $0x8] sm:$0xff] (!%p168_p9)   ;;  %928 = vmatprep.subr.bf16.mxu1 (!%p168_p9), %v1041_v17  ;;  %s1049_s14 = scalar_lea.vmem (!%p168_p9), %s1311_s11, 2048  ;;  %s1113_s20 = smov (!%p168_p9), [#allocation2]  }
  0x13   : > { %851 = vmatpush3.bf16.msra.mxu0 (!%p168_p9), %v1004_v3  ;;  %929 = vmatpush3.bf16.msra.mxu1 (!%p168_p9), %v1041_v17  ;;  %v1043_v21 = vld [vmem:[%s1361_s2 + $0x10] sm:$0xff] (!%p168_p9)   ;;  %v1044_v22 = vld [vmem:[%s1361_s2 + $0x18] sm:$0xff] (!%p168_p9)   ;;  %v1045_v36 = vld [vmem:[%s1361_s2 + $0x20] sm:$0xff] (!%p168_p9)   ;;  %p1050_p11 = scmp.ne.s32.totalorder (!%p168_p9), %s1311_s11, %s1049_s14  ;;  %s1053_s22 = sshll.u32 (!%p168_p9), %s1113_s20, 4  ;;  %s1054_s22 = int_to_ptr.vmem [resolvable:$false] %s1053_s22 }
  0x14   : > { %852 = vmatprep.subr.bf16.mxu0 (!%p168_p9), %v1005_v4  ;;  %930 = vmatprep.subr.bf16.mxu1 (!%p168_p9), %v1042_v19  ;;  %v1046_v37 = vld [vmem:[%s1361_s2 + $0x28] sm:$0xff] (!%p168_p9)   ;;  %v1047_v38 = vld [vmem:[%s1361_s2 + $0x30] sm:$0xff] (!%p168_p9)   ;;  %v1048_v39 = vld [vmem:[%s1361_s2 + $0x38] sm:$0xff] (!%p168_p9)   ;;  %s1055_s23 = scalar_lea.vmem (!%p168_p9), %s1054_s22, 4096  ;;  %p1056_p0 = scmp.lt.s32.totalorder (!%p168_p9), %s1311_s11, %s1054_s22 }
  0x15   : > { %s1371_s29 = smov (!%p195_p10, %s797_s29), 31  ;;  %p1051_p12 = pnand %p1050_p11, %p1179_p5 }
  0x16   : > { %s846_s27 = sshll.u32 %s1371_s29, 3  ;;  %p1057_p1 = scmp.lt.s32.totalorder %s1055_s23, %s1049_s14 }
  0x17   : > { %853 = vmatpush3.bf16.msra.mxu0 %v1006_v5  ;;  %s1220_s7 = scalar_lea.vmem %s1359_s0, %s846_s27  ;;  %931 = vmatpush3.bf16.msra.mxu1 %v1042_v19  ;;  %p1052_p13 = pneg %p1051_p12 }
  0x18   : > { %854 = vmatprep.subr.bf16.mxu0 %v1007_v6  ;;  %v1019_v11 = vld [vmem:[%s1220_s7 + $0x4] ss:$8 sps:$4 sm:$0xff]   ;;  %v1017_v18 = vld [vmem:[%s1220_s7] ss:$8 sps:$4 sm:$0xff]   ;;  %v1020_v20 = vld [vmem:[%s1220_s7 + $0x14] ss:$8 sps:$4 sm:$0xff]   ;;  %932 = vmatprep.subr.bf16.mxu1 %v1043_v21  ;;  %p1058_p2 = por %p1057_p1, %p1056_p0 }
  0x19   : > { %459 = vmatprep.mubr.bf16.mxu0 %v1019_v11  ;;  %v1022_v23 = vld [vmem:[%s1220_s7 + $0x10] ss:$8 sps:$4 sm:$0xff]   ;;  %v1023_v24 = vld [vmem:[%s1220_s7 + $0x24] ss:$8 sps:$4 sm:$0xff]   ;;  %v1025_v25 = vld [vmem:[%s1220_s7 + $0x20] ss:$8 sps:$4 sm:$0xff]  }
  0x1a   : > { %v1026_v26 = vld [vmem:[%s1220_s7 + $0x34] ss:$8 sps:$4 sm:$0xff]   ;;  %v1028_v27 = vld [vmem:[%s1220_s7 + $0x30] ss:$8 sps:$4 sm:$0xff]   ;;  %v1029_v28 = vld [vmem:[%s1220_s7 + $0x44] ss:$8 sps:$4 sm:$0xff]   ;;  %p1059_p3 = pnand %p1058_p2, %p1052_p13 }
  0x1b   : > { %855 = vmatpush3.bf16.msra.mxu0 %v1008_v7  ;;  %933 = vmatpush3.bf16.msra.mxu1 %v1043_v21  ;;  %v1031_v29 = vld [vmem:[%s1220_s7 + $0x40] ss:$8 sps:$4 sm:$0xff]   ;;  %v1032_v30 = vld [vmem:[%s1220_s7 + $0x54] ss:$8 sps:$4 sm:$0xff]   ;;  %v1034_v31 = vld [vmem:[%s1220_s7 + $0x50] ss:$8 sps:$4 sm:$0xff]  }
  0x1c   : > { %856 = vmatprep.subr.bf16.mxu0 %v1009_v8  ;;  %934 = vmatprep.subr.bf16.mxu1 %v1044_v22  ;;  %v1035_v32 = vld [vmem:[%s1220_s7 + $0x64] ss:$8 sps:$4 sm:$0xff]   ;;  %v1037_v33 = vld [vmem:[%s1220_s7 + $0x60] ss:$8 sps:$4 sm:$0xff]   ;;  %v1038_v34 = vld [vmem:[%s1220_s7 + $0x74] ss:$8 sps:$4 sm:$0xff]  }
  0x1d   : > { %v1040_v35 = vld [vmem:[%s1220_s7 + $0x70] ss:$8 sps:$4 sm:$0xff]  }
  0x1f   : > { %857 = vmatpush3.bf16.msra.mxu0 %v1010_v9  ;;  %935 = vmatpush3.bf16.msra.mxu1 %v1044_v22 }
  0x20   : > { %858 = vmatprep.subr.bf16.mxu0 %v1011_v10  ;;  %936 = vmatprep.subr.bf16.mxu1 %v1045_v36 }
  0x23   : > { %859 = vmatpush3.bf16.msra.mxu0 %v1012_v12  ;;  %937 = vmatpush3.bf16.msra.mxu1 %v1045_v36 }
  0x24   : > { %860 = vmatprep.subr.bf16.mxu0 %v1013_v13  ;;  %938 = vmatprep.subr.bf16.mxu1 %v1046_v37 }
  0x27   : > { %861 = vmatpush3.bf16.msra.mxu0 %v1014_v14  ;;  %939 = vmatpush3.bf16.msra.mxu1 %v1046_v37 }
  0x28   : > { %862 = vmatprep.subr.bf16.mxu0 %v1015_v15  ;;  %940 = vmatprep.subr.bf16.mxu1 %v1047_v38 }
  0x2b   : > { %863 = vmatpush3.bf16.msra.mxu0 %v1016_v16  ;;  %941 = vmatpush3.bf16.msra.mxu1 %v1047_v38 }
  0x2c   : > { %942 = vmatprep.subr.bf16.mxu1 %v1048_v39 }
  0x2e   : > { %460 = vmatmul.mubr.bf16.vlgmr.msra.gmra.mrb[0].mxu0 %v1017_v18 }
  0x2f   : > { %467 = vmatprep.mubr.bf16.mxu0 %v1020_v20  ;;  %943 = vmatpush3.bf16.msra.mxu1 %v1048_v39 }
  0x36   : > { %468 = vmatmul.mubr.bf16.gmra.mrb[4].mxu0 %v1022_v23 }
  0x37   : > { %475 = vmatprep.mubr.bf16.mxu0 %v1023_v24 }
  0x3e   : > { %476 = vmatmul.mubr.bf16.gmra.mrb[8].mxu0 %v1025_v25 }
  0x3f   : > { %483 = vmatprep.mubr.bf16.mxu0 %v1026_v26 }
  0x46   : > { %484 = vmatmul.mubr.bf16.gmra.mrb[12].mxu0 %v1028_v27 }
  0x47   : > { %491 = vmatprep.mubr.bf16.mxu0 %v1029_v28 }
  0x4e   : > { %492 = vmatmul.mubr.bf16.gmra.mrb[16].mxu0 %v1031_v29 }
  0x4f   : > { %499 = vmatprep.mubr.bf16.mxu0 %v1032_v30 }
  0x56   : > { %500 = vmatmul.mubr.bf16.gmra.mrb[20].mxu0 %v1034_v31 }
  0x57   : > { %507 = vmatprep.mubr.bf16.mxu0 %v1035_v32  ;;  %v832_v32 = vld [vmem:[%s1362_s3] ss:$0 sm:$0xff] }
  0x5e   : > { %508 = vmatmul.mubr.bf16.gmra.mrb[24].mxu0 %v1037_v33 }
  0x5f   : > { %515 = vmatprep.mubr.bf16.mxu0 %v1038_v34 }
  0x66   : > { %516 = vmatmul.mubr.bf16.gmra.mrb[28].mxu0 %v1040_v35 }
 0x101   : > { %v864_v40 = vpop.f32.mrb[0].mxu0 }
 0x102   : > { %v865_v41 = vpop.f32.mrb[1].mxu0 }
 0x103   : > { %v866_v42 = vadd.f32 %v865_v41, %v864_v40  ;;  %v867_v43 = vpop.f32.mrb[2].mxu0 }
 0x104   : > { %v868_v44 = vpop.f32.mrb[3].mxu0 }
 0x105   : > { %v869_v45 = vadd.f32 %v868_v44, %v867_v43 }
 0x107   : > { %v524_v46 = vpack.c.bf16 %v869_v45, %v866_v42 }
 0x109   : > { %v870_v47 = vpop.f32.mrb[4].mxu0  ;;  %944 = vmatprep.mubr.bf16.mxu1 %v524_v46 }
 0x10a   : > { %v871_v48 = vpop.f32.mrb[5].mxu0 }
 0x10b   : > { %v872_v49 = vadd.f32 %v871_v48, %v870_v47  ;;  %v873_v50 = vpop.f32.mrb[6].mxu0 }
 0x10c   : > { %v874_v51 = vpop.f32.mrb[7].mxu0 }
 0x10d   : > { %v875_v52 = vadd.f32 %v874_v51, %v873_v50 }
 0x10f   : > { %v525_v53 = vpack.c.bf16 %v875_v52, %v872_v49 }
 0x111   : > { %v876_v54 = vpop.f32.mrb[8].mxu0  ;;  %945 = vmatmul.mubr.bf16.vlgmr.msra.gmra.mrb[0].mxu1 %v525_v53 }
 0x112   : > { %v877_v55 = vpop.f32.mrb[9].mxu0 }
 0x113   : > { %v878_v56 = vadd.f32 %v877_v55, %v876_v54  ;;  %v879_v57 = vpop.f32.mrb[10].mxu0 }
 0x114   : > { %v880_v58 = vpop.f32.mrb[11].mxu0 }
 0x115   : > { %v881_v59 = vadd.f32 %v880_v58, %v879_v57 }
 0x117   : > { %v526_v60 = vpack.c.bf16 %v881_v59, %v878_v56 }
 0x119   : > { %v882_v61 = vpop.f32.mrb[12].mxu0  ;;  %948 = vmatprep.mubr.bf16.mxu1 %v526_v60 }
 0x11a   : > { %v883_v62 = vpop.f32.mrb[13].mxu0 }
 0x11b   : > { %v884_v63 = vadd.f32 %v883_v62, %v882_v61  ;;  %v885_v0 = vpop.f32.mrb[14].mxu0 }
 0x11c   : > { %v886_v1 = vpop.f32.mrb[15].mxu0 }
 0x11d   : > { %v887_v2 = vadd.f32 %v886_v1, %v885_v0 }
 0x11f   : > { %v527_v3 = vpack.c.bf16 %v887_v2, %v884_v63 }
 0x121   : > { %v888_v4 = vpop.f32.mrb[16].mxu0  ;;  %949 = vmatmul.mubr.bf16.gmra.mrb[4].mxu1 %v527_v3 }
 0x122   : > { %v889_v5 = vpop.f32.mrb[17].mxu0 }
 0x123   : > { %v890_v6 = vadd.f32 %v889_v5, %v888_v4  ;;  %v891_v7 = vpop.f32.mrb[18].mxu0 }
 0x124   : > { %v892_v8 = vpop.f32.mrb[19].mxu0 }
 0x125   : > { %v893_v9 = vadd.f32 %v892_v8, %v891_v7 }
 0x127   : > { %v528_v10 = vpack.c.bf16 %v893_v9, %v890_v6 }
 0x129   : > { %v894_v11 = vpop.f32.mrb[20].mxu0  ;;  %952 = vmatprep.mubr.bf16.mxu1 %v528_v10 }
 0x12a   : > { %v895_v12 = vpop.f32.mrb[21].mxu0 }
 0x12b   : > { %v896_v13 = vadd.f32 %v895_v12, %v894_v11  ;;  %v897_v14 = vpop.f32.mrb[22].mxu0 }
 0x12c   : > { %v898_v15 = vpop.f32.mrb[23].mxu0 }
 0x12d   : > { %v899_v16 = vadd.f32 %v898_v15, %v897_v14 }
 0x12f   : > { %v529_v17 = vpack.c.bf16 %v899_v16, %v896_v13 }
 0x131   : > { %v900_v18 = vpop.f32.mrb[24].mxu0  ;;  %953 = vmatmul.mubr.bf16.gmra.mrb[8].mxu1 %v529_v17 }
 0x132   : > { %v901_v19 = vpop.f32.mrb[25].mxu0 }
 0x133   : > { %v902_v20 = vadd.f32 %v901_v19, %v900_v18  ;;  %v903_v21 = vpop.f32.mrb[26].mxu0 }
 0x134   : > { %v904_v22 = vpop.f32.mrb[27].mxu0 }
 0x135   : > { %v905_v23 = vadd.f32 %v904_v22, %v903_v21 }
 0x137   : > { %v530_v24 = vpack.c.bf16 %v905_v23, %v902_v20 }
 0x139   : > { %v906_v25 = vpop.f32.mrb[28].mxu0  ;;  %956 = vmatprep.mubr.bf16.mxu1 %v530_v24 }
 0x13a   : > { %v907_v26 = vpop.f32.mrb[29].mxu0 }
 0x13b   : > { %v908_v27 = vadd.f32 %v907_v26, %v906_v25  ;;  %v909_v28 = vpop.f32.mrb[30].mxu0 }
 0x13c   : > { %v910_v29 = vpop.f32.mrb[31].mxu0 }
 0x13d   : > { %v911_v30 = vadd.f32 %v910_v29, %v909_v28 }
 0x13f   : > { %v531_v31 = vpack.c.bf16 %v911_v30, %v908_v27 }
 0x141   : > { %957 = vmatmul.mubr.bf16.gmra.mrb[12].mxu1 %v531_v31 }
 0x1e4   : > { %v946_v33 = vpop.f32.mrb[0].mxu1 }
 0x1e5   : > { %v646_v34 = vadd.f32 %v946_v33, %v832_v32  ;;  %v637_v35 = vpop.f32.mrb[1].mxu1 }
 0x1e6   : > { %v638_v36 = vadd.f32 %v832_v32, %v637_v35  ;;  %v947_v37 = vpop.f32.mrb[2].mxu1 }
 0x1e7   : > { %702 = vst [vmem:[%s1289_s9 + $0x10] sm:$0xff] %v646_v34  ;;  %v649_v38 = vadd.f32 %v947_v37, %v832_v32  ;;  %v640_v39 = vpop.f32.mrb[3].mxu1 }
 0x1e8   : > { %700 = vst [vmem:[%s1289_s9] sm:$0xff] %v638_v36  ;;  %v641_v40 = vadd.f32 %v832_v32, %v640_v39 }
 0x1e9   : > { %703 = vst [vmem:[%s1289_s9 + $0x18] sm:$0xff] %v649_v38 }
 0x1ea   : > { %701 = vst [vmem:[%s1289_s9 + $0x8] sm:$0xff] %v641_v40 }
 0x1f4   : > { %v950_v41 = vpop.f32.mrb[4].mxu1 }
 0x1f5   : > { %v662_v42 = vadd.f32 %v950_v41, %v832_v32  ;;  %v653_v43 = vpop.f32.mrb[5].mxu1 }
 0x1f6   : > { %v654_v44 = vadd.f32 %v832_v32, %v653_v43  ;;  %v951_v45 = vpop.f32.mrb[6].mxu1 }
 0x1f7   : > { %706 = vst [vmem:[%s1289_s9 + $0x30] sm:$0xff] %v662_v42  ;;  %v665_v46 = vadd.f32 %v951_v45, %v832_v32  ;;  %v656_v47 = vpop.f32.mrb[7].mxu1 }
 0x1f8   : > { %704 = vst [vmem:[%s1289_s9 + $0x20] sm:$0xff] %v654_v44  ;;  %v657_v48 = vadd.f32 %v832_v32, %v656_v47 }
 0x1f9   : > { %707 = vst [vmem:[%s1289_s9 + $0x38] sm:$0xff] %v665_v46 }
 0x1fa   : > { %705 = vst [vmem:[%s1289_s9 + $0x28] sm:$0xff] %v657_v48 }
 0x204   : > { %v954_v49 = vpop.f32.mrb[8].mxu1 }
 0x205   : > { %v678_v50 = vadd.f32 %v954_v49, %v832_v32  ;;  %v669_v51 = vpop.f32.mrb[9].mxu1 }
 0x206   : > { %v670_v52 = vadd.f32 %v832_v32, %v669_v51  ;;  %v955_v53 = vpop.f32.mrb[10].mxu1 }
 0x207   : > { %710 = vst [vmem:[%s1289_s9 + $0x50] sm:$0xff] %v678_v50  ;;  %v681_v54 = vadd.f32 %v955_v53, %v832_v32  ;;  %v672_v55 = vpop.f32.mrb[11].mxu1 }
 0x208   : > { %708 = vst [vmem:[%s1289_s9 + $0x40] sm:$0xff] %v670_v52  ;;  %v673_v56 = vadd.f32 %v832_v32, %v672_v55 }
 0x209   : > { %711 = vst [vmem:[%s1289_s9 + $0x58] sm:$0xff] %v681_v54 }
 0x20a   : > { %709 = vst [vmem:[%s1289_s9 + $0x48] sm:$0xff] %v673_v56 }
 0x214   : > { %v958_v57 = vpop.f32.mrb[12].mxu1 }
 0x215   : > { %v694_v58 = vadd.f32 %v958_v57, %v832_v32  ;;  %v685_v59 = vpop.f32.mrb[13].mxu1 }
 0x216   : > { %v686_v60 = vadd.f32 %v832_v32, %v685_v59  ;;  %v959_v61 = vpop.f32.mrb[14].mxu1 }
 0x217   : > { %714 = vst [vmem:[%s1289_s9 + $0x70] sm:$0xff] %v694_v58  ;;  %v697_v62 = vadd.f32 %v959_v61, %v832_v32  ;;  %v688_v63 = vpop.f32.mrb[15].mxu1 }
 0x218   : > { %712 = vst [vmem:[%s1289_s9 + $0x60] sm:$0xff] %v686_v60  ;;  %v689_v0 = vadd.f32 %v832_v32, %v688_v63 }
 0x219   : > { %715 = vst [vmem:[%s1289_s9 + $0x78] sm:$0xff] %v697_v62 }
 0x21a   : > { %713 = vst [vmem:[%s1289_s9 + $0x68] sm:$0xff] %v689_v0 }
 0x21b   : > { %1062 = shalt.err (!%p1059_p3)
}
 0x21c   : > { %s1063_s27 = scalar_lea.hbm %s1309_s13, 2048  ;;  %s1067_s30 = scalar_lea.hbm %s1363_s4, 4096 }
 0x21d   : > { %p1064_p4 = scmp.ne.s32.totalorder %s1309_s13, %s1063_s27  ;;  %p1068_p9 = scmp.lt.u32.totalorder %s1309_s13, %s1363_s4 }
 0x21e   : > { %p1069_p10 = scmp.lt.u32.totalorder %s1067_s30, %s1063_s27  ;;  %p1071_p12 = scmp.lt.u32.totalorder %s1063_s27, %s1309_s13 }
 0x21f   : > { %p1065_p7 = pnand %p1064_p4, %p1179_p5 }
 0x220   : > { %p1070_p11 = por %p1069_p10, %p1068_p9 }
 0x221   : > { %p1066_p8 = pneg %p1065_p7 }
 0x222   : > { %p1072_p13 = por %p1071_p12, %p1070_p11 }
 0x224   : > { %p1073_p0 = pnand %p1072_p13, %p1066_p8 }
 0x226   : > { %1076 = shalt.err (!%p1073_p0)
}
 0x227   : > { %s1114_s8 = smov 128   ;;  %s1115_s9 = smov 8  }
 0x228   : > { %960 = dma.vmem_to_hbm [thread:$0]  (%p1179_p5), %s1311_s11, 2048, %s1309_s13, %s1318_s19, %s1114_s8, %s1114_s8, %s1115_s9  }
 0x229 PF: > { %p966_p1 = scmp.ge.s32.totalorder %s1111_s18, 2  ;;  %s745_s10 = sand.u32 1, %s1099_s15  }
 0x22a   : > { %s746_s29 = scalar_lea.sflag [#allocation3], %s745_s10 }
 0x22b   : > { %p963_p2 = pnand %p966_p1, %p1183_p6 }
 0x22d   : > { %1094 = dma.done.wait (!%p963_p2), %s746_s29, 2048  }
 0x22e   : > { %1096 = vsyncadd (!%p963_p2), %s746_s29, 4294965248  ;;  %p14_p3 = scmp.ge.s32.totalorder %s1166_s21, 4   ;;  %s1366_s15 = smov %s1103_s16 }
 0x22f   : > { %s1367_s16 = smov %s1107_s17  ;;  %s1368_s17 = smov %s1177_s24 }
 0x230   : > { %s1369_s18 = smov %s1166_s21  ;;  %16 = sbr.rel (!%p14_p3) target bundleno = 3 (0x3), region = 71 }
 0x237   :  { %751 = vsyncpa [#allocation3], 1 }
 0x238   :  { %753 = vsyncpa [#allocation3 + $0x1], 1 }

// kernel: dwr_gcn_forward.14
= control target key start
LH: loop header
LB: loop body
LE: loop exit
PB: predicated region body
PF: predicated region fallthrough
CT: control target
= control target key end

     0   :  { %11 = vsyncpa [#allocation3], 0  ;;  %s1893_s0 = inlined_call_operand.vmem [shape: bf16[256,256], index: 0, kind: input, shape index: {}]   ;;  %s1894_s1 = inlined_call_operand.vmem [shape: bf16[256,128], index: 1, kind: input, shape index: {}]   ;;  %s1895_s2 = inlined_call_operand.vmem [shape: bf16[128,128], index: 2, kind: input, shape index: {}]   ;;  %s1896_s3 = inlined_call_operand.vmem [shape: f32[1,128], index: 3, kind: input, shape index: {}]   ;;  %s1897_s4 = inlined_call_operand.vmem [shape: f32[256,128], index: 4, kind: output, shape index: {0}]   ;;  %s1898_s5 = inlined_call_operand.hbm [shape: f32[256,128], index: 5, kind: output, shape index: {1}]  }
   0x1   :  { %13 = vsyncpa [#allocation3 + $0x1], 0  ;;  %s1466_s18 = smov 0   ;;  %s1468_s19 = smov 0  }
   0x2   :  { %s1470_s20 = smov 0   ;;  %s1472_s21 = smov 0  }
   0x3 LB: > { %s1487_s22 = sadd.s32 4294967295, %s1431_s21   ;;  %s1046_s23 = sadd.s32 4294967294, %s1431_s21   ;;  %s1431_s21 = sphi %s1472_s21, %s1904_s21   ;;  %s1427_s20 = sphi %s1470_s20, %s1903_s20   ;;  %s1423_s19 = sphi %s1468_s19, %s1902_s19   ;;  %s1419_s18 = sphi %s1466_s18, %s1901_s18  }
   0x4   : > { %s1491_s24 = sadd.s32 1, %s1431_s21   ;;  %s141_s25 = sadd.s32 1, %s1427_s20 }
   0x5   : > { %s138_s26 = ssub.s32 %s1431_s21, %s1491_s24  ;;  %p151_p0 = scmp.ne.s32.totalorder %s1427_s20, %s1423_s19 }
   0x6   : > { %p139_p1 = scmp.eq.s32.totalorder %s138_s26, 0  ;;  %p152_p2 = scmp.eq.s32.totalorder %s1487_s22, 1 }
   0x7   : > { %p157_p3 = scmp.ne.s32.totalorder %s1423_s19, %s1419_s18  ;;  %p158_p4 = scmp.eq.s32.totalorder %s1046_s23, 1 }
   0x8   : > { %s1502_s27 = scalar_select %p139_p1, %s1427_s20, %s141_s25  }
   0x9   : > { %p1504_p5 = por %p152_p2, %p151_p0  ;;  %p1508_p6 = por %p158_p4, %p157_p3 }
   0xa   : > { %p1049_p7 = scmp.ge.s32.totalorder %s1431_s21, 1  ;;  %p195_p8 = scmp.lt.s32.totalorder %s1431_s21, 3 }
   0xc   : > { %p196_p9 = pnand %p1049_p7, %p195_p8 }
   0xd   : > { %v1257_v0 = vld [vmem:[%s1894_s1 + $0x40] sm:$0xff] (!%p196_p9)   ;;  %s1051_s7 = sshll.u32 (!%p196_p9), %s1487_s22, 4  ;;  %v1259_v2 = vld [vmem:[%s1894_s1 + $0x48] sm:$0xff] (!%p196_p9)   ;;  %v1261_v4 = vld [vmem:[%s1894_s1 + $0x50] sm:$0xff] (!%p196_p9)   ;;  %s1103_s8 = sshll.u32 (!%p196_p9), %s1487_s22, 11 }
   0xe   : > { %199 = sbr.rel (%p196_p9) target bundleno = 870 (0x366), region = 36  ;;  %v1258_v1 = vld [vmem:[%s1894_s1] sm:$0xff] (!%p196_p9)   ;;  %1104 = vmatprep.subr.bf16.mxu0 (!%p196_p9), %v1257_v0  ;;  %v1260_v3 = vld [vmem:[%s1894_s1 + $0x8] sm:$0xff] (!%p196_p9)   ;;  %p230_p10 = scmp.lt.s32.totalorder (!%p196_p9), %s1051_s7, 31  ;;  %v1262_v5 = vld [vmem:[%s1894_s1 + $0x10] sm:$0xff] (!%p196_p9)  }
   0xf   : > { %1105 = vmatpush3.bf16.msra.mxu0 (!%p196_p9), %v1258_v1  ;;  %v1263_v6 = vld [vmem:[%s1894_s1 + $0x58] sm:$0xff] (!%p196_p9)   ;;  %v1265_v8 = vld [vmem:[%s1894_s1 + $0x60] sm:$0xff] (!%p196_p9)   ;;  %v1267_v10 = vld [vmem:[%s1894_s1 + $0x68] sm:$0xff] (!%p196_p9)   ;;  %s1843_s13 = scalar_lea.hbm (!%p196_p9), %s1898_s5, %s1103_s8 }
  0x10   : > { %1106 = vmatprep.subr.bf16.mxu0 (!%p196_p9), %v1259_v2  ;;  %v1264_v7 = vld [vmem:[%s1894_s1 + $0x18] sm:$0xff] (!%p196_p9)   ;;  %v1266_v9 = vld [vmem:[%s1894_s1 + $0x20] sm:$0xff] (!%p196_p9)   ;;  %v1268_v12 = vld [vmem:[%s1894_s1 + $0x28] sm:$0xff] (!%p196_p9)  }
  0x11   : > { %v1269_v13 = vld [vmem:[%s1894_s1 + $0x70] sm:$0xff] (!%p196_p9)   ;;  %v1271_v15 = vld [vmem:[%s1894_s1 + $0x78] sm:$0xff] (!%p196_p9)   ;;  %v1297_v17 = vld [vmem:[%s1895_s2] sm:$0xff] (!%p196_p9)  }
  0x12   : > { %v1270_v14 = vld [vmem:[%s1894_s1 + $0x30] sm:$0xff] (!%p196_p9)   ;;  %v1272_v16 = vld [vmem:[%s1894_s1 + $0x38] sm:$0xff] (!%p196_p9)   ;;  %v1298_v19 = vld [vmem:[%s1895_s2 + $0x8] sm:$0xff] (!%p196_p9)   ;;  %1184 = vmatprep.subr.bf16.mxu1 (!%p196_p9), %v1297_v17 }
  0x13   : > { %1107 = vmatpush3.bf16.msra.mxu0 (!%p196_p9), %v1260_v3  ;;  %1185 = vmatpush3.bf16.msra.mxu1 (!%p196_p9), %v1297_v17  ;;  %v1299_v21 = vld [vmem:[%s1895_s2 + $0x10] sm:$0xff] (!%p196_p9)   ;;  %v1300_v22 = vld [vmem:[%s1895_s2 + $0x18] sm:$0xff] (!%p196_p9)   ;;  %v1301_v36 = vld [vmem:[%s1895_s2 + $0x20] sm:$0xff] (!%p196_p9)  }
  0x14   : > { %1108 = vmatprep.subr.bf16.mxu0 (!%p196_p9), %v1261_v4  ;;  %1186 = vmatprep.subr.bf16.mxu1 (!%p196_p9), %v1298_v19  ;;  %v1302_v37 = vld [vmem:[%s1895_s2 + $0x28] sm:$0xff] (!%p196_p9)   ;;  %v1303_v38 = vld [vmem:[%s1895_s2 + $0x30] sm:$0xff] (!%p196_p9)   ;;  %v1304_v39 = vld [vmem:[%s1895_s2 + $0x38] sm:$0xff] (!%p196_p9)  }
  0x15   : > { %s1906_s7 = smov (!%p230_p10, %s1051_s7), 31 }
  0x16   : > { %s1102_s6 = sshll.u32 %s1906_s7, 3  ;;  %s226_s7 = sand.u32 1, %s1423_s19  }
  0x17   : > { %1109 = vmatpush3.bf16.msra.mxu0 %v1262_v5  ;;  %s1550_s12 = scalar_lea.vmem %s1893_s0, %s1102_s6  ;;  %1187 = vmatpush3.bf16.msra.mxu1 %v1298_v19  ;;  %s1625_s26 = scalar_lea.vmem %s1897_s4, %s1102_s6 }
  0x18   : > { %1110 = vmatprep.subr.bf16.mxu0 %v1263_v6  ;;  %v1275_v11 = vld [vmem:[%s1550_s12 + $0x4] ss:$8 sps:$4 sm:$0xff]   ;;  %v1273_v18 = vld [vmem:[%s1550_s12] ss:$8 sps:$4 sm:$0xff]   ;;  %v1276_v20 = vld [vmem:[%s1550_s12 + $0x14] ss:$8 sps:$4 sm:$0xff]   ;;  %1188 = vmatprep.subr.bf16.mxu1 %v1299_v21 }
  0x19   : > { %500 = vmatprep.mubr.bf16.mxu0 %v1275_v11  ;;  %v1278_v23 = vld [vmem:[%s1550_s12 + $0x10] ss:$8 sps:$4 sm:$0xff]   ;;  %v1279_v24 = vld [vmem:[%s1550_s12 + $0x24] ss:$8 sps:$4 sm:$0xff]   ;;  %v1281_v25 = vld [vmem:[%s1550_s12 + $0x20] ss:$8 sps:$4 sm:$0xff]  }
  0x1a   : > { %v1282_v26 = vld [vmem:[%s1550_s12 + $0x34] ss:$8 sps:$4 sm:$0xff]   ;;  %v1284_v27 = vld [vmem:[%s1550_s12 + $0x30] ss:$8 sps:$4 sm:$0xff]   ;;  %v1285_v28 = vld [vmem:[%s1550_s12 + $0x44] ss:$8 sps:$4 sm:$0xff]  }
  0x1b   : > { %1111 = vmatpush3.bf16.msra.mxu0 %v1264_v7  ;;  %1189 = vmatpush3.bf16.msra.mxu1 %v1299_v21  ;;  %v1287_v29 = vld [vmem:[%s1550_s12 + $0x40] ss:$8 sps:$4 sm:$0xff]   ;;  %v1288_v30 = vld [vmem:[%s1550_s12 + $0x54] ss:$8 sps:$4 sm:$0xff]   ;;  %v1290_v31 = vld [vmem:[%s1550_s12 + $0x50] ss:$8 sps:$4 sm:$0xff]  }
  0x1c   : > { %1112 = vmatprep.subr.bf16.mxu0 %v1265_v8  ;;  %1190 = vmatprep.subr.bf16.mxu1 %v1300_v22  ;;  %v1291_v32 = vld [vmem:[%s1550_s12 + $0x64] ss:$8 sps:$4 sm:$0xff]   ;;  %v1293_v33 = vld [vmem:[%s1550_s12 + $0x60] ss:$8 sps:$4 sm:$0xff]   ;;  %v1294_v34 = vld [vmem:[%s1550_s12 + $0x74] ss:$8 sps:$4 sm:$0xff]  }
  0x1d   : > { %v1296_v35 = vld [vmem:[%s1550_s12 + $0x70] ss:$8 sps:$4 sm:$0xff]   ;;  %s1050_s6 = sshll.u32 %s226_s7, 7  ;;  %s1852_s22 = scalar_lea.sflag [#allocation3], %s226_s7 }
  0x1e   : > { %s1808_s30 = scalar_lea.vmem [#allocation2], %s1050_s6  ;;  %s1433_s12 = smov [#allocation2]  }
  0x1f   : > { %1113 = vmatpush3.bf16.msra.mxu0 %v1266_v9  ;;  %1191 = vmatpush3.bf16.msra.mxu1 %v1300_v22  ;;  %s959_s9 = sshll.u32 %s1808_s30, 4  ;;  %s1373_s15 = sshll.u32 %s1433_s12, 4  ;;  %s1845_s9 = int_to_ptr.vmem [resolvable:$true] %s959_s9  ;;  %s1374_s15 = int_to_ptr.vmem [resolvable:$false] %s1373_s15 }
  0x20   : > { %1114 = vmatprep.subr.bf16.mxu0 %v1267_v10  ;;  %1192 = vmatprep.subr.bf16.mxu1 %v1301_v36  ;;  %s1369_s14 = scalar_lea.vmem %s1845_s9, 2048  ;;  %s1375_s16 = scalar_lea.vmem %s1374_s15, 4096 }
  0x21   : > { %p1370_p11 = scmp.ne.s32.totalorder %s1845_s9, %s1369_s14  ;;  %p1376_p0 = scmp.lt.s32.totalorder %s1845_s9, %s1374_s15 }
  0x22   : > { %p1377_p1 = scmp.lt.s32.totalorder %s1375_s16, %s1369_s14 }
  0x23   : > { %1115 = vmatpush3.bf16.msra.mxu0 %v1268_v12  ;;  %1193 = vmatpush3.bf16.msra.mxu1 %v1301_v36  ;;  %p1371_p12 = pnand %p1370_p11, %p1504_p5 }
  0x24   : > { %1116 = vmatprep.subr.bf16.mxu0 %v1269_v13  ;;  %1194 = vmatprep.subr.bf16.mxu1 %v1302_v37  ;;  %p1378_p2 = por %p1377_p1, %p1376_p0 }
  0x25   : > { %p1372_p13 = pneg %p1371_p12 }
  0x27   : > { %1117 = vmatpush3.bf16.msra.mxu0 %v1270_v14  ;;  %1195 = vmatpush3.bf16.msra.mxu1 %v1302_v37  ;;  %p1379_p3 = pnand %p1378_p2, %p1372_p13 }
  0x28   : > { %1118 = vmatprep.subr.bf16.mxu0 %v1271_v15  ;;  %1196 = vmatprep.subr.bf16.mxu1 %v1303_v38 }
  0x2b   : > { %1119 = vmatpush3.bf16.msra.mxu0 %v1272_v16  ;;  %1197 = vmatpush3.bf16.msra.mxu1 %v1303_v38 }
  0x2c   : > { %1198 = vmatprep.subr.bf16.mxu1 %v1304_v39 }
  0x2e   : > { %501 = vmatmul.mubr.bf16.vlgmr.msra.gmra.mrb[0].mxu0 %v1273_v18 }
  0x2f   : > { %508 = vmatprep.mubr.bf16.mxu0 %v1276_v20  ;;  %1199 = vmatpush3.bf16.msra.mxu1 %v1304_v39 }
  0x36   : > { %509 = vmatmul.mubr.bf16.gmra.mrb[4].mxu0 %v1278_v23 }
  0x37   : > { %516 = vmatprep.mubr.bf16.mxu0 %v1279_v24 }
  0x3e   : > { %517 = vmatmul.mubr.bf16.gmra.mrb[8].mxu0 %v1281_v25 }
  0x3f   : > { %524 = vmatprep.mubr.bf16.mxu0 %v1282_v26 }
  0x46   : > { %525 = vmatmul.mubr.bf16.gmra.mrb[12].mxu0 %v1284_v27 }
  0x47   : > { %532 = vmatprep.mubr.bf16.mxu0 %v1285_v28 }
  0x4e   : > { %533 = vmatmul.mubr.bf16.gmra.mrb[16].mxu0 %v1287_v29 }
  0x4f   : > { %540 = vmatprep.mubr.bf16.mxu0 %v1288_v30 }
  0x56   : > { %541 = vmatmul.mubr.bf16.gmra.mrb[20].mxu0 %v1290_v31 }
  0x57   : > { %548 = vmatprep.mubr.bf16.mxu0 %v1291_v32  ;;  %v741_v32 = vlaneseq }
  0x5e   : > { %549 = vmatmul.mubr.bf16.gmra.mrb[24].mxu0 %v1293_v33  ;;  %v1613_v33 = vand.u32 127, %v741_v32 }
  0x5f   : > { %556 = vmatprep.mubr.bf16.mxu0 %v1294_v34  ;;  %v1618_v34 = vld [vmem:[%s1896_s3] ss:$0 sm:$0xff] }
  0x60   : > { %vm743_vm0 = vcmp.lt.s32.totalorder %v1613_v33, 10 }
  0x66   : > { %557 = vmatmul.mubr.bf16.gmra.mrb[28].mxu0 %v1296_v35 }
 0x101   : > { %v1120_v40 = vpop.f32.mrb[0].mxu0 }
 0x102   : > { %v1121_v41 = vpop.f32.mrb[1].mxu0 }
 0x103   : > { %v1122_v42 = vadd.f32 %v1121_v41, %v1120_v40  ;;  %v1123_v43 = vpop.f32.mrb[2].mxu0 }
 0x104   : > { %v1124_v44 = vpop.f32.mrb[3].mxu0 }
 0x105   : > { %v1125_v45 = vadd.f32 %v1124_v44, %v1123_v43 }
 0x107   : > { %v565_v46 = vpack.c.bf16 %v1125_v45, %v1122_v42 }
 0x109   : > { %v1126_v47 = vpop.f32.mrb[4].mxu0  ;;  %1200 = vmatprep.mubr.bf16.mxu1 %v565_v46 }
 0x10a   : > { %v1127_v48 = vpop.f32.mrb[5].mxu0 }
 0x10b   : > { %v1128_v49 = vadd.f32 %v1127_v48, %v1126_v47  ;;  %v1129_v50 = vpop.f32.mrb[6].mxu0 }
 0x10c   : > { %v1130_v51 = vpop.f32.mrb[7].mxu0 }
 0x10d   : > { %v1131_v52 = vadd.f32 %v1130_v51, %v1129_v50 }
 0x10f   : > { %v566_v53 = vpack.c.bf16 %v1131_v52, %v1128_v49 }
 0x111   : > { %v1132_v54 = vpop.f32.mrb[8].mxu0  ;;  %1201 = vmatmul.mubr.bf16.vlgmr.msra.gmra.mrb[0].mxu1 %v566_v53 }
 0x112   : > { %v1133_v55 = vpop.f32.mrb[9].mxu0 }
 0x113   : > { %v1134_v56 = vadd.f32 %v1133_v55, %v1132_v54  ;;  %v1135_v57 = vpop.f32.mrb[10].mxu0 }
 0x114   : > { %v1136_v58 = vpop.f32.mrb[11].mxu0 }
 0x115   : > { %v1137_v59 = vadd.f32 %v1136_v58, %v1135_v57 }
 0x117   : > { %v567_v60 = vpack.c.bf16 %v1137_v59, %v1134_v56 }
 0x119   : > { %v1138_v61 = vpop.f32.mrb[12].mxu0  ;;  %1204 = vmatprep.mubr.bf16.mxu1 %v567_v60 }
 0x11a   : > { %v1139_v62 = vpop.f32.mrb[13].mxu0 }
 0x11b   : > { %v1140_v63 = vadd.f32 %v1139_v62, %v1138_v61  ;;  %v1141_v0 = vpop.f32.mrb[14].mxu0 }
 0x11c   : > { %v1142_v1 = vpop.f32.mrb[15].mxu0 }
 0x11d   : > { %v1143_v2 = vadd.f32 %v1142_v1, %v1141_v0 }
 0x11f   : > { %v568_v3 = vpack.c.bf16 %v1143_v2, %v1140_v63 }
 0x121   : > { %v1144_v4 = vpop.f32.mrb[16].mxu0  ;;  %1205 = vmatmul.mubr.bf16.gmra.mrb[4].mxu1 %v568_v3 }
 0x122   : > { %v1145_v5 = vpop.f32.mrb[17].mxu0 }
 0x123   : > { %v1146_v6 = vadd.f32 %v1145_v5, %v1144_v4  ;;  %v1147_v7 = vpop.f32.mrb[18].mxu0 }
 0x124   : > { %v1148_v8 = vpop.f32.mrb[19].mxu0 }
 0x125   : > { %v1149_v9 = vadd.f32 %v1148_v8, %v1147_v7 }
 0x127   : > { %v569_v10 = vpack.c.bf16 %v1149_v9, %v1146_v6 }
 0x129   : > { %v1150_v11 = vpop.f32.mrb[20].mxu0  ;;  %1208 = vmatprep.mubr.bf16.mxu1 %v569_v10 }
 0x12a   : > { %v1151_v12 = vpop.f32.mrb[21].mxu0 }
 0x12b   : > { %v1152_v13 = vadd.f32 %v1151_v12, %v1150_v11  ;;  %v1153_v14 = vpop.f32.mrb[22].mxu0 }
 0x12c   : > { %v1154_v15 = vpop.f32.mrb[23].mxu0 }
 0x12d   : > { %v1155_v16 = vadd.f32 %v1154_v15, %v1153_v14 }
 0x12f   : > { %v570_v17 = vpack.c.bf16 %v1155_v16, %v1152_v13 }
 0x131   : > { %v1156_v18 = vpop.f32.mrb[24].mxu0  ;;  %1209 = vmatmul.mubr.bf16.gmra.mrb[8].mxu1 %v570_v17 }
 0x132   : > { %v1157_v19 = vpop.f32.mrb[25].mxu0 }
 0x133   : > { %v1158_v20 = vadd.f32 %v1157_v19, %v1156_v18  ;;  %v1159_v21 = vpop.f32.mrb[26].mxu0 }
 0x134   : > { %v1160_v22 = vpop.f32.mrb[27].mxu0 }
 0x135   : > { %v1161_v23 = vadd.f32 %v1160_v22, %v1159_v21 }
 0x137   : > { %v571_v24 = vpack.c.bf16 %v1161_v23, %v1158_v20 }
 0x139   : > { %v1162_v25 = vpop.f32.mrb[28].mxu0  ;;  %1212 = vmatprep.mubr.bf16.mxu1 %v571_v24 }
 0x13a   : > { %v1163_v26 = vpop.f32.mrb[29].mxu0 }
 0x13b   : > { %v1164_v27 = vadd.f32 %v1163_v26, %v1162_v25  ;;  %v1165_v28 = vpop.f32.mrb[30].mxu0 }
 0x13c   : > { %v1166_v29 = vpop.f32.mrb[31].mxu0 }
 0x13d   : > { %v1167_v30 = vadd.f32 %v1166_v29, %v1165_v28 }
 0x13f   : > { %v572_v31 = vpack.c.bf16 %v1167_v30, %v1164_v27 }
 0x141   : > { %1213 = vmatmul.mubr.bf16.gmra.mrb[12].mxu1 %v572_v31 }
 0x1e4   : > { %v1202_v35 = vpop.f32.mrb[0].mxu1 }
 0x1e5   : > { %v687_v36 = vadd.f32 %v1202_v35, %v1618_v34  ;;  %v678_v37 = vpop.f32.mrb[1].mxu1 }
 0x1e6   : > { %v679_v38 = vadd.f32 %v1618_v34, %v678_v37  ;;  %v1203_v39 = vpop.f32.mrb[2].mxu1 }
 0x1e7   : > { %746 = vst [vmem:[%s1625_s26 + $0x10] sm:$0xff] %v687_v36  ;;  %v690_v40 = vadd.f32 %v1203_v39, %v1618_v34  ;;  %v681_v41 = vpop.f32.mrb[3].mxu1  ;;  %v1634_v42 = vsel %vm743_vm0, %v687_v36, -1e+30 }
 0x1e8   : > { %744 = vst [vmem:[%s1625_s26] sm:$0xff] %v679_v38  ;;  %v682_v43 = vadd.f32 %v1618_v34, %v681_v41  ;;  %780 = vmax.xlane.f32.xlu1 %v1634_v42  ;;  %v1641_v44 = vsel %vm743_vm0, %v679_v38, -1e+30 }
 0x1e9   : > { %747 = vst [vmem:[%s1625_s26 + $0x18] sm:$0xff] %v690_v40  ;;  %776 = vmax.xlane.f32.xlu0 %v1641_v44  ;;  %v1648_v45 = vsel %vm743_vm0, %v690_v40, -1e+30 }
 0x1ea   : > { %745 = vst [vmem:[%s1625_s26 + $0x8] sm:$0xff] %v682_v43  ;;  %v1653_v46 = vsel %vm743_vm0, %v682_v43, -1e+30 }
 0x1ec   : > { %782 = vmax.xlane.f32.xlu1 %v1648_v45 }
 0x1ed   : > { %778 = vmax.xlane.f32.xlu0 %v1653_v46 }
 0x1f4   : > { %v1206_v47 = vpop.f32.mrb[4].mxu1 }
 0x1f5   : > { %v703_v48 = vadd.f32 %v1206_v47, %v1618_v34  ;;  %v694_v49 = vpop.f32.mrb[5].mxu1 }
 0x1f6   : > { %v695_v50 = vadd.f32 %v1618_v34, %v694_v49  ;;  %v1207_v51 = vpop.f32.mrb[6].mxu1 }
 0x1f7   : > { %750 = vst [vmem:[%s1625_s26 + $0x30] sm:$0xff] %v703_v48  ;;  %v706_v52 = vadd.f32 %v1207_v51, %v1618_v34  ;;  %v697_v53 = vpop.f32.mrb[7].mxu1  ;;  %v1662_v54 = vsel %vm743_vm0, %v703_v48, -1e+30 }
 0x1f8   : > { %748 = vst [vmem:[%s1625_s26 + $0x20] sm:$0xff] %v695_v50  ;;  %v698_v55 = vadd.f32 %v1618_v34, %v697_v53  ;;  %788 = vmax.xlane.f32.xlu0 %v1662_v54  ;;  %v1676_v57 = vsel %vm743_vm0, %v695_v50, -1e+30 }
 0x1f9   : > { %751 = vst [vmem:[%s1625_s26 + $0x38] sm:$0xff] %v706_v52  ;;  %v1670_v56 = vsel %vm743_vm0, %v706_v52, -1e+30 }
 0x1fa   : > { %749 = vst [vmem:[%s1625_s26 + $0x28] sm:$0xff] %v698_v55  ;;  %790 = vmax.xlane.f32.xlu1 %v1670_v56  ;;  %v1681_v58 = vsel %vm743_vm0, %v698_v55, -1e+30 }
 0x1fc   : > { %784 = vmax.xlane.f32.xlu0 %v1676_v57 }
 0x1fe   : > { %786 = vmax.xlane.f32.xlu1 %v1681_v58 }
 0x204   : > { %v1210_v59 = vpop.f32.mrb[8].mxu1 }
 0x205   : > { %v719_v60 = vadd.f32 %v1210_v59, %v1618_v34  ;;  %v710_v61 = vpop.f32.mrb[9].mxu1 }
 0x206   : > { %v711_v62 = vadd.f32 %v1618_v34, %v710_v61  ;;  %v1211_v63 = vpop.f32.mrb[10].mxu1 }
 0x207   : > { %754 = vst [vmem:[%s1625_s26 + $0x50] sm:$0xff] %v719_v60  ;;  %v722_v0 = vadd.f32 %v1211_v63, %v1618_v34  ;;  %v713_v1 = vpop.f32.mrb[11].mxu1  ;;  %v1690_v2 = vsel %vm743_vm0, %v719_v60, -1e+30 }
 0x208   : > { %752 = vst [vmem:[%s1625_s26 + $0x40] sm:$0xff] %v711_v62  ;;  %v714_v3 = vadd.f32 %v1618_v34, %v713_v1  ;;  %796 = vmax.xlane.f32.xlu0 %v1690_v2  ;;  %v1704_v5 = vsel %vm743_vm0, %v711_v62, -1e+30 }
 0x209   : > { %755 = vst [vmem:[%s1625_s26 + $0x58] sm:$0xff] %v722_v0  ;;  %v1698_v4 = vsel %vm743_vm0, %v722_v0, -1e+30 }
 0x20a   : > { %753 = vst [vmem:[%s1625_s26 + $0x48] sm:$0xff] %v714_v3  ;;  %798 = vmax.xlane.f32.xlu1 %v1698_v4  ;;  %v1709_v6 = vsel %vm743_vm0, %v714_v3, -1e+30 }
 0x20c   : > { %792 = vmax.xlane.f32.xlu0 %v1704_v5 }
 0x20e   : > { %794 = vmax.xlane.f32.xlu1 %v1709_v6 }
 0x214   : > { %v1214_v7 = vpop.f32.mrb[12].mxu1 }
 0x215   : > { %v735_v8 = vadd.f32 %v1214_v7, %v1618_v34  ;;  %v726_v9 = vpop.f32.mrb[13].mxu1 }
 0x216   : > { %v727_v10 = vadd.f32 %v1618_v34, %v726_v9  ;;  %v1215_v11 = vpop.f32.mrb[14].mxu1 }
 0x217   : > { %758 = vst [vmem:[%s1625_s26 + $0x70] sm:$0xff] %v735_v8  ;;  %v738_v12 = vadd.f32 %v1215_v11, %v1618_v34  ;;  %v729_v13 = vpop.f32.mrb[15].mxu1  ;;  %v1732_v17 = vsel %vm743_vm0, %v735_v8, -1e+30 }
 0x218   : > { %756 = vst [vmem:[%s1625_s26 + $0x60] sm:$0xff] %v727_v10  ;;  %v730_v14 = vadd.f32 %v1618_v34, %v729_v13  ;;  %v1720_v15 = vsel %vm743_vm0, %v727_v10, -1e+30 }
 0x219   : > { %759 = vst [vmem:[%s1625_s26 + $0x78] sm:$0xff] %v738_v12  ;;  %800 = vmax.xlane.f32.xlu0 %v1720_v15  ;;  %v1737_v18 = vsel %vm743_vm0, %v738_v12, -1e+30 }
 0x21a   : > { %757 = vst [vmem:[%s1625_s26 + $0x68] sm:$0xff] %v730_v14  ;;  %v1727_v16 = vsel %vm743_vm0, %v730_v14, -1e+30 }
 0x21b   : > { %802 = vmax.xlane.f32.xlu1 %v1727_v16 }
 0x21d   : > { %804 = vmax.xlane.f32.xlu0 %v1732_v17 }
 0x21f   : > { %806 = vmax.xlane.f32.xlu1 %v1737_v18 }
 0x275   : > { %v781_v19 = vpop.xlane.xlu1 %780 }
 0x276   : > { %v810_v20 = vsub.f32 %v1634_v42, %v781_v19  ;;  %v777_v21 = vpop.xlane.xlu0 %776 }
 0x277   : > { %v808_v22 = vsub.f32 %v1641_v44, %v777_v21 }
 0x278   : > { %v828_v23 = vmul.f32 1.442695, %v810_v20 }
 0x279   : > { %v824_v24 = vmul.f32 1.442695, %v808_v22  ;;  %v783_v25 = vpop.xlane.xlu1 %782 }
 0x27a   : > { %1305 = vpow2.f32 %v828_v23  ;;  %v811_v26 = vsub.f32 %v1648_v45, %v783_v25  ;;  %v779_v27 = vpop.xlane.xlu0 %778 }
 0x27b   : > { %v809_v28 = vsub.f32 %v1653_v46, %v779_v27  ;;  %1307 = vpow2.f32 %v824_v24 }
 0x27c   : > { %v830_v29 = vmul.f32 1.442695, %v811_v26 }
 0x27d   : > { %v826_v30 = vmul.f32 1.442695, %v809_v28 }
 0x27e   : > { %1309 = vpow2.f32 %v830_v29 }
 0x27f   : > { %1311 = vpow2.f32 %v826_v30 }
 0x284   : > { %v1744_v31 = vpop.eup %1305 }
 0x285   : > { %860 = vadd.xlane.f32.xlu0 %v1744_v31  ;;  %v789_v32 = vpop.xlane.xlu0 %788  ;;  %v1748_v34 = vpop.eup %1307 }
 0x286   : > { %v814_v33 = vsub.f32 %v1662_v54, %v789_v32 }
 0x287   : > { %v791_v35 = vpop.xlane.xlu1 %790 }
 0x288   : > { %v1750_v36 = vpop.eup %1309  ;;  %v836_v37 = vmul.f32 1.442695, %v814_v33  ;;  %v815_v38 = vsub.f32 %v1670_v56, %v791_v35 }
 0x289   : > { %862 = vadd.xlane.f32.xlu1 %v1750_v36  ;;  %856 = vadd.xlane.f32.xlu0 %v1748_v34  ;;  %v785_v39 = vpop.xlane.xlu0 %784  ;;  %v1756_v43 = vpop.eup %1311 }
 0x28a   : > { %1313 = vpow2.f32 %v836_v37  ;;  %v838_v40 = vmul.f32 1.442695, %v815_v38  ;;  %v812_v41 = vsub.f32 %v1676_v57, %v785_v39 }
 0x28b   : > { %v787_v42 = vpop.xlane.xlu1 %786 }
 0x28c   : > { %1315 = vpow2.f32 %v838_v40  ;;  %v832_v44 = vmul.f32 1.442695, %v812_v41  ;;  %v813_v45 = vsub.f32 %v1681_v58, %v787_v42 }
 0x28d   : > { %858 = vadd.xlane.f32.xlu1 %v1756_v43 }
 0x28e   : > { %1317 = vpow2.f32 %v832_v44  ;;  %v834_v46 = vmul.f32 1.442695, %v813_v45 }
 0x290   : > { %1319 = vpow2.f32 %v834_v46 }
 0x294   : > { %v1760_v47 = vpop.eup %1313 }
 0x295   : > { %868 = vadd.xlane.f32.xlu0 %v1760_v47  ;;  %v797_v48 = vpop.xlane.xlu0 %796 }
 0x296   : > { %v1763_v49 = vpop.eup %1315  ;;  %v818_v50 = vsub.f32 %v1690_v2, %v797_v48 }
 0x297   : > { %v799_v51 = vpop.xlane.xlu1 %798  ;;  %870 = vadd.xlane.f32.xlu1 %v1763_v49 }
 0x298   : > { %v1767_v52 = vpop.eup %1317  ;;  %v844_v53 = vmul.f32 1.442695, %v818_v50  ;;  %v819_v54 = vsub.f32 %v1698_v4, %v799_v51 }
 0x299   : > { %864 = vadd.xlane.f32.xlu0 %v1767_v52  ;;  %v793_v55 = vpop.xlane.xlu0 %792 }
 0x29a   : > { %v1771_v56 = vpop.eup %1319  ;;  %1321 = vpow2.f32 %v844_v53  ;;  %v846_v57 = vmul.f32 1.442695, %v819_v54  ;;  %v816_v58 = vsub.f32 %v1704_v5, %v793_v55 }
 0x29b   : > { %v795_v59 = vpop.xlane.xlu1 %794  ;;  %866 = vadd.xlane.f32.xlu1 %v1771_v56 }
 0x29c   : > { %1323 = vpow2.f32 %v846_v57  ;;  %v840_v60 = vmul.f32 1.442695, %v816_v58  ;;  %v817_v61 = vsub.f32 %v1709_v6, %v795_v59 }
 0x29e   : > { %1325 = vpow2.f32 %v840_v60  ;;  %v842_v62 = vmul.f32 1.442695, %v817_v61 }
 0x2a0   : > { %1327 = vpow2.f32 %v842_v62 }
 0x2a4   : > { %v1776_v63 = vpop.eup %1321 }
 0x2a5   : > { %876 = vadd.xlane.f32.xlu0 %v1776_v63 }
 0x2a6   : > { %v1779_v0 = vpop.eup %1323  ;;  %v801_v1 = vpop.xlane.xlu0 %800 }
 0x2a7   : > { %v820_v2 = vsub.f32 %v1720_v15, %v801_v1  ;;  %878 = vadd.xlane.f32.xlu1 %v1779_v0 }
 0x2a8   : > { %v1783_v3 = vpop.eup %1325  ;;  %v803_v4 = vpop.xlane.xlu1 %802 }
 0x2a9   : > { %v848_v5 = vmul.f32 1.442695, %v820_v2  ;;  %v821_v6 = vsub.f32 %v1727_v16, %v803_v4  ;;  %872 = vadd.xlane.f32.xlu0 %v1783_v3 }
 0x2aa   : > { %v1787_v7 = vpop.eup %1327  ;;  %v805_v8 = vpop.xlane.xlu0 %804 }
 0x2ab   : > { %1329 = vpow2.f32 %v848_v5  ;;  %v850_v9 = vmul.f32 1.442695, %v821_v6  ;;  %v822_v10 = vsub.f32 %v1732_v17, %v805_v8  ;;  %874 = vadd.xlane.f32.xlu1 %v1787_v7 }
 0x2ac   : > { %v807_v11 = vpop.xlane.xlu1 %806 }
 0x2ad   : > { %1331 = vpow2.f32 %v850_v9  ;;  %v852_v12 = vmul.f32 1.442695, %v822_v10  ;;  %v823_v13 = vsub.f32 %v1737_v18, %v807_v11 }
 0x2af   : > { %1333 = vpow2.f32 %v852_v12  ;;  %v854_v14 = vmul.f32 1.442695, %v823_v13 }
 0x2b1   : > { %1335 = vpow2.f32 %v854_v14 }
 0x2b5   : > { %v1792_v15 = vpop.eup %1329 }
 0x2b6   : > { %880 = vadd.xlane.f32.xlu0 %v1792_v15 }
 0x2b7   : > { %v1795_v16 = vpop.eup %1331 }
 0x2b8   : > { %882 = vadd.xlane.f32.xlu1 %v1795_v16 }
 0x2b9   : > { %v1798_v17 = vpop.eup %1333 }
 0x2ba   : > { %884 = vadd.xlane.f32.xlu0 %v1798_v17 }
 0x2bb   : > { %v1801_v19 = vpop.eup %1335 }
 0x2bc   : > { %886 = vadd.xlane.f32.xlu1 %v1801_v19 }
 0x312   : > { %v861_v18 = vpop.xlane.xlu0 %860 }
 0x313   : > { %1337 = vrcp.f32 %v861_v18 }
 0x316   : > { %v863_v20 = vpop.xlane.xlu1 %862  ;;  %v857_v21 = vpop.xlane.xlu0 %856 }
 0x317   : > { %1339 = vrcp.f32 %v863_v20 }
 0x318   : > { %1341 = vrcp.f32 %v857_v21 }
 0x31a   : > { %v859_v22 = vpop.xlane.xlu1 %858 }
 0x31b   : > { %1343 = vrcp.f32 %v859_v22 }
 0x31d   : > { %v1338_v23 = vpop.eup %1337 }
 0x31e   : > { %v906_v24 = vmul.f32 %v1338_v23, %v1744_v31 }
 0x320   : > { %922 = vst [vmem:[%s1808_s30 + $0x10] sm:$0xff] %v906_v24 }
 0x321   : > { %v1340_v25 = vpop.eup %1339 }
 0x322   : > { %v1342_v26 = vpop.eup %1341  ;;  %v907_v27 = vmul.f32 %v1340_v25, %v1750_v36  ;;  %v869_v28 = vpop.xlane.xlu0 %868 }
 0x323   : > { %v904_v29 = vmul.f32 %v1342_v26, %v1748_v34  ;;  %1345 = vrcp.f32 %v869_v28 }
 0x324   : > { %923 = vst [vmem:[%s1808_s30 + $0x18] sm:$0xff] %v907_v27  ;;  %v871_v30 = vpop.xlane.xlu1 %870 }
 0x325   : > { %v1344_v31 = vpop.eup %1343  ;;  %920 = vst [vmem:[%s1808_s30] sm:$0xff] %v904_v29  ;;  %1347 = vrcp.f32 %v871_v30 }
 0x326   : > { %v905_v32 = vmul.f32 %v1344_v31, %v1756_v43  ;;  %v865_v33 = vpop.xlane.xlu0 %864 }
 0x327   : > { %1349 = vrcp.f32 %v865_v33 }
 0x328   : > { %921 = vst [vmem:[%s1808_s30 + $0x8] sm:$0xff] %v905_v32  ;;  %v867_v35 = vpop.xlane.xlu1 %866 }
 0x329   : > { %1351 = vrcp.f32 %v867_v35 }
 0x32d   : > { %v1346_v36 = vpop.eup %1345 }
 0x32e   : > { %v910_v34 = vmul.f32 %v1346_v36, %v1760_v47 }
 0x32f   : > { %v1348_v37 = vpop.eup %1347 }
 0x330   : > { %926 = vst [vmem:[%s1808_s30 + $0x30] sm:$0xff] %v910_v34  ;;  %v911_v38 = vmul.f32 %v1348_v37, %v1763_v49 }
 0x331   : > { %v1350_v39 = vpop.eup %1349 }
 0x332   : > { %927 = vst [vmem:[%s1808_s30 + $0x38] sm:$0xff] %v911_v38  ;;  %v908_v40 = vmul.f32 %v1350_v39, %v1767_v52  ;;  %v877_v41 = vpop.xlane.xlu0 %876 }
 0x333   : > { %v1352_v42 = vpop.eup %1351  ;;  %1353 = vrcp.f32 %v877_v41 }
 0x334   : > { %924 = vst [vmem:[%s1808_s30 + $0x20] sm:$0xff] %v908_v40  ;;  %v909_v43 = vmul.f32 %v1352_v42, %v1771_v56  ;;  %v879_v44 = vpop.xlane.xlu1 %878 }
 0x335   : > { %1355 = vrcp.f32 %v879_v44 }
 0x336   : > { %925 = vst [vmem:[%s1808_s30 + $0x28] sm:$0xff] %v909_v43  ;;  %v873_v45 = vpop.xlane.xlu0 %872 }
 0x337   : > { %1357 = vrcp.f32 %v873_v45 }
 0x338   : > { %v875_v46 = vpop.xlane.xlu1 %874 }
 0x339   : > { %1359 = vrcp.f32 %v875_v46 }
 0x33d   : > { %v1354_v47 = vpop.eup %1353 }
 0x33e   : > { %v914_v48 = vmul.f32 %v1354_v47, %v1776_v63 }
 0x33f   : > { %v1356_v49 = vpop.eup %1355 }
 0x340   : > { %930 = vst [vmem:[%s1808_s30 + $0x50] sm:$0xff] %v914_v48  ;;  %v915_v50 = vmul.f32 %v1356_v49, %v1779_v0 }
 0x341   : > { %v1358_v51 = vpop.eup %1357 }
 0x342   : > { %931 = vst [vmem:[%s1808_s30 + $0x58] sm:$0xff] %v915_v50  ;;  %v912_v52 = vmul.f32 %v1358_v51, %v1783_v3 }
 0x343   : > { %v1360_v53 = vpop.eup %1359  ;;  %v881_v54 = vpop.xlane.xlu0 %880 }
 0x344   : > { %928 = vst [vmem:[%s1808_s30 + $0x40] sm:$0xff] %v912_v52  ;;  %v913_v55 = vmul.f32 %v1360_v53, %v1787_v7  ;;  %1361 = vrcp.f32 %v881_v54 }
 0x345   : > { %v883_v56 = vpop.xlane.xlu1 %882 }
 0x346   : > { %929 = vst [vmem:[%s1808_s30 + $0x48] sm:$0xff] %v913_v55  ;;  %1363 = vrcp.f32 %v883_v56 }
 0x347   : > { %v885_v57 = vpop.xlane.xlu0 %884 }
 0x348   : > { %1365 = vrcp.f32 %v885_v57 }
 0x349   : > { %v887_v58 = vpop.xlane.xlu1 %886 }
 0x34a   : > { %1367 = vrcp.f32 %v887_v58 }
 0x34e   : > { %v1362_v59 = vpop.eup %1361 }
 0x34f   : > { %v916_v60 = vmul.f32 %v1362_v59, %v1792_v15 }
 0x350   : > { %v1364_v61 = vpop.eup %1363 }
 0x351   : > { %932 = vst [vmem:[%s1808_s30 + $0x60] sm:$0xff] %v916_v60  ;;  %v917_v62 = vmul.f32 %v1364_v61, %v1795_v16 }
 0x352   : > { %v1366_v63 = vpop.eup %1365 }
 0x353   : > { %933 = vst [vmem:[%s1808_s30 + $0x68] sm:$0xff] %v917_v62  ;;  %v918_v0 = vmul.f32 %v1366_v63, %v1798_v17 }
 0x354   : > { %v1368_v1 = vpop.eup %1367 }
 0x355   : > { %934 = vst [vmem:[%s1808_s30 + $0x70] sm:$0xff] %v918_v0  ;;  %v919_v2 = vmul.f32 %v1368_v1, %v1801_v19 }
 0x357   : > { %935 = vst [vmem:[%s1808_s30 + $0x78] sm:$0xff] %v919_v2 }
 0x358   : > { %1382 = shalt.err (!%p1379_p3)
}
 0x359   : > { %s1383_s17 = scalar_lea.hbm %s1843_s13, 2048  ;;  %s1387_s26 = scalar_lea.hbm %s1898_s5, 4096 }
 0x35a   : > { %p1384_p4 = scmp.ne.s32.totalorder %s1843_s13, %s1383_s17  ;;  %p1388_p9 = scmp.lt.u32.totalorder %s1843_s13, %s1898_s5 }
 0x35b   : > { %p1389_p10 = scmp.lt.u32.totalorder %s1387_s26, %s1383_s17  ;;  %p1391_p12 = scmp.lt.u32.totalorder %s1383_s17, %s1843_s13 }
 0x35c   : > { %p1385_p7 = pnand %p1384_p4, %p1504_p5 }
 0x35d   : > { %p1390_p11 = por %p1389_p10, %p1388_p9 }
 0x35e   : > { %p1386_p8 = pneg %p1385_p7 }
 0x35f   : > { %p1392_p13 = por %p1391_p12, %p1390_p11 }
 0x361   : > { %p1393_p0 = pnand %p1392_p13, %p1386_p8 }
 0x363   : > { %1396 = shalt.err (!%p1393_p0)
}
 0x364   : > { %s1434_s30 = smov 128   ;;  %s1435_s8 = smov 8  }
 0x365   : > { %1216 = dma.vmem_to_hbm [thread:$0]  (%p1504_p5), %s1845_s9, 2048, %s1843_s13, %s1852_s22, %s1434_s30, %s1434_s30, %s1435_s8  }
 0x366 PF: > { %p1222_p1 = scmp.ge.s32.totalorder %s1431_s21, 2  ;;  %s982_s10 = sand.u32 1, %s1419_s18  }
 0x367   : > { %s983_s11 = scalar_lea.sflag [#allocation3], %s982_s10 }
 0x368   : > { %p1219_p2 = pnand %p1222_p1, %p1508_p6 }
 0x36a   : > { %1414 = dma.done.wait (!%p1219_p2), %s983_s11, 2048  }
 0x36b   : > { %1416 = vsyncadd (!%p1219_p2), %s983_s11, 4294965248  ;;  %p16_p3 = scmp.ge.s32.totalorder %s1491_s24, 4   ;;  %s1901_s18 = smov %s1423_s19 }
 0x36c   : > { %s1902_s19 = smov %s1427_s20  ;;  %s1903_s20 = smov %s1502_s27 }
 0x36d   : > { %s1904_s21 = smov %s1491_s24  ;;  %18 = sbr.rel (!%p16_p3) target bundleno = 3 (0x3), region = 83 }
 0x374   :  { %988 = vsyncpa [#allocation3], 1 }
 0x375   :  { %990 = vsyncpa [#allocation3 + $0x1], 1 }

</bundles_post_ra>
